<compile_context>
chip_gen: v7x
topology: tpu7x:2x2x1
jax: 0.10.0
libtpu: 0.0.40
codegen_flags: <defaults>
</compile_context>

<pallas_src>
import jax
import jax.numpy as jnp
from jax.experimental import pallas as pl
from jax.experimental.pallas import tpu as pltpu


# -----------------------------------------------------------------------------
# Host-side (XLA) construction of the per-layer operator matrices.
# -----------------------------------------------------------------------------
def _row_tap_selectors(Hin, dtype):
    """A[dy, Y, r] = 1 iff upsampled-row tap (Y + dy - 1) maps to input row r (0 at pads)."""
    Ho = 2 * Hin
    Y = jnp.arange(Ho)[:, None]
    r = jnp.arange(Hin)[None, :]
    y = Y // 2
    even = (Y % 2) == 0
    a0 = jnp.where(even, r == (y - 1), r == y)   # dy = 0  -> row (Y-1)//2 (pad at top)
    a1 = (r == y)                                # dy = 1  -> row Y//2
    a2 = jnp.where(even, r == y, r == (y + 1))   # dy = 2  -> row (Y+1)//2 (pad at bottom)
    return jnp.stack([a0, a1, a2], axis=0).astype(dtype)          # (3, Ho, Hin)


def _build_row_channel_mats(w, Hin):
    """Lstack (3*Cout*Ho, Cin*Hin): per-dx blocks of the fused (channel-mix x row-tap x
    2x row-upsample) operator acting on the flattened (Cin*Hin, Win) activation."""
    Cout, Cin = w.shape[0], w.shape[1]
    Ho = 2 * Hin
    A = _row_tap_selectors(Hin, w.dtype)                          # (3, Ho, Hin), dy-major
    blocks = []
    for dx in range(3):
        # L_dx[co, Y, ci, r] = sum_dy w[co, ci, dy, dx] * A[dy, Y, r]
        L = jnp.einsum("oid,dYr->oYir", w[:, :, :, dx], A)
        blocks.append(L.reshape(Cout * Ho, Cin * Hin))
    return jnp.concatenate(blocks, axis=0)                        # (3*Cout*Ho, Cin*Hin)


def _build_col_mats(Win, dtype):
    """U (3, Win, 2*Win): 2x nearest column upsample combined with tap shift dx and pad."""
    Wo = 2 * Win
    X = jnp.arange(Wo)[None, :]
    k = jnp.arange(Win)[:, None]
    mats = []
    for dx in range(3):
        src = X + (dx - 1)
        m = ((src >= 0) & (src < Wo) & ((src // 2) == k)).astype(dtype)
        mats.append(m)
    return jnp.stack(mats, axis=0)                                # (3, Win, Wo)


def _build_bias_rows(b, Ho):
    """(Cout*Ho, 1) bias, one value per flattened output row."""
    return jnp.broadcast_to(b[:, None], (b.shape[0], Ho)).reshape(-1, 1)


# -----------------------------------------------------------------------------
# Fused 4-layer decoder kernel.  One grid step = one batch element; everything
# (weights, column matrices, intermediate activations) lives in VMEM.
#   refs = (x_ref, L1,U1,b1, L2,U2,b2, L3,U3,b3, L4,U4,b4, o_ref)
#   x_ref : (1, Cin*Hin, Win)   flattened NCHW input for this batch element
#   L_ref : (3*Cout*Ho, Cin*Hin)
#   U_ref : (3, Win, 2*Win)
#   b_ref : (Cout*Ho, 1)
#   o_ref : (1, Cout4*Ho4, Wo4) flattened output
# -----------------------------------------------------------------------------
def _decoder_kernel(*refs):
    x_ref = refs[0]
    o_ref = refs[-1]
    layer_refs = refs[1:-1]

    a = x_ref[0]                                                  # (Cin*Hin, Win)
    for idx in range(0, len(layer_refs), 3):
        L_ref, U_ref, b_ref = layer_refs[idx], layer_refs[idx + 1], layer_refs[idx + 2]
        M = L_ref.shape[0] // 3                                   # Cout*Ho of this layer

        # Row taps + 2x row upsample + channel contraction, all three dx blocks at once.
        t = jnp.dot(L_ref[...], a, preferred_element_type=jnp.float32)   # (3*M, Win)

        # Column taps + 2x column upsample (one movement matmul per dx).
        out = jnp.dot(t[0:M], U_ref[0], preferred_element_type=jnp.float32)
        out = out + jnp.dot(t[M:2 * M], U_ref[1], preferred_element_type=jnp.float32)
        out = out + jnp.dot(t[2 * M:3 * M], U_ref[2], preferred_element_type=jnp.float32)

        a = jnp.maximum(out + b_ref[...], 0.0)                    # (Cout*Ho, Wo)

    o_ref[0] = a.astype(o_ref.dtype)


def decoder_forward_pallas(x_nchw, params):
    """Fused Decoder.forward: 4x (2x nearest upsample -> conv3x3 pad1 -> bias -> ReLU)."""
    N, C, H, W = x_nchw.shape

    inputs = [x_nchw.reshape(N, C * H, W).astype(jnp.float32)]
    in_specs = [pl.BlockSpec((1, C * H, W), lambda n: (n, 0, 0))]

    c, h, w_ = C, H, W
    for (wgt, b) in params:
        cout = wgt.shape[0]
        L = _build_row_channel_mats(wgt.astype(jnp.float32), h)   # (3*cout*2h, c*h)
        U = _build_col_mats(w_, jnp.float32)                      # (3, w, 2w)
        brow = _build_bias_rows(b.astype(jnp.float32), 2 * h)     # (cout*2h, 1)
        inputs += [L, U, brow]
        in_specs += [
            pl.BlockSpec((3 * cout * 2 * h, c * h), lambda n: (0, 0)),
            pl.BlockSpec((3, w_, 2 * w_), lambda n: (0, 0, 0)),
            pl.BlockSpec((cout * 2 * h, 1), lambda n: (0, 0)),
        ]
        c, h, w_ = cout, 2 * h, 2 * w_

    out_flat = pl.pallas_call(
        _decoder_kernel,
        out_shape=jax.ShapeDtypeStruct((N, c * h, w_), jnp.float32),
        grid_spec=pltpu.PrefetchScalarGridSpec(
            num_scalar_prefetch=0,
            grid=(N,),
            in_specs=in_specs,
            out_specs=pl.BlockSpec((1, c * h, w_), lambda n: (n, 0, 0)),
        ),
        compiler_params=pltpu.CompilerParams(
            dimension_semantics=("parallel",),      # N images -> v7x megacore sharding
            vmem_limit_bytes=32 * 1024 * 1024,      # explicit budget; usage is a few MiB
        ),
    )(*inputs)

    return out_flat.reshape(N, c, h, w_)


def init_decoder_params(in_channels, key):
    """Deterministic parameters for 4 decoder layers (channels halve each layer), OIHW."""
    params = []
    c = in_channels
    for _ in range(4):
        c_out = max(c // 2, 1)
        kw, kb, key = jax.random.split(key, 3)
        fan_in = 3 * 3 * c
        w = jax.random.normal(kw, (c_out, c, 3, 3), jnp.float32) * (2.0 / fan_in) ** 0.5
        b = jax.random.normal(kb, (c_out,), jnp.float32) * 0.01
        params.append((w, b))
        c = c_out
    return params


@jax.jit
def decoder_forward(x_nchw, params):
    """Matches Decoder.forward: x = layer1(x); x = layer2(x); x = layer3(x); x = layer4(x)."""
    return decoder_forward_pallas(x_nchw, params)


def _reference_forward(x, params):
    """Pure-JAX reference (upsample -> conv3x3 pad1 -> bias -> ReLU per layer)."""
    for (w, b) in params:
        u = jnp.repeat(jnp.repeat(x, 2, axis=2), 2, axis=3)
        y = jax.lax.conv_general_dilated(
            u, w, window_strides=(1, 1), padding=((1, 1), (1, 1)),
            dimension_numbers=("NCHW", "OIHW", "NCHW"),
            precision=jax.lax.Precision.HIGHEST)
        x = jnp.maximum(y + b[None, :, None, None], 0.0)
    return x


if __name__ == "__main__":
    key = jax.random.PRNGKey(0)
    kx, kp = jax.random.split(key)

    # Small decoder entry point: N=2, C=16, H=W=16 (NCHW).
    x = jax.random.normal(kx, (2, 16, 16, 16), jnp.float32)
    params = init_decoder_params(in_channels=16, key=kp)

    y = decoder_forward(x, params)
    jax.block_until_ready(y)

    # After 4 upsample+conv blocks: (2, 1, 256, 256)
    assert y.shape == (2, 1, 256, 256), y.shape
    assert bool(jnp.all(jnp.isfinite(y)))

    # Numerical check against a pure-JAX reference of the same module semantics.
    y_ref = _reference_forward(x, params)
    denom = jnp.maximum(jnp.max(jnp.abs(y_ref)), 1e-3)
    err = float(jnp.max(jnp.abs(y - y_ref)) / denom)
    assert err < 1e-3, err

    print("KERNEL_OK")
</pallas_src>

<mosaic_0001>
module attributes {stable_mosaic.version = 11 : i64} {
  func.func @_decoder_kernel(%arg0: i32, %arg1: memref<1x256x16xf32, #tpu.memory_space<vmem>>, %arg2: memref<768x256xf32, #tpu.memory_space<vmem>>, %arg3: memref<3x16x32xf32, #tpu.memory_space<vmem>>, %arg4: memref<256x1xf32, #tpu.memory_space<vmem>>, %arg5: memref<768x256xf32, #tpu.memory_space<vmem>>, %arg6: memref<3x32x64xf32, #tpu.memory_space<vmem>>, %arg7: memref<256x1xf32, #tpu.memory_space<vmem>>, %arg8: memref<768x256xf32, #tpu.memory_space<vmem>>, %arg9: memref<3x64x128xf32, #tpu.memory_space<vmem>>, %arg10: memref<256x1xf32, #tpu.memory_space<vmem>>, %arg11: memref<768x256xf32, #tpu.memory_space<vmem>>, %arg12: memref<3x128x256xf32, #tpu.memory_space<vmem>>, %arg13: memref<256x1xf32, #tpu.memory_space<vmem>>, %arg14: memref<1x256x256xf32, #tpu.memory_space<vmem>>) attributes {dimension_semantics = [#tpu.dimension_semantics<parallel>], iteration_bounds = array<i64: 2>, scalar_prefetch = 0 : i64, scratch_operands = 0 : i64, tpu.core_type = #tpu.core_type<tc>, window_params = [{transform_indices = @transform_0, window_bounds = array<i64: 1, 256, 16>}, {pipeline_mode = #tpu.pipeline_mode<synchronous>, transform_indices = @transform_1, window_bounds = array<i64: 768, 256>}, {pipeline_mode = #tpu.pipeline_mode<synchronous>, transform_indices = @transform_2, window_bounds = array<i64: 3, 16, 32>}, {pipeline_mode = #tpu.pipeline_mode<synchronous>, transform_indices = @transform_3, window_bounds = array<i64: 256, 1>}, {pipeline_mode = #tpu.pipeline_mode<synchronous>, transform_indices = @transform_4, window_bounds = array<i64: 768, 256>}, {pipeline_mode = #tpu.pipeline_mode<synchronous>, transform_indices = @transform_5, window_bounds = array<i64: 3, 32, 64>}, {pipeline_mode = #tpu.pipeline_mode<synchronous>, transform_indices = @transform_6, window_bounds = array<i64: 256, 1>}, {pipeline_mode = #tpu.pipeline_mode<synchronous>, transform_indices = @transform_7, window_bounds = array<i64: 768, 256>}, {pipeline_mode = #tpu.pipeline_mode<synchronous>, transform_indices = @transform_8, window_bounds = array<i64: 3, 64, 128>}, {pipeline_mode = #tpu.pipeline_mode<synchronous>, transform_indices = @transform_9, window_bounds = array<i64: 256, 1>}, {pipeline_mode = #tpu.pipeline_mode<synchronous>, transform_indices = @transform_10, window_bounds = array<i64: 768, 256>}, {pipeline_mode = #tpu.pipeline_mode<synchronous>, transform_indices = @transform_11, window_bounds = array<i64: 3, 128, 256>}, {pipeline_mode = #tpu.pipeline_mode<synchronous>, transform_indices = @transform_12, window_bounds = array<i64: 256, 1>}, {transform_indices = @transform_13, window_bounds = array<i64: 1, 256, 256>}]} {
    %c0 = arith.constant 0 : index
    %c0_0 = arith.constant 0 : index
    %c0_1 = arith.constant 0 : index
    %0 = vector.load %arg1[%c0, %c0_0, %c0_1] : memref<1x256x16xf32, #tpu.memory_space<vmem>>, vector<1x256x16xf32>
    %1 = vector.shape_cast %0 : vector<1x256x16xf32> to vector<256x16xf32>
    %c0_2 = arith.constant 0 : index
    %c0_3 = arith.constant 0 : index
    %2 = vector.load %arg2[%c0_2, %c0_3] : memref<768x256xf32, #tpu.memory_space<vmem>>, vector<768x256xf32>
    %cst = arith.constant dense<0.000000e+00> : vector<768x16xf32>
    %3 = tpu.matmul %2, %1, %cst {dimension_numbers = #tpu.dot_dimension_numbers<[1], [0], [0], [1], [0, 0, 1, 1], [], []>} : vector<768x256xf32>, vector<256x16xf32>, vector<768x16xf32> -> vector<768x16xf32>
    %4 = vector.extract_strided_slice %3 {offsets = [0, 0], sizes = [256, 16], strides = [1, 1]} : vector<768x16xf32> to vector<256x16xf32>
    %c0_4 = arith.constant 0 : index
    %c0_5 = arith.constant 0 : index
    %c0_6 = arith.constant 0 : index
    %5 = vector.load %arg3[%c0_4, %c0_5, %c0_6] : memref<3x16x32xf32, #tpu.memory_space<vmem>>, vector<1x16x32xf32>
    %6 = vector.shape_cast %5 : vector<1x16x32xf32> to vector<16x32xf32>
    %cst_7 = arith.constant dense<0.000000e+00> : vector<256x32xf32>
    %7 = tpu.matmul %4, %6, %cst_7 {dimension_numbers = #tpu.dot_dimension_numbers<[1], [0], [0], [1], [0, 0, 1, 1], [], []>} : vector<256x16xf32>, vector<16x32xf32>, vector<256x32xf32> -> vector<256x32xf32>
    %8 = vector.extract_strided_slice %3 {offsets = [256, 0], sizes = [256, 16], strides = [1, 1]} : vector<768x16xf32> to vector<256x16xf32>
    %c1 = arith.constant 1 : index
    %c0_8 = arith.constant 0 : index
    %c0_9 = arith.constant 0 : index
    %9 = vector.load %arg3[%c1, %c0_8, %c0_9] : memref<3x16x32xf32, #tpu.memory_space<vmem>>, vector<1x16x32xf32>
    %10 = vector.shape_cast %9 : vector<1x16x32xf32> to vector<16x32xf32>
    %cst_10 = arith.constant dense<0.000000e+00> : vector<256x32xf32>
    %11 = tpu.matmul %8, %10, %cst_10 {dimension_numbers = #tpu.dot_dimension_numbers<[1], [0], [0], [1], [0, 0, 1, 1], [], []>} : vector<256x16xf32>, vector<16x32xf32>, vector<256x32xf32> -> vector<256x32xf32>
    %12 = arith.addf %7, %11 : vector<256x32xf32>
    %13 = vector.extract_strided_slice %3 {offsets = [512, 0], sizes = [256, 16], strides = [1, 1]} : vector<768x16xf32> to vector<256x16xf32>
    %c2 = arith.constant 2 : index
    %c0_11 = arith.constant 0 : index
    %c0_12 = arith.constant 0 : index
    %14 = vector.load %arg3[%c2, %c0_11, %c0_12] : memref<3x16x32xf32, #tpu.memory_space<vmem>>, vector<1x16x32xf32>
    %15 = vector.shape_cast %14 : vector<1x16x32xf32> to vector<16x32xf32>
    %cst_13 = arith.constant dense<0.000000e+00> : vector<256x32xf32>
    %16 = tpu.matmul %13, %15, %cst_13 {dimension_numbers = #tpu.dot_dimension_numbers<[1], [0], [0], [1], [0, 0, 1, 1], [], []>} : vector<256x16xf32>, vector<16x32xf32>, vector<256x32xf32> -> vector<256x32xf32>
    %17 = arith.addf %12, %16 : vector<256x32xf32>
    %c0_14 = arith.constant 0 : index
    %c0_15 = arith.constant 0 : index
    %18 = vector.load %arg4[%c0_14, %c0_15] : memref<256x1xf32, #tpu.memory_space<vmem>>, vector<256x1xf32>
    %19 = vector.broadcast %18 : vector<256x1xf32> to vector<256x32xf32>
    %20 = arith.addf %17, %19 : vector<256x32xf32>
    %cst_16 = arith.constant 0.000000e+00 : f32
    %21 = vector.broadcast %cst_16 : f32 to vector<256x32xf32>
    %22 = arith.maximumf %20, %21 : vector<256x32xf32>
    %c0_17 = arith.constant 0 : index
    %c0_18 = arith.constant 0 : index
    %23 = vector.load %arg5[%c0_17, %c0_18] : memref<768x256xf32, #tpu.memory_space<vmem>>, vector<768x256xf32>
    %cst_19 = arith.constant dense<0.000000e+00> : vector<768x32xf32>
    %24 = tpu.matmul %23, %22, %cst_19 {dimension_numbers = #tpu.dot_dimension_numbers<[1], [0], [0], [1], [0, 0, 1, 1], [], []>} : vector<768x256xf32>, vector<256x32xf32>, vector<768x32xf32> -> vector<768x32xf32>
    %25 = vector.extract_strided_slice %24 {offsets = [0, 0], sizes = [256, 32], strides = [1, 1]} : vector<768x32xf32> to vector<256x32xf32>
    %c0_20 = arith.constant 0 : index
    %c0_21 = arith.constant 0 : index
    %c0_22 = arith.constant 0 : index
    %26 = vector.load %arg6[%c0_20, %c0_21, %c0_22] : memref<3x32x64xf32, #tpu.memory_space<vmem>>, vector<1x32x64xf32>
    %27 = vector.shape_cast %26 : vector<1x32x64xf32> to vector<32x64xf32>
    %cst_23 = arith.constant dense<0.000000e+00> : vector<256x64xf32>
    %28 = tpu.matmul %25, %27, %cst_23 {dimension_numbers = #tpu.dot_dimension_numbers<[1], [0], [0], [1], [0, 0, 1, 1], [], []>} : vector<256x32xf32>, vector<32x64xf32>, vector<256x64xf32> -> vector<256x64xf32>
    %29 = vector.extract_strided_slice %24 {offsets = [256, 0], sizes = [256, 32], strides = [1, 1]} : vector<768x32xf32> to vector<256x32xf32>
    %c1_24 = arith.constant 1 : index
    %c0_25 = arith.constant 0 : index
    %c0_26 = arith.constant 0 : index
    %30 = vector.load %arg6[%c1_24, %c0_25, %c0_26] : memref<3x32x64xf32, #tpu.memory_space<vmem>>, vector<1x32x64xf32>
    %31 = vector.shape_cast %30 : vector<1x32x64xf32> to vector<32x64xf32>
    %cst_27 = arith.constant dense<0.000000e+00> : vector<256x64xf32>
    %32 = tpu.matmul %29, %31, %cst_27 {dimension_numbers = #tpu.dot_dimension_numbers<[1], [0], [0], [1], [0, 0, 1, 1], [], []>} : vector<256x32xf32>, vector<32x64xf32>, vector<256x64xf32> -> vector<256x64xf32>
    %33 = arith.addf %28, %32 : vector<256x64xf32>
    %34 = vector.extract_strided_slice %24 {offsets = [512, 0], sizes = [256, 32], strides = [1, 1]} : vector<768x32xf32> to vector<256x32xf32>
    %c2_28 = arith.constant 2 : index
    %c0_29 = arith.constant 0 : index
    %c0_30 = arith.constant 0 : index
    %35 = vector.load %arg6[%c2_28, %c0_29, %c0_30] : memref<3x32x64xf32, #tpu.memory_space<vmem>>, vector<1x32x64xf32>
    %36 = vector.shape_cast %35 : vector<1x32x64xf32> to vector<32x64xf32>
    %cst_31 = arith.constant dense<0.000000e+00> : vector<256x64xf32>
    %37 = tpu.matmul %34, %36, %cst_31 {dimension_numbers = #tpu.dot_dimension_numbers<[1], [0], [0], [1], [0, 0, 1, 1], [], []>} : vector<256x32xf32>, vector<32x64xf32>, vector<256x64xf32> -> vector<256x64xf32>
    %38 = arith.addf %33, %37 : vector<256x64xf32>
    %c0_32 = arith.constant 0 : index
    %c0_33 = arith.constant 0 : index
    %39 = vector.load %arg7[%c0_32, %c0_33] : memref<256x1xf32, #tpu.memory_space<vmem>>, vector<256x1xf32>
    %40 = vector.broadcast %39 : vector<256x1xf32> to vector<256x64xf32>
    %41 = arith.addf %38, %40 : vector<256x64xf32>
    %cst_34 = arith.constant 0.000000e+00 : f32
    %42 = vector.broadcast %cst_34 : f32 to vector<256x64xf32>
    %43 = arith.maximumf %41, %42 : vector<256x64xf32>
    %c0_35 = arith.constant 0 : index
    %c0_36 = arith.constant 0 : index
    %44 = vector.load %arg8[%c0_35, %c0_36] : memref<768x256xf32, #tpu.memory_space<vmem>>, vector<768x256xf32>
    %cst_37 = arith.constant dense<0.000000e+00> : vector<768x64xf32>
    %45 = tpu.matmul %44, %43, %cst_37 {dimension_numbers = #tpu.dot_dimension_numbers<[1], [0], [0], [1], [0, 0, 1, 1], [], []>} : vector<768x256xf32>, vector<256x64xf32>, vector<768x64xf32> -> vector<768x64xf32>
    %46 = vector.extract_strided_slice %45 {offsets = [0, 0], sizes = [256, 64], strides = [1, 1]} : vector<768x64xf32> to vector<256x64xf32>
    %c0_38 = arith.constant 0 : index
    %c0_39 = arith.constant 0 : index
    %c0_40 = arith.constant 0 : index
    %47 = vector.load %arg9[%c0_38, %c0_39, %c0_40] : memref<3x64x128xf32, #tpu.memory_space<vmem>>, vector<1x64x128xf32>
    %48 = vector.shape_cast %47 : vector<1x64x128xf32> to vector<64x128xf32>
    %cst_41 = arith.constant dense<0.000000e+00> : vector<256x128xf32>
    %49 = tpu.matmul %46, %48, %cst_41 {dimension_numbers = #tpu.dot_dimension_numbers<[1], [0], [0], [1], [0, 0, 1, 1], [], []>} : vector<256x64xf32>, vector<64x128xf32>, vector<256x128xf32> -> vector<256x128xf32>
    %50 = vector.extract_strided_slice %45 {offsets = [256, 0], sizes = [256, 64], strides = [1, 1]} : vector<768x64xf32> to vector<256x64xf32>
    %c1_42 = arith.constant 1 : index
    %c0_43 = arith.constant 0 : index
    %c0_44 = arith.constant 0 : index
    %51 = vector.load %arg9[%c1_42, %c0_43, %c0_44] : memref<3x64x128xf32, #tpu.memory_space<vmem>>, vector<1x64x128xf32>
    %52 = vector.shape_cast %51 : vector<1x64x128xf32> to vector<64x128xf32>
    %cst_45 = arith.constant dense<0.000000e+00> : vector<256x128xf32>
    %53 = tpu.matmul %50, %52, %cst_45 {dimension_numbers = #tpu.dot_dimension_numbers<[1], [0], [0], [1], [0, 0, 1, 1], [], []>} : vector<256x64xf32>, vector<64x128xf32>, vector<256x128xf32> -> vector<256x128xf32>
    %54 = arith.addf %49, %53 : vector<256x128xf32>
    %55 = vector.extract_strided_slice %45 {offsets = [512, 0], sizes = [256, 64], strides = [1, 1]} : vector<768x64xf32> to vector<256x64xf32>
    %c2_46 = arith.constant 2 : index
    %c0_47 = arith.constant 0 : index
    %c0_48 = arith.constant 0 : index
    %56 = vector.load %arg9[%c2_46, %c0_47, %c0_48] : memref<3x64x128xf32, #tpu.memory_space<vmem>>, vector<1x64x128xf32>
    %57 = vector.shape_cast %56 : vector<1x64x128xf32> to vector<64x128xf32>
    %cst_49 = arith.constant dense<0.000000e+00> : vector<256x128xf32>
    %58 = tpu.matmul %55, %57, %cst_49 {dimension_numbers = #tpu.dot_dimension_numbers<[1], [0], [0], [1], [0, 0, 1, 1], [], []>} : vector<256x64xf32>, vector<64x128xf32>, vector<256x128xf32> -> vector<256x128xf32>
    %59 = arith.addf %54, %58 : vector<256x128xf32>
    %c0_50 = arith.constant 0 : index
    %c0_51 = arith.constant 0 : index
    %60 = vector.load %arg10[%c0_50, %c0_51] : memref<256x1xf32, #tpu.memory_space<vmem>>, vector<256x1xf32>
    %61 = vector.broadcast %60 : vector<256x1xf32> to vector<256x128xf32>
    %62 = arith.addf %59, %61 : vector<256x128xf32>
    %cst_52 = arith.constant 0.000000e+00 : f32
    %63 = vector.broadcast %cst_52 : f32 to vector<256x128xf32>
    %64 = arith.maximumf %62, %63 : vector<256x128xf32>
    %c0_53 = arith.constant 0 : index
    %c0_54 = arith.constant 0 : index
    %65 = vector.load %arg11[%c0_53, %c0_54] : memref<768x256xf32, #tpu.memory_space<vmem>>, vector<768x256xf32>
    %cst_55 = arith.constant dense<0.000000e+00> : vector<768x128xf32>
    %66 = tpu.matmul %65, %64, %cst_55 {dimension_numbers = #tpu.dot_dimension_numbers<[1], [0], [0], [1], [0, 0, 1, 1], [], []>} : vector<768x256xf32>, vector<256x128xf32>, vector<768x128xf32> -> vector<768x128xf32>
    %67 = vector.extract_strided_slice %66 {offsets = [0, 0], sizes = [256, 128], strides = [1, 1]} : vector<768x128xf32> to vector<256x128xf32>
    %c0_56 = arith.constant 0 : index
    %c0_57 = arith.constant 0 : index
    %c0_58 = arith.constant 0 : index
    %68 = vector.load %arg12[%c0_56, %c0_57, %c0_58] : memref<3x128x256xf32, #tpu.memory_space<vmem>>, vector<1x128x256xf32>
    %69 = vector.shape_cast %68 : vector<1x128x256xf32> to vector<128x256xf32>
    %cst_59 = arith.constant dense<0.000000e+00> : vector<256x256xf32>
    %70 = tpu.matmul %67, %69, %cst_59 {dimension_numbers = #tpu.dot_dimension_numbers<[1], [0], [0], [1], [0, 0, 1, 1], [], []>} : vector<256x128xf32>, vector<128x256xf32>, vector<256x256xf32> -> vector<256x256xf32>
    %71 = vector.extract_strided_slice %66 {offsets = [256, 0], sizes = [256, 128], strides = [1, 1]} : vector<768x128xf32> to vector<256x128xf32>
    %c1_60 = arith.constant 1 : index
    %c0_61 = arith.constant 0 : index
    %c0_62 = arith.constant 0 : index
    %72 = vector.load %arg12[%c1_60, %c0_61, %c0_62] : memref<3x128x256xf32, #tpu.memory_space<vmem>>, vector<1x128x256xf32>
    %73 = vector.shape_cast %72 : vector<1x128x256xf32> to vector<128x256xf32>
    %cst_63 = arith.constant dense<0.000000e+00> : vector<256x256xf32>
    %74 = tpu.matmul %71, %73, %cst_63 {dimension_numbers = #tpu.dot_dimension_numbers<[1], [0], [0], [1], [0, 0, 1, 1], [], []>} : vector<256x128xf32>, vector<128x256xf32>, vector<256x256xf32> -> vector<256x256xf32>
    %75 = arith.addf %70, %74 : vector<256x256xf32>
    %76 = vector.extract_strided_slice %66 {offsets = [512, 0], sizes = [256, 128], strides = [1, 1]} : vector<768x128xf32> to vector<256x128xf32>
    %c2_64 = arith.constant 2 : index
    %c0_65 = arith.constant 0 : index
    %c0_66 = arith.constant 0 : index
    %77 = vector.load %arg12[%c2_64, %c0_65, %c0_66] : memref<3x128x256xf32, #tpu.memory_space<vmem>>, vector<1x128x256xf32>
    %78 = vector.shape_cast %77 : vector<1x128x256xf32> to vector<128x256xf32>
    %cst_67 = arith.constant dense<0.000000e+00> : vector<256x256xf32>
    %79 = tpu.matmul %76, %78, %cst_67 {dimension_numbers = #tpu.dot_dimension_numbers<[1], [0], [0], [1], [0, 0, 1, 1], [], []>} : vector<256x128xf32>, vector<128x256xf32>, vector<256x256xf32> -> vector<256x256xf32>
    %80 = arith.addf %75, %79 : vector<256x256xf32>
    %c0_68 = arith.constant 0 : index
    %c0_69 = arith.constant 0 : index
    %81 = vector.load %arg13[%c0_68, %c0_69] : memref<256x1xf32, #tpu.memory_space<vmem>>, vector<256x1xf32>
    %82 = vector.broadcast %81 : vector<256x1xf32> to vector<256x256xf32>
    %83 = arith.addf %80, %82 : vector<256x256xf32>
    %cst_70 = arith.constant 0.000000e+00 : f32
    %84 = vector.broadcast %cst_70 : f32 to vector<256x256xf32>
    %85 = arith.maximumf %83, %84 : vector<256x256xf32>
    %c0_71 = arith.constant 0 : index
    %c0_72 = arith.constant 0 : index
    %c0_73 = arith.constant 0 : index
    %86 = vector.load %arg14[%c0_71, %c0_72, %c0_73] : memref<1x256x256xf32, #tpu.memory_space<vmem>>, vector<1x256x256xf32>
    %87 = vector.shape_cast %86 : vector<1x256x256xf32> to vector<256x256xf32>
    %88 = vector.shape_cast %85 : vector<256x256xf32> to vector<1x256x256xf32>
    tpu.vector_store %arg14[%c0_71, %c0_72, %c0_73], %88 {strides = array<i32>} : memref<1x256x256xf32, #tpu.memory_space<vmem>>, vector<1x256x256xf32>,
    return
  }
  func.func @transform_0(%arg0: i32) -> (i32, i32, i32) {
    %c0_i32 = arith.constant 0 : i32
    %c0_i32_0 = arith.constant 0 : i32
    %c0_i32_1 = arith.constant 0 : i32
    return %arg0, %c0_i32, %c0_i32_0 : i32, i32, i32
  }
  func.func @transform_1(%arg0: i32) -> (i32, i32) {
    %c0_i32 = arith.constant 0 : i32
    %c0_i32_0 = arith.constant 0 : i32
    %c0_i32_1 = arith.constant 0 : i32
    return %c0_i32, %c0_i32_0 : i32, i32
  }
  func.func @transform_2(%arg0: i32) -> (i32, i32, i32) {
    %c0_i32 = arith.constant 0 : i32
    %c0_i32_0 = arith.constant 0 : i32
    %c0_i32_1 = arith.constant 0 : i32
    %c0_i32_2 = arith.constant 0 : i32
    return %c0_i32, %c0_i32_0, %c0_i32_1 : i32, i32, i32
  }
  func.func @transform_3(%arg0: i32) -> (i32, i32) {
    %c0_i32 = arith.constant 0 : i32
    %c0_i32_0 = arith.constant 0 : i32
    %c0_i32_1 = arith.constant 0 : i32
    return %c0_i32, %c0_i32_0 : i32, i32
  }
  func.func @transform_4(%arg0: i32) -> (i32, i32) {
    %c0_i32 = arith.constant 0 : i32
    %c0_i32_0 = arith.constant 0 : i32
    %c0_i32_1 = arith.constant 0 : i32
    return %c0_i32, %c0_i32_0 : i32, i32
  }
  func.func @transform_5(%arg0: i32) -> (i32, i32, i32) {
    %c0_i32 = arith.constant 0 : i32
    %c0_i32_0 = arith.constant 0 : i32
    %c0_i32_1 = arith.constant 0 : i32
    %c0_i32_2 = arith.constant 0 : i32
    return %c0_i32, %c0_i32_0, %c0_i32_1 : i32, i32, i32
  }
  func.func @transform_6(%arg0: i32) -> (i32, i32) {
    %c0_i32 = arith.constant 0 : i32
    %c0_i32_0 = arith.constant 0 : i32
    %c0_i32_1 = arith.constant 0 : i32
    return %c0_i32, %c0_i32_0 : i32, i32
  }
  func.func @transform_7(%arg0: i32) -> (i32, i32) {
    %c0_i32 = arith.constant 0 : i32
    %c0_i32_0 = arith.constant 0 : i32
    %c0_i32_1 = arith.constant 0 : i32
    return %c0_i32, %c0_i32_0 : i32, i32
  }
  func.func @transform_8(%arg0: i32) -> (i32, i32, i32) {
    %c0_i32 = arith.constant 0 : i32
    %c0_i32_0 = arith.constant 0 : i32
    %c0_i32_1 = arith.constant 0 : i32
    %c0_i32_2 = arith.constant 0 : i32
    return %c0_i32, %c0_i32_0, %c0_i32_1 : i32, i32, i32
  }
  func.func @transform_9(%arg0: i32) -> (i32, i32) {
    %c0_i32 = arith.constant 0 : i32
    %c0_i32_0 = arith.constant 0 : i32
    %c0_i32_1 = arith.constant 0 : i32
    return %c0_i32, %c0_i32_0 : i32, i32
  }
  func.func @transform_10(%arg0: i32) -> (i32, i32) {
    %c0_i32 = arith.constant 0 : i32
    %c0_i32_0 = arith.constant 0 : i32
    %c0_i32_1 = arith.constant 0 : i32
    return %c0_i32, %c0_i32_0 : i32, i32
  }
  func.func @transform_11(%arg0: i32) -> (i32, i32, i32) {
    %c0_i32 = arith.constant 0 : i32
    %c0_i32_0 = arith.constant 0 : i32
    %c0_i32_1 = arith.constant 0 : i32
    %c0_i32_2 = arith.constant 0 : i32
    return %c0_i32, %c0_i32_0, %c0_i32_1 : i32, i32, i32
  }
  func.func @transform_12(%arg0: i32) -> (i32, i32) {
    %c0_i32 = arith.constant 0 : i32
    %c0_i32_0 = arith.constant 0 : i32
    %c0_i32_1 = arith.constant 0 : i32
    return %c0_i32, %c0_i32_0 : i32, i32
  }
  func.func @transform_13(%arg0: i32) -> (i32, i32, i32) {
    %c0_i32 = arith.constant 0 : i32
    %c0_i32_0 = arith.constant 0 : i32
    %c0_i32_1 = arith.constant 0 : i32
    return %arg0, %c0_i32, %c0_i32_0 : i32, i32, i32
  }
}

</mosaic_0001>

<bundles_post_ra>
// kernel: decoder_forward.1
= control target key start
LH: loop header
LB: loop body
LE: loop exit
PB: predicated region body
PF: predicated region fallthrough
CT: control target
= control target key end

     0   :  { %s15082_s0 = inlined_call_operand.vmem [shape: f32[2,256,16], index: 0, kind: input, shape index: {}]   ;;  %s15083_s1 = inlined_call_operand.vmem [shape: f32[768,256], index: 1, kind: input, shape index: {}]   ;;  %s15084_s2 = inlined_call_operand.vmem [shape: f32[3,16,32], index: 2, kind: input, shape index: {}]   ;;  %s15085_s3 = inlined_call_operand.vmem [shape: f32[256,1], index: 3, kind: input, shape index: {}]   ;;  %s15086_s4 = inlined_call_operand.vmem [shape: f32[768,256], index: 4, kind: input, shape index: {}]   ;;  %s15087_s5 = inlined_call_operand.vmem [shape: f32[3,32,64], index: 5, kind: input, shape index: {}]   ;;  %s15088_s6 = inlined_call_operand.vmem [shape: f32[256,1], index: 6, kind: input, shape index: {}]   ;;  %s15089_s7 = inlined_call_operand.vmem [shape: f32[768,256], index: 7, kind: input, shape index: {}]   ;;  %s15090_s8 = inlined_call_operand.vmem [shape: f32[3,64,128], index: 8, kind: input, shape index: {}]   ;;  %s15091_s9 = inlined_call_operand.vmem [shape: f32[256,1], index: 9, kind: input, shape index: {}]   ;;  %s15092_s10 = inlined_call_operand.vmem [shape: f32[768,256], index: 10, kind: input, shape index: {}]   ;;  %s15093_s11 = inlined_call_operand.vmem [shape: f32[3,128,256], index: 11, kind: input, shape index: {}]   ;;  %s15094_s12 = inlined_call_operand.vmem [shape: f32[256,1], index: 12, kind: input, shape index: {}]   ;;  %s15095_s13 = inlined_call_operand.hbm [shape: f32[2,256,256], index: 13, kind: output, shape index: {}]  }
   0x1   :  { %15098 = sst [smem:[#allocation19_spill]] %s15082_s0 }
   0x2   :  { %15099 = sst [smem:[#allocation20_spill]] %s15085_s3 }
   0x3   :  { %18 = vsyncpa [#allocation3], 0 }
   0x4   :  { %20 = vsyncpa [#allocation3 + $0x1], 0  ;;  %s10734_s25 = smov 0   ;;  %s10736_s26 = smov 0  }
   0x5   :  { %s10738_s27 = smov 0   ;;  %s10740_s28 = smov 0  }
   0x6 LB: > { %s10755_s29 = sadd.s32 4294967295, %s10656_s28   ;;  %s8616_s30 = sadd.s32 4294967294, %s10656_s28   ;;  %s10656_s28 = sphi %s10740_s28, %s15136_s28   ;;  %s10652_s27 = sphi %s10738_s27, %s15135_s27   ;;  %s10648_s26 = sphi %s10736_s26, %s15134_s26   ;;  %s10644_s25 = sphi %s10734_s25, %s15133_s25  }
   0x7   : > { %s10759_s14 = sadd.s32 1, %s10656_s28   ;;  %s311_s15 = sadd.s32 1, %s10652_s27 }
   0x8   : > { %s308_s16 = ssub.s32 %s10656_s28, %s10759_s14  ;;  %p321_p0 = scmp.ne.s32.totalorder %s10652_s27, %s10648_s26 }
   0x9   : > { %p309_p1 = scmp.eq.s32.totalorder %s308_s16, 0  ;;  %p322_p2 = scmp.eq.s32.totalorder %s10755_s29, 1 }
   0xa   : > { %p327_p3 = scmp.ne.s32.totalorder %s10648_s26, %s10644_s25  ;;  %p328_p4 = scmp.eq.s32.totalorder %s8616_s30, 1 }
   0xb   : > { %s10770_s17 = scalar_select %p309_p1, %s10652_s27, %s311_s15  }
   0xc   : > { %p10772_p5 = por %p322_p2, %p321_p0  ;;  %p10776_p6 = por %p328_p4, %p327_p3 }
   0xd   : > { %15100 = sst [smem:[#allocation5_spill]] %s10770_s17  ;;  %p8619_p7 = scmp.ge.s32.totalorder %s10656_s28, 1 }
   0xe   : > { %p390_p8 = scmp.lt.s32.totalorder %s10656_s28, 3 }
  0x10   : > { %p391_p9 = pnand %p8619_p7, %p390_p8 }
  0x12   : > { %394 = sbr.rel (%p391_p9) target bundleno = 3494 (0xda6), region = 72 }
  0x19   : > { %p434_p10 = scmp.lt.s32.totalorder %s10755_s29, 1  ;;  %v472_v0 = vld [vmem:[%s15083_s1 + $0x8] sm:$0xff]  ;;  %v15096_v1 = vmov 0.0|0.0   ;;  %s15103_s0 = sld [smem:[#allocation19_spill]]  ;;  %v471_v50 = vld [vmem:[%s15083_s1] sm:$0xff]  ;;  %v474_v51 = vld [vmem:[%s15083_s1 + $0x18] sm:$0xff] }
  0x1a   : > { %9856 = vmatprep.subr.bf16.mxu0 %v15096_v1  ;;  %727 = vmatprep.mubr.f32.mxu0 %v472_v0  ;;  %v473_v52 = vld [vmem:[%s15083_s1 + $0x10] sm:$0xff]  ;;  %v476_v53 = vld [vmem:[%s15083_s1 + $0x28] sm:$0xff]  ;;  %v475_v54 = vld [vmem:[%s15083_s1 + $0x20] sm:$0xff]  ;;  %vm1213_vm0 = vcmask 130048   ;;  %s15104_s3 = sld [smem:[#allocation20_spill]]  ;;  %vm3214_vm1 = vcmask 261120  }
  0x1b   : > { %s435_s22 = scalar_select %p434_p10, %s10755_s29, 1  ;;  %v478_v55 = vld [vmem:[%s15083_s1 + $0x38] sm:$0xff]  ;;  %v477_v56 = vld [vmem:[%s15083_s1 + $0x30] sm:$0xff]  ;;  %v480_v57 = vld [vmem:[%s15083_s1 + $0x48] sm:$0xff]  ;;  %vm5225_vm2 = vcmask 523264  }
  0x1c   : > { %v479_v58 = vld [vmem:[%s15083_s1 + $0x40] sm:$0xff]  ;;  %v482_v59 = vld [vmem:[%s15083_s1 + $0x58] sm:$0xff]  ;;  %v481_v60 = vld [vmem:[%s15083_s1 + $0x50] sm:$0xff]  ;;  %s431_s17 = sand.u32 1, %s10648_s26   ;;  %s9009_s21 = sshll.u32 %s10755_s29, 13 }
  0x1d   : > { %s9008_s23 = sshll.u32 %s435_s22, 8  ;;  %v484_v61 = vld [vmem:[%s15083_s1 + $0x68] sm:$0xff]  ;;  %v483_v62 = vld [vmem:[%s15083_s1 + $0x60] sm:$0xff]  ;;  %v486_v63 = vld [vmem:[%s15083_s1 + $0x78] sm:$0xff]  ;;  %s8620_s16 = sshll.u32 %s431_s17, 9 }
  0x1e   : > { %v485_v0 = vld [vmem:[%s15083_s1 + $0x70] sm:$0xff]  ;;  %s14964_s20 = scalar_lea.vmem [#allocation2], %s8620_s16  ;;  %s15041_s29 = scalar_lea.sflag [#allocation3], %s431_s17 }
  0x1f   : > { %s10791_s15 = scalar_lea.vmem %s15103_s0, %s9008_s23  ;;  %s8554_s22 = sshll.u32 %s14964_s20, 4  ;;  %s15035_s22 = int_to_ptr.vmem [resolvable:$true] %s8554_s22 }
  0x20   : > { %v439_v2 = vld [vmem:[%s10791_s15] sm:$0xff]  ;;  %v440_v3 = vld [vmem:[%s10791_s15 + $0x8] sm:$0xff]  ;;  %v441_v4 = vld [vmem:[%s10791_s15 + $0x10] sm:$0xff]  ;;  %s10594_s30 = scalar_lea.vmem %s15035_s22, 8192 }
  0x21   : > { %v9857_v5 = vpack.c.bf16 %v440_v3, %v439_v2  ;;  %v442_v6 = vld [vmem:[%s10791_s15 + $0x18] sm:$0xff]  ;;  %v443_v8 = vld [vmem:[%s10791_s15 + $0x20] sm:$0xff]  ;;  %v444_v9 = vld [vmem:[%s10791_s15 + $0x28] sm:$0xff]  ;;  %p10595_p11 = scmp.ne.s32.totalorder %s15035_s22, %s10594_s30 }
  0x22   : > { %v9860_v7 = vpack.c.bf16 %v442_v6, %v441_v4  ;;  %v9863_v10 = vpack.c.bf16 %v444_v9, %v443_v8  ;;  %v445_v11 = vld [vmem:[%s10791_s15 + $0x30] sm:$0xff]  ;;  %v446_v12 = vld [vmem:[%s10791_s15 + $0x38] sm:$0xff]  ;;  %v447_v14 = vld [vmem:[%s10791_s15 + $0x40] sm:$0xff] }
  0x23   : > { %9858 = vmatpush1.bf16.msra.mxu0 %v9857_v5  ;;  %v9866_v13 = vpack.c.bf16 %v446_v12, %v445_v11  ;;  %v448_v15 = vld [vmem:[%s10791_s15 + $0x48] sm:$0xff]  ;;  %v449_v17 = vld [vmem:[%s10791_s15 + $0x50] sm:$0xff]  ;;  %v450_v18 = vld [vmem:[%s10791_s15 + $0x58] sm:$0xff]  ;;  %p10596_p12 = pnand %p10595_p11, %p10772_p5 }
  0x24   : > { %9859 = vmatprep.subr.bf16.mxu0 %v15096_v1  ;;  %v9869_v16 = vpack.c.bf16 %v448_v15, %v447_v14  ;;  %v9872_v19 = vpack.c.bf16 %v450_v18, %v449_v17  ;;  %v451_v20 = vld [vmem:[%s10791_s15 + $0x60] sm:$0xff]  ;;  %v452_v21 = vld [vmem:[%s10791_s15 + $0x68] sm:$0xff]  ;;  %v453_v23 = vld [vmem:[%s10791_s15 + $0x70] sm:$0xff] }
  0x25   : > { %v9875_v22 = vpack.c.bf16 %v452_v21, %v451_v20  ;;  %v454_v24 = vld [vmem:[%s10791_s15 + $0x78] sm:$0xff]  ;;  %v455_v26 = vld [vmem:[%s10791_s15 + $0x80] sm:$0xff]  ;;  %v456_v27 = vld [vmem:[%s10791_s15 + $0x88] sm:$0xff]  ;;  %p10597_p13 = pneg %p10596_p12 }
  0x26   : > { %v9878_v25 = vpack.c.bf16 %v454_v24, %v453_v23  ;;  %v9881_v28 = vpack.c.bf16 %v456_v27, %v455_v26  ;;  %v457_v29 = vld [vmem:[%s10791_s15 + $0x90] sm:$0xff]  ;;  %v458_v30 = vld [vmem:[%s10791_s15 + $0x98] sm:$0xff]  ;;  %v459_v32 = vld [vmem:[%s10791_s15 + $0xa0] sm:$0xff] }
  0x27   : > { %9861 = vmatpush1.bf16.msra.mxu0 %v9860_v7  ;;  %v9884_v31 = vpack.c.bf16 %v458_v30, %v457_v29  ;;  %v460_v33 = vld [vmem:[%s10791_s15 + $0xa8] sm:$0xff]  ;;  %v461_v35 = vld [vmem:[%s10791_s15 + $0xb0] sm:$0xff]  ;;  %v462_v36 = vld [vmem:[%s10791_s15 + $0xb8] sm:$0xff] }
  0x28   : > { %9862 = vmatprep.subr.bf16.mxu0 %v15096_v1  ;;  %v9887_v34 = vpack.c.bf16 %v460_v33, %v459_v32  ;;  %v9890_v37 = vpack.c.bf16 %v462_v36, %v461_v35  ;;  %v463_v38 = vld [vmem:[%s10791_s15 + $0xc0] sm:$0xff]  ;;  %v464_v39 = vld [vmem:[%s10791_s15 + $0xc8] sm:$0xff]  ;;  %v465_v41 = vld [vmem:[%s10791_s15 + $0xd0] sm:$0xff] }
  0x29   : > { %v9893_v40 = vpack.c.bf16 %v464_v39, %v463_v38  ;;  %v466_v42 = vld [vmem:[%s10791_s15 + $0xd8] sm:$0xff]  ;;  %v467_v44 = vld [vmem:[%s10791_s15 + $0xe0] sm:$0xff]  ;;  %v468_v45 = vld [vmem:[%s10791_s15 + $0xe8] sm:$0xff] }
  0x2a   : > { %v9896_v43 = vpack.c.bf16 %v466_v42, %v465_v41  ;;  %v9899_v46 = vpack.c.bf16 %v468_v45, %v467_v44  ;;  %v469_v47 = vld [vmem:[%s10791_s15 + $0xf0] sm:$0xff]  ;;  %v470_v48 = vld [vmem:[%s10791_s15 + $0xf8] sm:$0xff]  ;;  %v488_v2 = vld [vmem:[%s15083_s1 + $0x88] sm:$0xff]  ;;  %s10661_s15 = smov [#allocation2]  }
  0x2b   : > { %9864 = vmatpush1.bf16.msra.mxu0 %v9863_v10  ;;  %v9902_v49 = vpack.c.bf16 %v470_v48, %v469_v47  ;;  %v487_v3 = vld [vmem:[%s15083_s1 + $0x80] sm:$0xff]  ;;  %v490_v4 = vld [vmem:[%s15083_s1 + $0x98] sm:$0xff]  ;;  %v489_v5 = vld [vmem:[%s15083_s1 + $0x90] sm:$0xff]  ;;  %s10598_s0 = sshll.u32 %s10661_s15, 4  ;;  %s10599_s0 = int_to_ptr.vmem [resolvable:$false] %s10598_s0 }
  0x2c   : > { %9865 = vmatprep.subr.bf16.mxu0 %v15096_v1  ;;  %v492_v6 = vld [vmem:[%s15083_s1 + $0xa8] sm:$0xff]  ;;  %v491_v7 = vld [vmem:[%s15083_s1 + $0xa0] sm:$0xff]  ;;  %v494_v8 = vld [vmem:[%s15083_s1 + $0xb8] sm:$0xff]  ;;  %s10600_s16 = scalar_lea.vmem %s10599_s0, 16384  ;;  %p10601_p0 = scmp.lt.s32.totalorder %s15035_s22, %s10599_s0 }
  0x2d   : > { %v493_v9 = vld [vmem:[%s15083_s1 + $0xb0] sm:$0xff]  ;;  %v496_v10 = vld [vmem:[%s15083_s1 + $0xc8] sm:$0xff]  ;;  %v495_v11 = vld [vmem:[%s15083_s1 + $0xc0] sm:$0xff]  ;;  %p10602_p1 = scmp.lt.s32.totalorder %s10600_s16, %s10594_s30 }
  0x2e   : > { %v498_v12 = vld [vmem:[%s15083_s1 + $0xd8] sm:$0xff]  ;;  %v500_v14 = vld [vmem:[%s15083_s1 + $0xe8] sm:$0xff]  ;;  %v499_v15 = vld [vmem:[%s15083_s1 + $0xe0] sm:$0xff] }
  0x2f   : > { %9867 = vmatpush1.bf16.msra.mxu0 %v9866_v13  ;;  %v497_v13 = vld [vmem:[%s15083_s1 + $0xd0] sm:$0xff]  ;;  %v504_v18 = vld [vmem:[%s15083_s1 + $0x108] sm:$0xff]  ;;  %v506_v20 = vld [vmem:[%s15083_s1 + $0x118] sm:$0xff]  ;;  %p10603_p2 = por %p10602_p1, %p10601_p0 }
  0x30   : > { %9868 = vmatprep.subr.bf16.mxu0 %v15096_v1  ;;  %v501_v17 = vld [vmem:[%s15083_s1 + $0xf0] sm:$0xff]  ;;  %v507_v23 = vld [vmem:[%s15083_s1 + $0x120] sm:$0xff]  ;;  %v510_v24 = vld [vmem:[%s15083_s1 + $0x138] sm:$0xff] }
  0x31   : > { %v505_v21 = vld [vmem:[%s15083_s1 + $0x110] sm:$0xff]  ;;  %v512_v26 = vld [vmem:[%s15083_s1 + $0x148] sm:$0xff]  ;;  %v511_v27 = vld [vmem:[%s15083_s1 + $0x140] sm:$0xff]  ;;  %p10604_p3 = pnand %p10603_p2, %p10597_p13 }
  0x32   : > { %v513_v29 = vld [vmem:[%s15083_s1 + $0x150] sm:$0xff]  ;;  %v1208_v30 = vld [vmem:[%s15084_s2] sm:$0xff]  ;;  %v516_v32 = vld [vmem:[%s15083_s1 + $0x168] sm:$0xff] }
  0x33   : > { %9870 = vmatpush1.bf16.msra.mxu0 %v9869_v16  ;;  %v502_v16 = vld [vmem:[%s15083_s1 + $0xf8] sm:$0xff]  ;;  %v517_v36 = vld [vmem:[%s15083_s1 + $0x170] sm:$0xff]  ;;  %v519_v38 = vld [vmem:[%s15083_s1 + $0x180] sm:$0xff] }
  0x34   : > { %9871 = vmatprep.subr.bf16.mxu0 %v15096_v1  ;;  %v518_v35 = vld [vmem:[%s15083_s1 + $0x178] sm:$0xff]  ;;  %v524_v41 = vld [vmem:[%s15083_s1 + $0x1a8] sm:$0xff]  ;;  %v523_v42 = vld [vmem:[%s15083_s1 + $0x1a0] sm:$0xff] }
  0x35   : > { %v522_v39 = vld [vmem:[%s15083_s1 + $0x198] sm:$0xff]  ;;  %v525_v44 = vld [vmem:[%s15083_s1 + $0x1b0] sm:$0xff]  ;;  %v528_v45 = vld [vmem:[%s15083_s1 + $0x1c8] sm:$0xff] }
  0x36   : > { %v530_v47 = vld [vmem:[%s15083_s1 + $0x1d8] sm:$0xff]  ;;  %v529_v48 = vld [vmem:[%s15083_s1 + $0x1d0] sm:$0xff] }
  0x37   : > { %9873 = vmatpush1.bf16.msra.mxu0 %v9872_v19  ;;  %v503_v19 = vld [vmem:[%s15083_s1 + $0x100] sm:$0xff] }
  0x38   : > { %9874 = vmatprep.subr.bf16.mxu0 %v15096_v1 }
  0x3b   : > { %9876 = vmatpush1.bf16.msra.mxu0 %v9875_v22  ;;  %v508_v22 = vld [vmem:[%s15083_s1 + $0x128] sm:$0xff] }
  0x3c   : > { %9877 = vmatprep.subr.bf16.mxu0 %v15096_v1 }
  0x3f   : > { %9879 = vmatpush1.bf16.msra.mxu0 %v9878_v25  ;;  %v509_v25 = vld [vmem:[%s15083_s1 + $0x130] sm:$0xff] }
  0x40   : > { %9880 = vmatprep.subr.bf16.mxu0 %v15096_v1 }
  0x43   : > { %9882 = vmatpush1.bf16.msra.mxu0 %v9881_v28  ;;  %v514_v28 = vld [vmem:[%s15083_s1 + $0x158] sm:$0xff] }
  0x44   : > { %9883 = vmatprep.subr.bf16.mxu0 %v15096_v1 }
  0x47   : > { %9885 = vmatpush1.bf16.msra.mxu0 %v9884_v31  ;;  %v1209_v31 = vld [vmem:[%s15084_s2 + $0x8] sm:$0xff] }
  0x48   : > { %9886 = vmatprep.subr.bf16.mxu0 %v15096_v1  ;;  %v9908_v33 = vpack.c.bf16 %v1209_v31, %v1208_v30  ;;  %v576_v30 = vld [vmem:[%s15083_s1 + $0x348] sm:$0xff]  ;;  %v575_v31 = vld [vmem:[%s15083_s1 + $0x340] sm:$0xff] }
  0x4a   : > { %9909 = vmatprep.subr.bf16.mxu1 %v9908_v33 }
  0x4b   : > { %9888 = vmatpush1.bf16.msra.mxu0 %v9887_v34  ;;  %v515_v34 = vld [vmem:[%s15083_s1 + $0x160] sm:$0xff]  ;;  %9911 = vmatpush3.bf16.msra.mxu1 %v9908_v33  ;;  %v577_v33 = vld [vmem:[%s15083_s1 + $0x350] sm:$0xff] }
  0x4c   : > { %9889 = vmatprep.subr.bf16.mxu0 %v15096_v1 }
  0x4f   : > { %9891 = vmatpush1.bf16.msra.mxu0 %v9890_v37  ;;  %v520_v37 = vld [vmem:[%s15083_s1 + $0x188] sm:$0xff] }
  0x50   : > { %9892 = vmatprep.subr.bf16.mxu0 %v15096_v1 }
  0x53   : > { %9894 = vmatpush1.bf16.msra.mxu0 %v9893_v40  ;;  %v521_v40 = vld [vmem:[%s15083_s1 + $0x190] sm:$0xff] }
  0x54   : > { %9895 = vmatprep.subr.bf16.mxu0 %v15096_v1 }
  0x57   : > { %9897 = vmatpush1.bf16.msra.mxu0 %v9896_v43  ;;  %v526_v43 = vld [vmem:[%s15083_s1 + $0x1b8] sm:$0xff] }
  0x58   : > { %9898 = vmatprep.subr.bf16.mxu0 %v15096_v1 }
  0x5b   : > { %9900 = vmatpush1.bf16.msra.mxu0 %v9899_v46  ;;  %v527_v46 = vld [vmem:[%s15083_s1 + $0x1c0] sm:$0xff] }
  0x5c   : > { %9901 = vmatprep.subr.bf16.mxu0 %v15096_v1 }
  0x5f   : > { %9903 = vmatpush1.bf16.msra.mxu0 %v9902_v49  ;;  %v532_v49 = vld [vmem:[%s15083_s1 + $0x1e8] sm:$0xff] }
  0x62   : > { %728 = vmatmul.mubr.f32.vlgmr.msra.gmra.mrb[0].mxu0 %v471_v50  ;;  %v531_v50 = vld [vmem:[%s15083_s1 + $0x1e0] sm:$0xff] }
  0x63   : > { %732 = vmatprep.mubr.f32.mxu0 %v474_v51  ;;  %v534_v51 = vld [vmem:[%s15083_s1 + $0x1f8] sm:$0xff] }
  0x66   : > { %733 = vmatmul.mubr.f32.gmra.mrb[2].mxu0 %v473_v52  ;;  %v533_v52 = vld [vmem:[%s15083_s1 + $0x1f0] sm:$0xff] }
  0x67   : > { %737 = vmatprep.mubr.f32.mxu0 %v476_v53  ;;  %v536_v53 = vld [vmem:[%s15083_s1 + $0x208] sm:$0xff] }
  0x6a   : > { %738 = vmatmul.mubr.f32.gmra.mrb[4].mxu0 %v475_v54  ;;  %v535_v54 = vld [vmem:[%s15083_s1 + $0x200] sm:$0xff] }
  0x6b   : > { %742 = vmatprep.mubr.f32.mxu0 %v478_v55  ;;  %v538_v55 = vld [vmem:[%s15083_s1 + $0x218] sm:$0xff] }
  0x6e   : > { %743 = vmatmul.mubr.f32.gmra.mrb[6].mxu0 %v477_v56  ;;  %v537_v56 = vld [vmem:[%s15083_s1 + $0x210] sm:$0xff] }
  0x6f   : > { %747 = vmatprep.mubr.f32.mxu0 %v480_v57  ;;  %v540_v57 = vld [vmem:[%s15083_s1 + $0x228] sm:$0xff] }
  0x72   : > { %748 = vmatmul.mubr.f32.gmra.mrb[8].mxu0 %v479_v58  ;;  %v539_v58 = vld [vmem:[%s15083_s1 + $0x220] sm:$0xff] }
  0x73   : > { %752 = vmatprep.mubr.f32.mxu0 %v482_v59  ;;  %v542_v59 = vld [vmem:[%s15083_s1 + $0x238] sm:$0xff] }
  0x76   : > { %753 = vmatmul.mubr.f32.gmra.mrb[10].mxu0 %v481_v60  ;;  %v541_v60 = vld [vmem:[%s15083_s1 + $0x230] sm:$0xff] }
  0x77   : > { %757 = vmatprep.mubr.f32.mxu0 %v484_v61  ;;  %v544_v61 = vld [vmem:[%s15083_s1 + $0x248] sm:$0xff] }
  0x7a   : > { %758 = vmatmul.mubr.f32.gmra.mrb[12].mxu0 %v483_v62  ;;  %v543_v62 = vld [vmem:[%s15083_s1 + $0x240] sm:$0xff] }
  0x7b   : > { %762 = vmatprep.mubr.f32.mxu0 %v486_v63  ;;  %v546_v63 = vld [vmem:[%s15083_s1 + $0x258] sm:$0xff] }
  0x7e   : > { %763 = vmatmul.mubr.f32.gmra.mrb[14].mxu0 %v485_v0  ;;  %v545_v0 = vld [vmem:[%s15083_s1 + $0x250] sm:$0xff] }
  0x7f   : > { %767 = vmatprep.mubr.f32.mxu0 %v488_v2  ;;  %v548_v2 = vld [vmem:[%s15083_s1 + $0x268] sm:$0xff] }
  0x82   : > { %768 = vmatmul.mubr.f32.gmra.mrb[16].mxu0 %v487_v3  ;;  %v547_v3 = vld [vmem:[%s15083_s1 + $0x260] sm:$0xff] }
  0x83   : > { %772 = vmatprep.mubr.f32.mxu0 %v490_v4  ;;  %v550_v4 = vld [vmem:[%s15083_s1 + $0x278] sm:$0xff] }
  0x86   : > { %773 = vmatmul.mubr.f32.gmra.mrb[18].mxu0 %v489_v5  ;;  %v549_v5 = vld [vmem:[%s15083_s1 + $0x270] sm:$0xff] }
  0x87   : > { %777 = vmatprep.mubr.f32.mxu0 %v492_v6  ;;  %v552_v6 = vld [vmem:[%s15083_s1 + $0x288] sm:$0xff] }
  0x8a   : > { %778 = vmatmul.mubr.f32.gmra.mrb[20].mxu0 %v491_v7  ;;  %v551_v7 = vld [vmem:[%s15083_s1 + $0x280] sm:$0xff] }
  0x8b   : > { %782 = vmatprep.mubr.f32.mxu0 %v494_v8  ;;  %v554_v8 = vld [vmem:[%s15083_s1 + $0x298] sm:$0xff] }
  0x8e   : > { %783 = vmatmul.mubr.f32.gmra.mrb[22].mxu0 %v493_v9  ;;  %v553_v9 = vld [vmem:[%s15083_s1 + $0x290] sm:$0xff] }
  0x8f   : > { %787 = vmatprep.mubr.f32.mxu0 %v496_v10  ;;  %v556_v10 = vld [vmem:[%s15083_s1 + $0x2a8] sm:$0xff] }
  0x92   : > { %788 = vmatmul.mubr.f32.gmra.mrb[24].mxu0 %v495_v11  ;;  %v555_v11 = vld [vmem:[%s15083_s1 + $0x2a0] sm:$0xff] }
  0x93   : > { %792 = vmatprep.mubr.f32.mxu0 %v498_v12  ;;  %v558_v12 = vld [vmem:[%s15083_s1 + $0x2b8] sm:$0xff] }
  0x96   : > { %793 = vmatmul.mubr.f32.gmra.mrb[26].mxu0 %v497_v13  ;;  %v557_v13 = vld [vmem:[%s15083_s1 + $0x2b0] sm:$0xff] }
  0x97   : > { %797 = vmatprep.mubr.f32.mxu0 %v500_v14  ;;  %v560_v14 = vld [vmem:[%s15083_s1 + $0x2c8] sm:$0xff] }
  0x9a   : > { %798 = vmatmul.mubr.f32.gmra.mrb[28].mxu0 %v499_v15  ;;  %v559_v15 = vld [vmem:[%s15083_s1 + $0x2c0] sm:$0xff] }
  0x9b   : > { %802 = vmatprep.mubr.f32.mxu0 %v502_v16  ;;  %v562_v16 = vld [vmem:[%s15083_s1 + $0x2d8] sm:$0xff] }
  0x9e   : > { %803 = vmatmul.mubr.f32.gmra.mrb[30].mxu0 %v501_v17  ;;  %v561_v17 = vld [vmem:[%s15083_s1 + $0x2d0] sm:$0xff] }
  0x9f   : > { %807 = vmatprep.mubr.f32.mxu0 %v504_v18  ;;  %v564_v18 = vld [vmem:[%s15083_s1 + $0x2e8] sm:$0xff] }
  0xa2   : > { %808 = vmatmul.mubr.f32.gmra.mrb[32].mxu0 %v503_v19  ;;  %v563_v19 = vld [vmem:[%s15083_s1 + $0x2e0] sm:$0xff] }
  0xa3   : > { %812 = vmatprep.mubr.f32.mxu0 %v506_v20  ;;  %v566_v20 = vld [vmem:[%s15083_s1 + $0x2f8] sm:$0xff] }
  0xa6   : > { %813 = vmatmul.mubr.f32.gmra.mrb[34].mxu0 %v505_v21  ;;  %v565_v21 = vld [vmem:[%s15083_s1 + $0x2f0] sm:$0xff] }
  0xa7   : > { %817 = vmatprep.mubr.f32.mxu0 %v508_v22  ;;  %v568_v22 = vld [vmem:[%s15083_s1 + $0x308] sm:$0xff] }
  0xaa   : > { %818 = vmatmul.mubr.f32.gmra.mrb[36].mxu0 %v507_v23  ;;  %v567_v23 = vld [vmem:[%s15083_s1 + $0x300] sm:$0xff] }
  0xab   : > { %822 = vmatprep.mubr.f32.mxu0 %v510_v24  ;;  %v570_v24 = vld [vmem:[%s15083_s1 + $0x318] sm:$0xff] }
  0xae   : > { %823 = vmatmul.mubr.f32.gmra.mrb[38].mxu0 %v509_v25  ;;  %v569_v25 = vld [vmem:[%s15083_s1 + $0x310] sm:$0xff] }
  0xaf   : > { %827 = vmatprep.mubr.f32.mxu0 %v512_v26  ;;  %v572_v26 = vld [vmem:[%s15083_s1 + $0x328] sm:$0xff] }
  0xb2   : > { %828 = vmatmul.mubr.f32.gmra.mrb[40].mxu0 %v511_v27  ;;  %v571_v27 = vld [vmem:[%s15083_s1 + $0x320] sm:$0xff] }
  0xb3   : > { %832 = vmatprep.mubr.f32.mxu0 %v514_v28  ;;  %v574_v28 = vld [vmem:[%s15083_s1 + $0x338] sm:$0xff] }
  0xb6   : > { %833 = vmatmul.mubr.f32.gmra.mrb[42].mxu0 %v513_v29  ;;  %v573_v29 = vld [vmem:[%s15083_s1 + $0x330] sm:$0xff] }
  0xb7   : > { %837 = vmatprep.mubr.f32.mxu0 %v516_v32  ;;  %v578_v32 = vld [vmem:[%s15083_s1 + $0x358] sm:$0xff] }
  0xba   : > { %838 = vmatmul.mubr.f32.gmra.mrb[44].mxu0 %v515_v34  ;;  %v580_v34 = vld [vmem:[%s15083_s1 + $0x368] sm:$0xff] }
  0xbb   : > { %842 = vmatprep.mubr.f32.mxu0 %v518_v35 }
  0xbe   : > { %843 = vmatmul.mubr.f32.gmra.mrb[46].mxu0 %v517_v36 }
  0xbf   : > { %847 = vmatprep.mubr.f32.mxu0 %v520_v37  ;;  %v579_v37 = vld [vmem:[%s15083_s1 + $0x360] sm:$0xff] }
  0xc2   : > { %848 = vmatmul.mubr.f32.gmra.mrb[48].mxu0 %v519_v38  ;;  %v582_v38 = vld [vmem:[%s15083_s1 + $0x378] sm:$0xff] }
  0xc3   : > { %852 = vmatprep.mubr.f32.mxu0 %v522_v39 }
  0xc6   : > { %853 = vmatmul.mubr.f32.gmra.mrb[50].mxu0 %v521_v40 }
  0xc7   : > { %857 = vmatprep.mubr.f32.mxu0 %v524_v41  ;;  %v581_v41 = vld [vmem:[%s15083_s1 + $0x370] sm:$0xff] }
  0xca   : > { %858 = vmatmul.mubr.f32.gmra.mrb[52].mxu0 %v523_v42  ;;  %v584_v42 = vld [vmem:[%s15083_s1 + $0x388] sm:$0xff] }
  0xcb   : > { %862 = vmatprep.mubr.f32.mxu0 %v526_v43 }
  0xce   : > { %863 = vmatmul.mubr.f32.gmra.mrb[54].mxu0 %v525_v44 }
  0xcf   : > { %867 = vmatprep.mubr.f32.mxu0 %v528_v45  ;;  %v583_v45 = vld [vmem:[%s15083_s1 + $0x380] sm:$0xff] }
  0xd2   : > { %868 = vmatmul.mubr.f32.gmra.mrb[56].mxu0 %v527_v46  ;;  %v586_v46 = vld [vmem:[%s15083_s1 + $0x398] sm:$0xff] }
  0xd3   : > { %872 = vmatprep.mubr.f32.mxu0 %v530_v47 }
  0xd6   : > { %873 = vmatmul.mubr.f32.gmra.mrb[58].mxu0 %v529_v48 }
  0xd7   : > { %877 = vmatprep.mubr.f32.mxu0 %v532_v49  ;;  %v585_v49 = vld [vmem:[%s15083_s1 + $0x390] sm:$0xff] }
  0xda   : > { %878 = vmatmul.mubr.f32.gmra.mrb[60].mxu0 %v531_v50  ;;  %v588_v50 = vld [vmem:[%s15083_s1 + $0x3a8] sm:$0xff] }
  0xdb   : > { %882 = vmatprep.mubr.f32.mxu0 %v534_v51 }
  0xde   : > { %883 = vmatmul.mubr.f32.gmra.mrb[62].mxu0 %v533_v52 }
  0xdf   : > { %887 = vmatprep.mubr.f32.mxu0 %v536_v53  ;;  %v587_v53 = vld [vmem:[%s15083_s1 + $0x3a0] sm:$0xff] }
  0xe2   : > { %888 = vmatmul.mubr.f32.gmra.mrb[64].mxu0 %v535_v54  ;;  %v590_v54 = vld [vmem:[%s15083_s1 + $0x3b8] sm:$0xff] }
  0xe3   : > { %892 = vmatprep.mubr.f32.mxu0 %v538_v55 }
  0xe6   : > { %893 = vmatmul.mubr.f32.gmra.mrb[66].mxu0 %v537_v56 }
  0xe7   : > { %897 = vmatprep.mubr.f32.mxu0 %v540_v57  ;;  %v2212_v57 = vld [vmem:[%s15104_s3] sm:$0xff] }
  0xea   : > { %898 = vmatmul.mubr.f32.gmra.mrb[68].mxu0 %v539_v58  ;;  %v589_v58 = vld [vmem:[%s15083_s1 + $0x3b0] sm:$0xff] }
  0xeb   : > { %902 = vmatprep.mubr.f32.mxu0 %v542_v59  ;;  %v10659_v59 = vmov 0  }
  0xec   : > { %10592 = vset.pattern.permute.xlu0 %v10659_v59  ;;  %10593 = vset.pattern.permute.xlu1 %v10659_v59  ;;  %v2232_v59 = vld [vmem:[%s15104_s3 + $0xa0] sm:$0xff] }
  0xed   : > { %2246 = vperm.xlu0 %10592, %v2212_v57   ;;  %v609_v57 = vld [vmem:[%s15083_s1 + $0x450] sm:$0xff] }
  0xee   : > { %903 = vmatmul.mubr.f32.gmra.mrb[70].mxu0 %v541_v60  ;;  %v592_v60 = vld [vmem:[%s15083_s1 + $0x3c8] sm:$0xff] }
  0xef   : > { %907 = vmatprep.mubr.f32.mxu0 %v544_v61 }
  0xf2   : > { %908 = vmatmul.mubr.f32.gmra.mrb[72].mxu0 %v543_v62 }
  0xf3   : > { %912 = vmatprep.mubr.f32.mxu0 %v546_v63  ;;  %v2214_v63 = vld [vmem:[%s15104_s3 + $0x10] sm:$0xff] }
  0xf4   : > { %2256 = vperm.xlu1 %10593, %v2214_v63   ;;  %v611_v63 = vld [vmem:[%s15083_s1 + $0x460] sm:$0xff] }
  0xf6   : > { %913 = vmatmul.mubr.f32.gmra.mrb[74].mxu0 %v545_v0  ;;  %v2213_v0 = vld [vmem:[%s15104_s3 + $0x8] sm:$0xff] }
  0xf7   : > { %917 = vmatprep.mubr.f32.mxu0 %v548_v2  ;;  %v591_v2 = vld [vmem:[%s15083_s1 + $0x3c0] sm:$0xff]  ;;  %2251 = vperm.xlu0 %10592, %v2213_v0   ;;  %v2233_v0 = vld [vmem:[%s15104_s3 + $0xa8] sm:$0xff] }
  0xfa   : > { %918 = vmatmul.mubr.f32.gmra.mrb[76].mxu0 %v547_v3  ;;  %v594_v3 = vld [vmem:[%s15083_s1 + $0x3d8] sm:$0xff] }
  0xfb   : > { %922 = vmatprep.mubr.f32.mxu0 %v550_v4 }
  0xfe   : > { %923 = vmatmul.mubr.f32.gmra.mrb[78].mxu0 %v549_v5 }
  0xff   : > { %927 = vmatprep.mubr.f32.mxu0 %v552_v6  ;;  %v2215_v6 = vld [vmem:[%s15104_s3 + $0x18] sm:$0xff] }
 0x100   : > { %2261 = vperm.xlu1 %10593, %v2215_v6   ;;  %v613_v6 = vld [vmem:[%s15083_s1 + $0x470] sm:$0xff] }
 0x102   : > { %928 = vmatmul.mubr.f32.gmra.mrb[80].mxu0 %v551_v7  ;;  %v2216_v7 = vld [vmem:[%s15104_s3 + $0x20] sm:$0xff] }
 0x103   : > { %932 = vmatprep.mubr.f32.mxu0 %v554_v8  ;;  %v593_v8 = vld [vmem:[%s15083_s1 + $0x3d0] sm:$0xff]  ;;  %2266 = vperm.xlu0 %10592, %v2216_v7   ;;  %v2235_v7 = vld [vmem:[%s15104_s3 + $0xb8] sm:$0xff] }
 0x106   : > { %933 = vmatmul.mubr.f32.gmra.mrb[82].mxu0 %v553_v9  ;;  %v596_v9 = vld [vmem:[%s15083_s1 + $0x3e8] sm:$0xff] }
 0x107   : > { %937 = vmatprep.mubr.f32.mxu0 %v556_v10 }
 0x10a   : > { %938 = vmatmul.mubr.f32.gmra.mrb[84].mxu0 %v555_v11 }
 0x10b   : > { %942 = vmatprep.mubr.f32.mxu0 %v558_v12  ;;  %v2217_v12 = vld [vmem:[%s15104_s3 + $0x28] sm:$0xff] }
 0x10c   : > { %2271 = vperm.xlu1 %10593, %v2217_v12   ;;  %v615_v12 = vld [vmem:[%s15083_s1 + $0x480] sm:$0xff] }
 0x10e   : > { %943 = vmatmul.mubr.f32.gmra.mrb[86].mxu0 %v557_v13  ;;  %v2218_v13 = vld [vmem:[%s15104_s3 + $0x30] sm:$0xff] }
 0x10f   : > { %947 = vmatprep.mubr.f32.mxu0 %v560_v14  ;;  %v595_v14 = vld [vmem:[%s15083_s1 + $0x3e0] sm:$0xff]  ;;  %2276 = vperm.xlu0 %10592, %v2218_v13   ;;  %v2237_v13 = vld [vmem:[%s15104_s3 + $0xc8] sm:$0xff] }
 0x112   : > { %948 = vmatmul.mubr.f32.gmra.mrb[88].mxu0 %v559_v15  ;;  %v598_v15 = vld [vmem:[%s15083_s1 + $0x3f8] sm:$0xff] }
 0x113   : > { %952 = vmatprep.mubr.f32.mxu0 %v562_v16 }
 0x116   : > { %953 = vmatmul.mubr.f32.gmra.mrb[90].mxu0 %v561_v17 }
 0x117   : > { %957 = vmatprep.mubr.f32.mxu0 %v564_v18  ;;  %v2219_v18 = vld [vmem:[%s15104_s3 + $0x38] sm:$0xff] }
 0x118   : > { %2281 = vperm.xlu1 %10593, %v2219_v18   ;;  %v617_v18 = vld [vmem:[%s15083_s1 + $0x490] sm:$0xff] }
 0x11a   : > { %958 = vmatmul.mubr.f32.gmra.mrb[92].mxu0 %v563_v19  ;;  %v2220_v19 = vld [vmem:[%s15104_s3 + $0x40] sm:$0xff] }
 0x11b   : > { %962 = vmatprep.mubr.f32.mxu0 %v566_v20  ;;  %v597_v20 = vld [vmem:[%s15083_s1 + $0x3f0] sm:$0xff]  ;;  %2286 = vperm.xlu0 %10592, %v2220_v19   ;;  %v2239_v19 = vld [vmem:[%s15104_s3 + $0xd8] sm:$0xff] }
 0x11e   : > { %963 = vmatmul.mubr.f32.gmra.mrb[94].mxu0 %v565_v21  ;;  %v8623_v21 = vld [vmem:[%s15084_s2 + $0x10] sm:$0xff] }
 0x11f   : > { %967 = vmatprep.mubr.f32.mxu0 %v568_v22  ;;  %v8624_v22 = vld [vmem:[%s15084_s2 + $0x18] sm:$0xff] }
 0x122   : > { %968 = vmatmul.mubr.f32.gmra.mrb[96].mxu0 %v567_v23  ;;  %v600_v23 = vld [vmem:[%s15083_s1 + $0x408] sm:$0xff] }
 0x123   : > { %972 = vmatprep.mubr.f32.mxu0 %v570_v24  ;;  %v9904_v24 = vpack.c.bf16 %v8624_v22, %v8623_v21  ;;  %v620_v21 = vld [vmem:[%s15083_s1 + $0x4a8] sm:$0xff] }
 0x125   : > { %9905 = vmatprep.subr.bf16.mxu0 %v9904_v24 }
 0x126   : > { %973 = vmatmul.mubr.f32.gmra.mrb[98].mxu0 %v569_v25 }
 0x127   : > { %977 = vmatprep.mubr.f32.mxu0 %v572_v26  ;;  %9907 = vmatpush3.bf16.msra.mxu0 %v9904_v24  ;;  %v619_v24 = vld [vmem:[%s15083_s1 + $0x4a0] sm:$0xff] }
 0x12a   : > { %978 = vmatmul.mubr.f32.gmra.mrb[100].mxu0 %v571_v27  ;;  %v599_v27 = vld [vmem:[%s15083_s1 + $0x400] sm:$0xff] }
 0x12b   : > { %982 = vmatprep.mubr.f32.mxu0 %v574_v28  ;;  %v2221_v28 = vld [vmem:[%s15104_s3 + $0x48] sm:$0xff] }
 0x12c   : > { %2291 = vperm.xlu1 %10593, %v2221_v28  }
 0x12e   : > { %983 = vmatmul.mubr.f32.gmra.mrb[102].mxu0 %v573_v29  ;;  %v2222_v29 = vld [vmem:[%s15104_s3 + $0x50] sm:$0xff] }
 0x12f   : > { %987 = vmatprep.mubr.f32.mxu0 %v576_v30  ;;  %v602_v30 = vld [vmem:[%s15083_s1 + $0x418] sm:$0xff]  ;;  %2296 = vperm.xlu0 %10592, %v2222_v29  }
 0x132   : > { %988 = vmatmul.mubr.f32.gmra.mrb[104].mxu0 %v575_v31 }
 0x133   : > { %992 = vmatprep.mubr.f32.mxu0 %v578_v32 }
 0x135   : > { %v729_v35 = vpop.f32.mrb[0].mxu0 }
 0x136   : > { %v731_v36 = vpop.f32.mrb[1].mxu0  ;;  %993 = vmatmul.mubr.f32.gmra.mrb[106].mxu0 %v577_v33  ;;  %9396 = vmatprep.mubr.msk.f32.mxu1 %vm1213_vm0, %v729_v35  ;;  %v601_v33 = vld [vmem:[%s15083_s1 + $0x410] sm:$0xff]  ;;  %v2224_v35 = vld [vmem:[%s15104_s3 + $0x60] sm:$0xff] }
 0x137   : > { %997 = vmatprep.mubr.f32.mxu0 %v580_v34  ;;  %v2223_v34 = vld [vmem:[%s15104_s3 + $0x58] sm:$0xff]  ;;  %v604_v36 = vld [vmem:[%s15083_s1 + $0x428] sm:$0xff]  ;;  %2306 = vperm.xlu0 %10592, %v2224_v35  }
 0x138   : > { %2301 = vperm.xlu1 %10593, %v2223_v34  }
 0x139   : > { %v734_v39 = vpop.f32.mrb[2].mxu0 }
 0x13a   : > { %v736_v40 = vpop.f32.mrb[3].mxu0  ;;  %998 = vmatmul.mubr.f32.gmra.mrb[108].mxu0 %v579_v37  ;;  %9397 = vmatmul.mubr.msk.f32.vlgmr.msra.gmra.mrb[0].mxu1 %vm1213_vm0, %v734_v39  ;;  %v603_v39 = vld [vmem:[%s15083_s1 + $0x420] sm:$0xff] }
 0x13b   : > { %1002 = vmatprep.mubr.f32.mxu0 %v582_v38  ;;  %v2225_v40 = vld [vmem:[%s15104_s3 + $0x68] sm:$0xff] }
 0x13c   : > { %2311 = vperm.xlu1 %10593, %v2225_v40  }
 0x13d   : > { %v739_v43 = vpop.f32.mrb[4].mxu0 }
 0x13e   : > { %v741_v44 = vpop.f32.mrb[5].mxu0  ;;  %1003 = vmatmul.mubr.f32.gmra.mrb[110].mxu0 %v581_v41  ;;  %9399 = vmatprep.mubr.msk.f32.mxu1 %vm1213_vm0, %v739_v43  ;;  %v2226_v41 = vld [vmem:[%s15104_s3 + $0x70] sm:$0xff] }
 0x13f   : > { %1007 = vmatprep.mubr.f32.mxu0 %v584_v42  ;;  %v606_v42 = vld [vmem:[%s15083_s1 + $0x438] sm:$0xff]  ;;  %2316 = vperm.xlu0 %10592, %v2226_v41  }
 0x141   : > { %v744_v47 = vpop.f32.mrb[6].mxu0 }
 0x142   : > { %v746_v48 = vpop.f32.mrb[7].mxu0  ;;  %1008 = vmatmul.mubr.f32.gmra.mrb[112].mxu0 %v583_v45  ;;  %9400 = vmatmul.mubr.msk.f32.gmra.mrb[2].mxu1 %vm1213_vm0, %v744_v47  ;;  %v605_v45 = vld [vmem:[%s15083_s1 + $0x430] sm:$0xff]  ;;  %v2228_v47 = vld [vmem:[%s15104_s3 + $0x80] sm:$0xff] }
 0x143   : > { %1012 = vmatprep.mubr.f32.mxu0 %v586_v46  ;;  %v2227_v46 = vld [vmem:[%s15104_s3 + $0x78] sm:$0xff]  ;;  %v608_v48 = vld [vmem:[%s15083_s1 + $0x448] sm:$0xff]  ;;  %2326 = vperm.xlu0 %10592, %v2228_v47  }
 0x144   : > { %2321 = vperm.xlu1 %10593, %v2227_v46  }
 0x145   : > { %v749_v51 = vpop.f32.mrb[8].mxu0 }
 0x146   : > { %v751_v52 = vpop.f32.mrb[9].mxu0  ;;  %1013 = vmatmul.mubr.f32.gmra.mrb[114].mxu0 %v585_v49  ;;  %9402 = vmatprep.mubr.msk.f32.mxu1 %vm1213_vm0, %v749_v51  ;;  %v607_v51 = vld [vmem:[%s15083_s1 + $0x440] sm:$0xff] }
 0x147   : > { %1017 = vmatprep.mubr.f32.mxu0 %v588_v50  ;;  %v2229_v52 = vld [vmem:[%s15104_s3 + $0x88] sm:$0xff] }
 0x148   : > { %2331 = vperm.xlu1 %10593, %v2229_v52  }
 0x149   : > { %v754_v55 = vpop.f32.mrb[10].mxu0 }
 0x14a   : > { %v756_v56 = vpop.f32.mrb[11].mxu0  ;;  %1018 = vmatmul.mubr.f32.gmra.mrb[116].mxu0 %v587_v53  ;;  %9403 = vmatmul.mubr.msk.f32.gmra.mrb[4].mxu1 %vm1213_vm0, %v754_v55  ;;  %v2230_v53 = vld [vmem:[%s15104_s3 + $0x90] sm:$0xff] }
 0x14b   : > { %1022 = vmatprep.mubr.f32.mxu0 %v590_v54  ;;  %v610_v54 = vld [vmem:[%s15083_s1 + $0x458] sm:$0xff]  ;;  %2336 = vperm.xlu0 %10592, %v2230_v53  }
 0x14d   : > { %v759_v61 = vpop.f32.mrb[12].mxu0 }
 0x14e   : > { %v761_v62 = vpop.f32.mrb[13].mxu0  ;;  %1023 = vmatmul.mubr.f32.gmra.mrb[118].mxu0 %v589_v58  ;;  %9405 = vmatprep.mubr.msk.f32.mxu1 %vm1213_vm0, %v759_v61  ;;  %v2231_v58 = vld [vmem:[%s15104_s3 + $0x98] sm:$0xff] }
 0x14f   : > { %1027 = vmatprep.mubr.f32.mxu0 %v592_v60  ;;  %v612_v60 = vld [vmem:[%s15083_s1 + $0x468] sm:$0xff]  ;;  %2341 = vperm.xlu1 %10593, %v2231_v58  }
 0x150   : > { %2346 = vperm.xlu0 %10592, %v2232_v59  }
 0x151   : > { %v764_v4 = vpop.f32.mrb[14].mxu0 }
 0x152   : > { %v766_v5 = vpop.f32.mrb[15].mxu0  ;;  %1028 = vmatmul.mubr.f32.gmra.mrb[120].mxu0 %v591_v2  ;;  %9406 = vmatmul.mubr.msk.f32.gmra.mrb[6].mxu1 %vm1213_vm0, %v764_v4  ;;  %v2234_v2 = vld [vmem:[%s15104_s3 + $0xb0] sm:$0xff] }
 0x153   : > { %1032 = vmatprep.mubr.f32.mxu0 %v594_v3  ;;  %v614_v3 = vld [vmem:[%s15083_s1 + $0x478] sm:$0xff]  ;;  %2351 = vperm.xlu1 %10593, %v2233_v0  }
 0x154   : > { %2356 = vperm.xlu0 %10592, %v2234_v2  }
 0x155   : > { %v769_v10 = vpop.f32.mrb[16].mxu0 }
 0x156   : > { %v771_v11 = vpop.f32.mrb[17].mxu0  ;;  %1033 = vmatmul.mubr.f32.gmra.mrb[122].mxu0 %v593_v8  ;;  %9408 = vmatprep.mubr.msk.f32.mxu1 %vm1213_vm0, %v769_v10  ;;  %v2236_v8 = vld [vmem:[%s15104_s3 + $0xc0] sm:$0xff] }
 0x157   : > { %1037 = vmatprep.mubr.f32.mxu0 %v596_v9  ;;  %v616_v9 = vld [vmem:[%s15083_s1 + $0x488] sm:$0xff]  ;;  %2361 = vperm.xlu1 %10593, %v2235_v7  }
 0x158   : > { %2366 = vperm.xlu0 %10592, %v2236_v8  }
 0x159   : > { %v774_v16 = vpop.f32.mrb[18].mxu0 }
 0x15a   : > { %v776_v17 = vpop.f32.mrb[19].mxu0  ;;  %1038 = vmatmul.mubr.f32.gmra.mrb[124].mxu0 %v595_v14  ;;  %9409 = vmatmul.mubr.msk.f32.gmra.mrb[8].mxu1 %vm1213_vm0, %v774_v16  ;;  %v2238_v14 = vld [vmem:[%s15104_s3 + $0xd0] sm:$0xff] }
 0x15b   : > { %1042 = vmatprep.mubr.f32.mxu0 %v598_v15  ;;  %v618_v15 = vld [vmem:[%s15083_s1 + $0x498] sm:$0xff]  ;;  %2371 = vperm.xlu1 %10593, %v2237_v13  }
 0x15c   : > { %2376 = vperm.xlu0 %10592, %v2238_v14  }
 0x15d   : > { %v779_v25 = vpop.f32.mrb[20].mxu0 }
 0x15e   : > { %v781_v26 = vpop.f32.mrb[21].mxu0  ;;  %1043 = vmatmul.mubr.f32.gmra.mrb[126].mxu0 %v597_v20  ;;  %9411 = vmatprep.mubr.msk.f32.mxu1 %vm1213_vm0, %v779_v25  ;;  %v2240_v20 = vld [vmem:[%s15104_s3 + $0xe0] sm:$0xff]  ;;  %v2241_v25 = vld [vmem:[%s15104_s3 + $0xe8] sm:$0xff] }
 0x15f   : > { %1047 = vmatprep.mubr.f32.mxu0 %v600_v23  ;;  %2381 = vperm.xlu1 %10593, %v2239_v19   ;;  %v2242_v26 = vld [vmem:[%s15104_s3 + $0xf0] sm:$0xff] }
 0x160   : > { %2386 = vperm.xlu0 %10592, %v2240_v20  }
 0x161   : > { %v784_v31 = vpop.f32.mrb[22].mxu0 }
 0x162   : > { %v786_v32 = vpop.f32.mrb[23].mxu0  ;;  %1048 = vmatmul.mubr.f32.gmra.mrb[128].mxu0 %v599_v27  ;;  %9412 = vmatmul.mubr.msk.f32.gmra.mrb[10].mxu1 %vm1213_vm0, %v784_v31  ;;  %v622_v27 = vld [vmem:[%s15083_s1 + $0x4b8] sm:$0xff]  ;;  %v4215_v31 = vld [vmem:[%s15088_s6] sm:$0xff] }
 0x163   : > { %1052 = vmatprep.mubr.f32.mxu0 %v602_v30  ;;  %2391 = vperm.xlu1 %10593, %v2241_v25   ;;  %v2243_v30 = vld [vmem:[%s15104_s3 + $0xf8] sm:$0xff]  ;;  %v621_v32 = vld [vmem:[%s15083_s1 + $0x4b0] sm:$0xff]  ;;  %s15033_s3 = scalar_lea.hbm %s15095_s13, %s9009_s21 }
 0x164   : > { %2396 = vperm.xlu0 %10592, %v2242_v26  }
 0x165   : > { %v789_v37 = vpop.f32.mrb[24].mxu0 }
 0x166   : > { %v791_v38 = vpop.f32.mrb[25].mxu0  ;;  %1053 = vmatmul.mubr.f32.gmra.mrb[130].mxu0 %v601_v33  ;;  %9414 = vmatprep.mubr.msk.f32.mxu1 %vm1213_vm0, %v789_v37  ;;  %v624_v33 = vld [vmem:[%s15083_s1 + $0x4c8] sm:$0xff]  ;;  %v4217_v37 = vld [vmem:[%s15088_s6 + $0x10] sm:$0xff] }
 0x167   : > { %1057 = vmatprep.mubr.f32.mxu0 %v604_v36  ;;  %2401 = vperm.xlu1 %10593, %v2243_v30   ;;  %v4216_v36 = vld [vmem:[%s15088_s6 + $0x8] sm:$0xff]  ;;  %v623_v38 = vld [vmem:[%s15083_s1 + $0x4c0] sm:$0xff] }
 0x168   : > { %4249 = vperm.xlu0 %10592, %v4215_v31   ;;  %v8689_v30 = vld [vmem:[%s15084_s2 + $0x20] sm:$0xff]  ;;  %v8690_v31 = vld [vmem:[%s15084_s2 + $0x28] sm:$0xff] }
 0x169   : > { %v794_v43 = vpop.f32.mrb[26].mxu0 }
 0x16a   : > { %v796_v44 = vpop.f32.mrb[27].mxu0  ;;  %1058 = vmatmul.mubr.f32.gmra.mrb[132].mxu0 %v603_v39  ;;  %9415 = vmatmul.mubr.msk.f32.gmra.mrb[12].mxu1 %vm1213_vm0, %v794_v43  ;;  %v626_v39 = vld [vmem:[%s15083_s1 + $0x4d8] sm:$0xff]  ;;  %v4219_v43 = vld [vmem:[%s15088_s6 + $0x20] sm:$0xff] }
 0x16b   : > { %1062 = vmatprep.mubr.f32.mxu0 %v606_v42  ;;  %4254 = vperm.xlu1 %10593, %v4216_v36   ;;  %v4218_v42 = vld [vmem:[%s15088_s6 + $0x18] sm:$0xff]  ;;  %v625_v44 = vld [vmem:[%s15083_s1 + $0x4d0] sm:$0xff]  ;;  %v4236_v36 = vld [vmem:[%s15088_s6 + $0xa8] sm:$0xff] }
 0x16c   : > { %4259 = vperm.xlu0 %10592, %v4217_v37   ;;  %v4237_v37 = vld [vmem:[%s15088_s6 + $0xb0] sm:$0xff] }
 0x16d   : > { %v799_v49 = vpop.f32.mrb[28].mxu0 }
 0x16e   : > { %v801_v50 = vpop.f32.mrb[29].mxu0  ;;  %1063 = vmatmul.mubr.f32.gmra.mrb[134].mxu0 %v605_v45  ;;  %9417 = vmatprep.mubr.msk.f32.mxu1 %vm1213_vm0, %v799_v49  ;;  %v628_v45 = vld [vmem:[%s15083_s1 + $0x4e8] sm:$0xff]  ;;  %v4221_v49 = vld [vmem:[%s15088_s6 + $0x30] sm:$0xff] }
 0x16f   : > { %1067 = vmatprep.mubr.f32.mxu0 %v608_v48  ;;  %4264 = vperm.xlu1 %10593, %v4218_v42   ;;  %v4220_v48 = vld [vmem:[%s15088_s6 + $0x28] sm:$0xff]  ;;  %v627_v50 = vld [vmem:[%s15083_s1 + $0x4e0] sm:$0xff]  ;;  %v4238_v42 = vld [vmem:[%s15088_s6 + $0xb8] sm:$0xff] }
 0x170   : > { %4269 = vperm.xlu0 %10592, %v4219_v43   ;;  %v4239_v43 = vld [vmem:[%s15088_s6 + $0xc0] sm:$0xff] }
 0x171   : > { %v804_v55 = vpop.f32.mrb[30].mxu0 }
 0x172   : > { %v806_v56 = vpop.f32.mrb[31].mxu0  ;;  %1068 = vmatmul.mubr.f32.gmra.mrb[136].mxu0 %v607_v51  ;;  %9418 = vmatmul.mubr.msk.f32.gmra.mrb[14].mxu1 %vm1213_vm0, %v804_v55  ;;  %v630_v51 = vld [vmem:[%s15083_s1 + $0x4f8] sm:$0xff]  ;;  %v4223_v55 = vld [vmem:[%s15088_s6 + $0x40] sm:$0xff] }
 0x173   : > { %1072 = vmatprep.mubr.f32.mxu0 %v610_v54  ;;  %4274 = vperm.xlu1 %10593, %v4220_v48   ;;  %v4222_v54 = vld [vmem:[%s15088_s6 + $0x38] sm:$0xff]  ;;  %v629_v56 = vld [vmem:[%s15083_s1 + $0x4f0] sm:$0xff]  ;;  %v4240_v48 = vld [vmem:[%s15088_s6 + $0xc8] sm:$0xff] }
 0x174   : > { %4279 = vperm.xlu0 %10592, %v4221_v49   ;;  %v4241_v49 = vld [vmem:[%s15088_s6 + $0xd0] sm:$0xff] }
 0x175   : > { %v809_v61 = vpop.f32.mrb[32].mxu0 }
 0x176   : > { %v811_v62 = vpop.f32.mrb[33].mxu0  ;;  %1073 = vmatmul.mubr.f32.gmra.mrb[138].mxu0 %v609_v57  ;;  %9420 = vmatprep.mubr.msk.f32.mxu1 %vm1213_vm0, %v809_v61  ;;  %v632_v57 = vld [vmem:[%s15083_s1 + $0x508] sm:$0xff]  ;;  %v4225_v61 = vld [vmem:[%s15088_s6 + $0x50] sm:$0xff] }
 0x177   : > { %1077 = vmatprep.mubr.f32.mxu0 %v612_v60  ;;  %4284 = vperm.xlu1 %10593, %v4222_v54   ;;  %v4224_v60 = vld [vmem:[%s15088_s6 + $0x48] sm:$0xff]  ;;  %v631_v62 = vld [vmem:[%s15083_s1 + $0x500] sm:$0xff]  ;;  %v4242_v54 = vld [vmem:[%s15088_s6 + $0xd8] sm:$0xff] }
 0x178   : > { %4289 = vperm.xlu0 %10592, %v4223_v55   ;;  %v4243_v55 = vld [vmem:[%s15088_s6 + $0xe0] sm:$0xff] }
 0x179   : > { %v814_v4 = vpop.f32.mrb[34].mxu0 }
 0x17a   : > { %v816_v5 = vpop.f32.mrb[35].mxu0  ;;  %1078 = vmatmul.mubr.f32.gmra.mrb[140].mxu0 %v611_v63  ;;  %9421 = vmatmul.mubr.msk.f32.gmra.mrb[16].mxu1 %vm1213_vm0, %v814_v4  ;;  %v634_v63 = vld [vmem:[%s15083_s1 + $0x518] sm:$0xff]  ;;  %v4227_v4 = vld [vmem:[%s15088_s6 + $0x60] sm:$0xff] }
 0x17b   : > { %1082 = vmatprep.mubr.f32.mxu0 %v614_v3  ;;  %4294 = vperm.xlu1 %10593, %v4224_v60   ;;  %v4226_v3 = vld [vmem:[%s15088_s6 + $0x58] sm:$0xff]  ;;  %v633_v5 = vld [vmem:[%s15083_s1 + $0x510] sm:$0xff]  ;;  %v4244_v60 = vld [vmem:[%s15088_s6 + $0xe8] sm:$0xff] }
 0x17c   : > { %4299 = vperm.xlu0 %10592, %v4225_v61   ;;  %v4245_v61 = vld [vmem:[%s15088_s6 + $0xf0] sm:$0xff] }
 0x17d   : > { %v819_v10 = vpop.f32.mrb[36].mxu0 }
 0x17e   : > { %v821_v11 = vpop.f32.mrb[37].mxu0  ;;  %1083 = vmatmul.mubr.f32.gmra.mrb[142].mxu0 %v613_v6  ;;  %9423 = vmatprep.mubr.msk.f32.mxu1 %vm1213_vm0, %v819_v10  ;;  %v636_v6 = vld [vmem:[%s15083_s1 + $0x528] sm:$0xff]  ;;  %v4229_v10 = vld [vmem:[%s15088_s6 + $0x70] sm:$0xff] }
 0x17f   : > { %1087 = vmatprep.mubr.f32.mxu0 %v616_v9  ;;  %4304 = vperm.xlu1 %10593, %v4226_v3   ;;  %v4228_v9 = vld [vmem:[%s15088_s6 + $0x68] sm:$0xff]  ;;  %v635_v11 = vld [vmem:[%s15083_s1 + $0x520] sm:$0xff]  ;;  %v4246_v3 = vld [vmem:[%s15088_s6 + $0xf8] sm:$0xff] }
 0x180   : > { %4309 = vperm.xlu0 %10592, %v4227_v4   ;;  %v6230_v4 = vld [vmem:[%s15091_s9] sm:$0xff] }
 0x181   : > { %v824_v16 = vpop.f32.mrb[38].mxu0 }
 0x182   : > { %v826_v17 = vpop.f32.mrb[39].mxu0  ;;  %1088 = vmatmul.mubr.f32.gmra.mrb[144].mxu0 %v615_v12  ;;  %9424 = vmatmul.mubr.msk.f32.gmra.mrb[18].mxu1 %vm1213_vm0, %v824_v16  ;;  %v638_v12 = vld [vmem:[%s15083_s1 + $0x538] sm:$0xff]  ;;  %v4231_v16 = vld [vmem:[%s15088_s6 + $0x80] sm:$0xff] }
 0x183   : > { %1092 = vmatprep.mubr.f32.mxu0 %v618_v15  ;;  %4314 = vperm.xlu1 %10593, %v4228_v9   ;;  %v4230_v15 = vld [vmem:[%s15088_s6 + $0x78] sm:$0xff]  ;;  %v637_v17 = vld [vmem:[%s15083_s1 + $0x530] sm:$0xff]  ;;  %v6231_v9 = vld [vmem:[%s15091_s9 + $0x8] sm:$0xff] }
 0x184   : > { %4319 = vperm.xlu0 %10592, %v4229_v10   ;;  %v6232_v10 = vld [vmem:[%s15091_s9 + $0x10] sm:$0xff] }
 0x185   : > { %v829_v22 = vpop.f32.mrb[40].mxu0 }
 0x186   : > { %v831_v23 = vpop.f32.mrb[41].mxu0  ;;  %1093 = vmatmul.mubr.f32.gmra.mrb[146].mxu0 %v617_v18  ;;  %9426 = vmatprep.mubr.msk.f32.mxu1 %vm1213_vm0, %v829_v22  ;;  %v640_v18 = vld [vmem:[%s15083_s1 + $0x548] sm:$0xff]  ;;  %v4233_v22 = vld [vmem:[%s15088_s6 + $0x90] sm:$0xff] }
 0x187   : > { %1097 = vmatprep.mubr.f32.mxu0 %v620_v21  ;;  %4324 = vperm.xlu1 %10593, %v4230_v15   ;;  %v4232_v21 = vld [vmem:[%s15088_s6 + $0x88] sm:$0xff]  ;;  %v639_v23 = vld [vmem:[%s15083_s1 + $0x540] sm:$0xff]  ;;  %v6233_v15 = vld [vmem:[%s15091_s9 + $0x18] sm:$0xff] }
 0x188   : > { %4329 = vperm.xlu0 %10592, %v4231_v16   ;;  %v6234_v16 = vld [vmem:[%s15091_s9 + $0x20] sm:$0xff] }
 0x189   : > { %v834_v28 = vpop.f32.mrb[42].mxu0 }
 0x18a   : > { %v836_v29 = vpop.f32.mrb[43].mxu0  ;;  %1098 = vmatmul.mubr.f32.gmra.mrb[148].mxu0 %v619_v24  ;;  %9427 = vmatmul.mubr.msk.f32.gmra.mrb[20].mxu1 %vm1213_vm0, %v834_v28  ;;  %v642_v24 = vld [vmem:[%s15083_s1 + $0x558] sm:$0xff]  ;;  %v4235_v28 = vld [vmem:[%s15088_s6 + $0xa0] sm:$0xff] }
 0x18b   : > { %1102 = vmatprep.mubr.f32.mxu0 %v622_v27  ;;  %4334 = vperm.xlu1 %10593, %v4232_v21   ;;  %v4234_v27 = vld [vmem:[%s15088_s6 + $0x98] sm:$0xff]  ;;  %v641_v29 = vld [vmem:[%s15083_s1 + $0x550] sm:$0xff]  ;;  %v6235_v21 = vld [vmem:[%s15091_s9 + $0x28] sm:$0xff] }
 0x18c   : > { %4339 = vperm.xlu0 %10592, %v4233_v22   ;;  %v6236_v22 = vld [vmem:[%s15091_s9 + $0x30] sm:$0xff] }
 0x18d   : > { %v839_v34 = vpop.f32.mrb[44].mxu0 }
 0x18e   : > { %v841_v35 = vpop.f32.mrb[45].mxu0  ;;  %1103 = vmatmul.mubr.f32.gmra.mrb[150].mxu0 %v621_v32  ;;  %9429 = vmatprep.mubr.msk.f32.mxu1 %vm1213_vm0, %v839_v34  ;;  %v644_v32 = vld [vmem:[%s15083_s1 + $0x568] sm:$0xff] }
 0x18f   : > { %1107 = vmatprep.mubr.f32.mxu0 %v624_v33  ;;  %4344 = vperm.xlu1 %10593, %v4234_v27   ;;  %v9912_v33 = vpack.c.bf16 %v8690_v31, %v8689_v30  ;;  %v6237_v27 = vld [vmem:[%s15091_s9 + $0x38] sm:$0xff] }
 0x190   : > { %4349 = vperm.xlu0 %10592, %v4235_v28   ;;  %v6238_v28 = vld [vmem:[%s15091_s9 + $0x40] sm:$0xff] }
 0x191   : > { %v844_v40 = vpop.f32.mrb[46].mxu0  ;;  %9913 = vmatprep.subr.bf16.mxu1 %v9912_v33 }
 0x192   : > { %v846_v41 = vpop.f32.mrb[47].mxu0  ;;  %1108 = vmatmul.mubr.f32.gmra.mrb[152].mxu0 %v623_v38  ;;  %9430 = vmatmul.mubr.msk.f32.gmra.mrb[22].mxu1 %vm1213_vm0, %v844_v40  ;;  %v643_v38 = vld [vmem:[%s15083_s1 + $0x560] sm:$0xff] }
 0x193   : > { %1112 = vmatprep.mubr.f32.mxu0 %v626_v39  ;;  %9915 = vmatpush3.bf16.msra.mxu1 %v9912_v33  ;;  %v646_v39 = vld [vmem:[%s15083_s1 + $0x578] sm:$0xff]  ;;  %v6240_v33 = vld [vmem:[%s15091_s9 + $0x50] sm:$0xff] }
 0x194   : > { %4354 = vperm.xlu1 %10593, %v4236_v36   ;;  %9916 = vmatprep.subr.bf16.mxu1 %v15096_v1 }
 0x195   : > { %v849_v46 = vpop.f32.mrb[48].mxu0  ;;  %4359 = vperm.xlu0 %10592, %v4237_v37   ;;  %v6241_v37 = vld [vmem:[%s15091_s9 + $0x58] sm:$0xff] }
 0x196   : > { %v851_v47 = vpop.f32.mrb[49].mxu0  ;;  %1113 = vmatmul.mubr.f32.gmra.mrb[154].mxu0 %v625_v44  ;;  %9432 = vmatprep.mubr.msk.f32.mxu1 %vm1213_vm0, %v849_v46  ;;  %v645_v44 = vld [vmem:[%s15083_s1 + $0x570] sm:$0xff] }
 0x197   : > { %1117 = vmatprep.mubr.f32.mxu0 %v628_v45  ;;  %v648_v45 = vld [vmem:[%s15083_s1 + $0x588] sm:$0xff] }
 0x198   : > { %4364 = vperm.xlu1 %10593, %v4238_v42  }
 0x199   : > { %v854_v52 = vpop.f32.mrb[50].mxu0  ;;  %4369 = vperm.xlu0 %10592, %v4239_v43  }
 0x19a   : > { %v856_v53 = vpop.f32.mrb[51].mxu0  ;;  %1118 = vmatmul.mubr.f32.gmra.mrb[156].mxu0 %v627_v50  ;;  %9433 = vmatmul.mubr.msk.f32.gmra.mrb[24].mxu1 %vm1213_vm0, %v854_v52  ;;  %v647_v50 = vld [vmem:[%s15083_s1 + $0x580] sm:$0xff] }
 0x19b   : > { %1122 = vmatprep.mubr.f32.mxu0 %v630_v51  ;;  %v650_v51 = vld [vmem:[%s15083_s1 + $0x598] sm:$0xff] }
 0x19c   : > { %4374 = vperm.xlu1 %10593, %v4240_v48   ;;  %v6247_v48 = vld [vmem:[%s15091_s9 + $0x88] sm:$0xff] }
 0x19d   : > { %v859_v58 = vpop.f32.mrb[52].mxu0  ;;  %4379 = vperm.xlu0 %10592, %v4241_v49   ;;  %v6248_v49 = vld [vmem:[%s15091_s9 + $0x90] sm:$0xff] }
 0x19e   : > { %v861_v59 = vpop.f32.mrb[53].mxu0  ;;  %1123 = vmatmul.mubr.f32.gmra.mrb[158].mxu0 %v629_v56  ;;  %9435 = vmatprep.mubr.msk.f32.mxu1 %vm1213_vm0, %v859_v58  ;;  %v649_v56 = vld [vmem:[%s15083_s1 + $0x590] sm:$0xff] }
 0x19f   : > { %1127 = vmatprep.mubr.f32.mxu0 %v632_v57  ;;  %v652_v57 = vld [vmem:[%s15083_s1 + $0x5a8] sm:$0xff] }
 0x1a0   : > { %4384 = vperm.xlu1 %10593, %v4242_v54  }
 0x1a1   : > { %v864_v0 = vpop.f32.mrb[54].mxu0  ;;  %4389 = vperm.xlu0 %10592, %v4243_v55   ;;  %v11754_v55 = vpop.permute.xlu0 %2246 }
 0x1a2   : > { %v866_v2 = vpop.f32.mrb[55].mxu0  ;;  %1128 = vmatmul.mubr.f32.gmra.mrb[160].mxu0 %v631_v62  ;;  %9436 = vmatmul.mubr.msk.f32.gmra.mrb[26].mxu1 %vm1213_vm0, %v864_v0  ;;  %v651_v62 = vld [vmem:[%s15083_s1 + $0x5a0] sm:$0xff] }
 0x1a3   : > { %1132 = vmatprep.mubr.f32.mxu0 %v634_v63  ;;  %v654_v63 = vld [vmem:[%s15083_s1 + $0x5b8] sm:$0xff] }
 0x1a4   : > { %4394 = vperm.xlu1 %10593, %v4244_v60  }
 0x1a5   : > { %v869_v7 = vpop.f32.mrb[56].mxu0  ;;  %4399 = vperm.xlu0 %10592, %v4245_v61  }
 0x1a6   : > { %v871_v8 = vpop.f32.mrb[57].mxu0  ;;  %1133 = vmatmul.mubr.f32.gmra.mrb[162].mxu0 %v633_v5  ;;  %9438 = vmatprep.mubr.msk.f32.mxu1 %vm1213_vm0, %v869_v7  ;;  %v653_v5 = vld [vmem:[%s15083_s1 + $0x5b0] sm:$0xff] }
 0x1a7   : > { %1137 = vmatprep.mubr.f32.mxu0 %v636_v6  ;;  %v656_v6 = vld [vmem:[%s15083_s1 + $0x5c8] sm:$0xff] }
 0x1a8   : > { %4404 = vperm.xlu1 %10593, %v4246_v3  }
 0x1a9   : > { %v874_v13 = vpop.f32.mrb[58].mxu0  ;;  %6264 = vperm.xlu0 %10592, %v6230_v4  }
 0x1aa   : > { %v876_v14 = vpop.f32.mrb[59].mxu0  ;;  %1138 = vmatmul.mubr.f32.gmra.mrb[164].mxu0 %v635_v11  ;;  %9439 = vmatmul.mubr.msk.f32.gmra.mrb[28].mxu1 %vm1213_vm0, %v874_v13  ;;  %v655_v11 = vld [vmem:[%s15083_s1 + $0x5c0] sm:$0xff] }
 0x1ab   : > { %1142 = vmatprep.mubr.f32.mxu0 %v638_v12  ;;  %v658_v12 = vld [vmem:[%s15083_s1 + $0x5d8] sm:$0xff] }
 0x1ac   : > { %6269 = vperm.xlu1 %10593, %v6231_v9  }
 0x1ad   : > { %v879_v19 = vpop.f32.mrb[60].mxu0  ;;  %6274 = vperm.xlu0 %10592, %v6232_v10   ;;  %v6257_v10 = vld [vmem:[%s15091_s9 + $0xd8] sm:$0xff] }
 0x1ae   : > { %v881_v20 = vpop.f32.mrb[61].mxu0  ;;  %1143 = vmatmul.mubr.f32.gmra.mrb[166].mxu0 %v637_v17  ;;  %9441 = vmatprep.mubr.msk.f32.mxu1 %vm1213_vm0, %v879_v19  ;;  %v657_v17 = vld [vmem:[%s15083_s1 + $0x5d0] sm:$0xff] }
 0x1af   : > { %1147 = vmatprep.mubr.f32.mxu0 %v640_v18  ;;  %v660_v18 = vld [vmem:[%s15083_s1 + $0x5e8] sm:$0xff] }
 0x1b0   : > { %6279 = vperm.xlu1 %10593, %v6233_v15   ;;  %v6259_v15 = vld [vmem:[%s15091_s9 + $0xe8] sm:$0xff] }
 0x1b1   : > { %v884_v25 = vpop.f32.mrb[62].mxu0  ;;  %6284 = vperm.xlu0 %10592, %v6234_v16   ;;  %v6260_v16 = vld [vmem:[%s15091_s9 + $0xf0] sm:$0xff] }
 0x1b2   : > { %v886_v26 = vpop.f32.mrb[63].mxu0  ;;  %1148 = vmatmul.mubr.f32.gmra.mrb[168].mxu0 %v639_v23  ;;  %9442 = vmatmul.mubr.msk.f32.gmra.mrb[30].mxu1 %vm1213_vm0, %v884_v25  ;;  %v659_v23 = vld [vmem:[%s15083_s1 + $0x5e0] sm:$0xff] }
 0x1b3   : > { %1152 = vmatprep.mubr.f32.mxu0 %v642_v24  ;;  %v662_v24 = vld [vmem:[%s15083_s1 + $0x5f8] sm:$0xff] }
 0x1b4   : > { %6289 = vperm.xlu1 %10593, %v6235_v21   ;;  %v6261_v21 = vld [vmem:[%s15091_s9 + $0xf8] sm:$0xff] }
 0x1b5   : > { %v11565_v34 = vpop.f32.mrb[64].mxu0  ;;  %6294 = vperm.xlu0 %10592, %v6236_v22   ;;  %v8156_v22 = vld [vmem:[%s15094_s12] sm:$0xff] }
 0x1b6   : > { %v891_v35 = vpop.f32.mrb[65].mxu0  ;;  %1153 = vmatmul.mubr.f32.gmra.mrb[170].mxu0 %v641_v29  ;;  %v661_v29 = vld [vmem:[%s15083_s1 + $0x5f0] sm:$0xff] }
 0x1b7   : > { %1157 = vmatprep.mubr.f32.mxu0 %v644_v32  ;;  %v6239_v32 = vld [vmem:[%s15091_s9 + $0x48] sm:$0xff] }
 0x1b8   : > { %6299 = vperm.xlu1 %10593, %v6237_v27   ;;  %v8158_v27 = vld [vmem:[%s15094_s12 + $0x10] sm:$0xff] }
 0x1b9   : > { %v11580_v40 = vpop.f32.mrb[66].mxu0  ;;  %6304 = vperm.xlu0 %10592, %v6238_v28  }
 0x1ba   : > { %v896_v41 = vpop.f32.mrb[67].mxu0  ;;  %1158 = vmatmul.mubr.f32.gmra.mrb[172].mxu0 %v643_v38  ;;  %v6242_v38 = vld [vmem:[%s15091_s9 + $0x60] sm:$0xff] }
 0x1bb   : > { %1162 = vmatprep.mubr.f32.mxu0 %v646_v39  ;;  %v6244_v41 = vld [vmem:[%s15091_s9 + $0x70] sm:$0xff] }
 0x1bc   : > { %6309 = vperm.xlu1 %10593, %v6239_v32   ;;  %v8160_v32 = vld [vmem:[%s15094_s12 + $0x20] sm:$0xff] }
 0x1bd   : > { %v11594_v46 = vpop.f32.mrb[68].mxu0  ;;  %6314 = vperm.xlu0 %10592, %v6240_v33  }
 0x1be   : > { %v901_v47 = vpop.f32.mrb[69].mxu0  ;;  %1163 = vmatmul.mubr.f32.gmra.mrb[174].mxu0 %v645_v44  ;;  %v6245_v44 = vld [vmem:[%s15091_s9 + $0x78] sm:$0xff] }
 0x1bf   : > { %1167 = vmatprep.mubr.f32.mxu0 %v648_v45  ;;  %v6246_v45 = vld [vmem:[%s15091_s9 + $0x80] sm:$0xff] }
 0x1c0   : > { %6319 = vperm.xlu1 %10593, %v6241_v37  }
 0x1c1   : > { %v11608_v52 = vpop.f32.mrb[70].mxu0  ;;  %6324 = vperm.xlu0 %10592, %v6242_v38   ;;  %v8161_v38 = vld [vmem:[%s15094_s12 + $0x28] sm:$0xff] }
 0x1c2   : > { %v906_v53 = vpop.f32.mrb[71].mxu0  ;;  %1168 = vmatmul.mubr.f32.gmra.mrb[176].mxu0 %v647_v50 }
 0x1c3   : > { %1172 = vmatprep.mubr.f32.mxu0 %v650_v51  ;;  %v6250_v53 = vld [vmem:[%s15091_s9 + $0xa0] sm:$0xff] }
 0x1c5   : > { %v11622_v58 = vpop.f32.mrb[72].mxu0  ;;  %6334 = vperm.xlu0 %10592, %v6244_v41  }
 0x1c6   : > { %v911_v59 = vpop.f32.mrb[73].mxu0  ;;  %1173 = vmatmul.mubr.f32.gmra.mrb[178].mxu0 %v649_v56 }
 0x1c7   : > { %1177 = vmatprep.mubr.f32.mxu0 %v652_v57  ;;  %v6251_v57 = vld [vmem:[%s15091_s9 + $0xa8] sm:$0xff]  ;;  %v11764_v59 = vpop.permute.xlu1 %2256 }
 0x1c9   : > { %v11636_v0 = vpop.f32.mrb[74].mxu0  ;;  %6344 = vperm.xlu0 %10592, %v6246_v45  }
 0x1ca   : > { %v916_v2 = vpop.f32.mrb[75].mxu0  ;;  %1178 = vmatmul.mubr.f32.gmra.mrb[180].mxu0 %v651_v62  ;;  %v6253_v62 = vld [vmem:[%s15091_s9 + $0xb8] sm:$0xff] }
 0x1cb   : > { %1182 = vmatprep.mubr.f32.mxu0 %v654_v63  ;;  %v6254_v63 = vld [vmem:[%s15091_s9 + $0xc0] sm:$0xff]  ;;  %v11777_v4 = vpop.permute.xlu1 %2261 }
 0x1cd   : > { %v11650_v7 = vpop.f32.mrb[76].mxu0  ;;  %6354 = vperm.xlu0 %10592, %v6248_v49  }
 0x1ce   : > { %v921_v8 = vpop.f32.mrb[77].mxu0  ;;  %1183 = vmatmul.mubr.f32.gmra.mrb[182].mxu0 %v653_v5  ;;  %v6255_v5 = vld [vmem:[%s15091_s9 + $0xc8] sm:$0xff] }
 0x1cf   : > { %1187 = vmatprep.mubr.f32.mxu0 %v656_v6  ;;  %v6256_v6 = vld [vmem:[%s15091_s9 + $0xd0] sm:$0xff] }
 0x1d1   : > { %v11664_v13 = vpop.f32.mrb[78].mxu0  ;;  %6364 = vperm.xlu0 %10592, %v6250_v53   ;;  %v8167_v53 = vld [vmem:[%s15094_s12 + $0x58] sm:$0xff] }
 0x1d2   : > { %v926_v14 = vpop.f32.mrb[79].mxu0  ;;  %1188 = vmatmul.mubr.f32.gmra.mrb[184].mxu0 %v655_v11  ;;  %v6258_v11 = vld [vmem:[%s15091_s9 + $0xe0] sm:$0xff] }
 0x1d3   : > { %1192 = vmatprep.mubr.f32.mxu0 %v658_v12  ;;  %v11796_v12 = vpop.permute.xlu1 %2271 }
 0x1d5   : > { %v929_v19 = vpop.f32.mrb[80].mxu0 }
 0x1d6   : > { %v931_v20 = vpop.f32.mrb[81].mxu0  ;;  %1193 = vmatmul.mubr.f32.gmra.mrb[186].mxu0 %v657_v17 }
 0x1d7   : > { %1197 = vmatprep.mubr.f32.mxu0 %v660_v18  ;;  %v11809_v20 = vpop.permute.xlu1 %2281 }
 0x1d9   : > { %v934_v25 = vpop.f32.mrb[82].mxu0 }
 0x1da   : > { %v936_v26 = vpop.f32.mrb[83].mxu0  ;;  %1198 = vmatmul.mubr.f32.gmra.mrb[188].mxu0 %v659_v23 }
 0x1db   : > { %1202 = vmatprep.mubr.f32.mxu0 %v662_v24  ;;  %v8157_v26 = vld [vmem:[%s15094_s12 + $0x8] sm:$0xff]  ;;  %v11826_v28 = vpop.permute.xlu1 %2291 }
 0x1dd   : > { %v939_v30 = vpop.f32.mrb[84].mxu0 }
 0x1de   : > { %v941_v31 = vpop.f32.mrb[85].mxu0  ;;  %1203 = vmatmul.mubr.f32.gmra.mrb[190].mxu0 %v661_v29 }
 0x1df   : > { %9344 = vmatprep.mubr.msk.f32.mxu0 %vm1213_vm0, %v11565_v34  ;;  %v8159_v31 = vld [vmem:[%s15094_s12 + $0x18] sm:$0xff]  ;;  %v11838_v37 = vpop.permute.xlu1 %2301 }
 0x1e1   : > { %v944_v35 = vpop.f32.mrb[86].mxu0 }
 0x1e2   : > { %v946_v36 = vpop.f32.mrb[87].mxu0  ;;  %9345 = vmatmul.mubr.msk.f32.vlgmr.msra.gmra.mrb[192].mxu0 %vm1213_vm0, %v11580_v40  ;;  %v6243_v40 = vld [vmem:[%s15091_s9 + $0x68] sm:$0xff] }
 0x1e3   : > { %9347 = vmatprep.mubr.msk.f32.mxu0 %vm1213_vm0, %v11594_v46  ;;  %6329 = vperm.xlu1 %10593, %v6243_v40  }
 0x1e5   : > { %v949_v34 = vpop.f32.mrb[88].mxu0 }
 0x1e6   : > { %v951_v39 = vpop.f32.mrb[89].mxu0  ;;  %9348 = vmatmul.mubr.msk.f32.gmra.mrb[194].mxu0 %vm1213_vm0, %v11608_v52  ;;  %v6249_v52 = vld [vmem:[%s15091_s9 + $0x98] sm:$0xff] }
 0x1e7   : > { %9350 = vmatprep.mubr.msk.f32.mxu0 %vm1213_vm0, %v11622_v58  ;;  %6339 = vperm.xlu1 %10593, %v6245_v44   ;;  %v6252_v58 = vld [vmem:[%s15091_s9 + $0xb0] sm:$0xff]  ;;  %v11855_v44 = vpop.permute.xlu1 %2311 }
 0x1e8   : > { %6374 = vperm.xlu0 %10592, %v6252_v58  }
 0x1e9   : > { %v954_v42 = vpop.f32.mrb[90].mxu0 }
 0x1ea   : > { %v956_v43 = vpop.f32.mrb[91].mxu0  ;;  %9351 = vmatmul.mubr.msk.f32.gmra.mrb[196].mxu0 %vm1213_vm0, %v11636_v0  ;;  %v11774_v0 = vpop.permute.xlu0 %2251 }
 0x1eb   : > { %9353 = vmatprep.mubr.msk.f32.mxu0 %vm1213_vm0, %v11650_v7  ;;  %6349 = vperm.xlu1 %10593, %v6247_v48   ;;  %v8164_v43 = vld [vmem:[%s15094_s12 + $0x40] sm:$0xff]  ;;  %v8166_v48 = vld [vmem:[%s15094_s12 + $0x50] sm:$0xff] }
 0x1ec   : > { %6384 = vperm.xlu0 %10592, %v6254_v63  }
 0x1ed   : > { %v959_v46 = vpop.f32.mrb[92].mxu0 }
 0x1ee   : > { %v961_v47 = vpop.f32.mrb[93].mxu0  ;;  %9354 = vmatmul.mubr.msk.f32.gmra.mrb[198].mxu0 %vm1213_vm0, %v11664_v13  ;;  %v11786_v8 = vpop.permute.xlu0 %2266 }
 0x1ef   : > { %9356 = vmatprep.mubr.msk.f32.mxu0 %vm1213_vm0, %v929_v19  ;;  %6359 = vperm.xlu1 %10593, %v6249_v52   ;;  %v8165_v47 = vld [vmem:[%s15094_s12 + $0x48] sm:$0xff]  ;;  %v11867_v52 = vpop.permute.xlu1 %2321 }
 0x1f0   : > { %6394 = vperm.xlu0 %10592, %v6256_v6  }
 0x1f1   : > { %v964_v50 = vpop.f32.mrb[94].mxu0 }
 0x1f2   : > { %v966_v51 = vpop.f32.mrb[95].mxu0  ;;  %9357 = vmatmul.mubr.msk.f32.gmra.mrb[200].mxu0 %vm1213_vm0, %v934_v25  ;;  %v11806_v17 = vpop.permute.xlu0 %2276 }
 0x1f3   : > { %9359 = vmatprep.mubr.msk.f32.mxu0 %vm1213_vm0, %v939_v30  ;;  %6369 = vperm.xlu1 %10593, %v6251_v57  }
 0x1f4   : > { %6404 = vperm.xlu0 %10592, %v6258_v11   ;;  %v8173_v11 = vld [vmem:[%s15094_s12 + $0x88] sm:$0xff] }
 0x1f5   : > { %v969_v54 = vpop.f32.mrb[96].mxu0 }
 0x1f6   : > { %v971_v56 = vpop.f32.mrb[97].mxu0  ;;  %9360 = vmatmul.mubr.msk.f32.gmra.mrb[202].mxu0 %vm1213_vm0, %v944_v35  ;;  %v11817_v24 = vpop.permute.xlu0 %2286 }
 0x1f7   : > { %9362 = vmatprep.mubr.msk.f32.mxu0 %vm1213_vm0, %v949_v34  ;;  %6379 = vperm.xlu1 %10593, %v6253_v62   ;;  %v8162_v34 = vld [vmem:[%s15094_s12 + $0x30] sm:$0xff]  ;;  %v11884_v62 = vpop.permute.xlu1 %2331 }
 0x1f8   : > { %6414 = vperm.xlu0 %10592, %v6260_v16  }
 0x1f9   : > { %v974_v60 = vpop.f32.mrb[98].mxu0 }
 0x1fa   : > { %v976_v61 = vpop.f32.mrb[99].mxu0  ;;  %9363 = vmatmul.mubr.msk.f32.gmra.mrb[204].mxu0 %vm1213_vm0, %v954_v42  ;;  %v11835_v33 = vpop.permute.xlu0 %2296  ;;  %v8163_v42 = vld [vmem:[%s15094_s12 + $0x38] sm:$0xff] }
 0x1fb   : > { %9365 = vmatprep.mubr.msk.f32.mxu0 %vm1213_vm0, %v959_v46  ;;  %6389 = vperm.xlu1 %10593, %v6255_v5   ;;  %v8170_v61 = vld [vmem:[%s15094_s12 + $0x70] sm:$0xff]  ;;  %v8172_v5 = vld [vmem:[%s15094_s12 + $0x80] sm:$0xff] }
 0x1fc   : > { %8190 = vperm.xlu0 %10592, %v8156_v22  }
 0x1fd   : > { %v979_v2 = vpop.f32.mrb[100].mxu0 }
 0x1fe   : > { %v981_v3 = vpop.f32.mrb[101].mxu0  ;;  %9366 = vmatmul.mubr.msk.f32.gmra.mrb[206].mxu0 %vm1213_vm0, %v964_v50  ;;  %v11846_v40 = vpop.permute.xlu0 %2306 }
 0x1ff   : > { %9368 = vmatprep.mubr.msk.f32.mxu0 %vm1213_vm0, %v969_v54  ;;  %6399 = vperm.xlu1 %10593, %v6257_v10   ;;  %v8168_v54 = vld [vmem:[%s15094_s12 + $0x60] sm:$0xff]  ;;  %v8171_v3 = vld [vmem:[%s15094_s12 + $0x78] sm:$0xff]  ;;  %v11896_v10 = vpop.permute.xlu1 %2341 }
 0x200   : > { %8200 = vperm.xlu0 %10592, %v8158_v27  }
 0x201   : > { %v984_v7 = vpop.f32.mrb[102].mxu0 }
 0x202   : > { %v986_v9 = vpop.f32.mrb[103].mxu0  ;;  %9369 = vmatmul.mubr.msk.f32.gmra.mrb[208].mxu0 %vm1213_vm0, %v974_v60  ;;  %v11864_v49 = vpop.permute.xlu0 %2316  ;;  %v8169_v60 = vld [vmem:[%s15094_s12 + $0x68] sm:$0xff] }
 0x203   : > { %9371 = vmatprep.mubr.msk.f32.mxu0 %vm1213_vm0, %v979_v2  ;;  %6409 = vperm.xlu1 %10593, %v6259_v15  }
 0x204   : > { %8210 = vperm.xlu0 %10592, %v8160_v32   ;;  %v8179_v32 = vld [vmem:[%s15094_s12 + $0xb8] sm:$0xff] }
 0x205   : > { %v989_v13 = vpop.f32.mrb[104].mxu0 }
 0x206   : > { %v991_v14 = vpop.f32.mrb[105].mxu0  ;;  %9372 = vmatmul.mubr.msk.f32.gmra.mrb[210].mxu0 %vm1213_vm0, %v984_v7  ;;  %v11875_v57 = vpop.permute.xlu0 %2326 }
 0x207   : > { %9374 = vmatprep.mubr.msk.f32.mxu0 %vm1213_vm0, %v989_v13  ;;  %6419 = vperm.xlu1 %10593, %v6261_v21   ;;  %v8174_v13 = vld [vmem:[%s15094_s12 + $0x90] sm:$0xff]  ;;  %v11913_v21 = vpop.permute.xlu1 %2351 }
 0x208   : > { %8220 = vperm.xlu0 %10592, %v8162_v34  }
 0x209   : > { %v994_v18 = vpop.f32.mrb[106].mxu0 }
 0x20a   : > { %v996_v19 = vpop.f32.mrb[107].mxu0  ;;  %9375 = vmatmul.mubr.msk.f32.gmra.mrb[212].mxu0 %vm1213_vm0, %v994_v18  ;;  %v11893_v6 = vpop.permute.xlu0 %2336  ;;  %v8175_v18 = vld [vmem:[%s15094_s12 + $0x98] sm:$0xff] }
 0x20b   : > { %8195 = vperm.xlu1 %10593, %v8157_v26   ;;  %v8176_v19 = vld [vmem:[%s15094_s12 + $0xa0] sm:$0xff]  ;;  %v8178_v26 = vld [vmem:[%s15094_s12 + $0xb0] sm:$0xff] }
 0x20c   : > { %8230 = vperm.xlu0 %10592, %v8164_v43  }
 0x20d   : > { %v999_v23 = vpop.f32.mrb[108].mxu0 }
 0x20e   : > { %v1001_v25 = vpop.f32.mrb[109].mxu0  ;;  %9377 = vmatprep.mubr.msk.f32.mxu0 %vm1213_vm0, %v999_v23  ;;  %v11904_v15 = vpop.permute.xlu0 %2346 }
 0x20f   : > { %8205 = vperm.xlu1 %10593, %v8159_v31   ;;  %v8177_v25 = vld [vmem:[%s15094_s12 + $0xa8] sm:$0xff]  ;;  %v11925_v31 = vpop.permute.xlu1 %2361 }
 0x210   : > { %8240 = vperm.xlu0 %10592, %v8166_v48  }
 0x211   : > { %v1004_v29 = vpop.f32.mrb[110].mxu0 }
 0x212   : > { %v1006_v30 = vpop.f32.mrb[111].mxu0  ;;  %9378 = vmatmul.mubr.msk.f32.gmra.mrb[214].mxu0 %vm1213_vm0, %v1004_v29  ;;  %v11922_v27 = vpop.permute.xlu0 %2356 }
 0x213   : > { %8215 = vperm.xlu1 %10593, %v8161_v38  }
 0x214   : > { %8250 = vperm.xlu0 %10592, %v8168_v54   ;;  %v8185_v54 = vld [vmem:[%s15094_s12 + $0xe8] sm:$0xff] }
 0x215   : > { %v1009_v35 = vpop.f32.mrb[112].mxu0 }
 0x216   : > { %v1011_v36 = vpop.f32.mrb[113].mxu0  ;;  %9380 = vmatprep.mubr.msk.f32.mxu0 %vm1213_vm0, %v1009_v35  ;;  %v8180_v35 = vld [vmem:[%s15094_s12 + $0xc0] sm:$0xff]  ;;  %v11933_v38 = vpop.permute.xlu0 %2366 }
 0x217   : > { %8225 = vperm.xlu1 %10593, %v8163_v42   ;;  %15105 = vst [vmem:[#allocation6_spill] sm:$0xff] %v11933_v38  ;;  %v11942_v42 = vpop.permute.xlu1 %2371 }
 0x218   : > { %8260 = vperm.xlu0 %10592, %v8170_v61   ;;  %15106 = vst [vmem:[#allocation7_spill] sm:$0xff] %v11942_v42 }
 0x219   : > { %v1014_v39 = vpop.f32.mrb[114].mxu0 }
 0x21a   : > { %v1016_v41 = vpop.f32.mrb[115].mxu0  ;;  %9381 = vmatmul.mubr.msk.f32.gmra.mrb[216].mxu0 %vm1213_vm0, %v1014_v39  ;;  %v8181_v39 = vld [vmem:[%s15094_s12 + $0xc8] sm:$0xff]  ;;  %v11951_v48 = vpop.permute.xlu0 %2376 }
 0x21b   : > { %8235 = vperm.xlu1 %10593, %v8165_v47   ;;  %v8182_v41 = vld [vmem:[%s15094_s12 + $0xd0] sm:$0xff]  ;;  %v8184_v47 = vld [vmem:[%s15094_s12 + $0xe0] sm:$0xff]  ;;  %15107 = vst [vmem:[#allocation8_spill] sm:$0xff] %v11951_v48  ;;  %v2469_v48 = vld [vmem:[%s15086_s4 + $0x8] sm:$0xff] }
 0x21c   : > { %8270 = vperm.xlu0 %10592, %v8172_v5  }
 0x21d   : > { %v1019_v45 = vpop.f32.mrb[116].mxu0 }
 0x21e   : > { %v1021_v46 = vpop.f32.mrb[117].mxu0  ;;  %9383 = vmatprep.mubr.msk.f32.mxu0 %vm1213_vm0, %v1019_v45 }
 0x21f   : > { %8245 = vperm.xlu1 %10593, %v8167_v53   ;;  %v8183_v46 = vld [vmem:[%s15094_s12 + $0xd8] sm:$0xff]  ;;  %v11954_v53 = vpop.permute.xlu1 %2381 }
 0x220   : > { %8280 = vperm.xlu0 %10592, %v8174_v13   ;;  %15108 = vst [vmem:[#allocation9_spill] sm:$0xff] %v11954_v53 }
 0x221   : > { %v1024_v50 = vpop.f32.mrb[118].mxu0 }
 0x222   : > { %v1026_v51 = vpop.f32.mrb[119].mxu0  ;;  %9384 = vmatmul.mubr.msk.f32.gmra.mrb[218].mxu0 %vm1213_vm0, %v1024_v50 }
 0x223   : > { %8255 = vperm.xlu1 %10593, %v8169_v60   ;;  %v11962_v60 = vpop.permute.xlu0 %2386 }
 0x224   : > { %8290 = vperm.xlu0 %10592, %v8176_v19   ;;  %15109 = vst [vmem:[#allocation10_spill] sm:$0xff] %v11962_v60 }
 0x225   : > { %v1029_v56 = vpop.f32.mrb[120].mxu0 }
 0x226   : > { %v1031_v58 = vpop.f32.mrb[121].mxu0  ;;  %9386 = vmatprep.mubr.msk.f32.mxu0 %vm1213_vm0, %v1029_v56  ;;  %v8186_v56 = vld [vmem:[%s15094_s12 + $0xf0] sm:$0xff] }
 0x227   : > { %8265 = vperm.xlu1 %10593, %v8171_v3  }
 0x228   : > { %8300 = vperm.xlu0 %10592, %v8178_v26  }
 0x229   : > { %v1034_v63 = vpop.f32.mrb[122].mxu0 }
 0x22a   : > { %v1036_v2 = vpop.f32.mrb[123].mxu0  ;;  %9387 = vmatmul.mubr.msk.f32.gmra.mrb[220].mxu0 %vm1213_vm0, %v1034_v63  ;;  %v8187_v63 = vld [vmem:[%s15094_s12 + $0xf8] sm:$0xff] }
 0x22b   : > { %8275 = vperm.xlu1 %10593, %v8173_v11   ;;  %v11968_v2 = vpop.permute.xlu1 %2391 }
 0x22c   : > { %8310 = vperm.xlu0 %10592, %v8180_v35   ;;  %15110 = vst [vmem:[#allocation11_spill] sm:$0xff] %v11968_v2 }
 0x22d   : > { %v1039_v7 = vpop.f32.mrb[124].mxu0 }
 0x22e   : > { %v1041_v9 = vpop.f32.mrb[125].mxu0  ;;  %9389 = vmatprep.mubr.msk.f32.mxu0 %vm1213_vm0, %v1039_v7 }
 0x22f   : > { %8285 = vperm.xlu1 %10593, %v8175_v18  }
 0x230   : > { %8320 = vperm.xlu0 %10592, %v8182_v41  }
 0x231   : > { %v1044_v14 = vpop.f32.mrb[126].mxu0 }
 0x232   : > { %v1046_v16 = vpop.f32.mrb[127].mxu0  ;;  %9390 = vmatmul.mubr.msk.f32.gmra.mrb[222].mxu0 %vm1213_vm0, %v1044_v14 }
 0x233   : > { %8295 = vperm.xlu1 %10593, %v8177_v25  }
 0x234   : > { %8330 = vperm.xlu0 %10592, %v8184_v47  }
 0x235   : > { %v1049_v22 = vpop.f32.mrb[128].mxu0 }
 0x236   : > { %v1051_v23 = vpop.f32.mrb[129].mxu0  ;;  %9448 = vmatprep.mubr.msk.f32.mxu1 %vm1213_vm0, %v1049_v22 }
 0x237   : > { %8305 = vperm.xlu1 %10593, %v8179_v32  }
 0x238   : > { %8340 = vperm.xlu0 %10592, %v8186_v56  }
 0x239   : > { %v1054_v29 = vpop.f32.mrb[130].mxu0 }
 0x23a   : > { %v1056_v30 = vpop.f32.mrb[131].mxu0  ;;  %9449 = vmatmul.mubr.msk.f32.vlgmr.msra.gmra.mrb[0].mxu1 %vm1213_vm0, %v1054_v29 }
 0x23b   : > { %8315 = vperm.xlu1 %10593, %v8181_v39  }
 0x23d   : > { %v1059_v36 = vpop.f32.mrb[132].mxu0 }
 0x23e   : > { %v1061_v34 = vpop.f32.mrb[133].mxu0  ;;  %9451 = vmatprep.mubr.msk.f32.mxu1 %vm1213_vm0, %v1059_v36 }
 0x23f   : > { %8325 = vperm.xlu1 %10593, %v8183_v46  }
 0x241   : > { %v1064_v43 = vpop.f32.mrb[134].mxu0 }
 0x242   : > { %v1066_v45 = vpop.f32.mrb[135].mxu0  ;;  %9452 = vmatmul.mubr.msk.f32.gmra.mrb[2].mxu1 %vm1213_vm0, %v1064_v43 }
 0x243   : > { %8335 = vperm.xlu1 %10593, %v8185_v54  }
 0x245   : > { %v1069_v50 = vpop.f32.mrb[136].mxu0 }
 0x246   : > { %v1071_v51 = vpop.f32.mrb[137].mxu0  ;;  %9454 = vmatprep.mubr.msk.f32.mxu1 %vm1213_vm0, %v1069_v50 }
 0x247   : > { %8345 = vperm.xlu1 %10593, %v8187_v63  }
 0x249   : > { %v1074_v58 = vpop.f32.mrb[138].mxu0 }
 0x24a   : > { %v1076_v61 = vpop.f32.mrb[139].mxu0  ;;  %9455 = vmatmul.mubr.msk.f32.gmra.mrb[4].mxu1 %vm1213_vm0, %v1074_v58 }
 0x24d   : > { %v1079_v3 = vpop.f32.mrb[140].mxu0 }
 0x24e   : > { %v1081_v5 = vpop.f32.mrb[141].mxu0  ;;  %9457 = vmatprep.mubr.msk.f32.mxu1 %vm1213_vm0, %v1079_v3 }
 0x251   : > { %v1084_v7 = vpop.f32.mrb[142].mxu0 }
 0x252   : > { %v1086_v9 = vpop.f32.mrb[143].mxu0  ;;  %9458 = vmatmul.mubr.msk.f32.gmra.mrb[6].mxu1 %vm1213_vm0, %v1084_v7 }
 0x255   : > { %v1089_v11 = vpop.f32.mrb[144].mxu0 }
 0x256   : > { %v1091_v13 = vpop.f32.mrb[145].mxu0  ;;  %9460 = vmatprep.mubr.msk.f32.mxu1 %vm1213_vm0, %v1089_v11 }
 0x259   : > { %v1094_v14 = vpop.f32.mrb[146].mxu0 }
 0x25a   : > { %v1096_v16 = vpop.f32.mrb[147].mxu0  ;;  %9461 = vmatmul.mubr.msk.f32.gmra.mrb[8].mxu1 %vm1213_vm0, %v1094_v14 }
 0x25d   : > { %v1099_v18 = vpop.f32.mrb[148].mxu0 }
 0x25e   : > { %v1101_v19 = vpop.f32.mrb[149].mxu0  ;;  %9463 = vmatprep.mubr.msk.f32.mxu1 %vm1213_vm0, %v1099_v18 }
 0x261   : > { %v1104_v22 = vpop.f32.mrb[150].mxu0 }
 0x262   : > { %v1106_v23 = vpop.f32.mrb[151].mxu0  ;;  %9464 = vmatmul.mubr.msk.f32.gmra.mrb[10].mxu1 %vm1213_vm0, %v1104_v22 }
 0x265   : > { %v1109_v25 = vpop.f32.mrb[152].mxu0 }
 0x266   : > { %v1111_v26 = vpop.f32.mrb[153].mxu0  ;;  %9466 = vmatprep.mubr.msk.f32.mxu1 %vm1213_vm0, %v1109_v25 }
 0x269   : > { %v1114_v29 = vpop.f32.mrb[154].mxu0 }
 0x26a   : > { %v1116_v30 = vpop.f32.mrb[155].mxu0  ;;  %9467 = vmatmul.mubr.msk.f32.gmra.mrb[12].mxu1 %vm1213_vm0, %v1114_v29 }
 0x26d   : > { %v1119_v32 = vpop.f32.mrb[156].mxu0 }
 0x26e   : > { %v1121_v35 = vpop.f32.mrb[157].mxu0  ;;  %9469 = vmatprep.mubr.msk.f32.mxu1 %vm1213_vm0, %v1119_v32 }
 0x271   : > { %v1124_v36 = vpop.f32.mrb[158].mxu0 }
 0x272   : > { %v1126_v34 = vpop.f32.mrb[159].mxu0  ;;  %9470 = vmatmul.mubr.msk.f32.gmra.mrb[14].mxu1 %vm1213_vm0, %v1124_v36 }
 0x275   : > { %v1129_v39 = vpop.f32.mrb[160].mxu0 }
 0x276   : > { %v1131_v41 = vpop.f32.mrb[161].mxu0  ;;  %9472 = vmatprep.mubr.msk.f32.mxu1 %vm1213_vm0, %v1129_v39 }
 0x279   : > { %v1134_v43 = vpop.f32.mrb[162].mxu0 }
 0x27a   : > { %v1136_v45 = vpop.f32.mrb[163].mxu0  ;;  %9473 = vmatmul.mubr.msk.f32.gmra.mrb[16].mxu1 %vm1213_vm0, %v1134_v43 }
 0x27d   : > { %v1139_v46 = vpop.f32.mrb[164].mxu0 }
 0x27e   : > { %v1141_v47 = vpop.f32.mrb[165].mxu0  ;;  %9475 = vmatprep.mubr.msk.f32.mxu1 %vm1213_vm0, %v1139_v46 }
 0x281   : > { %v1144_v50 = vpop.f32.mrb[166].mxu0 }
 0x282   : > { %v1146_v51 = vpop.f32.mrb[167].mxu0  ;;  %9476 = vmatmul.mubr.msk.f32.gmra.mrb[18].mxu1 %vm1213_vm0, %v1144_v50 }
 0x285   : > { %v1149_v54 = vpop.f32.mrb[168].mxu0 }
 0x286   : > { %v1151_v56 = vpop.f32.mrb[169].mxu0  ;;  %9478 = vmatprep.mubr.msk.f32.mxu1 %vm1213_vm0, %v1149_v54 }
 0x289   : > { %v1154_v58 = vpop.f32.mrb[170].mxu0 }
 0x28a   : > { %v1156_v61 = vpop.f32.mrb[171].mxu0  ;;  %9479 = vmatmul.mubr.msk.f32.gmra.mrb[20].mxu1 %vm1213_vm0, %v1154_v58 }
 0x28d   : > { %v1159_v63 = vpop.f32.mrb[172].mxu0 }
 0x28e   : > { %v1161_v3 = vpop.f32.mrb[173].mxu0  ;;  %9481 = vmatprep.mubr.msk.f32.mxu1 %vm1213_vm0, %v1159_v63 }
 0x291   : > { %v1164_v5 = vpop.f32.mrb[174].mxu0 }
 0x292   : > { %v1166_v7 = vpop.f32.mrb[175].mxu0  ;;  %9482 = vmatmul.mubr.msk.f32.gmra.mrb[22].mxu1 %vm1213_vm0, %v1164_v5 }
 0x295   : > { %v1169_v9 = vpop.f32.mrb[176].mxu0 }
 0x296   : > { %v1171_v11 = vpop.f32.mrb[177].mxu0  ;;  %9484 = vmatprep.mubr.msk.f32.mxu1 %vm1213_vm0, %v1169_v9 }
 0x299   : > { %v1174_v13 = vpop.f32.mrb[178].mxu0 }
 0x29a   : > { %v1176_v14 = vpop.f32.mrb[179].mxu0  ;;  %9485 = vmatmul.mubr.msk.f32.gmra.mrb[24].mxu1 %vm1213_vm0, %v1174_v13 }
 0x29d   : > { %v1179_v16 = vpop.f32.mrb[180].mxu0 }
 0x29e   : > { %v1181_v18 = vpop.f32.mrb[181].mxu0  ;;  %9487 = vmatprep.mubr.msk.f32.mxu1 %vm1213_vm0, %v1179_v16 }
 0x2a1   : > { %v1184_v19 = vpop.f32.mrb[182].mxu0 }
 0x2a2   : > { %v1186_v22 = vpop.f32.mrb[183].mxu0  ;;  %9488 = vmatmul.mubr.msk.f32.gmra.mrb[26].mxu1 %vm1213_vm0, %v1184_v19 }
 0x2a5   : > { %v1189_v23 = vpop.f32.mrb[184].mxu0 }
 0x2a6   : > { %v1191_v25 = vpop.f32.mrb[185].mxu0  ;;  %9490 = vmatprep.mubr.msk.f32.mxu1 %vm1213_vm0, %v1189_v23 }
 0x2a9   : > { %v1194_v26 = vpop.f32.mrb[186].mxu0 }
 0x2aa   : > { %v1196_v29 = vpop.f32.mrb[187].mxu0  ;;  %9491 = vmatmul.mubr.msk.f32.gmra.mrb[28].mxu1 %vm1213_vm0, %v1194_v26 }
 0x2ad   : > { %v1199_v30 = vpop.f32.mrb[188].mxu0 }
 0x2ae   : > { %v1201_v32 = vpop.f32.mrb[189].mxu0  ;;  %9493 = vmatprep.mubr.msk.f32.mxu1 %vm1213_vm0, %v1199_v30 }
 0x2b1   : > { %v1204_v35 = vpop.f32.mrb[190].mxu0 }
 0x2b2   : > { %v1206_v36 = vpop.f32.mrb[191].mxu0  ;;  %9494 = vmatmul.mubr.msk.f32.gmra.mrb[30].mxu1 %vm1213_vm0, %v1204_v35 }
 0x2b3   : > { %2724 = vmatprep.mubr.f32.mxu1 %v2469_v48 }
 0x2b5   : > { %v9346_v34 = vpop.f32.mrb[192].mxu0 }
 0x2b6   : > { %v1376_v39 = vpop.f32.mrb[193].mxu0 }
 0x2b9   : > { %v9349_v41 = vpop.f32.mrb[194].mxu0 }
 0x2ba   : > { %v1386_v43 = vpop.f32.mrb[195].mxu0 }
 0x2bd   : > { %v9352_v45 = vpop.f32.mrb[196].mxu0 }
 0x2be   : > { %v1396_v46 = vpop.f32.mrb[197].mxu0 }
 0x2c1   : > { %v9355_v47 = vpop.f32.mrb[198].mxu0 }
 0x2c2   : > { %v1406_v50 = vpop.f32.mrb[199].mxu0 }
 0x2c5   : > { %v11996_v51 = vpop.f32.mrb[200].mxu0 }
 0x2c6   : > { %v11998_v54 = vpop.f32.mrb[201].mxu0 }
 0x2c9   : > { %v12000_v56 = vpop.f32.mrb[202].mxu0 }
 0x2ca   : > { %v12002_v58 = vpop.f32.mrb[203].mxu0 }
 0x2cd   : > { %v12004_v61 = vpop.f32.mrb[204].mxu0 }
 0x2ce   : > { %v12006_v63 = vpop.f32.mrb[205].mxu0 }
 0x2d1   : > { %v12008_v3 = vpop.f32.mrb[206].mxu0 }
 0x2d2   : > { %v12010_v5 = vpop.f32.mrb[207].mxu0 }
 0x2d5   : > { %v12012_v7 = vpop.f32.mrb[208].mxu0 }
 0x2d6   : > { %v12014_v9 = vpop.f32.mrb[209].mxu0 }
 0x2d9   : > { %v12016_v11 = vpop.f32.mrb[210].mxu0 }
 0x2da   : > { %v12018_v13 = vpop.f32.mrb[211].mxu0 }
 0x2dd   : > { %v12020_v14 = vpop.f32.mrb[212].mxu0 }
 0x2de   : > { %v12022_v16 = vpop.f32.mrb[213].mxu0 }
 0x2e5   : > { %v12024_v18 = vpop.f32.mrb[214].mxu0 }
 0x2e6   : > { %v12026_v19 = vpop.f32.mrb[215].mxu0 }
 0x2ed   : > { %v12028_v22 = vpop.f32.mrb[216].mxu0 }
 0x2ee   : > { %v12030_v23 = vpop.f32.mrb[217].mxu0 }
 0x2ef   : > { %15111 = vst [vmem:[#allocation12_spill] sm:$0xff] %v12030_v23 }
 0x2f5   : > { %v12032_v25 = vpop.f32.mrb[218].mxu0 }
 0x2f6   : > { %15112 = vst [vmem:[#allocation13_spill] sm:$0xff] %v12032_v25  ;;  %v12034_v26 = vpop.f32.mrb[219].mxu0 }
 0x2f7   : > { %15113 = vst [vmem:[#allocation14_spill] sm:$0xff] %v12034_v26 }
 0x2fd   : > { %v12036_v29 = vpop.f32.mrb[220].mxu0 }
 0x2fe   : > { %15114 = vst [vmem:[#allocation15_spill] sm:$0xff] %v12036_v29  ;;  %v12038_v30 = vpop.f32.mrb[221].mxu0 }
 0x2ff   : > { %15115 = vst [vmem:[#allocation16_spill] sm:$0xff] %v12038_v30 }
 0x305   : > { %v12040_v32 = vpop.f32.mrb[222].mxu0 }
 0x306   : > { %15116 = vst [vmem:[#allocation17_spill] sm:$0xff] %v12040_v32  ;;  %v12042_v35 = vpop.f32.mrb[223].mxu0 }
 0x307   : > { %15117 = vst [vmem:[#allocation18_spill] sm:$0xff] %v12042_v35 }
 0x30d   : > { %v9450_v36 = vpop.f32.mrb[0].mxu1 }
 0x30e   : > { %v10228_v1 = vadd.f32 %v9450_v36, %v9346_v34  ;;  %v2021_v60 = vpop.f32.mrb[1].mxu1 }
 0x30f   : > { %v10229_v2 = vadd.f32 %v2021_v60, %v1376_v39  ;;  %v15118_v60 = vmov 0.0|0.0  }
 0x310   : > { %v2405_v53 = vadd.f32 %v10228_v1, %v11774_v0 }
 0x311   : > { %v2404_v26 = vadd.f32 %v10229_v2, %v11754_v55 }
 0x312   : > { %v2437_v29 = vmax.f32 %v2405_v53, 0.0 }
 0x313   : > { %v2436_v25 = vmax.f32 %v2404_v26, 0.0 }
 0x315   : > { %v9453_v30 = vpop.f32.mrb[2].mxu1  ;;  %v9917_v38 = vpack.c.bf16 %v2437_v29, %v2436_v25 }
 0x316   : > { %v10230_v32 = vadd.f32 %v9453_v30, %v9349_v41  ;;  %v2031_v42 = vpop.f32.mrb[3].mxu1 }
 0x317   : > { %v10231_v35 = vadd.f32 %v2031_v42, %v1386_v43  ;;  %9918 = vmatpush1.bf16.msra.mxu1 %v9917_v38 }
 0x318   : > { %v2407_v34 = vadd.f32 %v10230_v32, %v11777_v4  ;;  %9919 = vmatprep.subr.bf16.mxu1 %v15118_v60 }
 0x319   : > { %v2406_v39 = vadd.f32 %v10231_v35, %v11764_v59 }
 0x31a   : > { %v2439_v36 = vmax.f32 %v2407_v34, 0.0 }
 0x31b   : > { %v2438_v23 = vmax.f32 %v2406_v39, 0.0 }
 0x31d   : > { %v9456_v1 = vpop.f32.mrb[4].mxu1  ;;  %v9920_v0 = vpack.c.bf16 %v2439_v36, %v2438_v23 }
 0x31e   : > { %v10232_v48 = vadd.f32 %v9456_v1, %v9352_v45  ;;  %v2041_v55 = vpop.f32.mrb[5].mxu1 }
 0x31f   : > { %v10233_v53 = vadd.f32 %v2041_v55, %v1396_v46  ;;  %9921 = vmatpush1.bf16.msra.mxu1 %v9920_v0 }
 0x320   : > { %v2409_v2 = vadd.f32 %v10232_v48, %v11796_v12  ;;  %9922 = vmatprep.subr.bf16.mxu1 %v15118_v60 }
 0x321   : > { %v2408_v38 = vadd.f32 %v10233_v53, %v11786_v8 }
 0x322   : > { %v2441_v42 = vmax.f32 %v2409_v2, 0.0 }
 0x323   : > { %v2440_v4 = vmax.f32 %v2408_v38, 0.0 }
 0x325   : > { %v9459_v41 = vpop.f32.mrb[6].mxu1  ;;  %v9923_v43 = vpack.c.bf16 %v2441_v42, %v2440_v4 }
 0x326   : > { %v10234_v25 = vadd.f32 %v9459_v41, %v9355_v47  ;;  %v2051_v59 = vpop.f32.mrb[7].mxu1 }
 0x327   : > { %v10235_v26 = vadd.f32 %v2051_v59, %v1406_v50  ;;  %9924 = vmatpush1.bf16.msra.mxu1 %v9923_v43 }
 0x328   : > { %v2411_v23 = vadd.f32 %v10234_v25, %v11809_v20  ;;  %9925 = vmatprep.subr.bf16.mxu1 %v15118_v60 }
 0x329   : > { %v2410_v45 = vadd.f32 %v10235_v26, %v11806_v17 }
 0x32a   : > { %v2443_v46 = vmax.f32 %v2411_v23, 0.0 }
 0x32b   : > { %v2442_v12 = vmax.f32 %v2410_v45, 0.0 }
 0x32d   : > { %v9462_v29 = vpop.f32.mrb[8].mxu1  ;;  %v9926_v30 = vpack.c.bf16 %v2443_v46, %v2442_v12 }
 0x32e   : > { %v10236_v8 = vadd.f32 %v9462_v29, %v11996_v51  ;;  %v2061_v32 = vpop.f32.mrb[9].mxu1 }
 0x32f   : > { %v10237_v35 = vadd.f32 %v2061_v32, %v11998_v54  ;;  %9927 = vmatpush1.bf16.msra.mxu1 %v9926_v30 }
 0x330   : > { %v2413_v47 = vadd.f32 %v10236_v8, %v11826_v28  ;;  %9928 = vmatprep.subr.bf16.mxu1 %v15118_v60 }
 0x331   : > { %v2412_v20 = vadd.f32 %v10237_v35, %v11817_v24 }
 0x332   : > { %v2445_v50 = vmax.f32 %v2413_v47, 0.0 }
 0x333   : > { %v2444_v34 = vmax.f32 %v2412_v20, 0.0 }
 0x335   : > { %v9465_v39 = vpop.f32.mrb[10].mxu1  ;;  %v9929_v17 = vpack.c.bf16 %v2445_v50, %v2444_v34 }
 0x336   : > { %v10238_v36 = vadd.f32 %v9465_v39, %v12000_v56  ;;  %v2071_v1 = vpop.f32.mrb[11].mxu1 }
 0x337   : > { %v10239_v0 = vadd.f32 %v2071_v1, %v12002_v58  ;;  %9930 = vmatpush1.bf16.msra.mxu1 %v9929_v17 }
 0x338   : > { %v2415_v51 = vadd.f32 %v10238_v36, %v11838_v37  ;;  %9931 = vmatprep.subr.bf16.mxu1 %v15118_v60 }
 0x339   : > { %v2414_v28 = vadd.f32 %v10239_v0, %v11835_v33 }
 0x33a   : > { %v2447_v54 = vmax.f32 %v2415_v51, 0.0 }
 0x33b   : > { %v2446_v48 = vmax.f32 %v2414_v28, 0.0 }
 0x33d   : > { %v9468_v55 = vpop.f32.mrb[12].mxu1  ;;  %v9932_v24 = vpack.c.bf16 %v2447_v54, %v2446_v48 }
 0x33e   : > { %v10240_v53 = vadd.f32 %v9468_v55, %v12004_v61  ;;  %v2081_v2 = vpop.f32.mrb[13].mxu1  ;;  %v15119_v55 = vld [vmem:[#allocation12_spill] sm:$0xff] }
 0x33f   : > { %v10241_v38 = vadd.f32 %v2081_v2, %v12006_v63  ;;  %9933 = vmatpush1.bf16.msra.mxu1 %v9932_v24 }
 0x340   : > { %v2417_v56 = vadd.f32 %v10240_v53, %v11855_v44  ;;  %9934 = vmatprep.subr.bf16.mxu1 %v15118_v60 }
 0x341   : > { %v2416_v37 = vadd.f32 %v10241_v38, %v11846_v40 }
 0x342   : > { %v2449_v58 = vmax.f32 %v2417_v56, 0.0 }
 0x343   : > { %v2448_v42 = vmax.f32 %v2416_v37, 0.0  ;;  %v15122_v37 = vld [vmem:[#allocation13_spill] sm:$0xff] }
 0x345   : > { %v9471_v4 = vpop.f32.mrb[14].mxu1  ;;  %v9935_v33 = vpack.c.bf16 %v2449_v58, %v2448_v42 }
 0x346   : > { %v10242_v41 = vadd.f32 %v9471_v4, %v12008_v3  ;;  %v2091_v43 = vpop.f32.mrb[15].mxu1  ;;  %v15123_v4 = vld [vmem:[#allocation14_spill] sm:$0xff] }
 0x347   : > { %v10243_v25 = vadd.f32 %v2091_v43, %v12010_v5  ;;  %9936 = vmatpush1.bf16.msra.mxu1 %v9935_v33  ;;  %v15125_v43 = vld [vmem:[#allocation8_spill] sm:$0xff] }
 0x348   : > { %v2419_v61 = vadd.f32 %v10242_v41, %v11867_v52  ;;  %9937 = vmatprep.subr.bf16.mxu1 %v15118_v60 }
 0x349   : > { %v2418_v44 = vadd.f32 %v10243_v25, %v11864_v49 }
 0x34a   : > { %v2451_v63 = vmax.f32 %v2419_v61, 0.0 }
 0x34b   : > { %v2450_v59 = vmax.f32 %v2418_v44, 0.0 }
 0x34d   : > { %v9474_v26 = vpop.f32.mrb[16].mxu1  ;;  %v9938_v40 = vpack.c.bf16 %v2451_v63, %v2450_v59 }
 0x34e   : > { %v10244_v23 = vadd.f32 %v9474_v26, %v12012_v7  ;;  %v2101_v45 = vpop.f32.mrb[17].mxu1  ;;  %v15126_v26 = vld [vmem:[#allocation15_spill] sm:$0xff] }
 0x34f   : > { %v10245_v46 = vadd.f32 %v2101_v45, %v12014_v9  ;;  %9939 = vmatpush1.bf16.msra.mxu1 %v9938_v40  ;;  %v15127_v45 = vld [vmem:[#allocation16_spill] sm:$0xff] }
 0x350   : > { %v2421_v3 = vadd.f32 %v10244_v23, %v11884_v62  ;;  %9940 = vmatprep.subr.bf16.mxu1 %v15118_v60 }
 0x351   : > { %v2420_v52 = vadd.f32 %v10245_v46, %v11875_v57 }
 0x352   : > { %v2453_v5 = vmax.f32 %v2421_v3, 0.0  ;;  %v15128_v3 = vld [vmem:[#allocation11_spill] sm:$0xff] }
 0x353   : > { %v2452_v12 = vmax.f32 %v2420_v52, 0.0 }
 0x355   : > { %v9477_v29 = vpop.f32.mrb[18].mxu1  ;;  %v9941_v49 = vpack.c.bf16 %v2453_v5, %v2452_v12  ;;  %v15129_v5 = vld [vmem:[#allocation10_spill] sm:$0xff] }
 0x356   : > { %v10246_v30 = vadd.f32 %v9477_v29, %v12016_v11  ;;  %v2111_v8 = vpop.f32.mrb[19].mxu1 }
 0x357   : > { %v10247_v32 = vadd.f32 %v2111_v8, %v12018_v13  ;;  %9942 = vmatpush1.bf16.msra.mxu1 %v9941_v49 }
 0x358   : > { %v2423_v7 = vadd.f32 %v10246_v30, %v11896_v10  ;;  %9943 = vmatprep.subr.bf16.mxu1 %v15118_v60 }
 0x359   : > { %v2422_v62 = vadd.f32 %v10247_v32, %v11893_v6  ;;  %v15130_v32 = vld [vmem:[#allocation17_spill] sm:$0xff] }
 0x35a   : > { %v2455_v9 = vmax.f32 %v2423_v7, 0.0 }
 0x35b   : > { %v2454_v35 = vmax.f32 %v2422_v62, 0.0 }
 0x35d   : > { %v9480_v47 = vpop.f32.mrb[20].mxu1  ;;  %v9944_v57 = vpack.c.bf16 %v2455_v9, %v2454_v35  ;;  %v2402_v9 = vpop.permute.xlu1 %2401  ;;  %v15131_v35 = vld [vmem:[#allocation18_spill] sm:$0xff] }
 0x35e   : > { %v10248_v20 = vadd.f32 %v9480_v47, %v12020_v14  ;;  %v2121_v50 = vpop.f32.mrb[21].mxu1 }
 0x35f   : > { %v10249_v34 = vadd.f32 %v2121_v50, %v12022_v16  ;;  %9945 = vmatpush1.bf16.msra.mxu1 %v9944_v57  ;;  %v2397_v57 = vpop.permute.xlu0 %2396 }
 0x360   : > { %v2425_v11 = vadd.f32 %v10248_v20, %v11913_v21  ;;  %9946 = vmatprep.subr.bf16.mxu1 %v15118_v60 }
 0x361   : > { %v2424_v10 = vadd.f32 %v10249_v34, %v11904_v15 }
 0x362   : > { %v2457_v13 = vmax.f32 %v2425_v11, 0.0 }
 0x363   : > { %v2456_v39 = vmax.f32 %v2424_v10, 0.0 }
 0x365   : > { %v9483_v17 = vpop.f32.mrb[22].mxu1  ;;  %v9947_v6 = vpack.c.bf16 %v2457_v13, %v2456_v39  ;;  %v2468_v13 = vld [vmem:[%s15086_s4] sm:$0xff]  ;;  %v2471_v39 = vld [vmem:[%s15086_s4 + $0x18] sm:$0xff] }
 0x366   : > { %v10250_v36 = vadd.f32 %v9483_v17, %v12024_v18  ;;  %v2131_v1 = vpop.f32.mrb[23].mxu1  ;;  %v15120_v18 = vld [vmem:[#allocation7_spill] sm:$0xff]  ;;  %v2470_v17 = vld [vmem:[%s15086_s4 + $0x10] sm:$0xff] }
 0x367   : > { %v10251_v0 = vadd.f32 %v2131_v1, %v12026_v19  ;;  %9948 = vmatpush1.bf16.msra.mxu1 %v9947_v6  ;;  %v15121_v19 = vld [vmem:[#allocation6_spill] sm:$0xff]  ;;  %v2473_v6 = vld [vmem:[%s15086_s4 + $0x28] sm:$0xff]  ;;  %v2475_v1 = vld [vmem:[%s15086_s4 + $0x38] sm:$0xff] }
 0x368   : > { %v2427_v14 = vadd.f32 %v10250_v36, %v11925_v31  ;;  %9949 = vmatprep.subr.bf16.mxu1 %v15118_v60  ;;  %v2472_v36 = vld [vmem:[%s15086_s4 + $0x20] sm:$0xff] }
 0x369   : > { %v2426_v21 = vadd.f32 %v10251_v0, %v11922_v27  ;;  %v2474_v0 = vld [vmem:[%s15086_s4 + $0x30] sm:$0xff] }
 0x36a   : > { %v2459_v16 = vmax.f32 %v2427_v14, 0.0  ;;  %v2477_v14 = vld [vmem:[%s15086_s4 + $0x48] sm:$0xff] }
 0x36b   : > { %v2458_v51 = vmax.f32 %v2426_v21, 0.0  ;;  %v2476_v21 = vld [vmem:[%s15086_s4 + $0x40] sm:$0xff] }
 0x36d   : > { %v9486_v28 = vpop.f32.mrb[24].mxu1  ;;  %v9950_v15 = vpack.c.bf16 %v2459_v16, %v2458_v51  ;;  %v2479_v16 = vld [vmem:[%s15086_s4 + $0x58] sm:$0xff]  ;;  %v2478_v51 = vld [vmem:[%s15086_s4 + $0x50] sm:$0xff] }
 0x36e   : > { %v10252_v54 = vadd.f32 %v9486_v28, %v12028_v22  ;;  %v2141_v48 = vpop.f32.mrb[25].mxu1  ;;  %v15124_v22 = vld [vmem:[#allocation9_spill] sm:$0xff]  ;;  %v2481_v28 = vld [vmem:[%s15086_s4 + $0x68] sm:$0xff] }
 0x36f   : > { %v10253_v24 = vadd.f32 %v2141_v48, %v15119_v55  ;;  %9951 = vmatpush1.bf16.msra.mxu1 %v9950_v15  ;;  %v2480_v15 = vld [vmem:[%s15086_s4 + $0x60] sm:$0xff]  ;;  %v2482_v48 = vld [vmem:[%s15086_s4 + $0x70] sm:$0xff]  ;;  %v2485_v55 = vld [vmem:[%s15086_s4 + $0x88] sm:$0xff] }
 0x370   : > { %v2429_v53 = vadd.f32 %v10252_v54, %v15120_v18  ;;  %9952 = vmatprep.subr.bf16.mxu1 %v15118_v60  ;;  %v2483_v54 = vld [vmem:[%s15086_s4 + $0x78] sm:$0xff] }
 0x371   : > { %v2428_v31 = vadd.f32 %v10253_v24, %v15121_v19  ;;  %v2484_v24 = vld [vmem:[%s15086_s4 + $0x80] sm:$0xff]  ;;  %v2487_v18 = vld [vmem:[%s15086_s4 + $0x98] sm:$0xff]  ;;  %v2489_v19 = vld [vmem:[%s15086_s4 + $0xa8] sm:$0xff] }
 0x372   : > { %v2461_v2 = vmax.f32 %v2429_v53, 0.0  ;;  %v2486_v53 = vld [vmem:[%s15086_s4 + $0x90] sm:$0xff] }
 0x373   : > { %v2460_v38 = vmax.f32 %v2428_v31, 0.0  ;;  %v2488_v31 = vld [vmem:[%s15086_s4 + $0xa0] sm:$0xff] }
 0x375   : > { %v9489_v56 = vpop.f32.mrb[26].mxu1  ;;  %v9953_v27 = vpack.c.bf16 %v2461_v2, %v2460_v38  ;;  %v2491_v2 = vld [vmem:[%s15086_s4 + $0xb8] sm:$0xff]  ;;  %v2490_v38 = vld [vmem:[%s15086_s4 + $0xb0] sm:$0xff] }
 0x376   : > { %v10254_v58 = vadd.f32 %v9489_v56, %v15122_v37  ;;  %v2151_v42 = vpop.f32.mrb[27].mxu1  ;;  %v2493_v56 = vld [vmem:[%s15086_s4 + $0xc8] sm:$0xff]  ;;  %v2495_v37 = vld [vmem:[%s15086_s4 + $0xd8] sm:$0xff] }
 0x377   : > { %v10255_v33 = vadd.f32 %v2151_v42, %v15123_v4  ;;  %9954 = vmatpush1.bf16.msra.mxu1 %v9953_v27  ;;  %v2492_v27 = vld [vmem:[%s15086_s4 + $0xc0] sm:$0xff]  ;;  %v2497_v42 = vld [vmem:[%s15086_s4 + $0xe8] sm:$0xff] }
 0x378   : > { %v2431_v41 = vadd.f32 %v10254_v58, %v15124_v22  ;;  %9955 = vmatprep.subr.bf16.mxu1 %v15118_v60  ;;  %v2494_v58 = vld [vmem:[%s15086_s4 + $0xd0] sm:$0xff]  ;;  %v2496_v4 = vld [vmem:[%s15086_s4 + $0xe0] sm:$0xff] }
 0x379   : > { %v2430_v25 = vadd.f32 %v10255_v33, %v15125_v43  ;;  %v2499_v33 = vld [vmem:[%s15086_s4 + $0xf8] sm:$0xff]  ;;  %v2498_v22 = vld [vmem:[%s15086_s4 + $0xf0] sm:$0xff]  ;;  %v2500_v43 = vld [vmem:[%s15086_s4 + $0x100] sm:$0xff] }
 0x37a   : > { %v2463_v61 = vmax.f32 %v2431_v41, 0.0  ;;  %v2501_v41 = vld [vmem:[%s15086_s4 + $0x108] sm:$0xff] }
 0x37b   : > { %v2462_v44 = vmax.f32 %v2430_v25, 0.0  ;;  %v2503_v25 = vld [vmem:[%s15086_s4 + $0x118] sm:$0xff] }
 0x37d   : > { %v9492_v63 = vpop.f32.mrb[28].mxu1  ;;  %v9956_v59 = vpack.c.bf16 %v2463_v61, %v2462_v44  ;;  %v2502_v61 = vld [vmem:[%s15086_s4 + $0x110] sm:$0xff]  ;;  %v2505_v44 = vld [vmem:[%s15086_s4 + $0x128] sm:$0xff] }
 0x37e   : > { %v10256_v40 = vadd.f32 %v9492_v63, %v15126_v26  ;;  %v2161_v23 = vpop.f32.mrb[29].mxu1  ;;  %v2504_v63 = vld [vmem:[%s15086_s4 + $0x120] sm:$0xff]  ;;  %v2506_v26 = vld [vmem:[%s15086_s4 + $0x130] sm:$0xff] }
 0x37f   : > { %v10257_v46 = vadd.f32 %v2161_v23, %v15127_v45  ;;  %9957 = vmatpush1.bf16.msra.mxu1 %v9956_v59  ;;  %v2507_v59 = vld [vmem:[%s15086_s4 + $0x138] sm:$0xff]  ;;  %v2508_v23 = vld [vmem:[%s15086_s4 + $0x140] sm:$0xff] }
 0x380   : > { %v2433_v52 = vadd.f32 %v10256_v40, %v15128_v3  ;;  %9958 = vmatprep.subr.bf16.mxu1 %v15118_v60  ;;  %v2509_v40 = vld [vmem:[%s15086_s4 + $0x148] sm:$0xff]  ;;  %v2511_v45 = vld [vmem:[%s15086_s4 + $0x158] sm:$0xff] }
 0x381   : > { %v2432_v12 = vadd.f32 %v10257_v46, %v15129_v5  ;;  %v2510_v46 = vld [vmem:[%s15086_s4 + $0x150] sm:$0xff]  ;;  %v2513_v3 = vld [vmem:[%s15086_s4 + $0x168] sm:$0xff]  ;;  %v2515_v5 = vld [vmem:[%s15086_s4 + $0x178] sm:$0xff] }
 0x382   : > { %v2465_v29 = vmax.f32 %v2433_v52, 0.0  ;;  %v2512_v52 = vld [vmem:[%s15086_s4 + $0x160] sm:$0xff] }
 0x383   : > { %v2464_v49 = vmax.f32 %v2432_v12, 0.0  ;;  %v2514_v12 = vld [vmem:[%s15086_s4 + $0x170] sm:$0xff] }
 0x385   : > { %v9495_v30 = vpop.f32.mrb[30].mxu1  ;;  %v9959_v8 = vpack.c.bf16 %v2465_v29, %v2464_v49  ;;  %v2517_v29 = vld [vmem:[%s15086_s4 + $0x188] sm:$0xff]  ;;  %v2516_v49 = vld [vmem:[%s15086_s4 + $0x180] sm:$0xff] }
 0x386   : > { %v10258_v7 = vadd.f32 %v9495_v30, %v15130_v32  ;;  %v2171_v62 = vpop.f32.mrb[31].mxu1  ;;  %v2519_v30 = vld [vmem:[%s15086_s4 + $0x198] sm:$0xff]  ;;  %v2521_v32 = vld [vmem:[%s15086_s4 + $0x1a8] sm:$0xff] }
 0x387   : > { %v10259_v47 = vadd.f32 %v2171_v62, %v15131_v35  ;;  %9960 = vmatpush1.bf16.msra.mxu1 %v9959_v8  ;;  %v2518_v8 = vld [vmem:[%s15086_s4 + $0x190] sm:$0xff]  ;;  %v2523_v62 = vld [vmem:[%s15086_s4 + $0x1b8] sm:$0xff]  ;;  %v2525_v35 = vld [vmem:[%s15086_s4 + $0x1c8] sm:$0xff] }
 0x388   : > { %v2435_v20 = vadd.f32 %v10258_v7, %v2402_v9  ;;  %9961 = vmatprep.subr.bf16.mxu1 %v15118_v60  ;;  %v2520_v7 = vld [vmem:[%s15086_s4 + $0x1a0] sm:$0xff]  ;;  %v2522_v9 = vld [vmem:[%s15086_s4 + $0x1b0] sm:$0xff] }
 0x389   : > { %v2434_v50 = vadd.f32 %v10259_v47, %v2397_v57  ;;  %v2524_v47 = vld [vmem:[%s15086_s4 + $0x1c0] sm:$0xff]  ;;  %v2527_v57 = vld [vmem:[%s15086_s4 + $0x1d8] sm:$0xff] }
 0x38a   : > { %v2467_v34 = vmax.f32 %v2435_v20, 0.0  ;;  %v2526_v20 = vld [vmem:[%s15086_s4 + $0x1d0] sm:$0xff] }
 0x38b   : > { %v2466_v11 = vmax.f32 %v2434_v50, 0.0  ;;  %v2529_v50 = vld [vmem:[%s15086_s4 + $0x1e8] sm:$0xff] }
 0x38d   : > { %v9962_v10 = vpack.c.bf16 %v2467_v34, %v2466_v11  ;;  %v2528_v34 = vld [vmem:[%s15086_s4 + $0x1e0] sm:$0xff]  ;;  %v2531_v11 = vld [vmem:[%s15086_s4 + $0x1f8] sm:$0xff] }
 0x38f   : > { %9963 = vmatpush1.bf16.msra.mxu1 %v9962_v10  ;;  %v2530_v10 = vld [vmem:[%s15086_s4 + $0x1f0] sm:$0xff] }
 0x390   : > { %9988 = vmatprep.subr.bf16.mxu1 %v15118_v60 }
 0x392   : > { %2725 = vmatmul.mubr.f32.vlgmr.msra.gmra.mrb[32].mxu1 %v2468_v13  ;;  %v2533_v13 = vld [vmem:[%s15086_s4 + $0x208] sm:$0xff] }
 0x393   : > { %2729 = vmatprep.mubr.f32.mxu1 %v2471_v39  ;;  %v2532_v39 = vld [vmem:[%s15086_s4 + $0x200] sm:$0xff] }
 0x396   : > { %2730 = vmatmul.mubr.f32.gmra.mrb[34].mxu1 %v2470_v17  ;;  %v2535_v17 = vld [vmem:[%s15086_s4 + $0x218] sm:$0xff] }
 0x397   : > { %2734 = vmatprep.mubr.f32.mxu1 %v2473_v6  ;;  %v2534_v6 = vld [vmem:[%s15086_s4 + $0x210] sm:$0xff] }
 0x39a   : > { %2735 = vmatmul.mubr.f32.gmra.mrb[36].mxu1 %v2472_v36  ;;  %v2537_v36 = vld [vmem:[%s15086_s4 + $0x228] sm:$0xff] }
 0x39b   : > { %2739 = vmatprep.mubr.f32.mxu1 %v2475_v1  ;;  %v2536_v1 = vld [vmem:[%s15086_s4 + $0x220] sm:$0xff] }
 0x39e   : > { %2740 = vmatmul.mubr.f32.gmra.mrb[38].mxu1 %v2474_v0  ;;  %v2539_v0 = vld [vmem:[%s15086_s4 + $0x238] sm:$0xff] }
 0x39f   : > { %2744 = vmatprep.mubr.f32.mxu1 %v2477_v14  ;;  %v2538_v14 = vld [vmem:[%s15086_s4 + $0x230] sm:$0xff] }
 0x3a2   : > { %2745 = vmatmul.mubr.f32.gmra.mrb[40].mxu1 %v2476_v21  ;;  %v2541_v21 = vld [vmem:[%s15086_s4 + $0x248] sm:$0xff] }
 0x3a3   : > { %2749 = vmatprep.mubr.f32.mxu1 %v2479_v16  ;;  %v2540_v16 = vld [vmem:[%s15086_s4 + $0x240] sm:$0xff] }
 0x3a6   : > { %2750 = vmatmul.mubr.f32.gmra.mrb[42].mxu1 %v2478_v51  ;;  %v2543_v51 = vld [vmem:[%s15086_s4 + $0x258] sm:$0xff] }
 0x3a7   : > { %2754 = vmatprep.mubr.f32.mxu1 %v2481_v28  ;;  %v2542_v28 = vld [vmem:[%s15086_s4 + $0x250] sm:$0xff] }
 0x3aa   : > { %2755 = vmatmul.mubr.f32.gmra.mrb[44].mxu1 %v2480_v15  ;;  %v2545_v15 = vld [vmem:[%s15086_s4 + $0x268] sm:$0xff] }
 0x3ab   : > { %2759 = vmatprep.mubr.f32.mxu1 %v2483_v54  ;;  %v2544_v54 = vld [vmem:[%s15086_s4 + $0x260] sm:$0xff] }
 0x3ae   : > { %2760 = vmatmul.mubr.f32.gmra.mrb[46].mxu1 %v2482_v48  ;;  %v2547_v48 = vld [vmem:[%s15086_s4 + $0x278] sm:$0xff] }
 0x3af   : > { %2764 = vmatprep.mubr.f32.mxu1 %v2485_v55  ;;  %v2546_v55 = vld [vmem:[%s15086_s4 + $0x270] sm:$0xff] }
 0x3b2   : > { %2765 = vmatmul.mubr.f32.gmra.mrb[48].mxu1 %v2484_v24  ;;  %v2549_v24 = vld [vmem:[%s15086_s4 + $0x288] sm:$0xff] }
 0x3b3   : > { %2769 = vmatprep.mubr.f32.mxu1 %v2487_v18  ;;  %v2548_v18 = vld [vmem:[%s15086_s4 + $0x280] sm:$0xff] }
 0x3b6   : > { %2770 = vmatmul.mubr.f32.gmra.mrb[50].mxu1 %v2486_v53  ;;  %v2551_v53 = vld [vmem:[%s15086_s4 + $0x298] sm:$0xff] }
 0x3b7   : > { %2774 = vmatprep.mubr.f32.mxu1 %v2489_v19  ;;  %v2550_v19 = vld [vmem:[%s15086_s4 + $0x290] sm:$0xff] }
 0x3ba   : > { %2775 = vmatmul.mubr.f32.gmra.mrb[52].mxu1 %v2488_v31  ;;  %v2553_v31 = vld [vmem:[%s15086_s4 + $0x2a8] sm:$0xff] }
 0x3bb   : > { %2779 = vmatprep.mubr.f32.mxu1 %v2491_v2  ;;  %v2552_v2 = vld [vmem:[%s15086_s4 + $0x2a0] sm:$0xff] }
 0x3be   : > { %2780 = vmatmul.mubr.f32.gmra.mrb[54].mxu1 %v2490_v38  ;;  %v2555_v38 = vld [vmem:[%s15086_s4 + $0x2b8] sm:$0xff] }
 0x3bf   : > { %2784 = vmatprep.mubr.f32.mxu1 %v2493_v56  ;;  %v2554_v56 = vld [vmem:[%s15086_s4 + $0x2b0] sm:$0xff] }
 0x3c2   : > { %2785 = vmatmul.mubr.f32.gmra.mrb[56].mxu1 %v2492_v27  ;;  %v2557_v27 = vld [vmem:[%s15086_s4 + $0x2c8] sm:$0xff] }
 0x3c3   : > { %2789 = vmatprep.mubr.f32.mxu1 %v2495_v37  ;;  %v2556_v37 = vld [vmem:[%s15086_s4 + $0x2c0] sm:$0xff] }
 0x3c6   : > { %2790 = vmatmul.mubr.f32.gmra.mrb[58].mxu1 %v2494_v58  ;;  %v2559_v58 = vld [vmem:[%s15086_s4 + $0x2d8] sm:$0xff] }
 0x3c7   : > { %2794 = vmatprep.mubr.f32.mxu1 %v2497_v42  ;;  %v2558_v42 = vld [vmem:[%s15086_s4 + $0x2d0] sm:$0xff] }
 0x3ca   : > { %2795 = vmatmul.mubr.f32.gmra.mrb[60].mxu1 %v2496_v4  ;;  %v2561_v4 = vld [vmem:[%s15086_s4 + $0x2e8] sm:$0xff] }
 0x3cb   : > { %2799 = vmatprep.mubr.f32.mxu1 %v2499_v33  ;;  %v2560_v33 = vld [vmem:[%s15086_s4 + $0x2e0] sm:$0xff] }
 0x3ce   : > { %2800 = vmatmul.mubr.f32.gmra.mrb[62].mxu1 %v2498_v22  ;;  %v2563_v22 = vld [vmem:[%s15086_s4 + $0x2f8] sm:$0xff] }
 0x3cf   : > { %2804 = vmatprep.mubr.f32.mxu1 %v2501_v41  ;;  %v2562_v41 = vld [vmem:[%s15086_s4 + $0x2f0] sm:$0xff] }
 0x3d2   : > { %2805 = vmatmul.mubr.f32.gmra.mrb[64].mxu1 %v2500_v43  ;;  %v2565_v43 = vld [vmem:[%s15086_s4 + $0x308] sm:$0xff] }
 0x3d3   : > { %2809 = vmatprep.mubr.f32.mxu1 %v2503_v25  ;;  %v2564_v25 = vld [vmem:[%s15086_s4 + $0x300] sm:$0xff] }
 0x3d6   : > { %2810 = vmatmul.mubr.f32.gmra.mrb[66].mxu1 %v2502_v61  ;;  %v2567_v61 = vld [vmem:[%s15086_s4 + $0x318] sm:$0xff] }
 0x3d7   : > { %2814 = vmatprep.mubr.f32.mxu1 %v2505_v44  ;;  %v2566_v44 = vld [vmem:[%s15086_s4 + $0x310] sm:$0xff] }
 0x3da   : > { %2815 = vmatmul.mubr.f32.gmra.mrb[68].mxu1 %v2504_v63  ;;  %v2569_v63 = vld [vmem:[%s15086_s4 + $0x328] sm:$0xff] }
 0x3db   : > { %2819 = vmatprep.mubr.f32.mxu1 %v2507_v59  ;;  %v2568_v59 = vld [vmem:[%s15086_s4 + $0x320] sm:$0xff] }
 0x3de   : > { %2820 = vmatmul.mubr.f32.gmra.mrb[70].mxu1 %v2506_v26  ;;  %v2571_v26 = vld [vmem:[%s15086_s4 + $0x338] sm:$0xff] }
 0x3df   : > { %2824 = vmatprep.mubr.f32.mxu1 %v2509_v40  ;;  %v2570_v40 = vld [vmem:[%s15086_s4 + $0x330] sm:$0xff] }
 0x3e2   : > { %2825 = vmatmul.mubr.f32.gmra.mrb[72].mxu1 %v2508_v23  ;;  %v2573_v23 = vld [vmem:[%s15086_s4 + $0x348] sm:$0xff] }
 0x3e3   : > { %2829 = vmatprep.mubr.f32.mxu1 %v2511_v45  ;;  %v2572_v45 = vld [vmem:[%s15086_s4 + $0x340] sm:$0xff] }
 0x3e6   : > { %2830 = vmatmul.mubr.f32.gmra.mrb[74].mxu1 %v2510_v46  ;;  %v8723_v46 = vld [vmem:[%s15087_s5 + $0x20] sm:$0xff] }
 0x3e7   : > { %2834 = vmatprep.mubr.f32.mxu1 %v2513_v3  ;;  %v8724_v3 = vld [vmem:[%s15087_s5 + $0x28] sm:$0xff] }
 0x3ea   : > { %2835 = vmatmul.mubr.f32.gmra.mrb[76].mxu1 %v2512_v52  ;;  %v2575_v52 = vld [vmem:[%s15086_s4 + $0x358] sm:$0xff] }
 0x3eb   : > { %2839 = vmatprep.mubr.f32.mxu1 %v2515_v5  ;;  %v9964_v5 = vpack.c.bf16 %v8724_v3, %v8723_v46  ;;  %v2602_v46 = vld [vmem:[%s15086_s4 + $0x430] sm:$0xff]  ;;  %v2605_v3 = vld [vmem:[%s15086_s4 + $0x448] sm:$0xff] }
 0x3ed   : > { %9965 = vmatprep.subr.bf16.mxu0 %v9964_v5 }
 0x3ee   : > { %2840 = vmatmul.mubr.f32.gmra.mrb[78].mxu1 %v2514_v12  ;;  %v2574_v12 = vld [vmem:[%s15086_s4 + $0x350] sm:$0xff]  ;;  %9967 = vmatpush3.bf16.msra.mxu0 %v9964_v5 }
 0x3ef   : > { %2844 = vmatprep.mubr.f32.mxu1 %v2517_v29  ;;  %v8725_v29 = vld [vmem:[%s15087_s5 + $0x30] sm:$0xff] }
 0x3f2   : > { %2845 = vmatmul.mubr.f32.gmra.mrb[80].mxu1 %v2516_v49  ;;  %v8726_v49 = vld [vmem:[%s15087_s5 + $0x38] sm:$0xff] }
 0x3f3   : > { %2849 = vmatprep.mubr.f32.mxu1 %v2519_v30  ;;  %v2577_v30 = vld [vmem:[%s15086_s4 + $0x368] sm:$0xff] }
 0x3f6   : > { %2850 = vmatmul.mubr.f32.gmra.mrb[82].mxu1 %v2518_v8  ;;  %v9968_v8 = vpack.c.bf16 %v8726_v49, %v8725_v29  ;;  %v2607_v29 = vld [vmem:[%s15086_s4 + $0x458] sm:$0xff] }
 0x3f7   : > { %2854 = vmatprep.mubr.f32.mxu1 %v2521_v32 }
 0x3f8   : > { %9969 = vmatprep.subr.bf16.mxu0 %v9968_v8 }
 0x3f9   : > { %9971 = vmatpush3.bf16.msra.mxu0 %v9968_v8  ;;  %v2606_v8 = vld [vmem:[%s15086_s4 + $0x450] sm:$0xff] }
 0x3fa   : > { %2855 = vmatmul.mubr.f32.gmra.mrb[84].mxu1 %v2520_v7 }
 0x3fb   : > { %2859 = vmatprep.mubr.f32.mxu1 %v2523_v62  ;;  %v2576_v62 = vld [vmem:[%s15086_s4 + $0x360] sm:$0xff] }
 0x3fe   : > { %2860 = vmatmul.mubr.f32.gmra.mrb[86].mxu1 %v2522_v9  ;;  %v2579_v9 = vld [vmem:[%s15086_s4 + $0x378] sm:$0xff] }
 0x3ff   : > { %2864 = vmatprep.mubr.f32.mxu1 %v2525_v35 }
 0x402   : > { %2865 = vmatmul.mubr.f32.gmra.mrb[88].mxu1 %v2524_v47 }
 0x403   : > { %2869 = vmatprep.mubr.f32.mxu1 %v2527_v57  ;;  %v2578_v57 = vld [vmem:[%s15086_s4 + $0x370] sm:$0xff] }
 0x406   : > { %2870 = vmatmul.mubr.f32.gmra.mrb[90].mxu1 %v2526_v20  ;;  %v2581_v20 = vld [vmem:[%s15086_s4 + $0x388] sm:$0xff] }
 0x407   : > { %2874 = vmatprep.mubr.f32.mxu1 %v2529_v50 }
 0x40a   : > { %2875 = vmatmul.mubr.f32.gmra.mrb[92].mxu1 %v2528_v34 }
 0x40b   : > { %2879 = vmatprep.mubr.f32.mxu1 %v2531_v11  ;;  %v2580_v11 = vld [vmem:[%s15086_s4 + $0x380] sm:$0xff] }
 0x40e   : > { %2880 = vmatmul.mubr.f32.gmra.mrb[94].mxu1 %v2530_v10  ;;  %v2583_v10 = vld [vmem:[%s15086_s4 + $0x398] sm:$0xff] }
 0x40f   : > { %2884 = vmatprep.mubr.f32.mxu1 %v2533_v13 }
 0x412   : > { %2885 = vmatmul.mubr.f32.gmra.mrb[96].mxu1 %v2532_v39 }
 0x413   : > { %2889 = vmatprep.mubr.f32.mxu1 %v2535_v17  ;;  %v2582_v17 = vld [vmem:[%s15086_s4 + $0x390] sm:$0xff] }
 0x416   : > { %2890 = vmatmul.mubr.f32.gmra.mrb[98].mxu1 %v2534_v6  ;;  %v2585_v6 = vld [vmem:[%s15086_s4 + $0x3a8] sm:$0xff] }
 0x417   : > { %2894 = vmatprep.mubr.f32.mxu1 %v2537_v36 }
 0x41a   : > { %2895 = vmatmul.mubr.f32.gmra.mrb[100].mxu1 %v2536_v1 }
 0x41b   : > { %2899 = vmatprep.mubr.f32.mxu1 %v2539_v0  ;;  %v2584_v0 = vld [vmem:[%s15086_s4 + $0x3a0] sm:$0xff] }
 0x41e   : > { %2900 = vmatmul.mubr.f32.gmra.mrb[102].mxu1 %v2538_v14  ;;  %v2587_v14 = vld [vmem:[%s15086_s4 + $0x3b8] sm:$0xff] }
 0x41f   : > { %2904 = vmatprep.mubr.f32.mxu1 %v2541_v21 }
 0x422   : > { %2905 = vmatmul.mubr.f32.gmra.mrb[104].mxu1 %v2540_v16 }
 0x423   : > { %2909 = vmatprep.mubr.f32.mxu1 %v2543_v51  ;;  %v2586_v51 = vld [vmem:[%s15086_s4 + $0x3b0] sm:$0xff] }
 0x426   : > { %2910 = vmatmul.mubr.f32.gmra.mrb[106].mxu1 %v2542_v28  ;;  %v2589_v28 = vld [vmem:[%s15086_s4 + $0x3c8] sm:$0xff] }
 0x427   : > { %2914 = vmatprep.mubr.f32.mxu1 %v2545_v15 }
 0x42a   : > { %2915 = vmatmul.mubr.f32.gmra.mrb[108].mxu1 %v2544_v54 }
 0x42b   : > { %2919 = vmatprep.mubr.f32.mxu1 %v2547_v48  ;;  %v2588_v48 = vld [vmem:[%s15086_s4 + $0x3c0] sm:$0xff] }
 0x42e   : > { %2920 = vmatmul.mubr.f32.gmra.mrb[110].mxu1 %v2546_v55  ;;  %v2591_v55 = vld [vmem:[%s15086_s4 + $0x3d8] sm:$0xff] }
 0x42f   : > { %2924 = vmatprep.mubr.f32.mxu1 %v2549_v24 }
 0x432   : > { %2925 = vmatmul.mubr.f32.gmra.mrb[112].mxu1 %v2548_v18 }
 0x433   : > { %2929 = vmatprep.mubr.f32.mxu1 %v2551_v53  ;;  %v2590_v53 = vld [vmem:[%s15086_s4 + $0x3d0] sm:$0xff] }
 0x436   : > { %2930 = vmatmul.mubr.f32.gmra.mrb[114].mxu1 %v2550_v19  ;;  %v2593_v19 = vld [vmem:[%s15086_s4 + $0x3e8] sm:$0xff] }
 0x437   : > { %2934 = vmatprep.mubr.f32.mxu1 %v2553_v31 }
 0x43a   : > { %2935 = vmatmul.mubr.f32.gmra.mrb[116].mxu1 %v2552_v2 }
 0x43b   : > { %2939 = vmatprep.mubr.f32.mxu1 %v2555_v38  ;;  %v2592_v38 = vld [vmem:[%s15086_s4 + $0x3e0] sm:$0xff] }
 0x43e   : > { %2940 = vmatmul.mubr.f32.gmra.mrb[118].mxu1 %v2554_v56  ;;  %v2595_v56 = vld [vmem:[%s15086_s4 + $0x3f8] sm:$0xff] }
 0x43f   : > { %2944 = vmatprep.mubr.f32.mxu1 %v2557_v27 }
 0x442   : > { %2945 = vmatmul.mubr.f32.gmra.mrb[120].mxu1 %v2556_v37 }
 0x443   : > { %2949 = vmatprep.mubr.f32.mxu1 %v2559_v58  ;;  %v2594_v58 = vld [vmem:[%s15086_s4 + $0x3f0] sm:$0xff] }
 0x446   : > { %2950 = vmatmul.mubr.f32.gmra.mrb[122].mxu1 %v2558_v42  ;;  %v2597_v42 = vld [vmem:[%s15086_s4 + $0x408] sm:$0xff] }
 0x447   : > { %2954 = vmatprep.mubr.f32.mxu1 %v2561_v4 }
 0x44a   : > { %2955 = vmatmul.mubr.f32.gmra.mrb[124].mxu1 %v2560_v33 }
 0x44b   : > { %2959 = vmatprep.mubr.f32.mxu1 %v2563_v22  ;;  %v2596_v22 = vld [vmem:[%s15086_s4 + $0x400] sm:$0xff] }
 0x44e   : > { %2960 = vmatmul.mubr.f32.gmra.mrb[126].mxu1 %v2562_v41  ;;  %v2599_v41 = vld [vmem:[%s15086_s4 + $0x418] sm:$0xff] }
 0x44f   : > { %2964 = vmatprep.mubr.f32.mxu1 %v2565_v43 }
 0x452   : > { %2965 = vmatmul.mubr.f32.gmra.mrb[128].mxu1 %v2564_v25 }
 0x453   : > { %2969 = vmatprep.mubr.f32.mxu1 %v2567_v61  ;;  %v2598_v61 = vld [vmem:[%s15086_s4 + $0x410] sm:$0xff] }
 0x456   : > { %2970 = vmatmul.mubr.f32.gmra.mrb[130].mxu1 %v2566_v44  ;;  %v2601_v44 = vld [vmem:[%s15086_s4 + $0x428] sm:$0xff] }
 0x457   : > { %2974 = vmatprep.mubr.f32.mxu1 %v2569_v63 }
 0x45a   : > { %2975 = vmatmul.mubr.f32.gmra.mrb[132].mxu1 %v2568_v59 }
 0x45b   : > { %2979 = vmatprep.mubr.f32.mxu1 %v2571_v26  ;;  %v2600_v26 = vld [vmem:[%s15086_s4 + $0x420] sm:$0xff] }
 0x45e   : > { %2980 = vmatmul.mubr.f32.gmra.mrb[134].mxu1 %v2570_v40  ;;  %v2603_v40 = vld [vmem:[%s15086_s4 + $0x438] sm:$0xff] }
 0x45f   : > { %2984 = vmatprep.mubr.f32.mxu1 %v2573_v23 }
 0x462   : > { %2985 = vmatmul.mubr.f32.gmra.mrb[136].mxu1 %v2572_v45 }
 0x463   : > { %2989 = vmatprep.mubr.f32.mxu1 %v2575_v52 }
 0x465   : > { %v12453_v32 = vpop.f32.mrb[32].mxu1 }
 0x466   : > { %v2728_v7 = vpop.f32.mrb[33].mxu1  ;;  %2990 = vmatmul.mubr.f32.gmra.mrb[138].mxu1 %v2574_v12  ;;  %v2604_v12 = vld [vmem:[%s15086_s4 + $0x440] sm:$0xff] }
 0x467   : > { %2994 = vmatprep.mubr.f32.mxu1 %v2577_v30  ;;  %v2609_v7 = vld [vmem:[%s15086_s4 + $0x468] sm:$0xff] }
 0x469   : > { %v12461_v35 = vpop.f32.mrb[34].mxu1 }
 0x46a   : > { %v2733_v47 = vpop.f32.mrb[35].mxu1  ;;  %2995 = vmatmul.mubr.f32.gmra.mrb[140].mxu1 %v2576_v62 }
 0x46b   : > { %2999 = vmatprep.mubr.f32.mxu1 %v2579_v9  ;;  %v2608_v47 = vld [vmem:[%s15086_s4 + $0x460] sm:$0xff] }
 0x46d   : > { %v12469_v50 = vpop.f32.mrb[36].mxu1 }
 0x46e   : > { %v2738_v34 = vpop.f32.mrb[37].mxu1  ;;  %3000 = vmatmul.mubr.f32.gmra.mrb[142].mxu1 %v2578_v57  ;;  %v2611_v57 = vld [vmem:[%s15086_s4 + $0x478] sm:$0xff] }
 0x46f   : > { %3004 = vmatprep.mubr.f32.mxu1 %v2581_v20 }
 0x471   : > { %v12477_v13 = vpop.f32.mrb[38].mxu1 }
 0x472   : > { %v2743_v39 = vpop.f32.mrb[39].mxu1  ;;  %3005 = vmatmul.mubr.f32.gmra.mrb[144].mxu1 %v2580_v11  ;;  %v2610_v11 = vld [vmem:[%s15086_s4 + $0x470] sm:$0xff] }
 0x473   : > { %3009 = vmatprep.mubr.f32.mxu1 %v2583_v10  ;;  %v2613_v10 = vld [vmem:[%s15086_s4 + $0x488] sm:$0xff] }
 0x475   : > { %v12485_v36 = vpop.f32.mrb[40].mxu1 }
 0x476   : > { %v2748_v1 = vpop.f32.mrb[41].mxu1  ;;  %3010 = vmatmul.mubr.f32.gmra.mrb[146].mxu1 %v2582_v17 }
 0x477   : > { %3014 = vmatprep.mubr.f32.mxu1 %v2585_v6  ;;  %v2612_v6 = vld [vmem:[%s15086_s4 + $0x480] sm:$0xff]  ;;  %v2615_v1 = vld [vmem:[%s15086_s4 + $0x498] sm:$0xff] }
 0x479   : > { %v12493_v21 = vpop.f32.mrb[42].mxu1 }
 0x47a   : > { %v2753_v16 = vpop.f32.mrb[43].mxu1  ;;  %3015 = vmatmul.mubr.f32.gmra.mrb[148].mxu1 %v2584_v0 }
 0x47b   : > { %3019 = vmatprep.mubr.f32.mxu1 %v2587_v14  ;;  %v2614_v16 = vld [vmem:[%s15086_s4 + $0x490] sm:$0xff] }
 0x47d   : > { %v12501_v15 = vpop.f32.mrb[44].mxu1 }
 0x47e   : > { %v2758_v54 = vpop.f32.mrb[45].mxu1  ;;  %3020 = vmatmul.mubr.f32.gmra.mrb[150].mxu1 %v2586_v51  ;;  %v2617_v51 = vld [vmem:[%s15086_s4 + $0x4a8] sm:$0xff] }
 0x47f   : > { %3024 = vmatprep.mubr.f32.mxu1 %v2589_v28 }
 0x481   : > { %v12509_v24 = vpop.f32.mrb[46].mxu1 }
 0x482   : > { %v2763_v18 = vpop.f32.mrb[47].mxu1  ;;  %3025 = vmatmul.mubr.f32.gmra.mrb[152].mxu1 %v2588_v48  ;;  %v2616_v48 = vld [vmem:[%s15086_s4 + $0x4a0] sm:$0xff] }
 0x483   : > { %3029 = vmatprep.mubr.f32.mxu1 %v2591_v55  ;;  %v2619_v55 = vld [vmem:[%s15086_s4 + $0x4b8] sm:$0xff] }
 0x485   : > { %v12517_v31 = vpop.f32.mrb[48].mxu1 }
 0x486   : > { %v2768_v2 = vpop.f32.mrb[49].mxu1  ;;  %3030 = vmatmul.mubr.f32.gmra.mrb[154].mxu1 %v2590_v53 }
 0x487   : > { %3034 = vmatprep.mubr.f32.mxu1 %v2593_v19  ;;  %v2618_v19 = vld [vmem:[%s15086_s4 + $0x4b0] sm:$0xff]  ;;  %v2621_v2 = vld [vmem:[%s15086_s4 + $0x4c8] sm:$0xff] }
 0x489   : > { %v12525_v27 = vpop.f32.mrb[50].mxu1 }
 0x48a   : > { %v2773_v37 = vpop.f32.mrb[51].mxu1  ;;  %3035 = vmatmul.mubr.f32.gmra.mrb[156].mxu1 %v2592_v38 }
 0x48b   : > { %3039 = vmatprep.mubr.f32.mxu1 %v2595_v56  ;;  %v2620_v37 = vld [vmem:[%s15086_s4 + $0x4c0] sm:$0xff] }
 0x48d   : > { %v12533_v4 = vpop.f32.mrb[52].mxu1 }
 0x48e   : > { %v2778_v33 = vpop.f32.mrb[53].mxu1  ;;  %3040 = vmatmul.mubr.f32.gmra.mrb[158].mxu1 %v2594_v58  ;;  %v2623_v58 = vld [vmem:[%s15086_s4 + $0x4d8] sm:$0xff] }
 0x48f   : > { %3044 = vmatprep.mubr.f32.mxu1 %v2597_v42 }
 0x491   : > { %v12541_v43 = vpop.f32.mrb[54].mxu1 }
 0x492   : > { %v2783_v25 = vpop.f32.mrb[55].mxu1  ;;  %3045 = vmatmul.mubr.f32.gmra.mrb[160].mxu1 %v2596_v22  ;;  %v2622_v22 = vld [vmem:[%s15086_s4 + $0x4d0] sm:$0xff] }
 0x493   : > { %3049 = vmatprep.mubr.f32.mxu1 %v2599_v41  ;;  %v2625_v41 = vld [vmem:[%s15086_s4 + $0x4e8] sm:$0xff] }
 0x495   : > { %v12549_v63 = vpop.f32.mrb[56].mxu1 }
 0x496   : > { %v2788_v59 = vpop.f32.mrb[57].mxu1  ;;  %3050 = vmatmul.mubr.f32.gmra.mrb[162].mxu1 %v2598_v61 }
 0x497   : > { %3054 = vmatprep.mubr.f32.mxu1 %v2601_v44  ;;  %v2624_v44 = vld [vmem:[%s15086_s4 + $0x4e0] sm:$0xff]  ;;  %v2627_v59 = vld [vmem:[%s15086_s4 + $0x4f8] sm:$0xff] }
 0x499   : > { %v12557_v23 = vpop.f32.mrb[58].mxu1 }
 0x49a   : > { %v2793_v45 = vpop.f32.mrb[59].mxu1  ;;  %3055 = vmatmul.mubr.f32.gmra.mrb[164].mxu1 %v2600_v26 }
 0x49b   : > { %3059 = vmatprep.mubr.f32.mxu1 %v2603_v40  ;;  %v2626_v45 = vld [vmem:[%s15086_s4 + $0x4f0] sm:$0xff] }
 0x49d   : > { %v12565_v52 = vpop.f32.mrb[60].mxu1 }
 0x49e   : > { %v2798_v5 = vpop.f32.mrb[61].mxu1  ;;  %3060 = vmatmul.mubr.f32.gmra.mrb[166].mxu1 %v2602_v46  ;;  %v2629_v46 = vld [vmem:[%s15086_s4 + $0x508] sm:$0xff] }
 0x49f   : > { %3064 = vmatprep.mubr.f32.mxu1 %v2605_v3 }
 0x4a1   : > { %v12573_v49 = vpop.f32.mrb[62].mxu1 }
 0x4a2   : > { %v2803_v30 = vpop.f32.mrb[63].mxu1  ;;  %3065 = vmatmul.mubr.f32.gmra.mrb[168].mxu1 %v2604_v12  ;;  %v2628_v12 = vld [vmem:[%s15086_s4 + $0x500] sm:$0xff] }
 0x4a3   : > { %3069 = vmatprep.mubr.f32.mxu1 %v2607_v29  ;;  %v2631_v29 = vld [vmem:[%s15086_s4 + $0x518] sm:$0xff] }
 0x4a5   : > { %v12581_v62 = vpop.f32.mrb[64].mxu1 }
 0x4a6   : > { %v2808_v9 = vpop.f32.mrb[65].mxu1  ;;  %3070 = vmatmul.mubr.f32.gmra.mrb[170].mxu1 %v2606_v8 }
 0x4a7   : > { %3074 = vmatprep.mubr.f32.mxu1 %v2609_v7  ;;  %v2630_v7 = vld [vmem:[%s15086_s4 + $0x510] sm:$0xff]  ;;  %v2633_v9 = vld [vmem:[%s15086_s4 + $0x528] sm:$0xff] }
 0x4a9   : > { %v12589_v20 = vpop.f32.mrb[66].mxu1 }
 0x4aa   : > { %v2813_v34 = vpop.f32.mrb[67].mxu1  ;;  %3075 = vmatmul.mubr.f32.gmra.mrb[172].mxu1 %v2608_v47 }
 0x4ab   : > { %3079 = vmatprep.mubr.f32.mxu1 %v2611_v57  ;;  %v2632_v34 = vld [vmem:[%s15086_s4 + $0x520] sm:$0xff] }
 0x4ad   : > { %v12597_v39 = vpop.f32.mrb[68].mxu1 }
 0x4ae   : > { %v2818_v17 = vpop.f32.mrb[69].mxu1  ;;  %3080 = vmatmul.mubr.f32.gmra.mrb[174].mxu1 %v2610_v11  ;;  %v2635_v11 = vld [vmem:[%s15086_s4 + $0x538] sm:$0xff] }
 0x4af   : > { %3084 = vmatprep.mubr.f32.mxu1 %v2613_v10 }
 0x4b1   : > { %v12605_v0 = vpop.f32.mrb[70].mxu1 }
 0x4b2   : > { %v2823_v14 = vpop.f32.mrb[71].mxu1  ;;  %3085 = vmatmul.mubr.f32.gmra.mrb[176].mxu1 %v2612_v6  ;;  %v2634_v6 = vld [vmem:[%s15086_s4 + $0x530] sm:$0xff] }
 0x4b3   : > { %3089 = vmatprep.mubr.f32.mxu1 %v2615_v1  ;;  %v3205_v1 = vld [vmem:[%s15087_s5] sm:$0xff]  ;;  %v3206_v14 = vld [vmem:[%s15087_s5 + $0x8] sm:$0xff] }
 0x4b5   : > { %v12613_v28 = vpop.f32.mrb[72].mxu1 }
 0x4b6   : > { %v2828_v54 = vpop.f32.mrb[73].mxu1  ;;  %3090 = vmatmul.mubr.f32.gmra.mrb[178].mxu1 %v2614_v16  ;;  %v2637_v16 = vld [vmem:[%s15086_s4 + $0x548] sm:$0xff] }
 0x4b7   : > { %3094 = vmatprep.mubr.f32.mxu1 %v2617_v51  ;;  %v9972_v51 = vpack.c.bf16 %v3206_v14, %v3205_v1  ;;  %v2648_v1 = vld [vmem:[%s15086_s4 + $0x5a0] sm:$0xff]  ;;  %v2651_v14 = vld [vmem:[%s15086_s4 + $0x5b8] sm:$0xff] }
 0x4b9   : > { %v12621_v18 = vpop.f32.mrb[74].mxu1  ;;  %9973 = vmatprep.subr.bf16.mxu0 %v9972_v51 }
 0x4ba   : > { %v2833_v53 = vpop.f32.mrb[75].mxu1  ;;  %3095 = vmatmul.mubr.f32.gmra.mrb[180].mxu1 %v2616_v48 }
 0x4bb   : > { %3099 = vmatprep.mubr.f32.mxu1 %v2619_v55  ;;  %v2636_v55 = vld [vmem:[%s15086_s4 + $0x540] sm:$0xff]  ;;  %v2639_v53 = vld [vmem:[%s15086_s4 + $0x558] sm:$0xff] }
 0x4bd   : > { %v12629_v38 = vpop.f32.mrb[76].mxu1 }
 0x4be   : > { %v2838_v56 = vpop.f32.mrb[77].mxu1  ;;  %3100 = vmatmul.mubr.f32.gmra.mrb[182].mxu1 %v2618_v19 }
 0x4bf   : > { %3104 = vmatprep.mubr.f32.mxu1 %v2621_v2  ;;  %v2638_v56 = vld [vmem:[%s15086_s4 + $0x550] sm:$0xff] }
 0x4c1   : > { %v12637_v42 = vpop.f32.mrb[78].mxu1 }
 0x4c2   : > { %v2843_v33 = vpop.f32.mrb[79].mxu1  ;;  %3105 = vmatmul.mubr.f32.gmra.mrb[184].mxu1 %v2620_v37  ;;  %v2641_v37 = vld [vmem:[%s15086_s4 + $0x568] sm:$0xff] }
 0x4c3   : > { %3109 = vmatprep.mubr.f32.mxu1 %v2623_v58  ;;  %v3207_v33 = vld [vmem:[%s15087_s5 + $0x10] sm:$0xff] }
 0x4c5   : > { %v12645_v25 = vpop.f32.mrb[80].mxu1 }
 0x4c6   : > { %v2848_v61 = vpop.f32.mrb[81].mxu1  ;;  %3110 = vmatmul.mubr.f32.gmra.mrb[186].mxu1 %v2622_v22  ;;  %v3208_v22 = vld [vmem:[%s15087_s5 + $0x18] sm:$0xff] }
 0x4c7   : > { %3114 = vmatprep.mubr.f32.mxu1 %v2625_v41  ;;  %v2640_v61 = vld [vmem:[%s15086_s4 + $0x560] sm:$0xff] }
 0x4c9   : > { %v12653_v26 = vpop.f32.mrb[82].mxu1 }
 0x4ca   : > { %v2853_v40 = vpop.f32.mrb[83].mxu1  ;;  %3115 = vmatmul.mubr.f32.gmra.mrb[188].mxu1 %v2624_v44  ;;  %v2643_v44 = vld [vmem:[%s15086_s4 + $0x578] sm:$0xff] }
 0x4cb   : > { %3119 = vmatprep.mubr.f32.mxu1 %v2627_v59  ;;  %v9976_v59 = vpack.c.bf16 %v3208_v22, %v3207_v33  ;;  %v2654_v22 = vld [vmem:[%s15086_s4 + $0x5d0] sm:$0xff] }
 0x4cd   : > { %v12661_v3 = vpop.f32.mrb[84].mxu1 }
 0x4ce   : > { %v2858_v5 = vpop.f32.mrb[85].mxu1  ;;  %3120 = vmatmul.mubr.f32.gmra.mrb[190].mxu1 %v2626_v45 }
 0x4cf   : > { %3124 = vmatprep.mubr.f32.mxu1 %v2629_v46  ;;  %v2642_v46 = vld [vmem:[%s15086_s4 + $0x570] sm:$0xff]  ;;  %v2645_v5 = vld [vmem:[%s15086_s4 + $0x588] sm:$0xff] }
 0x4d1   : > { %v12669_v30 = vpop.f32.mrb[86].mxu1 }
 0x4d2   : > { %v2863_v8 = vpop.f32.mrb[87].mxu1  ;;  %3125 = vmatmul.mubr.f32.gmra.mrb[192].mxu1 %v2628_v12 }
 0x4d3   : > { %3129 = vmatprep.mubr.f32.mxu1 %v2631_v29  ;;  %v2644_v8 = vld [vmem:[%s15086_s4 + $0x580] sm:$0xff] }
 0x4d5   : > { %v12677_v47 = vpop.f32.mrb[88].mxu1 }
 0x4d6   : > { %v2868_v57 = vpop.f32.mrb[89].mxu1  ;;  %3130 = vmatmul.mubr.f32.gmra.mrb[194].mxu1 %v2630_v7  ;;  %v2647_v7 = vld [vmem:[%s15086_s4 + $0x598] sm:$0xff] }
 0x4d7   : > { %3134 = vmatprep.mubr.f32.mxu1 %v2633_v9 }
 0x4d9   : > { %v12685_v10 = vpop.f32.mrb[90].mxu1 }
 0x4da   : > { %v2873_v17 = vpop.f32.mrb[91].mxu1  ;;  %3135 = vmatmul.mubr.f32.gmra.mrb[196].mxu1 %v2632_v34  ;;  %v2646_v34 = vld [vmem:[%s15086_s4 + $0x590] sm:$0xff] }
 0x4db   : > { %3139 = vmatprep.mubr.f32.mxu1 %v2635_v11  ;;  %v2649_v11 = vld [vmem:[%s15086_s4 + $0x5a8] sm:$0xff] }
 0x4dd   : > { %v12699_v54 = vpop.f32.mrb[92].mxu1 }
 0x4de   : > { %v2878_v48 = vpop.f32.mrb[93].mxu1  ;;  %3140 = vmatmul.mubr.f32.gmra.mrb[198].mxu1 %v2634_v6 }
 0x4df   : > { %3144 = vmatprep.mubr.f32.mxu1 %v2637_v16  ;;  %v2650_v48 = vld [vmem:[%s15086_s4 + $0x5b0] sm:$0xff] }
 0x4e1   : > { %v12707_v19 = vpop.f32.mrb[94].mxu1 }
 0x4e2   : > { %v2883_v2 = vpop.f32.mrb[95].mxu1  ;;  %3145 = vmatmul.mubr.f32.gmra.mrb[200].mxu1 %v2636_v55  ;;  %v2653_v55 = vld [vmem:[%s15086_s4 + $0x5c8] sm:$0xff] }
 0x4e3   : > { %3149 = vmatprep.mubr.f32.mxu1 %v2639_v53 }
 0x4e5   : > { %v2886_v58 = vpop.f32.mrb[96].mxu1 }
 0x4e6   : > { %v2888_v41 = vpop.f32.mrb[97].mxu1  ;;  %3150 = vmatmul.mubr.f32.gmra.mrb[202].mxu1 %v2638_v56  ;;  %9504 = vmatprep.mubr.msk.f32.mxu0 %vm3214_vm1, %v2886_v58  ;;  %v2652_v56 = vld [vmem:[%s15086_s4 + $0x5c0] sm:$0xff] }
 0x4e7   : > { %3154 = vmatprep.mubr.f32.mxu1 %v2641_v37  ;;  %v2655_v37 = vld [vmem:[%s15086_s4 + $0x5d8] sm:$0xff]  ;;  %v2657_v41 = vld [vmem:[%s15086_s4 + $0x5e8] sm:$0xff] }
 0x4e9   : > { %v2891_v40 = vpop.f32.mrb[98].mxu1 }
 0x4ea   : > { %v2893_v45 = vpop.f32.mrb[99].mxu1  ;;  %3155 = vmatmul.mubr.f32.gmra.mrb[204].mxu1 %v2640_v61  ;;  %9505 = vmatmul.mubr.msk.f32.vlgmr.msra.gmra.mrb[224].mxu0 %vm3214_vm1, %v2891_v40  ;;  %v2659_v40 = vld [vmem:[%s15086_s4 + $0x5f8] sm:$0xff] }
 0x4eb   : > { %3159 = vmatprep.mubr.f32.mxu1 %v2643_v44  ;;  %9975 = vmatpush3.bf16.msra.mxu0 %v9972_v51 }
 0x4ec   : > { %9977 = vmatprep.subr.bf16.mxu0 %v9976_v59 }
 0x4ed   : > { %v2896_v12 = vpop.f32.mrb[100].mxu1 }
 0x4ee   : > { %v2898_v29 = vpop.f32.mrb[101].mxu1  ;;  %3160 = vmatmul.mubr.f32.gmra.mrb[206].mxu1 %v2642_v46  ;;  %9507 = vmatprep.mubr.msk.f32.mxu0 %vm3214_vm1, %v2896_v12 }
 0x4ef   : > { %3164 = vmatprep.mubr.f32.mxu1 %v2645_v5  ;;  %9979 = vmatpush3.bf16.msra.mxu0 %v9976_v59  ;;  %v2656_v59 = vld [vmem:[%s15086_s4 + $0x5e0] sm:$0xff]  ;;  %v2658_v5 = vld [vmem:[%s15086_s4 + $0x5f0] sm:$0xff] }
 0x4f1   : > { %v2901_v9 = vpop.f32.mrb[102].mxu1 }
 0x4f2   : > { %v2903_v57 = vpop.f32.mrb[103].mxu1  ;;  %3165 = vmatmul.mubr.f32.gmra.mrb[208].mxu1 %v2644_v8  ;;  %9508 = vmatmul.mubr.msk.f32.gmra.mrb[226].mxu0 %vm3214_vm1, %v2901_v9 }
 0x4f3   : > { %3169 = vmatprep.mubr.f32.mxu1 %v2647_v7 }
 0x4f5   : > { %v2906_v17 = vpop.f32.mrb[104].mxu1 }
 0x4f6   : > { %v2908_v6 = vpop.f32.mrb[105].mxu1  ;;  %3170 = vmatmul.mubr.f32.gmra.mrb[210].mxu1 %v2646_v34  ;;  %9510 = vmatprep.mubr.msk.f32.mxu0 %vm3214_vm1, %v2906_v17  ;;  %v8791_v17 = vld [vmem:[%s15087_s5 + $0x40] sm:$0xff] }
 0x4f7   : > { %3174 = vmatprep.mubr.f32.mxu1 %v2649_v11  ;;  %v8792_v6 = vld [vmem:[%s15087_s5 + $0x48] sm:$0xff] }
 0x4f9   : > { %v2911_v16 = vpop.f32.mrb[106].mxu1 }
 0x4fa   : > { %v2913_v51 = vpop.f32.mrb[107].mxu1  ;;  %3175 = vmatmul.mubr.f32.gmra.mrb[212].mxu1 %v2648_v1  ;;  %9511 = vmatmul.mubr.msk.f32.gmra.mrb[228].mxu0 %vm3214_vm1, %v2911_v16  ;;  %v12798_v1 = vpack.c.bf16 %v8792_v6, %v8791_v17 }
 0x4fb   : > { %3179 = vmatprep.mubr.f32.mxu1 %v2651_v14 }
 0x4fc   : > { %9981 = vmatprep.subr.bf16.mxu0 %v12798_v1 }
 0x4fd   : > { %v2916_v53 = vpop.f32.mrb[108].mxu1 }
 0x4fe   : > { %v2918_v2 = vpop.f32.mrb[109].mxu1  ;;  %3180 = vmatmul.mubr.f32.gmra.mrb[214].mxu1 %v2650_v48  ;;  %9513 = vmatprep.mubr.msk.f32.mxu0 %vm3214_vm1, %v2916_v53 }
 0x4ff   : > { %3184 = vmatprep.mubr.f32.mxu1 %v2653_v55 }
 0x501   : > { %v2921_v58 = vpop.f32.mrb[110].mxu1 }
 0x502   : > { %v2923_v33 = vpop.f32.mrb[111].mxu1  ;;  %3185 = vmatmul.mubr.f32.gmra.mrb[216].mxu1 %v2652_v56  ;;  %9514 = vmatmul.mubr.msk.f32.gmra.mrb[230].mxu0 %vm3214_vm1, %v2921_v58 }
 0x503   : > { %3189 = vmatprep.mubr.f32.mxu1 %v2655_v37 }
 0x505   : > { %v2926_v61 = vpop.f32.mrb[112].mxu1 }
 0x506   : > { %v2928_v44 = vpop.f32.mrb[113].mxu1  ;;  %3190 = vmatmul.mubr.f32.gmra.mrb[218].mxu1 %v2654_v22  ;;  %9516 = vmatprep.mubr.msk.f32.mxu0 %vm3214_vm1, %v2926_v61 }
 0x507   : > { %3194 = vmatprep.mubr.f32.mxu1 %v2657_v41 }
 0x509   : > { %v2931_v45 = vpop.f32.mrb[114].mxu1 }
 0x50a   : > { %v2933_v46 = vpop.f32.mrb[115].mxu1  ;;  %3195 = vmatmul.mubr.f32.gmra.mrb[220].mxu1 %v2656_v59  ;;  %9517 = vmatmul.mubr.msk.f32.gmra.mrb[232].mxu0 %vm3214_vm1, %v2931_v45 }
 0x50b   : > { %3199 = vmatprep.mubr.f32.mxu1 %v2659_v40 }
 0x50d   : > { %v2936_v12 = vpop.f32.mrb[116].mxu1 }
 0x50e   : > { %v2938_v29 = vpop.f32.mrb[117].mxu1  ;;  %3200 = vmatmul.mubr.f32.gmra.mrb[222].mxu1 %v2658_v5  ;;  %9519 = vmatprep.mubr.msk.f32.mxu0 %vm3214_vm1, %v2936_v12 }
 0x511   : > { %v2941_v8 = vpop.f32.mrb[118].mxu1 }
 0x512   : > { %v2943_v7 = vpop.f32.mrb[119].mxu1  ;;  %9520 = vmatmul.mubr.msk.f32.gmra.mrb[234].mxu0 %vm3214_vm1, %v2941_v8 }
 0x515   : > { %v2946_v9 = vpop.f32.mrb[120].mxu1 }
 0x516   : > { %v2948_v57 = vpop.f32.mrb[121].mxu1  ;;  %9522 = vmatprep.mubr.msk.f32.mxu0 %vm3214_vm1, %v2946_v9 }
 0x519   : > { %v2951_v34 = vpop.f32.mrb[122].mxu1 }
 0x51a   : > { %v2953_v11 = vpop.f32.mrb[123].mxu1  ;;  %9523 = vmatmul.mubr.msk.f32.gmra.mrb[236].mxu0 %vm3214_vm1, %v2951_v34 }
 0x51d   : > { %v2956_v14 = vpop.f32.mrb[124].mxu1 }
 0x51e   : > { %v2958_v16 = vpop.f32.mrb[125].mxu1  ;;  %9525 = vmatprep.mubr.msk.f32.mxu0 %vm3214_vm1, %v2956_v14 }
 0x521   : > { %v2961_v51 = vpop.f32.mrb[126].mxu1 }
 0x522   : > { %v2963_v48 = vpop.f32.mrb[127].mxu1  ;;  %9526 = vmatmul.mubr.msk.f32.gmra.mrb[238].mxu0 %vm3214_vm1, %v2961_v51 }
 0x525   : > { %v2966_v55 = vpop.f32.mrb[128].mxu1 }
 0x526   : > { %v2968_v53 = vpop.f32.mrb[129].mxu1  ;;  %9528 = vmatprep.mubr.msk.f32.mxu0 %vm3214_vm1, %v2966_v55 }
 0x527   : > { %v8793_v53 = vld [vmem:[%s15087_s5 + $0x50] sm:$0xff] }
 0x529   : > { %v2971_v2 = vpop.f32.mrb[130].mxu1 }
 0x52a   : > { %v2973_v56 = vpop.f32.mrb[131].mxu1  ;;  %9529 = vmatmul.mubr.msk.f32.gmra.mrb[240].mxu0 %vm3214_vm1, %v2971_v2  ;;  %v8794_v2 = vld [vmem:[%s15087_s5 + $0x58] sm:$0xff] }
 0x52d   : > { %v2976_v37 = vpop.f32.mrb[132].mxu1 }
 0x52e   : > { %v2978_v58 = vpop.f32.mrb[133].mxu1  ;;  %9531 = vmatprep.mubr.msk.f32.mxu0 %vm3214_vm1, %v2976_v37  ;;  %v9984_v37 = vpack.c.bf16 %v8794_v2, %v8793_v53 }
 0x531   : > { %v2981_v33 = vpop.f32.mrb[134].mxu1 }
 0x532   : > { %v2983_v22 = vpop.f32.mrb[135].mxu1  ;;  %9532 = vmatmul.mubr.msk.f32.gmra.mrb[242].mxu0 %vm3214_vm1, %v2981_v33 }
 0x535   : > { %v2986_v41 = vpop.f32.mrb[136].mxu1 }
 0x536   : > { %v2988_v61 = vpop.f32.mrb[137].mxu1  ;;  %9534 = vmatprep.mubr.msk.f32.mxu0 %vm3214_vm1, %v2986_v41 }
 0x539   : > { %v2991_v44 = vpop.f32.mrb[138].mxu1 }
 0x53a   : > { %v2993_v59 = vpop.f32.mrb[139].mxu1  ;;  %9535 = vmatmul.mubr.msk.f32.gmra.mrb[244].mxu0 %vm3214_vm1, %v2991_v44 }
 0x53d   : > { %v2996_v40 = vpop.f32.mrb[140].mxu1 }
 0x53e   : > { %v2998_v45 = vpop.f32.mrb[141].mxu1  ;;  %9537 = vmatprep.mubr.msk.f32.mxu0 %vm3214_vm1, %v2996_v40 }
 0x541   : > { %v3001_v46 = vpop.f32.mrb[142].mxu1 }
 0x542   : > { %v3003_v5 = vpop.f32.mrb[143].mxu1  ;;  %9538 = vmatmul.mubr.msk.f32.gmra.mrb[246].mxu0 %vm3214_vm1, %v3001_v46 }
 0x545   : > { %v3006_v12 = vpop.f32.mrb[144].mxu1 }
 0x546   : > { %v3008_v29 = vpop.f32.mrb[145].mxu1  ;;  %9540 = vmatprep.mubr.msk.f32.mxu0 %vm3214_vm1, %v3006_v12 }
 0x549   : > { %v3011_v8 = vpop.f32.mrb[146].mxu1 }
 0x54a   : > { %v3013_v7 = vpop.f32.mrb[147].mxu1  ;;  %9541 = vmatmul.mubr.msk.f32.gmra.mrb[248].mxu0 %vm3214_vm1, %v3011_v8 }
 0x54d   : > { %v3016_v9 = vpop.f32.mrb[148].mxu1 }
 0x54e   : > { %v3018_v57 = vpop.f32.mrb[149].mxu1  ;;  %9543 = vmatprep.mubr.msk.f32.mxu0 %vm3214_vm1, %v3016_v9 }
 0x551   : > { %v3021_v34 = vpop.f32.mrb[150].mxu1 }
 0x552   : > { %v3023_v11 = vpop.f32.mrb[151].mxu1  ;;  %9544 = vmatmul.mubr.msk.f32.gmra.mrb[250].mxu0 %vm3214_vm1, %v3021_v34 }
 0x555   : > { %v3026_v17 = vpop.f32.mrb[152].mxu1 }
 0x556   : > { %v3028_v6 = vpop.f32.mrb[153].mxu1  ;;  %9546 = vmatprep.mubr.msk.f32.mxu0 %vm3214_vm1, %v3026_v17 }
 0x559   : > { %v3031_v14 = vpop.f32.mrb[154].mxu1 }
 0x55a   : > { %v3033_v16 = vpop.f32.mrb[155].mxu1  ;;  %9547 = vmatmul.mubr.msk.f32.gmra.mrb[252].mxu0 %vm3214_vm1, %v3031_v14 }
 0x55d   : > { %v3036_v51 = vpop.f32.mrb[156].mxu1 }
 0x55e   : > { %v3038_v48 = vpop.f32.mrb[157].mxu1  ;;  %9549 = vmatprep.mubr.msk.f32.mxu0 %vm3214_vm1, %v3036_v51 }
 0x561   : > { %v3041_v55 = vpop.f32.mrb[158].mxu1 }
 0x562   : > { %v3043_v56 = vpop.f32.mrb[159].mxu1  ;;  %9550 = vmatmul.mubr.msk.f32.gmra.mrb[254].mxu0 %vm3214_vm1, %v3041_v55 }
 0x563   : > { %9560 = vmatprep.mubr.msk.f32.mxu0 %vm3214_vm1, %v12453_v32 }
 0x565   : > { %v12827_v58 = vpop.f32.mrb[160].mxu1 }
 0x566   : > { %9561 = vmatmul.mubr.msk.f32.vlgmr.msra.gmra.mrb[224].mxu0 %vm3214_vm1, %v12461_v35  ;;  %v3048_v33 = vpop.f32.mrb[161].mxu1 }
 0x567   : > { %9563 = vmatprep.mubr.msk.f32.mxu0 %vm3214_vm1, %v12469_v50  ;;  %9983 = vmatpush3.bf16.msra.mxu0 %v12798_v1  ;;  %v4472_v33 = vld [vmem:[%s15089_s7 + $0x8] sm:$0xff] }
 0x568   : > { %9985 = vmatprep.subr.bf16.mxu0 %v9984_v37  ;;  %4727 = vmatprep.mubr.f32.mxu1 %v4472_v33 }
 0x569   : > { %v3051_v22 = vpop.f32.mrb[162].mxu1 }
 0x56a   : > { %9564 = vmatmul.mubr.msk.f32.gmra.mrb[226].mxu0 %vm3214_vm1, %v12477_v13  ;;  %v3053_v41 = vpop.f32.mrb[163].mxu1 }
 0x56b   : > { %9566 = vmatprep.mubr.msk.f32.mxu0 %vm3214_vm1, %v12485_v36  ;;  %9987 = vmatpush3.bf16.msra.mxu0 %v9984_v37  ;;  %v4250_v41 = vpop.permute.xlu0 %4249 }
 0x56d   : > { %v3056_v32 = vpop.f32.mrb[164].mxu1 }
 0x56e   : > { %9567 = vmatmul.mubr.msk.f32.gmra.mrb[228].mxu0 %vm3214_vm1, %v12493_v21  ;;  %v3058_v35 = vpop.f32.mrb[165].mxu1 }
 0x56f   : > { %9569 = vmatprep.mubr.msk.f32.mxu0 %vm3214_vm1, %v12501_v15  ;;  %v4260_v35 = vpop.permute.xlu0 %4259 }
 0x571   : > { %v3061_v50 = vpop.f32.mrb[166].mxu1 }
 0x572   : > { %9570 = vmatmul.mubr.msk.f32.gmra.mrb[230].mxu0 %vm3214_vm1, %v12509_v24  ;;  %v3063_v1 = vpop.f32.mrb[167].mxu1 }
 0x573   : > { %9572 = vmatprep.mubr.msk.f32.mxu0 %vm3214_vm1, %v12517_v31  ;;  %v4270_v1 = vpop.permute.xlu0 %4269 }
 0x575   : > { %v3066_v13 = vpop.f32.mrb[168].mxu1 }
 0x576   : > { %9573 = vmatmul.mubr.msk.f32.gmra.mrb[232].mxu0 %vm3214_vm1, %v12525_v27  ;;  %v3068_v36 = vpop.f32.mrb[169].mxu1 }
 0x577   : > { %9575 = vmatprep.mubr.msk.f32.mxu0 %vm3214_vm1, %v12533_v4  ;;  %v4280_v36 = vpop.permute.xlu0 %4279 }
 0x579   : > { %v3071_v21 = vpop.f32.mrb[170].mxu1 }
 0x57a   : > { %9576 = vmatmul.mubr.msk.f32.gmra.mrb[234].mxu0 %vm3214_vm1, %v12541_v43  ;;  %v3073_v15 = vpop.f32.mrb[171].mxu1 }
 0x57b   : > { %9578 = vmatprep.mubr.msk.f32.mxu0 %vm3214_vm1, %v12549_v63  ;;  %v4290_v15 = vpop.permute.xlu0 %4289 }
 0x57d   : > { %v3076_v24 = vpop.f32.mrb[172].mxu1 }
 0x57e   : > { %9579 = vmatmul.mubr.msk.f32.gmra.mrb[236].mxu0 %vm3214_vm1, %v12557_v23  ;;  %v3078_v31 = vpop.f32.mrb[173].mxu1 }
 0x57f   : > { %9581 = vmatprep.mubr.msk.f32.mxu0 %vm3214_vm1, %v12565_v52 }
 0x581   : > { %v3081_v27 = vpop.f32.mrb[174].mxu1 }
 0x582   : > { %9582 = vmatmul.mubr.msk.f32.gmra.mrb[238].mxu0 %vm3214_vm1, %v12573_v49  ;;  %v3083_v4 = vpop.f32.mrb[175].mxu1 }
 0x583   : > { %9584 = vmatprep.mubr.msk.f32.mxu0 %vm3214_vm1, %v12581_v62 }
 0x585   : > { %v3086_v43 = vpop.f32.mrb[176].mxu1 }
 0x586   : > { %9585 = vmatmul.mubr.msk.f32.gmra.mrb[240].mxu0 %vm3214_vm1, %v12589_v20  ;;  %v3088_v63 = vpop.f32.mrb[177].mxu1 }
 0x587   : > { %9587 = vmatprep.mubr.msk.f32.mxu0 %vm3214_vm1, %v12597_v39 }
 0x589   : > { %v3091_v23 = vpop.f32.mrb[178].mxu1 }
 0x58a   : > { %9588 = vmatmul.mubr.msk.f32.gmra.mrb[242].mxu0 %vm3214_vm1, %v12605_v0  ;;  %v3093_v52 = vpop.f32.mrb[179].mxu1 }
 0x58b   : > { %9590 = vmatprep.mubr.msk.f32.mxu0 %vm3214_vm1, %v12613_v28 }
 0x58d   : > { %v3096_v49 = vpop.f32.mrb[180].mxu1 }
 0x58e   : > { %9591 = vmatmul.mubr.msk.f32.gmra.mrb[244].mxu0 %vm3214_vm1, %v12621_v18  ;;  %v3098_v62 = vpop.f32.mrb[181].mxu1 }
 0x58f   : > { %9593 = vmatprep.mubr.msk.f32.mxu0 %vm3214_vm1, %v12629_v38 }
 0x591   : > { %v3101_v20 = vpop.f32.mrb[182].mxu1 }
 0x592   : > { %9594 = vmatmul.mubr.msk.f32.gmra.mrb[246].mxu0 %vm3214_vm1, %v12637_v42  ;;  %v3103_v39 = vpop.f32.mrb[183].mxu1 }
 0x593   : > { %9596 = vmatprep.mubr.msk.f32.mxu0 %vm3214_vm1, %v12645_v25 }
 0x595   : > { %v3106_v0 = vpop.f32.mrb[184].mxu1 }
 0x596   : > { %9597 = vmatmul.mubr.msk.f32.gmra.mrb[248].mxu0 %vm3214_vm1, %v12653_v26  ;;  %v3108_v28 = vpop.f32.mrb[185].mxu1 }
 0x597   : > { %9599 = vmatprep.mubr.msk.f32.mxu0 %vm3214_vm1, %v12661_v3 }
 0x599   : > { %v3111_v18 = vpop.f32.mrb[186].mxu1 }
 0x59a   : > { %9600 = vmatmul.mubr.msk.f32.gmra.mrb[250].mxu0 %vm3214_vm1, %v12669_v30  ;;  %v3113_v38 = vpop.f32.mrb[187].mxu1 }
 0x59b   : > { %9602 = vmatprep.mubr.msk.f32.mxu0 %vm3214_vm1, %v12677_v47 }
 0x59d   : > { %v3116_v42 = vpop.f32.mrb[188].mxu1 }
 0x59e   : > { %9603 = vmatmul.mubr.msk.f32.gmra.mrb[252].mxu0 %vm3214_vm1, %v12685_v10  ;;  %v3118_v25 = vpop.f32.mrb[189].mxu1 }
 0x59f   : > { %9605 = vmatprep.mubr.msk.f32.mxu0 %vm3214_vm1, %v12699_v54 }
 0x5a1   : > { %v3121_v26 = vpop.f32.mrb[190].mxu1 }
 0x5a2   : > { %9606 = vmatmul.mubr.msk.f32.gmra.mrb[254].mxu0 %vm3214_vm1, %v12707_v19  ;;  %v3123_v3 = vpop.f32.mrb[191].mxu1 }
 0x5a3   : > { %9616 = vmatprep.mubr.msk.f32.mxu0 %vm3214_vm1, %v12827_v58 }
 0x5a5   : > { %v3126_v30 = vpop.f32.mrb[192].mxu1 }
 0x5a6   : > { %9617 = vmatmul.mubr.msk.f32.vlgmr.msra.gmra.mrb[224].mxu0 %vm3214_vm1, %v3051_v22  ;;  %v3128_v47 = vpop.f32.mrb[193].mxu1  ;;  %v4255_v22 = vpop.permute.xlu1 %4254 }
 0x5a7   : > { %9619 = vmatprep.mubr.msk.f32.mxu0 %vm3214_vm1, %v3056_v32 }
 0x5a9   : > { %v3131_v61 = vpop.f32.mrb[194].mxu1 }
 0x5aa   : > { %9620 = vmatmul.mubr.msk.f32.gmra.mrb[226].mxu0 %vm3214_vm1, %v3061_v50  ;;  %v3133_v10 = vpop.f32.mrb[195].mxu1  ;;  %v4265_v32 = vpop.permute.xlu1 %4264 }
 0x5ab   : > { %9622 = vmatprep.mubr.msk.f32.mxu0 %vm3214_vm1, %v3066_v13 }
 0x5ad   : > { %v3136_v54 = vpop.f32.mrb[196].mxu1 }
 0x5ae   : > { %9623 = vmatmul.mubr.msk.f32.gmra.mrb[228].mxu0 %vm3214_vm1, %v3071_v21  ;;  %v3138_v19 = vpop.f32.mrb[197].mxu1  ;;  %v4275_v50 = vpop.permute.xlu1 %4274 }
 0x5af   : > { %9625 = vmatprep.mubr.msk.f32.mxu0 %vm3214_vm1, %v3076_v24 }
 0x5b1   : > { %v3141_v44 = vpop.f32.mrb[198].mxu1 }
 0x5b2   : > { %9626 = vmatmul.mubr.msk.f32.gmra.mrb[230].mxu0 %vm3214_vm1, %v3081_v27  ;;  %v3143_v59 = vpop.f32.mrb[199].mxu1  ;;  %v4285_v13 = vpop.permute.xlu1 %4284 }
 0x5b3   : > { %9628 = vmatprep.mubr.msk.f32.mxu0 %vm3214_vm1, %v3086_v43  ;;  %v4300_v27 = vpop.permute.xlu0 %4299 }
 0x5b5   : > { %v3146_v40 = vpop.f32.mrb[200].mxu1 }
 0x5b6   : > { %9629 = vmatmul.mubr.msk.f32.gmra.mrb[232].mxu0 %vm3214_vm1, %v3091_v23  ;;  %v3148_v45 = vpop.f32.mrb[201].mxu1  ;;  %v4295_v21 = vpop.permute.xlu1 %4294 }
 0x5b7   : > { %9631 = vmatprep.mubr.msk.f32.mxu0 %vm3214_vm1, %v3096_v49 }
 0x5b9   : > { %v3151_v46 = vpop.f32.mrb[202].mxu1 }
 0x5ba   : > { %9632 = vmatmul.mubr.msk.f32.gmra.mrb[234].mxu0 %vm3214_vm1, %v3101_v20  ;;  %v3153_v5 = vpop.f32.mrb[203].mxu1  ;;  %v4305_v24 = vpop.permute.xlu1 %4304 }
 0x5bb   : > { %9634 = vmatprep.mubr.msk.f32.mxu0 %vm3214_vm1, %v3106_v0 }
 0x5bd   : > { %v3156_v12 = vpop.f32.mrb[204].mxu1 }
 0x5be   : > { %9635 = vmatmul.mubr.msk.f32.gmra.mrb[236].mxu0 %vm3214_vm1, %v3111_v18  ;;  %v3158_v29 = vpop.f32.mrb[205].mxu1  ;;  %v4315_v39 = vpop.permute.xlu1 %4314 }
 0x5bf   : > { %9637 = vmatprep.mubr.msk.f32.mxu0 %vm3214_vm1, %v3116_v42  ;;  %v4310_v18 = vpop.permute.xlu0 %4309 }
 0x5c1   : > { %v3161_v8 = vpop.f32.mrb[206].mxu1 }
 0x5c2   : > { %9638 = vmatmul.mubr.msk.f32.gmra.mrb[238].mxu0 %vm3214_vm1, %v3121_v26  ;;  %v3163_v7 = vpop.f32.mrb[207].mxu1  ;;  %v4325_v10 = vpop.permute.xlu1 %4324 }
 0x5c3   : > { %9640 = vmatprep.mubr.msk.f32.mxu0 %vm3214_vm1, %v3126_v30 }
 0x5c5   : > { %v3166_v9 = vpop.f32.mrb[208].mxu1 }
 0x5c6   : > { %9641 = vmatmul.mubr.msk.f32.gmra.mrb[240].mxu0 %vm3214_vm1, %v3131_v61  ;;  %v3168_v57 = vpop.f32.mrb[209].mxu1 }
 0x5c7   : > { %9643 = vmatprep.mubr.msk.f32.mxu0 %vm3214_vm1, %v3136_v54 }
 0x5c9   : > { %v3171_v34 = vpop.f32.mrb[210].mxu1 }
 0x5ca   : > { %9644 = vmatmul.mubr.msk.f32.gmra.mrb[242].mxu0 %vm3214_vm1, %v3141_v44  ;;  %v3173_v11 = vpop.f32.mrb[211].mxu1  ;;  %v4320_v44 = vpop.permute.xlu0 %4319 }
 0x5cb   : > { %9646 = vmatprep.mubr.msk.f32.mxu0 %vm3214_vm1, %v3146_v40 }
 0x5cd   : > { %v3176_v17 = vpop.f32.mrb[212].mxu1 }
 0x5ce   : > { %9647 = vmatmul.mubr.msk.f32.gmra.mrb[244].mxu0 %vm3214_vm1, %v3151_v46  ;;  %v3178_v6 = vpop.f32.mrb[213].mxu1  ;;  %v4330_v11 = vpop.permute.xlu0 %4329 }
 0x5cf   : > { %9649 = vmatprep.mubr.msk.f32.mxu0 %vm3214_vm1, %v3156_v12 }
 0x5d1   : > { %v3181_v14 = vpop.f32.mrb[214].mxu1 }
 0x5d2   : > { %9650 = vmatmul.mubr.msk.f32.gmra.mrb[246].mxu0 %vm3214_vm1, %v3161_v8  ;;  %v3183_v16 = vpop.f32.mrb[215].mxu1 }
 0x5d3   : > { %9652 = vmatprep.mubr.msk.f32.mxu0 %vm3214_vm1, %v3166_v9  ;;  %v4335_v9 = vpop.permute.xlu1 %4334 }
 0x5d5   : > { %v3186_v51 = vpop.f32.mrb[216].mxu1 }
 0x5d6   : > { %9653 = vmatmul.mubr.msk.f32.gmra.mrb[248].mxu0 %vm3214_vm1, %v3171_v34  ;;  %v3188_v48 = vpop.f32.mrb[217].mxu1 }
 0x5d7   : > { %9655 = vmatprep.mubr.msk.f32.mxu0 %vm3214_vm1, %v3176_v17 }
 0x5d9   : > { %v3191_v55 = vpop.f32.mrb[218].mxu1 }
 0x5da   : > { %9656 = vmatmul.mubr.msk.f32.gmra.mrb[250].mxu0 %vm3214_vm1, %v3181_v14  ;;  %v3193_v53 = vpop.f32.mrb[219].mxu1 }
 0x5db   : > { %9658 = vmatprep.mubr.msk.f32.mxu0 %vm3214_vm1, %v3186_v51 }
 0x5dd   : > { %v3196_v2 = vpop.f32.mrb[220].mxu1 }
 0x5de   : > { %9659 = vmatmul.mubr.msk.f32.gmra.mrb[252].mxu0 %vm3214_vm1, %v3191_v55  ;;  %v3198_v56 = vpop.f32.mrb[221].mxu1 }
 0x5df   : > { %9661 = vmatprep.mubr.msk.f32.mxu0 %vm3214_vm1, %v3196_v2  ;;  %v4345_v2 = vpop.permute.xlu1 %4344 }
 0x5e1   : > { %v3201_v37 = vpop.f32.mrb[222].mxu1 }
 0x5e2   : > { %9662 = vmatmul.mubr.msk.f32.gmra.mrb[254].mxu0 %vm3214_vm1, %v3201_v37  ;;  %v3203_v58 = vpop.f32.mrb[223].mxu1 }
 0x5e3   : > { %v4340_v58 = vpop.permute.xlu0 %4339 }
 0x679   : > { %v9618_v31 = vpop.f32.mrb[224].mxu0 }
 0x67a   : > { %v4408_v4 = vadd.f32 %v9618_v31, %v4255_v22  ;;  %v4024_v43 = vpop.f32.mrb[225].mxu0  ;;  %v4350_v31 = vpop.permute.xlu0 %4349 }
 0x67b   : > { %v4407_v63 = vadd.f32 %v4250_v41, %v4024_v43 }
 0x67c   : > { %v4440_v23 = vmax.f32 %v4408_v4, 0.0 }
 0x67d   : > { %v4439_v52 = vmax.f32 %v4407_v63, 0.0  ;;  %v9621_v49 = vpop.f32.mrb[226].mxu0 }
 0x67e   : > { %v4410_v62 = vadd.f32 %v9621_v49, %v4265_v32  ;;  %v4034_v20 = vpop.f32.mrb[227].mxu0 }
 0x67f   : > { %v9989_v0 = vpack.c.bf16 %v4440_v23, %v4439_v52  ;;  %v4409_v28 = vadd.f32 %v4260_v35, %v4034_v20 }
 0x680   : > { %v4442_v38 = vmax.f32 %v4410_v62, 0.0 }
 0x681   : > { %v4441_v42 = vmax.f32 %v4409_v28, 0.0  ;;  %v9624_v25 = vpop.f32.mrb[228].mxu0  ;;  %9990 = vmatpush1.bf16.msra.mxu1 %v9989_v0  ;;  %v4360_v28 = vpop.permute.xlu0 %4359 }
 0x682   : > { %v4412_v26 = vadd.f32 %v9624_v25, %v4275_v50  ;;  %v4044_v3 = vpop.f32.mrb[229].mxu0  ;;  %9991 = vmatprep.subr.bf16.mxu1 %v15118_v60 }
 0x683   : > { %v9992_v30 = vpack.c.bf16 %v4442_v38, %v4441_v42  ;;  %v4411_v47 = vadd.f32 %v4270_v1, %v4044_v3 }
 0x684   : > { %v4444_v61 = vmax.f32 %v4412_v26, 0.0 }
 0x685   : > { %v4443_v54 = vmax.f32 %v4411_v47, 0.0  ;;  %v9627_v19 = vpop.f32.mrb[230].mxu0  ;;  %9993 = vmatpush1.bf16.msra.mxu1 %v9992_v30 }
 0x686   : > { %v4414_v59 = vadd.f32 %v9627_v19, %v4285_v13  ;;  %v4054_v40 = vpop.f32.mrb[231].mxu0  ;;  %9994 = vmatprep.subr.bf16.mxu1 %v15118_v60 }
 0x687   : > { %v9995_v45 = vpack.c.bf16 %v4444_v61, %v4443_v54  ;;  %v4413_v46 = vadd.f32 %v4280_v36, %v4054_v40 }
 0x688   : > { %v4446_v5 = vmax.f32 %v4414_v59, 0.0 }
 0x689   : > { %v4445_v12 = vmax.f32 %v4413_v46, 0.0  ;;  %v9630_v29 = vpop.f32.mrb[232].mxu0  ;;  %9996 = vmatpush1.bf16.msra.mxu1 %v9995_v45 }
 0x68a   : > { %v4416_v8 = vadd.f32 %v9630_v29, %v4295_v21  ;;  %v4064_v7 = vpop.f32.mrb[233].mxu0  ;;  %9997 = vmatprep.subr.bf16.mxu1 %v15118_v60  ;;  %v4355_v21 = vpop.permute.xlu1 %4354 }
 0x68b   : > { %v9998_v57 = vpack.c.bf16 %v4446_v5, %v4445_v12  ;;  %v4415_v34 = vadd.f32 %v4290_v15, %v4064_v7 }
 0x68c   : > { %v4448_v17 = vmax.f32 %v4416_v8, 0.0 }
 0x68d   : > { %v4447_v6 = vmax.f32 %v4415_v34, 0.0  ;;  %v9633_v14 = vpop.f32.mrb[234].mxu0  ;;  %9999 = vmatpush1.bf16.msra.mxu1 %v9998_v57 }
 0x68e   : > { %v4418_v16 = vadd.f32 %v9633_v14, %v4305_v24  ;;  %v4074_v51 = vpop.f32.mrb[235].mxu0  ;;  %10000 = vmatprep.subr.bf16.mxu1 %v15118_v60  ;;  %v4365_v20 = vpop.permute.xlu1 %4364 }
 0x68f   : > { %v10001_v48 = vpack.c.bf16 %v4448_v17, %v4447_v6  ;;  %v4417_v55 = vadd.f32 %v4300_v27, %v4074_v51 }
 0x690   : > { %v4450_v53 = vmax.f32 %v4418_v16, 0.0 }
 0x691   : > { %v4449_v56 = vmax.f32 %v4417_v55, 0.0  ;;  %v9636_v37 = vpop.f32.mrb[236].mxu0  ;;  %10002 = vmatpush1.bf16.msra.mxu1 %v10001_v48 }
 0x692   : > { %v4420_v33 = vadd.f32 %v9636_v37, %v4315_v39  ;;  %v4084_v22 = vpop.f32.mrb[237].mxu0  ;;  %10003 = vmatprep.subr.bf16.mxu1 %v15118_v60 }
 0x693   : > { %v10004_v41 = vpack.c.bf16 %v4450_v53, %v4449_v56  ;;  %v4419_v32 = vadd.f32 %v4310_v18, %v4084_v22 }
 0x694   : > { %v4452_v35 = vmax.f32 %v4420_v33, 0.0 }
 0x695   : > { %v4451_v50 = vmax.f32 %v4419_v32, 0.0  ;;  %v9639_v1 = vpop.f32.mrb[238].mxu0  ;;  %10005 = vmatpush1.bf16.msra.mxu1 %v10004_v41 }
 0x696   : > { %v4422_v13 = vadd.f32 %v9639_v1, %v4325_v10  ;;  %v4094_v36 = vpop.f32.mrb[239].mxu0  ;;  %10006 = vmatprep.subr.bf16.mxu1 %v15118_v60  ;;  %v4375_v10 = vpop.permute.xlu1 %4374 }
 0x697   : > { %v10007_v15 = vpack.c.bf16 %v4452_v35, %v4451_v50  ;;  %v4421_v24 = vadd.f32 %v4320_v44, %v4094_v36  ;;  %v4370_v44 = vpop.permute.xlu0 %4369 }
 0x698   : > { %v4454_v27 = vmax.f32 %v4422_v13, 0.0 }
 0x699   : > { %v4453_v4 = vmax.f32 %v4421_v24, 0.0  ;;  %v9642_v43 = vpop.f32.mrb[240].mxu0  ;;  %10008 = vmatpush1.bf16.msra.mxu1 %v10007_v15 }
 0x69a   : > { %v4424_v63 = vadd.f32 %v9642_v43, %v4335_v9  ;;  %v4104_v23 = vpop.f32.mrb[241].mxu0  ;;  %10009 = vmatprep.subr.bf16.mxu1 %v15118_v60  ;;  %v4385_v7 = vpop.permute.xlu1 %4384 }
 0x69b   : > { %v10010_v52 = vpack.c.bf16 %v4454_v27, %v4453_v4  ;;  %v4423_v49 = vadd.f32 %v4330_v11, %v4104_v23  ;;  %v4380_v34 = vpop.permute.xlu0 %4379 }
 0x69c   : > { %v4456_v62 = vmax.f32 %v4424_v63, 0.0 }
 0x69d   : > { %v4455_v39 = vmax.f32 %v4423_v49, 0.0  ;;  %v9645_v0 = vpop.f32.mrb[242].mxu0  ;;  %10011 = vmatpush1.bf16.msra.mxu1 %v10010_v52  ;;  %v4471_v49 = vld [vmem:[%s15089_s7] sm:$0xff] }
 0x69e   : > { %v4426_v18 = vadd.f32 %v9645_v0, %v4345_v2  ;;  %v4114_v38 = vpop.f32.mrb[243].mxu0  ;;  %10012 = vmatprep.subr.bf16.mxu1 %v15118_v60  ;;  %v4395_v2 = vpop.permute.xlu1 %4394  ;;  %v4475_v0 = vld [vmem:[%s15089_s7 + $0x20] sm:$0xff] }
 0x69f   : > { %v10013_v42 = vpack.c.bf16 %v4456_v62, %v4455_v39  ;;  %v4425_v25 = vadd.f32 %v4340_v58, %v4114_v38  ;;  %v4390_v58 = vpop.permute.xlu0 %4389  ;;  %v4474_v62 = vld [vmem:[%s15089_s7 + $0x18] sm:$0xff]  ;;  %v4476_v39 = vld [vmem:[%s15089_s7 + $0x28] sm:$0xff] }
 0x6a0   : > { %v4458_v26 = vmax.f32 %v4426_v18, 0.0  ;;  %v4477_v18 = vld [vmem:[%s15089_s7 + $0x30] sm:$0xff]  ;;  %v4480_v38 = vld [vmem:[%s15089_s7 + $0x48] sm:$0xff] }
 0x6a1   : > { %v4457_v3 = vmax.f32 %v4425_v25, 0.0  ;;  %v9648_v30 = vpop.f32.mrb[244].mxu0  ;;  %10014 = vmatpush1.bf16.msra.mxu1 %v10013_v42  ;;  %v4479_v42 = vld [vmem:[%s15089_s7 + $0x40] sm:$0xff]  ;;  %v4482_v25 = vld [vmem:[%s15089_s7 + $0x58] sm:$0xff] }
 0x6a2   : > { %v4428_v47 = vadd.f32 %v9648_v30, %v4355_v21  ;;  %v4124_v61 = vpop.f32.mrb[245].mxu0  ;;  %10015 = vmatprep.subr.bf16.mxu1 %v15118_v60  ;;  %v4405_v36 = vpop.permute.xlu1 %4404  ;;  %v4483_v30 = vld [vmem:[%s15089_s7 + $0x60] sm:$0xff] }
 0x6a3   : > { %v10016_v54 = vpack.c.bf16 %v4458_v26, %v4457_v3  ;;  %v4427_v19 = vadd.f32 %v4350_v31, %v4124_v61  ;;  %v4400_v24 = vpop.permute.xlu0 %4399  ;;  %v4481_v26 = vld [vmem:[%s15089_s7 + $0x50] sm:$0xff]  ;;  %v4484_v3 = vld [vmem:[%s15089_s7 + $0x68] sm:$0xff] }
 0x6a4   : > { %v4460_v59 = vmax.f32 %v4428_v47, 0.0  ;;  %v4486_v47 = vld [vmem:[%s15089_s7 + $0x78] sm:$0xff]  ;;  %v4485_v61 = vld [vmem:[%s15089_s7 + $0x70] sm:$0xff] }
 0x6a5   : > { %v4459_v40 = vmax.f32 %v4427_v19, 0.0  ;;  %v9651_v45 = vpop.f32.mrb[246].mxu0  ;;  %10017 = vmatpush1.bf16.msra.mxu1 %v10016_v54  ;;  %v4487_v54 = vld [vmem:[%s15089_s7 + $0x80] sm:$0xff]  ;;  %v4490_v19 = vld [vmem:[%s15089_s7 + $0x98] sm:$0xff] }
 0x6a6   : > { %v4430_v46 = vadd.f32 %v9651_v45, %v4365_v20  ;;  %v4134_v5 = vpop.f32.mrb[247].mxu0  ;;  %10018 = vmatprep.subr.bf16.mxu1 %v15118_v60  ;;  %v4473_v20 = vld [vmem:[%s15089_s7 + $0x10] sm:$0xff]  ;;  %v4494_v45 = vld [vmem:[%s15089_s7 + $0xb8] sm:$0xff] }
 0x6a7   : > { %v10019_v12 = vpack.c.bf16 %v4460_v59, %v4459_v40  ;;  %v4429_v29 = vadd.f32 %v4360_v28, %v4134_v5  ;;  %v4478_v28 = vld [vmem:[%s15089_s7 + $0x38] sm:$0xff]  ;;  %v4492_v59 = vld [vmem:[%s15089_s7 + $0xa8] sm:$0xff]  ;;  %v4491_v40 = vld [vmem:[%s15089_s7 + $0xa0] sm:$0xff] }
 0x6a8   : > { %v4462_v8 = vmax.f32 %v4430_v46, 0.0  ;;  %v4493_v46 = vld [vmem:[%s15089_s7 + $0xb0] sm:$0xff]  ;;  %v4496_v5 = vld [vmem:[%s15089_s7 + $0xc8] sm:$0xff] }
 0x6a9   : > { %v4461_v9 = vmax.f32 %v4429_v29, 0.0  ;;  %v9654_v57 = vpop.f32.mrb[248].mxu0  ;;  %10020 = vmatpush1.bf16.msra.mxu1 %v10019_v12  ;;  %v4495_v12 = vld [vmem:[%s15089_s7 + $0xc0] sm:$0xff]  ;;  %v4498_v29 = vld [vmem:[%s15089_s7 + $0xd8] sm:$0xff] }
 0x6aa   : > { %v4432_v11 = vadd.f32 %v9654_v57, %v4375_v10  ;;  %v4144_v17 = vpop.f32.mrb[249].mxu0  ;;  %10021 = vmatprep.subr.bf16.mxu1 %v15118_v60  ;;  %v4488_v10 = vld [vmem:[%s15089_s7 + $0x88] sm:$0xff]  ;;  %v4502_v57 = vld [vmem:[%s15089_s7 + $0xf8] sm:$0xff] }
 0x6ab   : > { %v10022_v6 = vpack.c.bf16 %v4462_v8, %v4461_v9  ;;  %v4431_v14 = vadd.f32 %v4370_v44, %v4144_v17  ;;  %v4489_v44 = vld [vmem:[%s15089_s7 + $0x90] sm:$0xff]  ;;  %v4499_v9 = vld [vmem:[%s15089_s7 + $0xe0] sm:$0xff] }
 0x6ac   : > { %v4464_v16 = vmax.f32 %v4432_v11, 0.0  ;;  %v4497_v8 = vld [vmem:[%s15089_s7 + $0xd0] sm:$0xff]  ;;  %v4504_v11 = vld [vmem:[%s15089_s7 + $0x108] sm:$0xff]  ;;  %v4503_v17 = vld [vmem:[%s15089_s7 + $0x100] sm:$0xff] }
 0x6ad   : > { %v4463_v51 = vmax.f32 %v4431_v14, 0.0  ;;  %v9657_v48 = vpop.f32.mrb[250].mxu0  ;;  %10023 = vmatpush1.bf16.msra.mxu1 %v10022_v6  ;;  %v4506_v6 = vld [vmem:[%s15089_s7 + $0x118] sm:$0xff]  ;;  %v4505_v14 = vld [vmem:[%s15089_s7 + $0x110] sm:$0xff] }
 0x6ae   : > { %v4434_v55 = vadd.f32 %v9657_v48, %v4385_v7  ;;  %v4154_v53 = vpop.f32.mrb[251].mxu0  ;;  %10024 = vmatprep.subr.bf16.mxu1 %v15118_v60  ;;  %v4500_v7 = vld [vmem:[%s15089_s7 + $0xe8] sm:$0xff]  ;;  %v4510_v48 = vld [vmem:[%s15089_s7 + $0x138] sm:$0xff] }
 0x6af   : > { %v10025_v56 = vpack.c.bf16 %v4464_v16, %v4463_v51  ;;  %v4433_v37 = vadd.f32 %v4380_v34, %v4154_v53  ;;  %v4501_v34 = vld [vmem:[%s15089_s7 + $0xf0] sm:$0xff]  ;;  %v4508_v16 = vld [vmem:[%s15089_s7 + $0x128] sm:$0xff]  ;;  %v4507_v51 = vld [vmem:[%s15089_s7 + $0x120] sm:$0xff] }
 0x6b0   : > { %v4466_v33 = vmax.f32 %v4434_v55, 0.0  ;;  %v4509_v55 = vld [vmem:[%s15089_s7 + $0x130] sm:$0xff]  ;;  %v4512_v53 = vld [vmem:[%s15089_s7 + $0x148] sm:$0xff] }
 0x6b1   : > { %v4465_v22 = vmax.f32 %v4433_v37, 0.0  ;;  %v9660_v41 = vpop.f32.mrb[252].mxu0  ;;  %10026 = vmatpush1.bf16.msra.mxu1 %v10025_v56  ;;  %v4514_v56 = vld [vmem:[%s15089_s7 + $0x158] sm:$0xff]  ;;  %v4513_v37 = vld [vmem:[%s15089_s7 + $0x150] sm:$0xff] }
 0x6b2   : > { %v4436_v32 = vadd.f32 %v9660_v41, %v4395_v2  ;;  %v4164_v35 = vpop.f32.mrb[253].mxu0  ;;  %10027 = vmatprep.subr.bf16.mxu1 %v15118_v60  ;;  %v4511_v2 = vld [vmem:[%s15089_s7 + $0x140] sm:$0xff]  ;;  %v4517_v41 = vld [vmem:[%s15089_s7 + $0x170] sm:$0xff] }
 0x6b3   : > { %v10028_v50 = vpack.c.bf16 %v4466_v33, %v4465_v22  ;;  %v4435_v1 = vadd.f32 %v4390_v58, %v4164_v35  ;;  %v4516_v58 = vld [vmem:[%s15089_s7 + $0x168] sm:$0xff]  ;;  %v4515_v33 = vld [vmem:[%s15089_s7 + $0x160] sm:$0xff]  ;;  %v4518_v22 = vld [vmem:[%s15089_s7 + $0x178] sm:$0xff] }
 0x6b4   : > { %v4468_v13 = vmax.f32 %v4436_v32, 0.0  ;;  %v4520_v32 = vld [vmem:[%s15089_s7 + $0x188] sm:$0xff]  ;;  %v4519_v35 = vld [vmem:[%s15089_s7 + $0x180] sm:$0xff] }
 0x6b5   : > { %v4467_v21 = vmax.f32 %v4435_v1, 0.0  ;;  %v9663_v15 = vpop.f32.mrb[254].mxu0  ;;  %10029 = vmatpush1.bf16.msra.mxu1 %v10028_v50  ;;  %v4522_v50 = vld [vmem:[%s15089_s7 + $0x198] sm:$0xff]  ;;  %v4521_v1 = vld [vmem:[%s15089_s7 + $0x190] sm:$0xff] }
 0x6b6   : > { %v4438_v31 = vadd.f32 %v9663_v15, %v4405_v36  ;;  %v4174_v27 = vpop.f32.mrb[255].mxu0  ;;  %10030 = vmatprep.subr.bf16.mxu1 %v15118_v60  ;;  %v4523_v36 = vld [vmem:[%s15089_s7 + $0x1a0] sm:$0xff]  ;;  %v4525_v15 = vld [vmem:[%s15089_s7 + $0x1b0] sm:$0xff] }
 0x6b7   : > { %v10031_v4 = vpack.c.bf16 %v4468_v13, %v4467_v21  ;;  %v4437_v43 = vadd.f32 %v4400_v24, %v4174_v27  ;;  %v4524_v13 = vld [vmem:[%s15089_s7 + $0x1a8] sm:$0xff]  ;;  %v4526_v21 = vld [vmem:[%s15089_s7 + $0x1b8] sm:$0xff] }
 0x6b8   : > { %v4470_v63 = vmax.f32 %v4438_v31, 0.0  ;;  %v4528_v24 = vld [vmem:[%s15089_s7 + $0x1c8] sm:$0xff]  ;;  %v4527_v31 = vld [vmem:[%s15089_s7 + $0x1c0] sm:$0xff]  ;;  %v4530_v27 = vld [vmem:[%s15089_s7 + $0x1d8] sm:$0xff] }
 0x6b9   : > { %v4469_v23 = vmax.f32 %v4437_v43, 0.0  ;;  %10032 = vmatpush1.bf16.msra.mxu1 %v10031_v4  ;;  %v4529_v4 = vld [vmem:[%s15089_s7 + $0x1d0] sm:$0xff]  ;;  %v4532_v43 = vld [vmem:[%s15089_s7 + $0x1e8] sm:$0xff] }
 0x6ba   : > { %10033 = vmatprep.subr.bf16.mxu1 %v15118_v60 }
 0x6bb   : > { %v10034_v52 = vpack.c.bf16 %v4470_v63, %v4469_v23  ;;  %v4531_v63 = vld [vmem:[%s15089_s7 + $0x1e0] sm:$0xff]  ;;  %v4534_v23 = vld [vmem:[%s15089_s7 + $0x1f8] sm:$0xff] }
 0x6bd   : > { %10035 = vmatpush1.bf16.msra.mxu1 %v10034_v52  ;;  %v4533_v52 = vld [vmem:[%s15089_s7 + $0x1f0] sm:$0xff] }
 0x6c0   : > { %4728 = vmatmul.mubr.f32.vlgmr.msra.gmra.mrb[224].mxu1 %v4471_v49  ;;  %v4536_v49 = vld [vmem:[%s15089_s7 + $0x208] sm:$0xff] }
 0x6c1   : > { %4732 = vmatprep.mubr.f32.mxu1 %v4474_v62  ;;  %v4535_v62 = vld [vmem:[%s15089_s7 + $0x200] sm:$0xff] }
 0x6c4   : > { %4733 = vmatmul.mubr.f32.gmra.mrb[226].mxu1 %v4473_v20  ;;  %v4538_v20 = vld [vmem:[%s15089_s7 + $0x218] sm:$0xff] }
 0x6c5   : > { %4737 = vmatprep.mubr.f32.mxu1 %v4476_v39  ;;  %v4537_v39 = vld [vmem:[%s15089_s7 + $0x210] sm:$0xff] }
 0x6c8   : > { %4738 = vmatmul.mubr.f32.gmra.mrb[228].mxu1 %v4475_v0  ;;  %v4540_v0 = vld [vmem:[%s15089_s7 + $0x228] sm:$0xff] }
 0x6c9   : > { %4742 = vmatprep.mubr.f32.mxu1 %v4478_v28  ;;  %v4539_v28 = vld [vmem:[%s15089_s7 + $0x220] sm:$0xff] }
 0x6cc   : > { %4743 = vmatmul.mubr.f32.gmra.mrb[230].mxu1 %v4477_v18  ;;  %v4542_v18 = vld [vmem:[%s15089_s7 + $0x238] sm:$0xff] }
 0x6cd   : > { %4747 = vmatprep.mubr.f32.mxu1 %v4480_v38  ;;  %v4541_v38 = vld [vmem:[%s15089_s7 + $0x230] sm:$0xff] }
 0x6d0   : > { %4748 = vmatmul.mubr.f32.gmra.mrb[232].mxu1 %v4479_v42  ;;  %v4544_v42 = vld [vmem:[%s15089_s7 + $0x248] sm:$0xff] }
 0x6d1   : > { %4752 = vmatprep.mubr.f32.mxu1 %v4482_v25  ;;  %v4543_v25 = vld [vmem:[%s15089_s7 + $0x240] sm:$0xff] }
 0x6d4   : > { %4753 = vmatmul.mubr.f32.gmra.mrb[234].mxu1 %v4481_v26  ;;  %v4546_v26 = vld [vmem:[%s15089_s7 + $0x258] sm:$0xff] }
 0x6d5   : > { %4757 = vmatprep.mubr.f32.mxu1 %v4484_v3  ;;  %v4545_v3 = vld [vmem:[%s15089_s7 + $0x250] sm:$0xff] }
 0x6d8   : > { %4758 = vmatmul.mubr.f32.gmra.mrb[236].mxu1 %v4483_v30  ;;  %v4548_v30 = vld [vmem:[%s15089_s7 + $0x268] sm:$0xff] }
 0x6d9   : > { %4762 = vmatprep.mubr.f32.mxu1 %v4486_v47  ;;  %v4547_v47 = vld [vmem:[%s15089_s7 + $0x260] sm:$0xff] }
 0x6dc   : > { %4763 = vmatmul.mubr.f32.gmra.mrb[238].mxu1 %v4485_v61  ;;  %v4550_v61 = vld [vmem:[%s15089_s7 + $0x278] sm:$0xff] }
 0x6dd   : > { %4767 = vmatprep.mubr.f32.mxu1 %v4488_v10  ;;  %v4549_v10 = vld [vmem:[%s15089_s7 + $0x270] sm:$0xff] }
 0x6e0   : > { %4768 = vmatmul.mubr.f32.gmra.mrb[240].mxu1 %v4487_v54  ;;  %v4552_v54 = vld [vmem:[%s15089_s7 + $0x288] sm:$0xff] }
 0x6e1   : > { %4772 = vmatprep.mubr.f32.mxu1 %v4490_v19  ;;  %v4551_v19 = vld [vmem:[%s15089_s7 + $0x280] sm:$0xff] }
 0x6e4   : > { %4773 = vmatmul.mubr.f32.gmra.mrb[242].mxu1 %v4489_v44  ;;  %v4554_v44 = vld [vmem:[%s15089_s7 + $0x298] sm:$0xff] }
 0x6e5   : > { %4777 = vmatprep.mubr.f32.mxu1 %v4492_v59  ;;  %v4553_v59 = vld [vmem:[%s15089_s7 + $0x290] sm:$0xff] }
 0x6e8   : > { %4778 = vmatmul.mubr.f32.gmra.mrb[244].mxu1 %v4491_v40  ;;  %v4556_v40 = vld [vmem:[%s15089_s7 + $0x2a8] sm:$0xff] }
 0x6e9   : > { %4782 = vmatprep.mubr.f32.mxu1 %v4494_v45  ;;  %v4555_v45 = vld [vmem:[%s15089_s7 + $0x2a0] sm:$0xff] }
 0x6ec   : > { %4783 = vmatmul.mubr.f32.gmra.mrb[246].mxu1 %v4493_v46  ;;  %v4558_v46 = vld [vmem:[%s15089_s7 + $0x2b8] sm:$0xff] }
 0x6ed   : > { %4787 = vmatprep.mubr.f32.mxu1 %v4496_v5  ;;  %v4557_v5 = vld [vmem:[%s15089_s7 + $0x2b0] sm:$0xff] }
 0x6f0   : > { %4788 = vmatmul.mubr.f32.gmra.mrb[248].mxu1 %v4495_v12  ;;  %v4560_v12 = vld [vmem:[%s15089_s7 + $0x2c8] sm:$0xff] }
 0x6f1   : > { %4792 = vmatprep.mubr.f32.mxu1 %v4498_v29  ;;  %v4559_v29 = vld [vmem:[%s15089_s7 + $0x2c0] sm:$0xff] }
 0x6f4   : > { %4793 = vmatmul.mubr.f32.gmra.mrb[250].mxu1 %v4497_v8  ;;  %v4562_v8 = vld [vmem:[%s15089_s7 + $0x2d8] sm:$0xff] }
 0x6f5   : > { %4797 = vmatprep.mubr.f32.mxu1 %v4500_v7  ;;  %v4561_v7 = vld [vmem:[%s15089_s7 + $0x2d0] sm:$0xff] }
 0x6f8   : > { %4798 = vmatmul.mubr.f32.gmra.mrb[252].mxu1 %v4499_v9  ;;  %v4564_v9 = vld [vmem:[%s15089_s7 + $0x2e8] sm:$0xff] }
 0x6f9   : > { %4802 = vmatprep.mubr.f32.mxu1 %v4502_v57  ;;  %v4563_v57 = vld [vmem:[%s15089_s7 + $0x2e0] sm:$0xff] }
 0x6fc   : > { %4803 = vmatmul.mubr.f32.gmra.mrb[254].mxu1 %v4501_v34  ;;  %v4566_v34 = vld [vmem:[%s15089_s7 + $0x2f8] sm:$0xff] }
 0x6fd   : > { %4807 = vmatprep.mubr.f32.mxu1 %v4504_v11  ;;  %v4565_v11 = vld [vmem:[%s15089_s7 + $0x2f0] sm:$0xff] }
 0x700   : > { %4808 = vmatmul.mubr.f32.gmra.mrb[0].mxu1 %v4503_v17  ;;  %v4568_v17 = vld [vmem:[%s15089_s7 + $0x308] sm:$0xff] }
 0x701   : > { %4812 = vmatprep.mubr.f32.mxu1 %v4506_v6  ;;  %v4567_v6 = vld [vmem:[%s15089_s7 + $0x300] sm:$0xff] }
 0x704   : > { %4813 = vmatmul.mubr.f32.gmra.mrb[2].mxu1 %v4505_v14  ;;  %v4570_v14 = vld [vmem:[%s15089_s7 + $0x318] sm:$0xff] }
 0x705   : > { %4817 = vmatprep.mubr.f32.mxu1 %v4508_v16  ;;  %v4569_v16 = vld [vmem:[%s15089_s7 + $0x310] sm:$0xff] }
 0x708   : > { %4818 = vmatmul.mubr.f32.gmra.mrb[4].mxu1 %v4507_v51  ;;  %v4572_v51 = vld [vmem:[%s15089_s7 + $0x328] sm:$0xff] }
 0x709   : > { %4822 = vmatprep.mubr.f32.mxu1 %v4510_v48  ;;  %v4571_v48 = vld [vmem:[%s15089_s7 + $0x320] sm:$0xff] }
 0x70c   : > { %4823 = vmatmul.mubr.f32.gmra.mrb[6].mxu1 %v4509_v55  ;;  %v8827_v55 = vld [vmem:[%s15090_s8 + $0x40] sm:$0xff] }
 0x70d   : > { %4827 = vmatprep.mubr.f32.mxu1 %v4512_v53  ;;  %v8828_v53 = vld [vmem:[%s15090_s8 + $0x48] sm:$0xff] }
 0x710   : > { %4828 = vmatmul.mubr.f32.gmra.mrb[8].mxu1 %v4511_v2  ;;  %v4574_v2 = vld [vmem:[%s15089_s7 + $0x338] sm:$0xff] }
 0x711   : > { %4832 = vmatprep.mubr.f32.mxu1 %v4514_v56  ;;  %v10036_v56 = vpack.c.bf16 %v8828_v53, %v8827_v55 }
 0x713   : > { %10037 = vmatprep.subr.bf16.mxu0 %v10036_v56 }
 0x714   : > { %4833 = vmatmul.mubr.f32.gmra.mrb[10].mxu1 %v4513_v37  ;;  %v4573_v37 = vld [vmem:[%s15089_s7 + $0x330] sm:$0xff]  ;;  %10039 = vmatpush3.bf16.msra.mxu0 %v10036_v56  ;;  %v4604_v56 = vld [vmem:[%s15089_s7 + $0x428] sm:$0xff] }
 0x715   : > { %4837 = vmatprep.mubr.f32.mxu1 %v4516_v58  ;;  %v8829_v58 = vld [vmem:[%s15090_s8 + $0x50] sm:$0xff] }
 0x718   : > { %4838 = vmatmul.mubr.f32.gmra.mrb[12].mxu1 %v4515_v33  ;;  %v8830_v33 = vld [vmem:[%s15090_s8 + $0x58] sm:$0xff] }
 0x719   : > { %4842 = vmatprep.mubr.f32.mxu1 %v4518_v22  ;;  %v4576_v22 = vld [vmem:[%s15089_s7 + $0x348] sm:$0xff] }
 0x71c   : > { %4843 = vmatmul.mubr.f32.gmra.mrb[14].mxu1 %v4517_v41  ;;  %v10040_v41 = vpack.c.bf16 %v8830_v33, %v8829_v58  ;;  %v4603_v33 = vld [vmem:[%s15089_s7 + $0x420] sm:$0xff] }
 0x71d   : > { %4847 = vmatprep.mubr.f32.mxu1 %v4520_v32  ;;  %v4575_v32 = vld [vmem:[%s15089_s7 + $0x340] sm:$0xff] }
 0x71e   : > { %10041 = vmatprep.subr.bf16.mxu0 %v10040_v41 }
 0x71f   : > { %10043 = vmatpush3.bf16.msra.mxu0 %v10040_v41 }
 0x720   : > { %4848 = vmatmul.mubr.f32.gmra.mrb[16].mxu1 %v4519_v35  ;;  %v8831_v35 = vld [vmem:[%s15090_s8 + $0x60] sm:$0xff] }
 0x721   : > { %4852 = vmatprep.mubr.f32.mxu1 %v4522_v50  ;;  %v8832_v50 = vld [vmem:[%s15090_s8 + $0x68] sm:$0xff] }
 0x724   : > { %4853 = vmatmul.mubr.f32.gmra.mrb[18].mxu1 %v4521_v1  ;;  %v4578_v1 = vld [vmem:[%s15089_s7 + $0x358] sm:$0xff] }
 0x725   : > { %4857 = vmatprep.mubr.f32.mxu1 %v4524_v13  ;;  %v10044_v13 = vpack.c.bf16 %v8832_v50, %v8831_v35  ;;  %v4605_v35 = vld [vmem:[%s15089_s7 + $0x430] sm:$0xff]  ;;  %v4608_v50 = vld [vmem:[%s15089_s7 + $0x448] sm:$0xff] }
 0x727   : > { %10045 = vmatprep.subr.bf16.mxu0 %v10044_v13 }
 0x728   : > { %4858 = vmatmul.mubr.f32.gmra.mrb[20].mxu1 %v4523_v36  ;;  %v4577_v36 = vld [vmem:[%s15089_s7 + $0x350] sm:$0xff]  ;;  %10047 = vmatpush3.bf16.msra.mxu0 %v10044_v13 }
 0x729   : > { %4862 = vmatprep.mubr.f32.mxu1 %v4526_v21  ;;  %v8833_v21 = vld [vmem:[%s15090_s8 + $0x70] sm:$0xff] }
 0x72c   : > { %4863 = vmatmul.mubr.f32.gmra.mrb[22].mxu1 %v4525_v15  ;;  %v8834_v15 = vld [vmem:[%s15090_s8 + $0x78] sm:$0xff] }
 0x72d   : > { %4867 = vmatprep.mubr.f32.mxu1 %v4528_v24  ;;  %v4580_v24 = vld [vmem:[%s15089_s7 + $0x368] sm:$0xff] }
 0x730   : > { %4868 = vmatmul.mubr.f32.gmra.mrb[24].mxu1 %v4527_v31  ;;  %v10048_v31 = vpack.c.bf16 %v8834_v15, %v8833_v21  ;;  %v4610_v21 = vld [vmem:[%s15089_s7 + $0x458] sm:$0xff] }
 0x731   : > { %4872 = vmatprep.mubr.f32.mxu1 %v4530_v27 }
 0x732   : > { %10049 = vmatprep.subr.bf16.mxu0 %v10048_v31 }
 0x733   : > { %10051 = vmatpush3.bf16.msra.mxu0 %v10048_v31  ;;  %v4609_v31 = vld [vmem:[%s15089_s7 + $0x450] sm:$0xff] }
 0x734   : > { %4873 = vmatmul.mubr.f32.gmra.mrb[26].mxu1 %v4529_v4 }
 0x735   : > { %4877 = vmatprep.mubr.f32.mxu1 %v4532_v43  ;;  %v4579_v43 = vld [vmem:[%s15089_s7 + $0x360] sm:$0xff] }
 0x738   : > { %4878 = vmatmul.mubr.f32.gmra.mrb[28].mxu1 %v4531_v63  ;;  %v4582_v63 = vld [vmem:[%s15089_s7 + $0x378] sm:$0xff] }
 0x739   : > { %4882 = vmatprep.mubr.f32.mxu1 %v4534_v23 }
 0x73c   : > { %4883 = vmatmul.mubr.f32.gmra.mrb[30].mxu1 %v4533_v52 }
 0x73d   : > { %4887 = vmatprep.mubr.f32.mxu1 %v4536_v49  ;;  %v4581_v49 = vld [vmem:[%s15089_s7 + $0x370] sm:$0xff] }
 0x740   : > { %4888 = vmatmul.mubr.f32.gmra.mrb[32].mxu1 %v4535_v62  ;;  %v4584_v62 = vld [vmem:[%s15089_s7 + $0x388] sm:$0xff] }
 0x741   : > { %4892 = vmatprep.mubr.f32.mxu1 %v4538_v20 }
 0x744   : > { %4893 = vmatmul.mubr.f32.gmra.mrb[34].mxu1 %v4537_v39 }
 0x745   : > { %4897 = vmatprep.mubr.f32.mxu1 %v4540_v0  ;;  %v4583_v0 = vld [vmem:[%s15089_s7 + $0x380] sm:$0xff] }
 0x748   : > { %4898 = vmatmul.mubr.f32.gmra.mrb[36].mxu1 %v4539_v28  ;;  %v4586_v28 = vld [vmem:[%s15089_s7 + $0x398] sm:$0xff] }
 0x749   : > { %4902 = vmatprep.mubr.f32.mxu1 %v4542_v18 }
 0x74c   : > { %4903 = vmatmul.mubr.f32.gmra.mrb[38].mxu1 %v4541_v38 }
 0x74d   : > { %4907 = vmatprep.mubr.f32.mxu1 %v4544_v42  ;;  %v4585_v42 = vld [vmem:[%s15089_s7 + $0x390] sm:$0xff] }
 0x750   : > { %4908 = vmatmul.mubr.f32.gmra.mrb[40].mxu1 %v4543_v25  ;;  %v4588_v25 = vld [vmem:[%s15089_s7 + $0x3a8] sm:$0xff] }
 0x751   : > { %4912 = vmatprep.mubr.f32.mxu1 %v4546_v26 }
 0x754   : > { %4913 = vmatmul.mubr.f32.gmra.mrb[42].mxu1 %v4545_v3 }
 0x755   : > { %4917 = vmatprep.mubr.f32.mxu1 %v4548_v30  ;;  %v4587_v30 = vld [vmem:[%s15089_s7 + $0x3a0] sm:$0xff] }
 0x758   : > { %4918 = vmatmul.mubr.f32.gmra.mrb[44].mxu1 %v4547_v47  ;;  %v4590_v47 = vld [vmem:[%s15089_s7 + $0x3b8] sm:$0xff] }
 0x759   : > { %4922 = vmatprep.mubr.f32.mxu1 %v4550_v61 }
 0x75c   : > { %4923 = vmatmul.mubr.f32.gmra.mrb[46].mxu1 %v4549_v10 }
 0x75d   : > { %4927 = vmatprep.mubr.f32.mxu1 %v4552_v54  ;;  %v4589_v54 = vld [vmem:[%s15089_s7 + $0x3b0] sm:$0xff] }
 0x760   : > { %4928 = vmatmul.mubr.f32.gmra.mrb[48].mxu1 %v4551_v19  ;;  %v4592_v19 = vld [vmem:[%s15089_s7 + $0x3c8] sm:$0xff] }
 0x761   : > { %4932 = vmatprep.mubr.f32.mxu1 %v4554_v44 }
 0x764   : > { %4933 = vmatmul.mubr.f32.gmra.mrb[50].mxu1 %v4553_v59 }
 0x765   : > { %4937 = vmatprep.mubr.f32.mxu1 %v4556_v40  ;;  %v4591_v40 = vld [vmem:[%s15089_s7 + $0x3c0] sm:$0xff] }
 0x768   : > { %4938 = vmatmul.mubr.f32.gmra.mrb[52].mxu1 %v4555_v45  ;;  %v4594_v45 = vld [vmem:[%s15089_s7 + $0x3d8] sm:$0xff] }
 0x769   : > { %4942 = vmatprep.mubr.f32.mxu1 %v4558_v46 }
 0x76c   : > { %4943 = vmatmul.mubr.f32.gmra.mrb[54].mxu1 %v4557_v5 }
 0x76d   : > { %4947 = vmatprep.mubr.f32.mxu1 %v4560_v12  ;;  %v4593_v12 = vld [vmem:[%s15089_s7 + $0x3d0] sm:$0xff] }
 0x770   : > { %4948 = vmatmul.mubr.f32.gmra.mrb[56].mxu1 %v4559_v29  ;;  %v4596_v29 = vld [vmem:[%s15089_s7 + $0x3e8] sm:$0xff] }
 0x771   : > { %4952 = vmatprep.mubr.f32.mxu1 %v4562_v8 }
 0x774   : > { %4953 = vmatmul.mubr.f32.gmra.mrb[58].mxu1 %v4561_v7 }
 0x775   : > { %4957 = vmatprep.mubr.f32.mxu1 %v4564_v9  ;;  %v4595_v9 = vld [vmem:[%s15089_s7 + $0x3e0] sm:$0xff] }
 0x778   : > { %4958 = vmatmul.mubr.f32.gmra.mrb[60].mxu1 %v4563_v57  ;;  %v4598_v57 = vld [vmem:[%s15089_s7 + $0x3f8] sm:$0xff] }
 0x779   : > { %4962 = vmatprep.mubr.f32.mxu1 %v4566_v34 }
 0x77c   : > { %4963 = vmatmul.mubr.f32.gmra.mrb[62].mxu1 %v4565_v11 }
 0x77d   : > { %4967 = vmatprep.mubr.f32.mxu1 %v4568_v17  ;;  %v4597_v17 = vld [vmem:[%s15089_s7 + $0x3f0] sm:$0xff] }
 0x780   : > { %4968 = vmatmul.mubr.f32.gmra.mrb[64].mxu1 %v4567_v6  ;;  %v4600_v6 = vld [vmem:[%s15089_s7 + $0x408] sm:$0xff] }
 0x781   : > { %4972 = vmatprep.mubr.f32.mxu1 %v4570_v14 }
 0x784   : > { %4973 = vmatmul.mubr.f32.gmra.mrb[66].mxu1 %v4569_v16 }
 0x785   : > { %4977 = vmatprep.mubr.f32.mxu1 %v4572_v51  ;;  %v4599_v51 = vld [vmem:[%s15089_s7 + $0x400] sm:$0xff] }
 0x788   : > { %4978 = vmatmul.mubr.f32.gmra.mrb[68].mxu1 %v4571_v48  ;;  %v4602_v48 = vld [vmem:[%s15089_s7 + $0x418] sm:$0xff] }
 0x789   : > { %4982 = vmatprep.mubr.f32.mxu1 %v4574_v2  ;;  %v4601_v2 = vld [vmem:[%s15089_s7 + $0x410] sm:$0xff] }
 0x78c   : > { %4983 = vmatmul.mubr.f32.gmra.mrb[70].mxu1 %v4573_v37 }
 0x78d   : > { %4987 = vmatprep.mubr.f32.mxu1 %v4576_v22  ;;  %v4606_v22 = vld [vmem:[%s15089_s7 + $0x438] sm:$0xff] }
 0x790   : > { %4988 = vmatmul.mubr.f32.gmra.mrb[72].mxu1 %v4575_v32 }
 0x791   : > { %4992 = vmatprep.mubr.f32.mxu1 %v4578_v1 }
 0x793   : > { %v13291_v27 = vpop.f32.mrb[224].mxu1 }
 0x794   : > { %4993 = vmatmul.mubr.f32.gmra.mrb[74].mxu1 %v4577_v36  ;;  %v4731_v4 = vpop.f32.mrb[225].mxu1  ;;  %v4607_v36 = vld [vmem:[%s15089_s7 + $0x440] sm:$0xff] }
 0x795   : > { %4997 = vmatprep.mubr.f32.mxu1 %v4580_v24  ;;  %v4612_v4 = vld [vmem:[%s15089_s7 + $0x468] sm:$0xff] }
 0x797   : > { %v13299_v23 = vpop.f32.mrb[226].mxu1 }
 0x798   : > { %4998 = vmatmul.mubr.f32.gmra.mrb[76].mxu1 %v4579_v43  ;;  %v4736_v52 = vpop.f32.mrb[227].mxu1 }
 0x799   : > { %5002 = vmatprep.mubr.f32.mxu1 %v4582_v63  ;;  %v4611_v52 = vld [vmem:[%s15089_s7 + $0x460] sm:$0xff] }
 0x79b   : > { %v13307_v20 = vpop.f32.mrb[228].mxu1 }
 0x79c   : > { %5003 = vmatmul.mubr.f32.gmra.mrb[78].mxu1 %v4581_v49  ;;  %v4741_v39 = vpop.f32.mrb[229].mxu1  ;;  %v4614_v49 = vld [vmem:[%s15089_s7 + $0x478] sm:$0xff] }
 0x79d   : > { %5007 = vmatprep.mubr.f32.mxu1 %v4584_v62 }
 0x79f   : > { %v13315_v18 = vpop.f32.mrb[230].mxu1 }
 0x7a0   : > { %5008 = vmatmul.mubr.f32.gmra.mrb[80].mxu1 %v4583_v0  ;;  %v4746_v38 = vpop.f32.mrb[231].mxu1  ;;  %v4613_v0 = vld [vmem:[%s15089_s7 + $0x470] sm:$0xff] }
 0x7a1   : > { %5012 = vmatprep.mubr.f32.mxu1 %v4586_v28  ;;  %v4616_v28 = vld [vmem:[%s15089_s7 + $0x488] sm:$0xff] }
 0x7a3   : > { %v13323_v26 = vpop.f32.mrb[232].mxu1 }
 0x7a4   : > { %5013 = vmatmul.mubr.f32.gmra.mrb[82].mxu1 %v4585_v42  ;;  %v4751_v3 = vpop.f32.mrb[233].mxu1 }
 0x7a5   : > { %5017 = vmatprep.mubr.f32.mxu1 %v4588_v25  ;;  %v4615_v25 = vld [vmem:[%s15089_s7 + $0x480] sm:$0xff]  ;;  %v4618_v3 = vld [vmem:[%s15089_s7 + $0x498] sm:$0xff] }
 0x7a7   : > { %v13331_v61 = vpop.f32.mrb[234].mxu1 }
 0x7a8   : > { %5018 = vmatmul.mubr.f32.gmra.mrb[84].mxu1 %v4587_v30  ;;  %v4756_v10 = vpop.f32.mrb[235].mxu1 }
 0x7a9   : > { %5022 = vmatprep.mubr.f32.mxu1 %v4590_v47  ;;  %v4617_v10 = vld [vmem:[%s15089_s7 + $0x490] sm:$0xff] }
 0x7ab   : > { %v13339_v44 = vpop.f32.mrb[236].mxu1 }
 0x7ac   : > { %5023 = vmatmul.mubr.f32.gmra.mrb[86].mxu1 %v4589_v54  ;;  %v4761_v59 = vpop.f32.mrb[237].mxu1  ;;  %v4620_v54 = vld [vmem:[%s15089_s7 + $0x4a8] sm:$0xff] }
 0x7ad   : > { %5027 = vmatprep.mubr.f32.mxu1 %v4592_v19 }
 0x7af   : > { %v13347_v46 = vpop.f32.mrb[238].mxu1 }
 0x7b0   : > { %5028 = vmatmul.mubr.f32.gmra.mrb[88].mxu1 %v4591_v40  ;;  %v4766_v5 = vpop.f32.mrb[239].mxu1  ;;  %v4619_v40 = vld [vmem:[%s15089_s7 + $0x4a0] sm:$0xff] }
 0x7b1   : > { %5032 = vmatprep.mubr.f32.mxu1 %v4594_v45  ;;  %v4622_v45 = vld [vmem:[%s15089_s7 + $0x4b8] sm:$0xff] }
 0x7b3   : > { %v13355_v8 = vpop.f32.mrb[240].mxu1 }
 0x7b4   : > { %5033 = vmatmul.mubr.f32.gmra.mrb[90].mxu1 %v4593_v12  ;;  %v4771_v7 = vpop.f32.mrb[241].mxu1 }
 0x7b5   : > { %5037 = vmatprep.mubr.f32.mxu1 %v4596_v29  ;;  %v4621_v29 = vld [vmem:[%s15089_s7 + $0x4b0] sm:$0xff]  ;;  %v4624_v7 = vld [vmem:[%s15089_s7 + $0x4c8] sm:$0xff] }
 0x7b7   : > { %v13363_v34 = vpop.f32.mrb[242].mxu1 }
 0x7b8   : > { %5038 = vmatmul.mubr.f32.gmra.mrb[92].mxu1 %v4595_v9  ;;  %v4776_v11 = vpop.f32.mrb[243].mxu1 }
 0x7b9   : > { %5042 = vmatprep.mubr.f32.mxu1 %v4598_v57  ;;  %v4623_v11 = vld [vmem:[%s15089_s7 + $0x4c0] sm:$0xff] }
 0x7bb   : > { %v13371_v14 = vpop.f32.mrb[244].mxu1 }
 0x7bc   : > { %5043 = vmatmul.mubr.f32.gmra.mrb[94].mxu1 %v4597_v17  ;;  %v4781_v16 = vpop.f32.mrb[245].mxu1  ;;  %v4626_v17 = vld [vmem:[%s15089_s7 + $0x4d8] sm:$0xff] }
 0x7bd   : > { %5047 = vmatprep.mubr.f32.mxu1 %v4600_v6 }
 0x7bf   : > { %v13379_v55 = vpop.f32.mrb[246].mxu1 }
 0x7c0   : > { %5048 = vmatmul.mubr.f32.gmra.mrb[96].mxu1 %v4599_v51  ;;  %v4786_v53 = vpop.f32.mrb[247].mxu1  ;;  %v4625_v51 = vld [vmem:[%s15089_s7 + $0x4d0] sm:$0xff] }
 0x7c1   : > { %5052 = vmatprep.mubr.f32.mxu1 %v4602_v48  ;;  %v4628_v48 = vld [vmem:[%s15089_s7 + $0x4e8] sm:$0xff] }
 0x7c3   : > { %v13387_v37 = vpop.f32.mrb[248].mxu1 }
 0x7c4   : > { %5053 = vmatmul.mubr.f32.gmra.mrb[98].mxu1 %v4601_v2  ;;  %v4791_v58 = vpop.f32.mrb[249].mxu1 }
 0x7c5   : > { %5057 = vmatprep.mubr.f32.mxu1 %v4604_v56  ;;  %v4627_v56 = vld [vmem:[%s15089_s7 + $0x4e0] sm:$0xff]  ;;  %v4630_v58 = vld [vmem:[%s15089_s7 + $0x4f8] sm:$0xff] }
 0x7c7   : > { %v13395_v41 = vpop.f32.mrb[250].mxu1 }
 0x7c8   : > { %5058 = vmatmul.mubr.f32.gmra.mrb[100].mxu1 %v4603_v33  ;;  %v4796_v32 = vpop.f32.mrb[251].mxu1 }
 0x7c9   : > { %5062 = vmatprep.mubr.f32.mxu1 %v4606_v22  ;;  %v5208_v32 = vld [vmem:[%s15090_s8] sm:$0xff] }
 0x7cb   : > { %v13403_v1 = vpop.f32.mrb[252].mxu1 }
 0x7cc   : > { %5063 = vmatmul.mubr.f32.gmra.mrb[102].mxu1 %v4605_v35  ;;  %v4801_v13 = vpop.f32.mrb[253].mxu1  ;;  %v5209_v35 = vld [vmem:[%s15090_s8 + $0x8] sm:$0xff] }
 0x7cd   : > { %5067 = vmatprep.mubr.f32.mxu1 %v4608_v50  ;;  %v4629_v50 = vld [vmem:[%s15089_s7 + $0x4f0] sm:$0xff]  ;;  %v10052_v13 = vpack.c.bf16 %v5209_v35, %v5208_v32  ;;  %v5212_v32 = vld [vmem:[%s15090_s8 + $0x20] sm:$0xff]  ;;  %v5213_v35 = vld [vmem:[%s15090_s8 + $0x28] sm:$0xff] }
 0x7cf   : > { %v13411_v15 = vpop.f32.mrb[254].mxu1  ;;  %10053 = vmatprep.subr.bf16.mxu0 %v10052_v13 }
 0x7d0   : > { %5068 = vmatmul.mubr.f32.gmra.mrb[104].mxu1 %v4607_v36  ;;  %v4806_v24 = vpop.f32.mrb[255].mxu1  ;;  %v4632_v36 = vld [vmem:[%s15089_s7 + $0x508] sm:$0xff] }
 0x7d1   : > { %5072 = vmatprep.mubr.f32.mxu1 %v4610_v21 }
 0x7d3   : > { %v13419_v43 = vpop.f32.mrb[0].mxu1 }
 0x7d4   : > { %5073 = vmatmul.mubr.f32.gmra.mrb[106].mxu1 %v4609_v31  ;;  %v4811_v63 = vpop.f32.mrb[1].mxu1  ;;  %v4631_v31 = vld [vmem:[%s15089_s7 + $0x500] sm:$0xff] }
 0x7d5   : > { %5077 = vmatprep.mubr.f32.mxu1 %v4612_v4  ;;  %v4634_v4 = vld [vmem:[%s15089_s7 + $0x518] sm:$0xff] }
 0x7d7   : > { %v13427_v62 = vpop.f32.mrb[2].mxu1 }
 0x7d8   : > { %5078 = vmatmul.mubr.f32.gmra.mrb[108].mxu1 %v4611_v52  ;;  %v4816_v39 = vpop.f32.mrb[3].mxu1 }
 0x7d9   : > { %5082 = vmatprep.mubr.f32.mxu1 %v4614_v49  ;;  %v4633_v49 = vld [vmem:[%s15089_s7 + $0x510] sm:$0xff]  ;;  %v4636_v39 = vld [vmem:[%s15089_s7 + $0x528] sm:$0xff] }
 0x7db   : > { %v13435_v38 = vpop.f32.mrb[4].mxu1 }
 0x7dc   : > { %5083 = vmatmul.mubr.f32.gmra.mrb[110].mxu1 %v4613_v0  ;;  %v4821_v42 = vpop.f32.mrb[5].mxu1 }
 0x7dd   : > { %5087 = vmatprep.mubr.f32.mxu1 %v4616_v28  ;;  %v4635_v42 = vld [vmem:[%s15089_s7 + $0x520] sm:$0xff] }
 0x7df   : > { %v13443_v30 = vpop.f32.mrb[6].mxu1 }
 0x7e0   : > { %5088 = vmatmul.mubr.f32.gmra.mrb[112].mxu1 %v4615_v25  ;;  %v4826_v47 = vpop.f32.mrb[7].mxu1  ;;  %v4638_v25 = vld [vmem:[%s15089_s7 + $0x538] sm:$0xff] }
 0x7e1   : > { %5092 = vmatprep.mubr.f32.mxu1 %v4618_v3 }
 0x7e3   : > { %v13451_v19 = vpop.f32.mrb[8].mxu1 }
 0x7e4   : > { %5093 = vmatmul.mubr.f32.gmra.mrb[114].mxu1 %v4617_v10  ;;  %v4831_v59 = vpop.f32.mrb[9].mxu1  ;;  %v4637_v10 = vld [vmem:[%s15089_s7 + $0x530] sm:$0xff] }
 0x7e5   : > { %5097 = vmatprep.mubr.f32.mxu1 %v4620_v54  ;;  %v4640_v54 = vld [vmem:[%s15089_s7 + $0x548] sm:$0xff] }
 0x7e7   : > { %v13459_v5 = vpop.f32.mrb[10].mxu1 }
 0x7e8   : > { %5098 = vmatmul.mubr.f32.gmra.mrb[116].mxu1 %v4619_v40  ;;  %v4836_v12 = vpop.f32.mrb[11].mxu1 }
 0x7e9   : > { %5102 = vmatprep.mubr.f32.mxu1 %v4622_v45  ;;  %v4639_v45 = vld [vmem:[%s15089_s7 + $0x540] sm:$0xff]  ;;  %v4642_v12 = vld [vmem:[%s15089_s7 + $0x558] sm:$0xff] }
 0x7eb   : > { %v13467_v9 = vpop.f32.mrb[12].mxu1 }
 0x7ec   : > { %5103 = vmatmul.mubr.f32.gmra.mrb[118].mxu1 %v4621_v29  ;;  %v4841_v57 = vpop.f32.mrb[13].mxu1 }
 0x7ed   : > { %5107 = vmatprep.mubr.f32.mxu1 %v4624_v7  ;;  %v4641_v57 = vld [vmem:[%s15089_s7 + $0x550] sm:$0xff] }
 0x7ef   : > { %v13475_v6 = vpop.f32.mrb[14].mxu1 }
 0x7f0   : > { %5108 = vmatmul.mubr.f32.gmra.mrb[120].mxu1 %v4623_v11  ;;  %v4846_v16 = vpop.f32.mrb[15].mxu1  ;;  %v4644_v11 = vld [vmem:[%s15089_s7 + $0x568] sm:$0xff] }
 0x7f1   : > { %5112 = vmatprep.mubr.f32.mxu1 %v4626_v17  ;;  %v5210_v16 = vld [vmem:[%s15090_s8 + $0x10] sm:$0xff] }
 0x7f3   : > { %v13483_v53 = vpop.f32.mrb[16].mxu1 }
 0x7f4   : > { %5113 = vmatmul.mubr.f32.gmra.mrb[122].mxu1 %v4625_v51  ;;  %v4851_v2 = vpop.f32.mrb[17].mxu1  ;;  %v5211_v51 = vld [vmem:[%s15090_s8 + $0x18] sm:$0xff] }
 0x7f5   : > { %5117 = vmatprep.mubr.f32.mxu1 %v4628_v48  ;;  %v4643_v2 = vld [vmem:[%s15089_s7 + $0x560] sm:$0xff] }
 0x7f7   : > { %v13491_v33 = vpop.f32.mrb[18].mxu1 }
 0x7f8   : > { %5118 = vmatmul.mubr.f32.gmra.mrb[124].mxu1 %v4627_v56  ;;  %v4856_v22 = vpop.f32.mrb[19].mxu1  ;;  %v4646_v56 = vld [vmem:[%s15089_s7 + $0x578] sm:$0xff] }
 0x7f9   : > { %5122 = vmatprep.mubr.f32.mxu1 %v4630_v58  ;;  %v10056_v58 = vpack.c.bf16 %v5211_v51, %v5210_v16  ;;  %v4656_v16 = vld [vmem:[%s15089_s7 + $0x5c8] sm:$0xff] }
 0x7fb   : > { %v13505_v21 = vpop.f32.mrb[20].mxu1 }
 0x7fc   : > { %5123 = vmatmul.mubr.f32.gmra.mrb[126].mxu1 %v4629_v50  ;;  %v4861_v24 = vpop.f32.mrb[21].mxu1 }
 0x7fd   : > { %5127 = vmatprep.mubr.f32.mxu1 %v4632_v36  ;;  %v4645_v36 = vld [vmem:[%s15089_s7 + $0x570] sm:$0xff]  ;;  %v4648_v24 = vld [vmem:[%s15089_s7 + $0x588] sm:$0xff] }
 0x7ff   : > { %v13513_v63 = vpop.f32.mrb[22].mxu1 }
 0x800   : > { %5128 = vmatmul.mubr.f32.gmra.mrb[128].mxu1 %v4631_v31  ;;  %v4866_v52 = vpop.f32.mrb[23].mxu1  ;;  %v10060_v31 = vpack.c.bf16 %v5213_v35, %v5212_v32  ;;  %v4657_v32 = vld [vmem:[%s15089_s7 + $0x5d0] sm:$0xff]  ;;  %v4660_v35 = vld [vmem:[%s15089_s7 + $0x5e8] sm:$0xff] }
 0x801   : > { %5132 = vmatprep.mubr.f32.mxu1 %v4634_v4  ;;  %v5214_v52 = vld [vmem:[%s15090_s8 + $0x30] sm:$0xff] }
 0x803   : > { %v13521_v0 = vpop.f32.mrb[24].mxu1 }
 0x804   : > { %5133 = vmatmul.mubr.f32.gmra.mrb[130].mxu1 %v4633_v49  ;;  %v4871_v28 = vpop.f32.mrb[25].mxu1  ;;  %v5215_v49 = vld [vmem:[%s15090_s8 + $0x38] sm:$0xff] }
 0x805   : > { %5137 = vmatprep.mubr.f32.mxu1 %v4636_v39  ;;  %v4650_v28 = vld [vmem:[%s15089_s7 + $0x598] sm:$0xff] }
 0x807   : > { %v13529_v3 = vpop.f32.mrb[26].mxu1 }
 0x808   : > { %5138 = vmatmul.mubr.f32.gmra.mrb[132].mxu1 %v4635_v42  ;;  %v4876_v47 = vpop.f32.mrb[27].mxu1  ;;  %v10064_v42 = vpack.c.bf16 %v5215_v49, %v5214_v52  ;;  %v4661_v49 = vld [vmem:[%s15089_s7 + $0x5f0] sm:$0xff] }
 0x809   : > { %5142 = vmatprep.mubr.f32.mxu1 %v4638_v25 }
 0x80b   : > { %v13537_v59 = vpop.f32.mrb[28].mxu1 }
 0x80c   : > { %5143 = vmatmul.mubr.f32.gmra.mrb[134].mxu1 %v4637_v10  ;;  %v4881_v40 = vpop.f32.mrb[29].mxu1  ;;  %v4649_v10 = vld [vmem:[%s15089_s7 + $0x590] sm:$0xff] }
 0x80d   : > { %5147 = vmatprep.mubr.f32.mxu1 %v4640_v54  ;;  %v4652_v54 = vld [vmem:[%s15089_s7 + $0x5a8] sm:$0xff] }
 0x80f   : > { %v13545_v29 = vpop.f32.mrb[30].mxu1 }
 0x810   : > { %5148 = vmatmul.mubr.f32.gmra.mrb[136].mxu1 %v4639_v45  ;;  %v4886_v7 = vpop.f32.mrb[31].mxu1 }
 0x811   : > { %5152 = vmatprep.mubr.f32.mxu1 %v4642_v12  ;;  %v4651_v12 = vld [vmem:[%s15089_s7 + $0x5a0] sm:$0xff]  ;;  %v4654_v7 = vld [vmem:[%s15089_s7 + $0x5b8] sm:$0xff] }
 0x813   : > { %v4889_v17 = vpop.f32.mrb[32].mxu1 }
 0x814   : > { %5153 = vmatmul.mubr.f32.gmra.mrb[138].mxu1 %v4641_v57  ;;  %v4891_v48 = vpop.f32.mrb[33].mxu1  ;;  %9680 = vmatprep.mubr.msk.f32.mxu0 %vm5225_vm2, %v4889_v17  ;;  %v4653_v17 = vld [vmem:[%s15089_s7 + $0x5b0] sm:$0xff] }
 0x815   : > { %5157 = vmatprep.mubr.f32.mxu1 %v4644_v11 }
 0x817   : > { %v4894_v22 = vpop.f32.mrb[34].mxu1 }
 0x818   : > { %5158 = vmatmul.mubr.f32.gmra.mrb[140].mxu1 %v4643_v2  ;;  %v4896_v50 = vpop.f32.mrb[35].mxu1  ;;  %9681 = vmatmul.mubr.msk.f32.vlgmr.msra.gmra.mrb[0].mxu0 %vm5225_vm2, %v4894_v22  ;;  %v4655_v2 = vld [vmem:[%s15089_s7 + $0x5c0] sm:$0xff] }
 0x819   : > { %5162 = vmatprep.mubr.f32.mxu1 %v4646_v56  ;;  %10055 = vmatpush3.bf16.msra.mxu0 %v10052_v13  ;;  %v4647_v13 = vld [vmem:[%s15089_s7 + $0x580] sm:$0xff]  ;;  %v4658_v56 = vld [vmem:[%s15089_s7 + $0x5d8] sm:$0xff] }
 0x81a   : > { %10057 = vmatprep.subr.bf16.mxu0 %v10056_v58 }
 0x81b   : > { %v4899_v4 = vpop.f32.mrb[36].mxu1 }
 0x81c   : > { %5163 = vmatmul.mubr.f32.gmra.mrb[142].mxu1 %v4645_v36  ;;  %v4901_v39 = vpop.f32.mrb[37].mxu1  ;;  %9683 = vmatprep.mubr.msk.f32.mxu0 %vm5225_vm2, %v4899_v4 }
 0x81d   : > { %5167 = vmatprep.mubr.f32.mxu1 %v4648_v24  ;;  %10059 = vmatpush3.bf16.msra.mxu0 %v10056_v58  ;;  %v4659_v24 = vld [vmem:[%s15089_s7 + $0x5e0] sm:$0xff] }
 0x81e   : > { %10061 = vmatprep.subr.bf16.mxu0 %v10060_v31 }
 0x81f   : > { %v4904_v25 = vpop.f32.mrb[38].mxu1 }
 0x820   : > { %5168 = vmatmul.mubr.f32.gmra.mrb[144].mxu1 %v4647_v13  ;;  %v4906_v47 = vpop.f32.mrb[39].mxu1  ;;  %9684 = vmatmul.mubr.msk.f32.gmra.mrb[2].mxu0 %vm5225_vm2, %v4904_v25  ;;  %v8899_v25 = vld [vmem:[%s15090_s8 + $0x80] sm:$0xff] }
 0x821   : > { %5172 = vmatprep.mubr.f32.mxu1 %v4650_v28  ;;  %10063 = vmatpush3.bf16.msra.mxu0 %v10060_v31  ;;  %v4662_v31 = vld [vmem:[%s15089_s7 + $0x5f8] sm:$0xff]  ;;  %v8900_v47 = vld [vmem:[%s15090_s8 + $0x88] sm:$0xff] }
 0x822   : > { %10065 = vmatprep.subr.bf16.mxu0 %v10064_v42 }
 0x823   : > { %v4909_v40 = vpop.f32.mrb[40].mxu1 }
 0x824   : > { %5173 = vmatmul.mubr.f32.gmra.mrb[146].mxu1 %v4649_v10  ;;  %v4911_v45 = vpop.f32.mrb[41].mxu1  ;;  %9686 = vmatprep.mubr.msk.f32.mxu0 %vm5225_vm2, %v4909_v40  ;;  %v13646_v10 = vpack.c.bf16 %v8900_v47, %v8899_v25 }
 0x825   : > { %5177 = vmatprep.mubr.f32.mxu1 %v4652_v54  ;;  %10067 = vmatpush3.bf16.msra.mxu0 %v10064_v42 }
 0x826   : > { %10069 = vmatprep.subr.bf16.mxu0 %v13646_v10 }
 0x827   : > { %v4914_v57 = vpop.f32.mrb[42].mxu1 }
 0x828   : > { %5178 = vmatmul.mubr.f32.gmra.mrb[148].mxu1 %v4651_v12  ;;  %v4916_v11 = vpop.f32.mrb[43].mxu1  ;;  %9687 = vmatmul.mubr.msk.f32.gmra.mrb[4].mxu0 %vm5225_vm2, %v4914_v57 }
 0x829   : > { %5182 = vmatprep.mubr.f32.mxu1 %v4654_v7 }
 0x82b   : > { %v4919_v51 = vpop.f32.mrb[44].mxu1 }
 0x82c   : > { %5183 = vmatmul.mubr.f32.gmra.mrb[150].mxu1 %v4653_v17  ;;  %v4921_v48 = vpop.f32.mrb[45].mxu1  ;;  %9689 = vmatprep.mubr.msk.f32.mxu0 %vm5225_vm2, %v4919_v51 }
 0x82d   : > { %5187 = vmatprep.mubr.f32.mxu1 %v4656_v16 }
 0x82f   : > { %v4924_v58 = vpop.f32.mrb[46].mxu1 }
 0x830   : > { %5188 = vmatmul.mubr.f32.gmra.mrb[152].mxu1 %v4655_v2  ;;  %v4926_v22 = vpop.f32.mrb[47].mxu1  ;;  %9690 = vmatmul.mubr.msk.f32.gmra.mrb[6].mxu0 %vm5225_vm2, %v4924_v58 }
 0x831   : > { %5192 = vmatprep.mubr.f32.mxu1 %v4658_v56 }
 0x833   : > { %v4929_v50 = vpop.f32.mrb[48].mxu1 }
 0x834   : > { %5193 = vmatmul.mubr.f32.gmra.mrb[154].mxu1 %v4657_v32  ;;  %v4931_v36 = vpop.f32.mrb[49].mxu1  ;;  %9692 = vmatprep.mubr.msk.f32.mxu0 %vm5225_vm2, %v4929_v50 }
 0x835   : > { %5197 = vmatprep.mubr.f32.mxu1 %v4660_v35 }
 0x837   : > { %v4934_v4 = vpop.f32.mrb[50].mxu1 }
 0x838   : > { %5198 = vmatmul.mubr.f32.gmra.mrb[156].mxu1 %v4659_v24  ;;  %v4936_v52 = vpop.f32.mrb[51].mxu1  ;;  %9693 = vmatmul.mubr.msk.f32.gmra.mrb[8].mxu0 %vm5225_vm2, %v4934_v4 }
 0x839   : > { %5202 = vmatprep.mubr.f32.mxu1 %v4662_v31 }
 0x83b   : > { %v4939_v39 = vpop.f32.mrb[52].mxu1 }
 0x83c   : > { %5203 = vmatmul.mubr.f32.gmra.mrb[158].mxu1 %v4661_v49  ;;  %v4941_v13 = vpop.f32.mrb[53].mxu1  ;;  %9695 = vmatprep.mubr.msk.f32.mxu0 %vm5225_vm2, %v4939_v39 }
 0x83f   : > { %v4944_v28 = vpop.f32.mrb[54].mxu1 }
 0x840   : > { %v4946_v42 = vpop.f32.mrb[55].mxu1  ;;  %9696 = vmatmul.mubr.msk.f32.gmra.mrb[10].mxu0 %vm5225_vm2, %v4944_v28 }
 0x843   : > { %v4949_v54 = vpop.f32.mrb[56].mxu1 }
 0x844   : > { %v4951_v40 = vpop.f32.mrb[57].mxu1  ;;  %9698 = vmatprep.mubr.msk.f32.mxu0 %vm5225_vm2, %v4949_v54 }
 0x847   : > { %v4954_v45 = vpop.f32.mrb[58].mxu1 }
 0x848   : > { %v4956_v12 = vpop.f32.mrb[59].mxu1  ;;  %9699 = vmatmul.mubr.msk.f32.gmra.mrb[12].mxu0 %vm5225_vm2, %v4954_v45 }
 0x84b   : > { %v4959_v7 = vpop.f32.mrb[60].mxu1 }
 0x84c   : > { %v4961_v57 = vpop.f32.mrb[61].mxu1  ;;  %9701 = vmatprep.mubr.msk.f32.mxu0 %vm5225_vm2, %v4959_v7 }
 0x84f   : > { %v4964_v11 = vpop.f32.mrb[62].mxu1 }
 0x850   : > { %v4966_v17 = vpop.f32.mrb[63].mxu1  ;;  %9702 = vmatmul.mubr.msk.f32.gmra.mrb[14].mxu0 %vm5225_vm2, %v4964_v11 }
 0x853   : > { %v4969_v16 = vpop.f32.mrb[64].mxu1 }
 0x854   : > { %v4971_v51 = vpop.f32.mrb[65].mxu1  ;;  %9704 = vmatprep.mubr.msk.f32.mxu0 %vm5225_vm2, %v4969_v16 }
 0x855   : > { %v8901_v51 = vld [vmem:[%s15090_s8 + $0x90] sm:$0xff] }
 0x857   : > { %v4974_v48 = vpop.f32.mrb[66].mxu1 }
 0x858   : > { %v4976_v2 = vpop.f32.mrb[67].mxu1  ;;  %9705 = vmatmul.mubr.msk.f32.gmra.mrb[16].mxu0 %vm5225_vm2, %v4974_v48  ;;  %v8902_v48 = vld [vmem:[%s15090_s8 + $0x98] sm:$0xff] }
 0x85b   : > { %v4979_v56 = vpop.f32.mrb[68].mxu1 }
 0x85c   : > { %v4981_v58 = vpop.f32.mrb[69].mxu1  ;;  %9707 = vmatprep.mubr.msk.f32.mxu0 %vm5225_vm2, %v4979_v56  ;;  %v10072_v56 = vpack.c.bf16 %v8902_v48, %v8901_v51 }
 0x85d   : > { %v8903_v58 = vld [vmem:[%s15090_s8 + $0xa0] sm:$0xff] }
 0x85f   : > { %v4984_v22 = vpop.f32.mrb[70].mxu1 }
 0x860   : > { %v4986_v32 = vpop.f32.mrb[71].mxu1  ;;  %9708 = vmatmul.mubr.msk.f32.gmra.mrb[18].mxu0 %vm5225_vm2, %v4984_v22  ;;  %v8904_v22 = vld [vmem:[%s15090_s8 + $0xa8] sm:$0xff] }
 0x863   : > { %v4989_v35 = vpop.f32.mrb[72].mxu1 }
 0x864   : > { %v4991_v50 = vpop.f32.mrb[73].mxu1  ;;  %9710 = vmatprep.mubr.msk.f32.mxu0 %vm5225_vm2, %v4989_v35 }
 0x865   : > { %v8905_v50 = vld [vmem:[%s15090_s8 + $0xb0] sm:$0xff] }
 0x867   : > { %v4994_v36 = vpop.f32.mrb[74].mxu1 }
 0x868   : > { %v4996_v24 = vpop.f32.mrb[75].mxu1  ;;  %9711 = vmatmul.mubr.msk.f32.gmra.mrb[20].mxu0 %vm5225_vm2, %v4994_v36  ;;  %v8906_v36 = vld [vmem:[%s15090_s8 + $0xb8] sm:$0xff] }
 0x86b   : > { %v4999_v31 = vpop.f32.mrb[76].mxu1 }
 0x86c   : > { %v5001_v4 = vpop.f32.mrb[77].mxu1  ;;  %9713 = vmatprep.mubr.msk.f32.mxu0 %vm5225_vm2, %v4999_v31 }
 0x86f   : > { %v5004_v52 = vpop.f32.mrb[78].mxu1 }
 0x870   : > { %v5006_v49 = vpop.f32.mrb[79].mxu1  ;;  %9714 = vmatmul.mubr.msk.f32.gmra.mrb[22].mxu0 %vm5225_vm2, %v5004_v52 }
 0x873   : > { %v5009_v39 = vpop.f32.mrb[80].mxu1 }
 0x874   : > { %v5011_v13 = vpop.f32.mrb[81].mxu1  ;;  %9716 = vmatprep.mubr.msk.f32.mxu0 %vm5225_vm2, %v5009_v39 }
 0x877   : > { %v5014_v28 = vpop.f32.mrb[82].mxu1 }
 0x878   : > { %v5016_v42 = vpop.f32.mrb[83].mxu1  ;;  %9717 = vmatmul.mubr.msk.f32.gmra.mrb[24].mxu0 %vm5225_vm2, %v5014_v28 }
 0x87b   : > { %v5019_v25 = vpop.f32.mrb[84].mxu1 }
 0x87c   : > { %v5021_v47 = vpop.f32.mrb[85].mxu1  ;;  %9719 = vmatprep.mubr.msk.f32.mxu0 %vm5225_vm2, %v5019_v25 }
 0x87f   : > { %v5024_v54 = vpop.f32.mrb[86].mxu1 }
 0x880   : > { %v5026_v40 = vpop.f32.mrb[87].mxu1  ;;  %9720 = vmatmul.mubr.msk.f32.gmra.mrb[26].mxu0 %vm5225_vm2, %v5024_v54 }
 0x883   : > { %v5029_v45 = vpop.f32.mrb[88].mxu1 }
 0x884   : > { %v5031_v12 = vpop.f32.mrb[89].mxu1  ;;  %9722 = vmatprep.mubr.msk.f32.mxu0 %vm5225_vm2, %v5029_v45 }
 0x887   : > { %v5034_v7 = vpop.f32.mrb[90].mxu1 }
 0x888   : > { %v5036_v57 = vpop.f32.mrb[91].mxu1  ;;  %9723 = vmatmul.mubr.msk.f32.gmra.mrb[28].mxu0 %vm5225_vm2, %v5034_v7 }
 0x88b   : > { %v5039_v11 = vpop.f32.mrb[92].mxu1 }
 0x88c   : > { %v5041_v17 = vpop.f32.mrb[93].mxu1  ;;  %9725 = vmatprep.mubr.msk.f32.mxu0 %vm5225_vm2, %v5039_v11 }
 0x88f   : > { %v5044_v16 = vpop.f32.mrb[94].mxu1 }
 0x890   : > { %9726 = vmatmul.mubr.msk.f32.gmra.mrb[30].mxu0 %vm5225_vm2, %v5044_v16  ;;  %v5046_v2 = vpop.f32.mrb[95].mxu1 }
 0x891   : > { %9744 = vmatprep.mubr.msk.f32.mxu0 %vm5225_vm2, %v13291_v27  ;;  %v10076_v27 = vpack.c.bf16 %v8904_v22, %v8903_v58 }
 0x893   : > { %v13683_v32 = vpop.f32.mrb[96].mxu1 }
 0x894   : > { %9745 = vmatmul.mubr.msk.f32.vlgmr.msra.gmra.mrb[0].mxu0 %vm5225_vm2, %v13299_v23  ;;  %v5051_v35 = vpop.f32.mrb[97].mxu1 }
 0x895   : > { %9747 = vmatprep.mubr.msk.f32.mxu0 %vm5225_vm2, %v13307_v20  ;;  %10071 = vmatpush3.bf16.msra.mxu0 %v13646_v10  ;;  %v10080_v20 = vpack.c.bf16 %v8906_v36, %v8905_v50 }
 0x896   : > { %10073 = vmatprep.subr.bf16.mxu0 %v10072_v56 }
 0x897   : > { %v13696_v24 = vpop.f32.mrb[98].mxu1 }
 0x898   : > { %9748 = vmatmul.mubr.msk.f32.gmra.mrb[2].mxu0 %vm5225_vm2, %v13315_v18  ;;  %v5056_v23 = vpop.f32.mrb[99].mxu1 }
 0x899   : > { %9750 = vmatprep.mubr.msk.f32.mxu0 %vm5225_vm2, %v13323_v26  ;;  %10075 = vmatpush3.bf16.msra.mxu0 %v10072_v56  ;;  %v6270_v23 = vpop.permute.xlu1 %6269 }
 0x89a   : > { %10077 = vmatprep.subr.bf16.mxu0 %v10076_v27 }
 0x89b   : > { %v13702_v10 = vpop.f32.mrb[100].mxu1 }
 0x89c   : > { %9751 = vmatmul.mubr.msk.f32.gmra.mrb[4].mxu0 %vm5225_vm2, %v13331_v61  ;;  %v5061_v31 = vpop.f32.mrb[101].mxu1 }
 0x89d   : > { %9753 = vmatprep.mubr.msk.f32.mxu0 %vm5225_vm2, %v13339_v44  ;;  %10079 = vmatpush3.bf16.msra.mxu0 %v10076_v27 }
 0x89e   : > { %10081 = vmatprep.subr.bf16.mxu0 %v10080_v20 }
 0x89f   : > { %v5064_v4 = vpop.f32.mrb[102].mxu1 }
 0x8a0   : > { %9754 = vmatmul.mubr.msk.f32.gmra.mrb[6].mxu0 %vm5225_vm2, %v13347_v46  ;;  %v5066_v18 = vpop.f32.mrb[103].mxu1 }
 0x8a1   : > { %9756 = vmatprep.mubr.msk.f32.mxu0 %vm5225_vm2, %v13355_v8  ;;  %10083 = vmatpush3.bf16.msra.mxu0 %v10080_v20  ;;  %v6265_v20 = vpop.permute.xlu0 %6264 }
 0x8a2   : > { %10084 = vmatprep.subr.bf16.mxu0 %v15118_v60 }
 0x8a3   : > { %v5069_v26 = vpop.f32.mrb[104].mxu1 }
 0x8a4   : > { %9757 = vmatmul.mubr.msk.f32.gmra.mrb[8].mxu0 %vm5225_vm2, %v13363_v34  ;;  %v5071_v61 = vpop.f32.mrb[105].mxu1 }
 0x8a5   : > { %9759 = vmatprep.mubr.msk.f32.mxu0 %vm5225_vm2, %v13371_v14  ;;  %v6275_v31 = vpop.permute.xlu0 %6274 }
 0x8a7   : > { %v5074_v44 = vpop.f32.mrb[106].mxu1 }
 0x8a8   : > { %9760 = vmatmul.mubr.msk.f32.gmra.mrb[10].mxu0 %vm5225_vm2, %v13379_v55  ;;  %v5076_v46 = vpop.f32.mrb[107].mxu1 }
 0x8a9   : > { %9762 = vmatprep.mubr.msk.f32.mxu0 %vm5225_vm2, %v13387_v37  ;;  %v6285_v18 = vpop.permute.xlu0 %6284 }
 0x8ab   : > { %v5079_v8 = vpop.f32.mrb[108].mxu1 }
 0x8ac   : > { %9763 = vmatmul.mubr.msk.f32.gmra.mrb[12].mxu0 %vm5225_vm2, %v13395_v41  ;;  %v5081_v52 = vpop.f32.mrb[109].mxu1 }
 0x8ad   : > { %9765 = vmatprep.mubr.msk.f32.mxu0 %vm5225_vm2, %v13403_v1  ;;  %v6295_v61 = vpop.permute.xlu0 %6294 }
 0x8af   : > { %v5084_v34 = vpop.f32.mrb[110].mxu1 }
 0x8b0   : > { %9766 = vmatmul.mubr.msk.f32.gmra.mrb[14].mxu0 %vm5225_vm2, %v13411_v15  ;;  %v5086_v14 = vpop.f32.mrb[111].mxu1 }
 0x8b1   : > { %9768 = vmatprep.mubr.msk.f32.mxu0 %vm5225_vm2, %v13419_v43  ;;  %v6305_v46 = vpop.permute.xlu0 %6304 }
 0x8b3   : > { %v5089_v55 = vpop.f32.mrb[112].mxu1 }
 0x8b4   : > { %9769 = vmatmul.mubr.msk.f32.gmra.mrb[16].mxu0 %vm5225_vm2, %v13427_v62  ;;  %v5091_v37 = vpop.f32.mrb[113].mxu1 }
 0x8b5   : > { %9771 = vmatprep.mubr.msk.f32.mxu0 %vm5225_vm2, %v13435_v38 }
 0x8b7   : > { %v5094_v41 = vpop.f32.mrb[114].mxu1 }
 0x8b8   : > { %9772 = vmatmul.mubr.msk.f32.gmra.mrb[18].mxu0 %vm5225_vm2, %v13443_v30  ;;  %v5096_v1 = vpop.f32.mrb[115].mxu1 }
 0x8b9   : > { %9774 = vmatprep.mubr.msk.f32.mxu0 %vm5225_vm2, %v13451_v19 }
 0x8bb   : > { %v5099_v15 = vpop.f32.mrb[116].mxu1 }
 0x8bc   : > { %9775 = vmatmul.mubr.msk.f32.gmra.mrb[20].mxu0 %vm5225_vm2, %v13459_v5  ;;  %v5101_v43 = vpop.f32.mrb[117].mxu1 }
 0x8bd   : > { %9777 = vmatprep.mubr.msk.f32.mxu0 %vm5225_vm2, %v13467_v9 }
 0x8bf   : > { %v5104_v62 = vpop.f32.mrb[118].mxu1 }
 0x8c0   : > { %9778 = vmatmul.mubr.msk.f32.gmra.mrb[22].mxu0 %vm5225_vm2, %v13475_v6  ;;  %v5106_v38 = vpop.f32.mrb[119].mxu1 }
 0x8c1   : > { %9780 = vmatprep.mubr.msk.f32.mxu0 %vm5225_vm2, %v13483_v53 }
 0x8c3   : > { %v5109_v30 = vpop.f32.mrb[120].mxu1 }
 0x8c4   : > { %9781 = vmatmul.mubr.msk.f32.gmra.mrb[24].mxu0 %vm5225_vm2, %v13491_v33  ;;  %v5111_v19 = vpop.f32.mrb[121].mxu1 }
 0x8c5   : > { %9783 = vmatprep.mubr.msk.f32.mxu0 %vm5225_vm2, %v13505_v21 }
 0x8c7   : > { %v5114_v5 = vpop.f32.mrb[122].mxu1 }
 0x8c8   : > { %9784 = vmatmul.mubr.msk.f32.gmra.mrb[26].mxu0 %vm5225_vm2, %v13513_v63  ;;  %v5116_v9 = vpop.f32.mrb[123].mxu1 }
 0x8c9   : > { %9786 = vmatprep.mubr.msk.f32.mxu0 %vm5225_vm2, %v13521_v0 }
 0x8cb   : > { %v5119_v6 = vpop.f32.mrb[124].mxu1 }
 0x8cc   : > { %9787 = vmatmul.mubr.msk.f32.gmra.mrb[28].mxu0 %vm5225_vm2, %v13529_v3  ;;  %v5121_v53 = vpop.f32.mrb[125].mxu1 }
 0x8cd   : > { %9789 = vmatprep.mubr.msk.f32.mxu0 %vm5225_vm2, %v13537_v59 }
 0x8cf   : > { %v5124_v33 = vpop.f32.mrb[126].mxu1 }
 0x8d0   : > { %9790 = vmatmul.mubr.msk.f32.gmra.mrb[30].mxu0 %vm5225_vm2, %v13545_v29  ;;  %v5126_v21 = vpop.f32.mrb[127].mxu1 }
 0x8d1   : > { %9808 = vmatprep.mubr.msk.f32.mxu0 %vm5225_vm2, %v13683_v32 }
 0x8d3   : > { %v5129_v63 = vpop.f32.mrb[128].mxu1 }
 0x8d4   : > { %9809 = vmatmul.mubr.msk.f32.vlgmr.msra.gmra.mrb[0].mxu0 %vm5225_vm2, %v13696_v24  ;;  %v5131_v0 = vpop.f32.mrb[129].mxu1  ;;  %v6487_v24 = vld [vmem:[%s15092_s10 + $0x8] sm:$0xff] }
 0x8d5   : > { %9811 = vmatprep.mubr.msk.f32.mxu0 %vm5225_vm2, %v13702_v10  ;;  %v6280_v10 = vpop.permute.xlu1 %6279 }
 0x8d7   : > { %v5134_v3 = vpop.f32.mrb[130].mxu1 }
 0x8d8   : > { %9812 = vmatmul.mubr.msk.f32.gmra.mrb[2].mxu0 %vm5225_vm2, %v5064_v4  ;;  %v5136_v59 = vpop.f32.mrb[131].mxu1 }
 0x8d9   : > { %9814 = vmatprep.mubr.msk.f32.mxu0 %vm5225_vm2, %v5069_v26  ;;  %v6290_v4 = vpop.permute.xlu1 %6289 }
 0x8db   : > { %v5139_v49 = vpop.f32.mrb[132].mxu1 }
 0x8dc   : > { %9815 = vmatmul.mubr.msk.f32.gmra.mrb[4].mxu0 %vm5225_vm2, %v5074_v44  ;;  %v5141_v29 = vpop.f32.mrb[133].mxu1 }
 0x8dd   : > { %9817 = vmatprep.mubr.msk.f32.mxu0 %vm5225_vm2, %v5079_v8  ;;  %v6300_v26 = vpop.permute.xlu1 %6299 }
 0x8df   : > { %v5144_v39 = vpop.f32.mrb[134].mxu1 }
 0x8e0   : > { %9818 = vmatmul.mubr.msk.f32.gmra.mrb[6].mxu0 %vm5225_vm2, %v5084_v34  ;;  %v5146_v13 = vpop.f32.mrb[135].mxu1  ;;  %v6315_v34 = vpop.permute.xlu0 %6314 }
 0x8e1   : > { %9820 = vmatprep.mubr.msk.f32.mxu0 %vm5225_vm2, %v5089_v55  ;;  %v6310_v44 = vpop.permute.xlu1 %6309 }
 0x8e3   : > { %v5149_v28 = vpop.f32.mrb[136].mxu1 }
 0x8e4   : > { %9821 = vmatmul.mubr.msk.f32.gmra.mrb[8].mxu0 %vm5225_vm2, %v5094_v41  ;;  %v5151_v42 = vpop.f32.mrb[137].mxu1 }
 0x8e5   : > { %9823 = vmatprep.mubr.msk.f32.mxu0 %vm5225_vm2, %v5099_v15  ;;  %v6320_v8 = vpop.permute.xlu1 %6319 }
 0x8e7   : > { %v5154_v25 = vpop.f32.mrb[138].mxu1 }
 0x8e8   : > { %9824 = vmatmul.mubr.msk.f32.gmra.mrb[10].mxu0 %vm5225_vm2, %v5104_v62  ;;  %v5156_v47 = vpop.f32.mrb[139].mxu1 }
 0x8e9   : > { %9826 = vmatprep.mubr.msk.f32.mxu0 %vm5225_vm2, %v5109_v30  ;;  %v6330_v38 = vpop.permute.xlu1 %6329 }
 0x8eb   : > { %v5159_v54 = vpop.f32.mrb[140].mxu1 }
 0x8ec   : > { %9827 = vmatmul.mubr.msk.f32.gmra.mrb[12].mxu0 %vm5225_vm2, %v5114_v5  ;;  %v5161_v40 = vpop.f32.mrb[141].mxu1  ;;  %v6325_v5 = vpop.permute.xlu0 %6324 }
 0x8ed   : > { %9829 = vmatprep.mubr.msk.f32.mxu0 %vm5225_vm2, %v5119_v6  ;;  %v6340_v59 = vpop.permute.xlu1 %6339 }
 0x8ef   : > { %v5164_v45 = vpop.f32.mrb[142].mxu1 }
 0x8f0   : > { %9830 = vmatmul.mubr.msk.f32.gmra.mrb[14].mxu0 %vm5225_vm2, %v5124_v33  ;;  %v5166_v12 = vpop.f32.mrb[143].mxu1 }
 0x8f1   : > { %9832 = vmatprep.mubr.msk.f32.mxu0 %vm5225_vm2, %v5129_v63 }
 0x8f3   : > { %v5169_v7 = vpop.f32.mrb[144].mxu1 }
 0x8f4   : > { %9833 = vmatmul.mubr.msk.f32.gmra.mrb[16].mxu0 %vm5225_vm2, %v5134_v3  ;;  %v5171_v57 = vpop.f32.mrb[145].mxu1 }
 0x8f5   : > { %9835 = vmatprep.mubr.msk.f32.mxu0 %vm5225_vm2, %v5139_v49 }
 0x8f7   : > { %v5174_v11 = vpop.f32.mrb[146].mxu1 }
 0x8f8   : > { %9836 = vmatmul.mubr.msk.f32.gmra.mrb[18].mxu0 %vm5225_vm2, %v5144_v39  ;;  %v5176_v17 = vpop.f32.mrb[147].mxu1  ;;  %v6335_v39 = vpop.permute.xlu0 %6334 }
 0x8f9   : > { %9838 = vmatprep.mubr.msk.f32.mxu0 %vm5225_vm2, %v5149_v28 }
 0x8fb   : > { %v5179_v16 = vpop.f32.mrb[148].mxu1 }
 0x8fc   : > { %9839 = vmatmul.mubr.msk.f32.gmra.mrb[20].mxu0 %vm5225_vm2, %v5154_v25  ;;  %v5181_v51 = vpop.f32.mrb[149].mxu1  ;;  %v6345_v17 = vpop.permute.xlu0 %6344 }
 0x8fd   : > { %9841 = vmatprep.mubr.msk.f32.mxu0 %vm5225_vm2, %v5159_v54 }
 0x8ff   : > { %v5184_v48 = vpop.f32.mrb[150].mxu1 }
 0x900   : > { %9842 = vmatmul.mubr.msk.f32.gmra.mrb[22].mxu0 %vm5225_vm2, %v5164_v45  ;;  %v5186_v2 = vpop.f32.mrb[151].mxu1 }
 0x901   : > { %9844 = vmatprep.mubr.msk.f32.mxu0 %vm5225_vm2, %v5169_v7  ;;  %v6350_v7 = vpop.permute.xlu1 %6349 }
 0x903   : > { %v5189_v56 = vpop.f32.mrb[152].mxu1 }
 0x904   : > { %9845 = vmatmul.mubr.msk.f32.gmra.mrb[24].mxu0 %vm5225_vm2, %v5174_v11  ;;  %v5191_v58 = vpop.f32.mrb[153].mxu1 }
 0x905   : > { %9847 = vmatprep.mubr.msk.f32.mxu0 %vm5225_vm2, %v5179_v16 }
 0x907   : > { %v5194_v22 = vpop.f32.mrb[154].mxu1 }
 0x908   : > { %9848 = vmatmul.mubr.msk.f32.gmra.mrb[26].mxu0 %vm5225_vm2, %v5184_v48  ;;  %v5196_v32 = vpop.f32.mrb[155].mxu1 }
 0x909   : > { %9850 = vmatprep.mubr.msk.f32.mxu0 %vm5225_vm2, %v5189_v56 }
 0x90b   : > { %v5199_v35 = vpop.f32.mrb[156].mxu1 }
 0x90c   : > { %9851 = vmatmul.mubr.msk.f32.gmra.mrb[28].mxu0 %vm5225_vm2, %v5194_v22  ;;  %v5201_v27 = vpop.f32.mrb[157].mxu1 }
 0x90d   : > { %9853 = vmatprep.mubr.msk.f32.mxu0 %vm5225_vm2, %v5199_v35  ;;  %v6360_v35 = vpop.permute.xlu1 %6359 }
 0x90f   : > { %v5204_v50 = vpop.f32.mrb[158].mxu1 }
 0x910   : > { %9854 = vmatmul.mubr.msk.f32.gmra.mrb[30].mxu0 %vm5225_vm2, %v5204_v50  ;;  %v5206_v36 = vpop.f32.mrb[159].mxu1 }
 0x911   : > { %6742 = vmatprep.mubr.f32.mxu0 %v6487_v24  ;;  %v6355_v36 = vpop.permute.xlu0 %6354 }
 0x9a7   : > { %v9810_v52 = vpop.f32.mrb[0].mxu0 }
 0x9a8   : > { %v6423_v14 = vadd.f32 %v9810_v52, %v6270_v23  ;;  %v6039_v55 = vpop.f32.mrb[1].mxu0  ;;  %v6365_v52 = vpop.permute.xlu0 %6364 }
 0x9a9   : > { %v6422_v37 = vadd.f32 %v6265_v20, %v6039_v55 }
 0x9aa   : > { %v6455_v41 = vmax.f32 %v6423_v14, 0.0 }
 0x9ab   : > { %v6454_v1 = vmax.f32 %v6422_v37, 0.0  ;;  %v9813_v15 = vpop.f32.mrb[2].mxu0 }
 0x9ac   : > { %v6425_v43 = vadd.f32 %v9813_v15, %v6280_v10  ;;  %v6049_v62 = vpop.f32.mrb[3].mxu0 }
 0x9ad   : > { %v10085_v30 = vpack.c.bf16 %v6455_v41, %v6454_v1  ;;  %v6424_v19 = vadd.f32 %v6275_v31, %v6049_v62 }
 0x9ae   : > { %v6457_v9 = vmax.f32 %v6425_v43, 0.0 }
 0x9af   : > { %v6456_v6 = vmax.f32 %v6424_v19, 0.0  ;;  %v9816_v53 = vpop.f32.mrb[4].mxu0  ;;  %10086 = vmatpush1.bf16.msra.mxu0 %v10085_v30  ;;  %v6375_v19 = vpop.permute.xlu0 %6374 }
 0x9b0   : > { %v6427_v33 = vadd.f32 %v9816_v53, %v6290_v4  ;;  %v6059_v21 = vpop.f32.mrb[5].mxu0  ;;  %10087 = vmatprep.subr.bf16.mxu0 %v15118_v60 }
 0x9b1   : > { %v10088_v63 = vpack.c.bf16 %v6457_v9, %v6456_v6  ;;  %v6426_v0 = vadd.f32 %v6285_v18, %v6059_v21 }
 0x9b2   : > { %v6459_v3 = vmax.f32 %v6427_v33, 0.0 }
 0x9b3   : > { %v6458_v49 = vmax.f32 %v6426_v0, 0.0  ;;  %v9819_v29 = vpop.f32.mrb[6].mxu0  ;;  %10089 = vmatpush1.bf16.msra.mxu0 %v10088_v63 }
 0x9b4   : > { %v6429_v13 = vadd.f32 %v9819_v29, %v6300_v26  ;;  %v6069_v28 = vpop.f32.mrb[7].mxu0  ;;  %10090 = vmatprep.subr.bf16.mxu0 %v15118_v60 }
 0x9b5   : > { %v10091_v42 = vpack.c.bf16 %v6459_v3, %v6458_v49  ;;  %v6428_v25 = vadd.f32 %v6295_v61, %v6069_v28 }
 0x9b6   : > { %v6461_v47 = vmax.f32 %v6429_v13, 0.0 }
 0x9b7   : > { %v6460_v54 = vmax.f32 %v6428_v25, 0.0  ;;  %v9822_v40 = vpop.f32.mrb[8].mxu0  ;;  %10092 = vmatpush1.bf16.msra.mxu0 %v10091_v42 }
 0x9b8   : > { %v6431_v45 = vadd.f32 %v9822_v40, %v6310_v44  ;;  %v6079_v12 = vpop.f32.mrb[9].mxu0  ;;  %10093 = vmatprep.subr.bf16.mxu0 %v15118_v60  ;;  %v6370_v44 = vpop.permute.xlu1 %6369 }
 0x9b9   : > { %v10094_v57 = vpack.c.bf16 %v6461_v47, %v6460_v54  ;;  %v6430_v11 = vadd.f32 %v6305_v46, %v6079_v12 }
 0x9ba   : > { %v6463_v16 = vmax.f32 %v6431_v45, 0.0 }
 0x9bb   : > { %v6462_v51 = vmax.f32 %v6430_v11, 0.0  ;;  %v9825_v48 = vpop.f32.mrb[10].mxu0  ;;  %10095 = vmatpush1.bf16.msra.mxu0 %v10094_v57 }
 0x9bc   : > { %v6433_v2 = vadd.f32 %v9825_v48, %v6320_v8  ;;  %v6089_v56 = vpop.f32.mrb[11].mxu0  ;;  %10096 = vmatprep.subr.bf16.mxu0 %v15118_v60  ;;  %v6380_v62 = vpop.permute.xlu1 %6379 }
 0x9bd   : > { %v10097_v58 = vpack.c.bf16 %v6463_v16, %v6462_v51  ;;  %v6432_v22 = vadd.f32 %v6315_v34, %v6089_v56 }
 0x9be   : > { %v6465_v32 = vmax.f32 %v6433_v2, 0.0 }
 0x9bf   : > { %v6464_v27 = vmax.f32 %v6432_v22, 0.0  ;;  %v9828_v50 = vpop.f32.mrb[12].mxu0  ;;  %10098 = vmatpush1.bf16.msra.mxu0 %v10097_v58 }
 0x9c0   : > { %v6435_v24 = vadd.f32 %v9828_v50, %v6330_v38  ;;  %v6099_v23 = vpop.f32.mrb[13].mxu0  ;;  %10099 = vmatprep.subr.bf16.mxu0 %v15118_v60 }
 0x9c1   : > { %v10100_v20 = vpack.c.bf16 %v6465_v32, %v6464_v27  ;;  %v6434_v10 = vadd.f32 %v6325_v5, %v6099_v23 }
 0x9c2   : > { %v6467_v31 = vmax.f32 %v6435_v24, 0.0 }
 0x9c3   : > { %v6466_v4 = vmax.f32 %v6434_v10, 0.0  ;;  %v9831_v18 = vpop.f32.mrb[14].mxu0  ;;  %10101 = vmatpush1.bf16.msra.mxu0 %v10100_v20 }
 0x9c4   : > { %v6437_v26 = vadd.f32 %v9831_v18, %v6340_v59  ;;  %v6109_v61 = vpop.f32.mrb[15].mxu0  ;;  %10102 = vmatprep.subr.bf16.mxu0 %v15118_v60  ;;  %v6390_v59 = vpop.permute.xlu1 %6389 }
 0x9c5   : > { %v10103_v46 = vpack.c.bf16 %v6467_v31, %v6466_v4  ;;  %v6436_v8 = vadd.f32 %v6335_v39, %v6109_v61  ;;  %v6385_v39 = vpop.permute.xlu0 %6384 }
 0x9c6   : > { %v6469_v34 = vmax.f32 %v6437_v26, 0.0 }
 0x9c7   : > { %v6468_v14 = vmax.f32 %v6436_v8, 0.0  ;;  %v9834_v55 = vpop.f32.mrb[16].mxu0  ;;  %10104 = vmatpush1.bf16.msra.mxu0 %v10103_v46 }
 0x9c8   : > { %v6439_v37 = vadd.f32 %v9834_v55, %v6350_v7  ;;  %v6119_v41 = vpop.f32.mrb[17].mxu0  ;;  %10105 = vmatprep.subr.bf16.mxu0 %v15118_v60  ;;  %v6400_v12 = vpop.permute.xlu1 %6399 }
 0x9c9   : > { %v10106_v1 = vpack.c.bf16 %v6469_v34, %v6468_v14  ;;  %v6438_v15 = vadd.f32 %v6345_v17, %v6119_v41  ;;  %v6395_v11 = vpop.permute.xlu0 %6394 }
 0x9ca   : > { %v6471_v43 = vmax.f32 %v6439_v37, 0.0 }
 0x9cb   : > { %v6470_v38 = vmax.f32 %v6438_v15, 0.0  ;;  %v9837_v30 = vpop.f32.mrb[18].mxu0  ;;  %10107 = vmatpush1.bf16.msra.mxu0 %v10106_v1  ;;  %v6486_v15 = vld [vmem:[%s15092_s10] sm:$0xff] }
 0x9cc   : > { %v6441_v5 = vadd.f32 %v9837_v30, %v6360_v35  ;;  %v6129_v9 = vpop.f32.mrb[19].mxu0  ;;  %10108 = vmatprep.subr.bf16.mxu0 %v15118_v60  ;;  %v6410_v35 = vpop.permute.xlu1 %6409  ;;  %v6493_v30 = vld [vmem:[%s15092_s10 + $0x38] sm:$0xff] }
 0x9cd   : > { %v10109_v6 = vpack.c.bf16 %v6471_v43, %v6470_v38  ;;  %v6440_v53 = vadd.f32 %v6355_v36, %v6129_v9  ;;  %v6405_v36 = vpop.permute.xlu0 %6404  ;;  %v6489_v43 = vld [vmem:[%s15092_s10 + $0x18] sm:$0xff]  ;;  %v6490_v38 = vld [vmem:[%s15092_s10 + $0x20] sm:$0xff] }
 0x9ce   : > { %v6473_v33 = vmax.f32 %v6441_v5, 0.0  ;;  %v6495_v5 = vld [vmem:[%s15092_s10 + $0x48] sm:$0xff]  ;;  %v6494_v9 = vld [vmem:[%s15092_s10 + $0x40] sm:$0xff] }
 0x9cf   : > { %v6472_v21 = vmax.f32 %v6440_v53, 0.0  ;;  %v9840_v63 = vpop.f32.mrb[20].mxu0  ;;  %10110 = vmatpush1.bf16.msra.mxu0 %v10109_v6  ;;  %v6497_v6 = vld [vmem:[%s15092_s10 + $0x58] sm:$0xff]  ;;  %v6496_v53 = vld [vmem:[%s15092_s10 + $0x50] sm:$0xff] }
 0x9d0   : > { %v6443_v0 = vadd.f32 %v9840_v63, %v6370_v44  ;;  %v6139_v3 = vpop.f32.mrb[21].mxu0  ;;  %10111 = vmatprep.subr.bf16.mxu0 %v15118_v60  ;;  %v6420_v61 = vpop.permute.xlu1 %6419  ;;  %v6501_v63 = vld [vmem:[%s15092_s10 + $0x78] sm:$0xff] }
 0x9d1   : > { %v10112_v49 = vpack.c.bf16 %v6473_v33, %v6472_v21  ;;  %v6442_v29 = vadd.f32 %v6365_v52, %v6139_v3  ;;  %v6415_v8 = vpop.permute.xlu0 %6414  ;;  %v6499_v33 = vld [vmem:[%s15092_s10 + $0x68] sm:$0xff]  ;;  %v6498_v21 = vld [vmem:[%s15092_s10 + $0x60] sm:$0xff] }
 0x9d2   : > { %v6475_v13 = vmax.f32 %v6443_v0, 0.0  ;;  %v6500_v0 = vld [vmem:[%s15092_s10 + $0x70] sm:$0xff]  ;;  %v6503_v3 = vld [vmem:[%s15092_s10 + $0x88] sm:$0xff] }
 0x9d3   : > { %v6474_v28 = vmax.f32 %v6442_v29, 0.0  ;;  %v9843_v42 = vpop.f32.mrb[22].mxu0  ;;  %10113 = vmatpush1.bf16.msra.mxu0 %v10112_v49  ;;  %v6505_v49 = vld [vmem:[%s15092_s10 + $0x98] sm:$0xff]  ;;  %v6504_v29 = vld [vmem:[%s15092_s10 + $0x90] sm:$0xff] }
 0x9d4   : > { %v6445_v25 = vadd.f32 %v9843_v42, %v6380_v62  ;;  %v6149_v47 = vpop.f32.mrb[23].mxu0  ;;  %10114 = vmatprep.subr.bf16.mxu0 %v15118_v60  ;;  %v6488_v62 = vld [vmem:[%s15092_s10 + $0x10] sm:$0xff] }
 0x9d5   : > { %v10115_v54 = vpack.c.bf16 %v6475_v13, %v6474_v28  ;;  %v6444_v40 = vadd.f32 %v6375_v19, %v6149_v47  ;;  %v6492_v19 = vld [vmem:[%s15092_s10 + $0x30] sm:$0xff]  ;;  %v6506_v13 = vld [vmem:[%s15092_s10 + $0xa0] sm:$0xff]  ;;  %v6509_v28 = vld [vmem:[%s15092_s10 + $0xb8] sm:$0xff] }
 0x9d6   : > { %v6477_v45 = vmax.f32 %v6445_v25, 0.0  ;;  %v6508_v42 = vld [vmem:[%s15092_s10 + $0xb0] sm:$0xff]  ;;  %v6511_v25 = vld [vmem:[%s15092_s10 + $0xc8] sm:$0xff]  ;;  %v6510_v47 = vld [vmem:[%s15092_s10 + $0xc0] sm:$0xff] }
 0x9d7   : > { %v6476_v7 = vmax.f32 %v6444_v40, 0.0  ;;  %v9846_v57 = vpop.f32.mrb[24].mxu0  ;;  %10116 = vmatpush1.bf16.msra.mxu0 %v10115_v54  ;;  %v6513_v54 = vld [vmem:[%s15092_s10 + $0xd8] sm:$0xff]  ;;  %v6512_v40 = vld [vmem:[%s15092_s10 + $0xd0] sm:$0xff] }
 0x9d8   : > { %v6447_v17 = vadd.f32 %v9846_v57, %v6390_v59  ;;  %v6159_v16 = vpop.f32.mrb[25].mxu0  ;;  %10117 = vmatprep.subr.bf16.mxu0 %v15118_v60  ;;  %v6502_v59 = vld [vmem:[%s15092_s10 + $0x80] sm:$0xff]  ;;  %v6516_v57 = vld [vmem:[%s15092_s10 + $0xf0] sm:$0xff] }
 0x9d9   : > { %v10118_v51 = vpack.c.bf16 %v6477_v45, %v6476_v7  ;;  %v6446_v48 = vadd.f32 %v6385_v39, %v6159_v16  ;;  %v6507_v39 = vld [vmem:[%s15092_s10 + $0xa8] sm:$0xff]  ;;  %v6517_v7 = vld [vmem:[%s15092_s10 + $0xf8] sm:$0xff] }
 0x9da   : > { %v6479_v2 = vmax.f32 %v6447_v17, 0.0  ;;  %v6515_v45 = vld [vmem:[%s15092_s10 + $0xe8] sm:$0xff]  ;;  %v6518_v17 = vld [vmem:[%s15092_s10 + $0x100] sm:$0xff]  ;;  %v6521_v16 = vld [vmem:[%s15092_s10 + $0x118] sm:$0xff] }
 0x9db   : > { %v6478_v56 = vmax.f32 %v6446_v48, 0.0  ;;  %v9849_v58 = vpop.f32.mrb[26].mxu0  ;;  %10119 = vmatpush1.bf16.msra.mxu0 %v10118_v51  ;;  %v6520_v51 = vld [vmem:[%s15092_s10 + $0x110] sm:$0xff]  ;;  %v6523_v48 = vld [vmem:[%s15092_s10 + $0x128] sm:$0xff] }
 0x9dc   : > { %v6449_v22 = vadd.f32 %v9849_v58, %v6400_v12  ;;  %v6169_v32 = vpop.f32.mrb[27].mxu0  ;;  %10120 = vmatprep.subr.bf16.mxu0 %v15118_v60  ;;  %v6514_v12 = vld [vmem:[%s15092_s10 + $0xe0] sm:$0xff]  ;;  %v6524_v58 = vld [vmem:[%s15092_s10 + $0x130] sm:$0xff] }
 0x9dd   : > { %v10121_v27 = vpack.c.bf16 %v6479_v2, %v6478_v56  ;;  %v6448_v50 = vadd.f32 %v6395_v11, %v6169_v32  ;;  %v6519_v11 = vld [vmem:[%s15092_s10 + $0x108] sm:$0xff]  ;;  %v6522_v2 = vld [vmem:[%s15092_s10 + $0x120] sm:$0xff]  ;;  %v6525_v56 = vld [vmem:[%s15092_s10 + $0x138] sm:$0xff] }
 0x9de   : > { %v6481_v24 = vmax.f32 %v6449_v22, 0.0  ;;  %v6527_v22 = vld [vmem:[%s15092_s10 + $0x148] sm:$0xff]  ;;  %v6526_v32 = vld [vmem:[%s15092_s10 + $0x140] sm:$0xff] }
 0x9df   : > { %v6480_v23 = vmax.f32 %v6448_v50, 0.0  ;;  %v9852_v20 = vpop.f32.mrb[28].mxu0  ;;  %10122 = vmatpush1.bf16.msra.mxu0 %v10121_v27  ;;  %v6528_v27 = vld [vmem:[%s15092_s10 + $0x150] sm:$0xff]  ;;  %v6531_v50 = vld [vmem:[%s15092_s10 + $0x168] sm:$0xff] }
 0x9e0   : > { %v6451_v10 = vadd.f32 %v9852_v20, %v6410_v35  ;;  %v6179_v31 = vpop.f32.mrb[29].mxu0  ;;  %10123 = vmatprep.subr.bf16.mxu0 %v15118_v60  ;;  %v6529_v35 = vld [vmem:[%s15092_s10 + $0x158] sm:$0xff]  ;;  %v6535_v20 = vld [vmem:[%s15092_s10 + $0x188] sm:$0xff] }
 0x9e1   : > { %v10124_v4 = vpack.c.bf16 %v6481_v24, %v6480_v23  ;;  %v6450_v18 = vadd.f32 %v6405_v36, %v6179_v31  ;;  %v6530_v36 = vld [vmem:[%s15092_s10 + $0x160] sm:$0xff]  ;;  %v6533_v24 = vld [vmem:[%s15092_s10 + $0x178] sm:$0xff]  ;;  %v6532_v23 = vld [vmem:[%s15092_s10 + $0x170] sm:$0xff] }
 0x9e2   : > { %v6483_v26 = vmax.f32 %v6451_v10, 0.0  ;;  %v6534_v10 = vld [vmem:[%s15092_s10 + $0x180] sm:$0xff]  ;;  %v6537_v31 = vld [vmem:[%s15092_s10 + $0x198] sm:$0xff] }
 0x9e3   : > { %v6482_v44 = vmax.f32 %v6450_v18, 0.0  ;;  %v9855_v46 = vpop.f32.mrb[30].mxu0  ;;  %10125 = vmatpush1.bf16.msra.mxu0 %v10124_v4  ;;  %v6536_v4 = vld [vmem:[%s15092_s10 + $0x190] sm:$0xff]  ;;  %v6539_v18 = vld [vmem:[%s15092_s10 + $0x1a8] sm:$0xff] }
 0x9e4   : > { %v6453_v52 = vadd.f32 %v9855_v46, %v6420_v61  ;;  %v6189_v34 = vpop.f32.mrb[31].mxu0  ;;  %10126 = vmatprep.subr.bf16.mxu0 %v15118_v60  ;;  %v6541_v61 = vld [vmem:[%s15092_s10 + $0x1b8] sm:$0xff]  ;;  %v6543_v46 = vld [vmem:[%s15092_s10 + $0x1c8] sm:$0xff] }
 0x9e5   : > { %v10127_v14 = vpack.c.bf16 %v6483_v26, %v6482_v44  ;;  %v6452_v55 = vadd.f32 %v6415_v8, %v6189_v34  ;;  %v6538_v26 = vld [vmem:[%s15092_s10 + $0x1a0] sm:$0xff]  ;;  %v6540_v44 = vld [vmem:[%s15092_s10 + $0x1b0] sm:$0xff] }
 0x9e6   : > { %v6485_v37 = vmax.f32 %v6453_v52, 0.0  ;;  %v6542_v8 = vld [vmem:[%s15092_s10 + $0x1c0] sm:$0xff]  ;;  %v6545_v52 = vld [vmem:[%s15092_s10 + $0x1d8] sm:$0xff]  ;;  %v6544_v34 = vld [vmem:[%s15092_s10 + $0x1d0] sm:$0xff] }
 0x9e7   : > { %v6484_v41 = vmax.f32 %v6452_v55, 0.0  ;;  %10128 = vmatpush1.bf16.msra.mxu0 %v10127_v14  ;;  %v6547_v14 = vld [vmem:[%s15092_s10 + $0x1e8] sm:$0xff]  ;;  %v6546_v55 = vld [vmem:[%s15092_s10 + $0x1e0] sm:$0xff] }
 0x9e8   : > { %10129 = vmatprep.subr.bf16.mxu0 %v15118_v60  ;;  %v6491_v60 = vld [vmem:[%s15092_s10 + $0x28] sm:$0xff] }
 0x9e9   : > { %v10130_v1 = vpack.c.bf16 %v6485_v37, %v6484_v41  ;;  %v6549_v37 = vld [vmem:[%s15092_s10 + $0x1f8] sm:$0xff]  ;;  %v6548_v41 = vld [vmem:[%s15092_s10 + $0x1f0] sm:$0xff] }
 0x9eb   : > { %10131 = vmatpush1.bf16.msra.mxu0 %v10130_v1  ;;  %v6551_v1 = vld [vmem:[%s15092_s10 + $0x208] sm:$0xff] }
 0x9ee   : > { %6743 = vmatmul.mubr.f32.vlgmr.msra.gmra.mrb[32].mxu0 %v6486_v15  ;;  %v8940_v15 = vld [vmem:[%s15093_s11 + $0x108] sm:$0xff] }
 0x9ef   : > { %6747 = vmatprep.mubr.f32.mxu0 %v6489_v43  ;;  %v8942_v43 = vld [vmem:[%s15093_s11 + $0x118] sm:$0xff] }
 0x9f2   : > { %6748 = vmatmul.mubr.f32.gmra.mrb[34].mxu0 %v6488_v62  ;;  %v8939_v62 = vld [vmem:[%s15093_s11 + $0x100] sm:$0xff] }
 0x9f3   : > { %6752 = vmatprep.mubr.f32.mxu0 %v6491_v60  ;;  %v6550_v60 = vld [vmem:[%s15092_s10 + $0x200] sm:$0xff] }
 0x9f6   : > { %6753 = vmatmul.mubr.f32.gmra.mrb[36].mxu0 %v6490_v38  ;;  %v10132_v38 = vpack.c.bf16 %v8942_v43, %v8940_v15  ;;  %v6582_v15 = vld [vmem:[%s15092_s10 + $0x300] sm:$0xff] }
 0x9f7   : > { %6757 = vmatprep.mubr.f32.mxu0 %v6493_v30  ;;  %v8941_v30 = vld [vmem:[%s15093_s11 + $0x110] sm:$0xff] }
 0x9f8   : > { %10133 = vmatprep.subr.bf16.mxu1 %v10132_v38  ;;  %v8961_v38 = vld [vmem:[%s15093_s11 + $0x1b0] sm:$0xff] }
 0x9fa   : > { %6758 = vmatmul.mubr.f32.gmra.mrb[38].mxu0 %v6492_v19  ;;  %v6553_v19 = vld [vmem:[%s15092_s10 + $0x218] sm:$0xff] }
 0x9fb   : > { %6762 = vmatprep.mubr.f32.mxu0 %v6495_v5  ;;  %v10134_v5 = vpack.c.bf16 %v8941_v30, %v8939_v62  ;;  %v6585_v62 = vld [vmem:[%s15092_s10 + $0x318] sm:$0xff] }
 0x9fd   : > { %10135 = vmatpush1.bf16.msra.mxu1 %v10134_v5  ;;  %v6587_v5 = vld [vmem:[%s15092_s10 + $0x328] sm:$0xff] }
 0x9fe   : > { %6763 = vmatmul.mubr.f32.gmra.mrb[40].mxu0 %v6494_v9  ;;  %v6552_v9 = vld [vmem:[%s15092_s10 + $0x210] sm:$0xff] }
 0x9ff   : > { %6767 = vmatprep.mubr.f32.mxu0 %v6497_v6  ;;  %v6555_v6 = vld [vmem:[%s15092_s10 + $0x228] sm:$0xff] }
 0xa02   : > { %6768 = vmatmul.mubr.f32.gmra.mrb[42].mxu0 %v6496_v53  ;;  %v6554_v53 = vld [vmem:[%s15092_s10 + $0x220] sm:$0xff] }
 0xa03   : > { %6772 = vmatprep.mubr.f32.mxu0 %v6499_v33  ;;  %v6557_v33 = vld [vmem:[%s15092_s10 + $0x238] sm:$0xff] }
 0xa06   : > { %6773 = vmatmul.mubr.f32.gmra.mrb[44].mxu0 %v6498_v21  ;;  %v6556_v21 = vld [vmem:[%s15092_s10 + $0x230] sm:$0xff] }
 0xa07   : > { %6777 = vmatprep.mubr.f32.mxu0 %v6501_v63  ;;  %v6559_v63 = vld [vmem:[%s15092_s10 + $0x248] sm:$0xff] }
 0xa0a   : > { %6778 = vmatmul.mubr.f32.gmra.mrb[46].mxu0 %v6500_v0  ;;  %v6558_v0 = vld [vmem:[%s15092_s10 + $0x240] sm:$0xff] }
 0xa0b   : > { %6782 = vmatprep.mubr.f32.mxu0 %v6503_v3  ;;  %v6561_v3 = vld [vmem:[%s15092_s10 + $0x258] sm:$0xff] }
 0xa0e   : > { %6783 = vmatmul.mubr.f32.gmra.mrb[48].mxu0 %v6502_v59  ;;  %v6560_v59 = vld [vmem:[%s15092_s10 + $0x250] sm:$0xff] }
 0xa0f   : > { %6787 = vmatprep.mubr.f32.mxu0 %v6505_v49  ;;  %v6563_v49 = vld [vmem:[%s15092_s10 + $0x268] sm:$0xff] }
 0xa12   : > { %6788 = vmatmul.mubr.f32.gmra.mrb[50].mxu0 %v6504_v29  ;;  %v6562_v29 = vld [vmem:[%s15092_s10 + $0x260] sm:$0xff] }
 0xa13   : > { %6792 = vmatprep.mubr.f32.mxu0 %v6507_v39  ;;  %v6565_v39 = vld [vmem:[%s15092_s10 + $0x278] sm:$0xff] }
 0xa16   : > { %6793 = vmatmul.mubr.f32.gmra.mrb[52].mxu0 %v6506_v13  ;;  %v6564_v13 = vld [vmem:[%s15092_s10 + $0x270] sm:$0xff] }
 0xa17   : > { %6797 = vmatprep.mubr.f32.mxu0 %v6509_v28  ;;  %v6567_v28 = vld [vmem:[%s15092_s10 + $0x288] sm:$0xff] }
 0xa1a   : > { %6798 = vmatmul.mubr.f32.gmra.mrb[54].mxu0 %v6508_v42  ;;  %v8944_v42 = vld [vmem:[%s15093_s11 + $0x128] sm:$0xff] }
 0xa1b   : > { %6802 = vmatprep.mubr.f32.mxu0 %v6511_v25  ;;  %v8946_v25 = vld [vmem:[%s15093_s11 + $0x138] sm:$0xff] }
 0xa1e   : > { %6803 = vmatmul.mubr.f32.gmra.mrb[56].mxu0 %v6510_v47  ;;  %v6566_v47 = vld [vmem:[%s15092_s10 + $0x280] sm:$0xff] }
 0xa1f   : > { %6807 = vmatprep.mubr.f32.mxu0 %v6513_v54  ;;  %v10136_v54 = vpack.c.bf16 %v8946_v25, %v8944_v42  ;;  %v6593_v42 = vld [vmem:[%s15092_s10 + $0x358] sm:$0xff]  ;;  %v8967_v25 = vld [vmem:[%s15093_s11 + $0x1e0] sm:$0xff] }
 0xa21   : > { %10137 = vmatprep.subr.bf16.mxu1 %v10136_v54 }
 0xa22   : > { %6808 = vmatmul.mubr.f32.gmra.mrb[58].mxu0 %v6512_v40  ;;  %v6569_v40 = vld [vmem:[%s15092_s10 + $0x298] sm:$0xff] }
 0xa23   : > { %6812 = vmatprep.mubr.f32.mxu0 %v6515_v45  ;;  %v8943_v45 = vld [vmem:[%s15093_s11 + $0x120] sm:$0xff] }
 0xa26   : > { %6813 = vmatmul.mubr.f32.gmra.mrb[60].mxu0 %v6514_v12  ;;  %v8945_v12 = vld [vmem:[%s15093_s11 + $0x130] sm:$0xff] }
 0xa27   : > { %6817 = vmatprep.mubr.f32.mxu0 %v6517_v7  ;;  %v10138_v7 = vpack.c.bf16 %v8945_v12, %v8943_v45  ;;  %v6595_v45 = vld [vmem:[%s15092_s10 + $0x368] sm:$0xff] }
 0xa29   : > { %10139 = vmatpush1.bf16.msra.mxu1 %v10138_v7  ;;  %v10660_v7 = vmov 0.0  }
 0xa2a   : > { %6818 = vmatmul.mubr.f32.gmra.mrb[62].mxu0 %v6516_v57  ;;  %v6568_v57 = vld [vmem:[%s15092_s10 + $0x290] sm:$0xff]  ;;  %7352 = vmatprep.mubr.f32.mxu1 %v10660_v7 }
 0xa2b   : > { %6822 = vmatprep.mubr.f32.mxu0 %v6519_v11  ;;  %v6571_v11 = vld [vmem:[%s15092_s10 + $0x2a8] sm:$0xff] }
 0xa2e   : > { %6823 = vmatmul.mubr.f32.gmra.mrb[64].mxu0 %v6518_v17  ;;  %v8948_v17 = vld [vmem:[%s15093_s11 + $0x148] sm:$0xff] }
 0xa2f   : > { %6827 = vmatprep.mubr.f32.mxu0 %v6521_v16  ;;  %v8950_v16 = vld [vmem:[%s15093_s11 + $0x158] sm:$0xff] }
 0xa32   : > { %6828 = vmatmul.mubr.f32.gmra.mrb[66].mxu0 %v6520_v51  ;;  %v6570_v51 = vld [vmem:[%s15092_s10 + $0x2a0] sm:$0xff] }
 0xa33   : > { %6832 = vmatprep.mubr.f32.mxu0 %v6523_v48  ;;  %v10140_v48 = vpack.c.bf16 %v8950_v16, %v8948_v17  ;;  %v6597_v17 = vld [vmem:[%s15092_s10 + $0x378] sm:$0xff] }
 0xa35   : > { %10141 = vmatprep.subr.bf16.mxu1 %v10140_v48  ;;  %v6596_v48 = vld [vmem:[%s15092_s10 + $0x370] sm:$0xff] }
 0xa36   : > { %6833 = vmatmul.mubr.f32.gmra.mrb[68].mxu0 %v6522_v2  ;;  %v6573_v2 = vld [vmem:[%s15092_s10 + $0x2b8] sm:$0xff] }
 0xa37   : > { %6837 = vmatprep.mubr.f32.mxu0 %v6525_v56  ;;  %v8947_v56 = vld [vmem:[%s15093_s11 + $0x140] sm:$0xff] }
 0xa3a   : > { %6838 = vmatmul.mubr.f32.gmra.mrb[70].mxu0 %v6524_v58  ;;  %v8949_v58 = vld [vmem:[%s15093_s11 + $0x150] sm:$0xff] }
 0xa3b   : > { %6842 = vmatprep.mubr.f32.mxu0 %v6527_v22  ;;  %v10142_v22 = vpack.c.bf16 %v8949_v58, %v8947_v56 }
 0xa3d   : > { %10143 = vmatpush1.bf16.msra.mxu1 %v10142_v22  ;;  %v6598_v22 = vld [vmem:[%s15092_s10 + $0x380] sm:$0xff] }
 0xa3e   : > { %6843 = vmatmul.mubr.f32.gmra.mrb[72].mxu0 %v6526_v32  ;;  %v6572_v32 = vld [vmem:[%s15092_s10 + $0x2b0] sm:$0xff] }
 0xa3f   : > { %6847 = vmatprep.mubr.f32.mxu0 %v6529_v35  ;;  %v6575_v35 = vld [vmem:[%s15092_s10 + $0x2c8] sm:$0xff] }
 0xa42   : > { %6848 = vmatmul.mubr.f32.gmra.mrb[74].mxu0 %v6528_v27  ;;  %v8952_v27 = vld [vmem:[%s15093_s11 + $0x168] sm:$0xff] }
 0xa43   : > { %6852 = vmatprep.mubr.f32.mxu0 %v6531_v50  ;;  %v8954_v50 = vld [vmem:[%s15093_s11 + $0x178] sm:$0xff] }
 0xa46   : > { %6853 = vmatmul.mubr.f32.gmra.mrb[76].mxu0 %v6530_v36  ;;  %v6574_v36 = vld [vmem:[%s15092_s10 + $0x2c0] sm:$0xff] }
 0xa47   : > { %6857 = vmatprep.mubr.f32.mxu0 %v6533_v24  ;;  %v10144_v24 = vpack.c.bf16 %v8954_v50, %v8952_v27  ;;  %v6600_v50 = vld [vmem:[%s15092_s10 + $0x390] sm:$0xff] }
 0xa49   : > { %10145 = vmatprep.subr.bf16.mxu1 %v10144_v24 }
 0xa4a   : > { %6858 = vmatmul.mubr.f32.gmra.mrb[78].mxu0 %v6532_v23  ;;  %v6577_v23 = vld [vmem:[%s15092_s10 + $0x2d8] sm:$0xff] }
 0xa4b   : > { %6862 = vmatprep.mubr.f32.mxu0 %v6535_v20  ;;  %v8951_v20 = vld [vmem:[%s15093_s11 + $0x160] sm:$0xff] }
 0xa4e   : > { %6863 = vmatmul.mubr.f32.gmra.mrb[80].mxu0 %v6534_v10  ;;  %v8953_v10 = vld [vmem:[%s15093_s11 + $0x170] sm:$0xff] }
 0xa4f   : > { %6867 = vmatprep.mubr.f32.mxu0 %v6537_v31  ;;  %v10146_v31 = vpack.c.bf16 %v8953_v10, %v8951_v20  ;;  %v6602_v20 = vld [vmem:[%s15092_s10 + $0x3a0] sm:$0xff]  ;;  %v6605_v10 = vld [vmem:[%s15092_s10 + $0x3b8] sm:$0xff] }
 0xa51   : > { %10147 = vmatpush1.bf16.msra.mxu1 %v10146_v31 }
 0xa52   : > { %6868 = vmatmul.mubr.f32.gmra.mrb[82].mxu0 %v6536_v4  ;;  %v6576_v4 = vld [vmem:[%s15092_s10 + $0x2d0] sm:$0xff] }
 0xa53   : > { %6872 = vmatprep.mubr.f32.mxu0 %v6539_v18  ;;  %v6579_v18 = vld [vmem:[%s15092_s10 + $0x2e8] sm:$0xff] }
 0xa56   : > { %6873 = vmatmul.mubr.f32.gmra.mrb[84].mxu0 %v6538_v26  ;;  %v8956_v26 = vld [vmem:[%s15093_s11 + $0x188] sm:$0xff] }
 0xa57   : > { %6877 = vmatprep.mubr.f32.mxu0 %v6541_v61  ;;  %v8958_v61 = vld [vmem:[%s15093_s11 + $0x198] sm:$0xff] }
 0xa5a   : > { %6878 = vmatmul.mubr.f32.gmra.mrb[86].mxu0 %v6540_v44  ;;  %v6578_v44 = vld [vmem:[%s15092_s10 + $0x2e0] sm:$0xff] }
 0xa5b   : > { %6882 = vmatprep.mubr.f32.mxu0 %v6543_v46  ;;  %v10148_v46 = vpack.c.bf16 %v8958_v61, %v8956_v26  ;;  %v6607_v26 = vld [vmem:[%s15092_s10 + $0x3c8] sm:$0xff] }
 0xa5d   : > { %10149 = vmatprep.subr.bf16.mxu1 %v10148_v46  ;;  %v6606_v46 = vld [vmem:[%s15092_s10 + $0x3c0] sm:$0xff] }
 0xa5e   : > { %6883 = vmatmul.mubr.f32.gmra.mrb[88].mxu0 %v6542_v8  ;;  %v6581_v8 = vld [vmem:[%s15092_s10 + $0x2f8] sm:$0xff] }
 0xa5f   : > { %6887 = vmatprep.mubr.f32.mxu0 %v6545_v52  ;;  %v8955_v52 = vld [vmem:[%s15093_s11 + $0x180] sm:$0xff] }
 0xa62   : > { %6888 = vmatmul.mubr.f32.gmra.mrb[90].mxu0 %v6544_v34  ;;  %v8957_v34 = vld [vmem:[%s15093_s11 + $0x190] sm:$0xff] }
 0xa63   : > { %6892 = vmatprep.mubr.f32.mxu0 %v6547_v14  ;;  %v10150_v14 = vpack.c.bf16 %v8957_v34, %v8955_v52 }
 0xa65   : > { %10151 = vmatpush1.bf16.msra.mxu1 %v10150_v14  ;;  %v6608_v14 = vld [vmem:[%s15092_s10 + $0x3d0] sm:$0xff] }
 0xa66   : > { %6893 = vmatmul.mubr.f32.gmra.mrb[92].mxu0 %v6546_v55  ;;  %v6580_v55 = vld [vmem:[%s15092_s10 + $0x2f0] sm:$0xff] }
 0xa67   : > { %6897 = vmatprep.mubr.f32.mxu0 %v6549_v37  ;;  %v6583_v37 = vld [vmem:[%s15092_s10 + $0x308] sm:$0xff] }
 0xa6a   : > { %6898 = vmatmul.mubr.f32.gmra.mrb[94].mxu0 %v6548_v41  ;;  %v8960_v41 = vld [vmem:[%s15093_s11 + $0x1a8] sm:$0xff] }
 0xa6b   : > { %6902 = vmatprep.mubr.f32.mxu0 %v6551_v1  ;;  %v8962_v1 = vld [vmem:[%s15093_s11 + $0x1b8] sm:$0xff] }
 0xa6c   : > { %v10152_v43 = vpack.c.bf16 %v8962_v1, %v8960_v41  ;;  %v6610_v1 = vld [vmem:[%s15092_s10 + $0x3e0] sm:$0xff] }
 0xa6e   : > { %6903 = vmatmul.mubr.f32.gmra.mrb[96].mxu0 %v6550_v60  ;;  %10153 = vmatprep.subr.bf16.mxu1 %v10152_v43  ;;  %v8959_v60 = vld [vmem:[%s15093_s11 + $0x1a0] sm:$0xff] }
 0xa6f   : > { %6907 = vmatprep.mubr.f32.mxu0 %v6553_v19  ;;  %v10154_v30 = vpack.c.bf16 %v8961_v38, %v8959_v60  ;;  %v6584_v19 = vld [vmem:[%s15092_s10 + $0x310] sm:$0xff] }
 0xa70   : > { %v6612_v60 = vld [vmem:[%s15092_s10 + $0x3f0] sm:$0xff] }
 0xa71   : > { %10155 = vmatpush1.bf16.msra.mxu1 %v10154_v30 }
 0xa72   : > { %6908 = vmatmul.mubr.f32.gmra.mrb[98].mxu0 %v6552_v9  ;;  %v8964_v9 = vld [vmem:[%s15093_s11 + $0x1c8] sm:$0xff] }
 0xa73   : > { %6912 = vmatprep.mubr.f32.mxu0 %v6555_v6  ;;  %v8966_v6 = vld [vmem:[%s15093_s11 + $0x1d8] sm:$0xff] }
 0xa76   : > { %6913 = vmatmul.mubr.f32.gmra.mrb[100].mxu0 %v6554_v53  ;;  %v6586_v53 = vld [vmem:[%s15092_s10 + $0x320] sm:$0xff] }
 0xa77   : > { %6917 = vmatprep.mubr.f32.mxu0 %v6557_v33  ;;  %v10156_v33 = vpack.c.bf16 %v8966_v6, %v8964_v9 }
 0xa79   : > { %10157 = vmatprep.subr.bf16.mxu1 %v10156_v33  ;;  %v6616_v33 = vld [vmem:[%s15092_s10 + $0x410] sm:$0xff] }
 0xa7a   : > { %6918 = vmatmul.mubr.f32.gmra.mrb[102].mxu0 %v6556_v21  ;;  %v6589_v21 = vld [vmem:[%s15092_s10 + $0x338] sm:$0xff] }
 0xa7b   : > { %6922 = vmatprep.mubr.f32.mxu0 %v6559_v63  ;;  %v8963_v63 = vld [vmem:[%s15093_s11 + $0x1c0] sm:$0xff] }
 0xa7e   : > { %6923 = vmatmul.mubr.f32.gmra.mrb[104].mxu0 %v6558_v0  ;;  %v8965_v0 = vld [vmem:[%s15093_s11 + $0x1d0] sm:$0xff] }
 0xa7f   : > { %6927 = vmatprep.mubr.f32.mxu0 %v6561_v3  ;;  %v10158_v3 = vpack.c.bf16 %v8965_v0, %v8963_v63  ;;  %v6619_v0 = vld [vmem:[%s15092_s10 + $0x428] sm:$0xff] }
 0xa81   : > { %10159 = vmatpush1.bf16.msra.mxu1 %v10158_v3  ;;  %v6618_v3 = vld [vmem:[%s15092_s10 + $0x420] sm:$0xff] }
 0xa82   : > { %6928 = vmatmul.mubr.f32.gmra.mrb[106].mxu0 %v6560_v59  ;;  %v6588_v59 = vld [vmem:[%s15092_s10 + $0x330] sm:$0xff] }
 0xa83   : > { %6932 = vmatprep.mubr.f32.mxu0 %v6563_v49  ;;  %v6591_v49 = vld [vmem:[%s15092_s10 + $0x348] sm:$0xff] }
 0xa86   : > { %6933 = vmatmul.mubr.f32.gmra.mrb[108].mxu0 %v6562_v29  ;;  %v8968_v29 = vld [vmem:[%s15093_s11 + $0x1e8] sm:$0xff] }
 0xa87   : > { %6937 = vmatprep.mubr.f32.mxu0 %v6565_v39  ;;  %v8970_v39 = vld [vmem:[%s15093_s11 + $0x1f8] sm:$0xff] }
 0xa8a   : > { %6938 = vmatmul.mubr.f32.gmra.mrb[110].mxu0 %v6564_v13  ;;  %v6590_v13 = vld [vmem:[%s15092_s10 + $0x340] sm:$0xff] }
 0xa8b   : > { %6942 = vmatprep.mubr.f32.mxu0 %v6567_v28  ;;  %v10160_v28 = vpack.c.bf16 %v8970_v39, %v8968_v29  ;;  %v6621_v29 = vld [vmem:[%s15092_s10 + $0x438] sm:$0xff]  ;;  %v6620_v39 = vld [vmem:[%s15092_s10 + $0x430] sm:$0xff] }
 0xa8d   : > { %10161 = vmatprep.subr.bf16.mxu1 %v10160_v28 }
 0xa8e   : > { %6943 = vmatmul.mubr.f32.gmra.mrb[112].mxu0 %v6566_v47  ;;  %v8969_v47 = vld [vmem:[%s15093_s11 + $0x1f0] sm:$0xff] }
 0xa8f   : > { %6947 = vmatprep.mubr.f32.mxu0 %v6569_v40  ;;  %v10162_v54 = vpack.c.bf16 %v8969_v47, %v8967_v25  ;;  %v6592_v40 = vld [vmem:[%s15092_s10 + $0x350] sm:$0xff]  ;;  %v6622_v25 = vld [vmem:[%s15092_s10 + $0x440] sm:$0xff] }
 0xa91   : > { %10163 = vmatpush1.bf16.msra.mxu1 %v10162_v54 }
 0xa92   : > { %6948 = vmatmul.mubr.f32.gmra.mrb[114].mxu0 %v6568_v57 }
 0xa93   : > { %6952 = vmatprep.mubr.f32.mxu0 %v6571_v11  ;;  %v6594_v11 = vld [vmem:[%s15092_s10 + $0x360] sm:$0xff] }
 0xa96   : > { %6953 = vmatmul.mubr.f32.gmra.mrb[116].mxu0 %v6570_v51 }
 0xa97   : > { %6957 = vmatprep.mubr.f32.mxu0 %v6573_v2  ;;  %v6599_v2 = vld [vmem:[%s15092_s10 + $0x388] sm:$0xff] }
 0xa9a   : > { %6958 = vmatmul.mubr.f32.gmra.mrb[118].mxu0 %v6572_v32  ;;  %v6601_v32 = vld [vmem:[%s15092_s10 + $0x398] sm:$0xff] }
 0xa9b   : > { %6962 = vmatprep.mubr.f32.mxu0 %v6575_v35 }
 0xa9e   : > { %6963 = vmatmul.mubr.f32.gmra.mrb[120].mxu0 %v6574_v36  ;;  %v6603_v36 = vld [vmem:[%s15092_s10 + $0x3a8] sm:$0xff] }
 0xa9f   : > { %6967 = vmatprep.mubr.f32.mxu0 %v6577_v23 }
 0xaa2   : > { %6968 = vmatmul.mubr.f32.gmra.mrb[122].mxu0 %v6576_v4 }
 0xaa3   : > { %6972 = vmatprep.mubr.f32.mxu0 %v6579_v18  ;;  %v6604_v18 = vld [vmem:[%s15092_s10 + $0x3b0] sm:$0xff] }
 0xaa6   : > { %6973 = vmatmul.mubr.f32.gmra.mrb[124].mxu0 %v6578_v44 }
 0xaa7   : > { %6977 = vmatprep.mubr.f32.mxu0 %v6581_v8  ;;  %v6609_v8 = vld [vmem:[%s15092_s10 + $0x3d8] sm:$0xff] }
 0xaaa   : > { %6978 = vmatmul.mubr.f32.gmra.mrb[126].mxu0 %v6580_v55  ;;  %v6611_v55 = vld [vmem:[%s15092_s10 + $0x3e8] sm:$0xff] }
 0xaab   : > { %6982 = vmatprep.mubr.f32.mxu0 %v6583_v37 }
 0xaae   : > { %6983 = vmatmul.mubr.f32.gmra.mrb[128].mxu0 %v6582_v15  ;;  %v6613_v15 = vld [vmem:[%s15092_s10 + $0x3f8] sm:$0xff] }
 0xaaf   : > { %6987 = vmatprep.mubr.f32.mxu0 %v6585_v62 }
 0xab2   : > { %6988 = vmatmul.mubr.f32.gmra.mrb[130].mxu0 %v6584_v19  ;;  %v6615_v19 = vld [vmem:[%s15092_s10 + $0x408] sm:$0xff] }
 0xab3   : > { %6992 = vmatprep.mubr.f32.mxu0 %v6587_v5  ;;  %v6614_v5 = vld [vmem:[%s15092_s10 + $0x400] sm:$0xff] }
 0xab6   : > { %6993 = vmatmul.mubr.f32.gmra.mrb[132].mxu0 %v6586_v53  ;;  %v6617_v53 = vld [vmem:[%s15092_s10 + $0x418] sm:$0xff] }
 0xab7   : > { %6997 = vmatprep.mubr.f32.mxu0 %v6589_v21 }
 0xaba   : > { %6998 = vmatmul.mubr.f32.gmra.mrb[134].mxu0 %v6588_v59 }
 0xabb   : > { %7002 = vmatprep.mubr.f32.mxu0 %v6591_v49 }
 0xabe   : > { %7003 = vmatmul.mubr.f32.gmra.mrb[136].mxu0 %v6590_v13 }
 0xabf   : > { %7007 = vmatprep.mubr.f32.mxu0 %v6593_v42  ;;  %v6623_v42 = vld [vmem:[%s15092_s10 + $0x448] sm:$0xff] }
 0xac1   : > { %v14232_v12 = vpop.f32.mrb[32].mxu0 }
 0xac2   : > { %7008 = vmatmul.mubr.f32.gmra.mrb[138].mxu0 %v6592_v40  ;;  %v6746_v57 = vpop.f32.mrb[33].mxu0  ;;  %v6625_v40 = vld [vmem:[%s15092_s10 + $0x458] sm:$0xff] }
 0xac3   : > { %7012 = vmatprep.mubr.f32.mxu0 %v6595_v45  ;;  %v6624_v45 = vld [vmem:[%s15092_s10 + $0x450] sm:$0xff] }
 0xac5   : > { %v14241_v16 = vpop.f32.mrb[34].mxu0 }
 0xac6   : > { %7013 = vmatmul.mubr.f32.gmra.mrb[140].mxu0 %v6594_v11  ;;  %v6751_v51 = vpop.f32.mrb[35].mxu0 }
 0xac7   : > { %7017 = vmatprep.mubr.f32.mxu0 %v6597_v17  ;;  %v6627_v17 = vld [vmem:[%s15092_s10 + $0x468] sm:$0xff]  ;;  %v6626_v51 = vld [vmem:[%s15092_s10 + $0x460] sm:$0xff] }
 0xac9   : > { %v14249_v56 = vpop.f32.mrb[36].mxu0 }
 0xaca   : > { %7018 = vmatmul.mubr.f32.gmra.mrb[142].mxu0 %v6596_v48  ;;  %v6756_v58 = vpop.f32.mrb[37].mxu0 }
 0xacb   : > { %7022 = vmatprep.mubr.f32.mxu0 %v6599_v2  ;;  %v6629_v58 = vld [vmem:[%s15092_s10 + $0x478] sm:$0xff] }
 0xacd   : > { %v14257_v35 = vpop.f32.mrb[38].mxu0 }
 0xace   : > { %7023 = vmatmul.mubr.f32.gmra.mrb[144].mxu0 %v6598_v22  ;;  %v6761_v27 = vpop.f32.mrb[39].mxu0  ;;  %v6628_v22 = vld [vmem:[%s15092_s10 + $0x470] sm:$0xff] }
 0xacf   : > { %7027 = vmatprep.mubr.f32.mxu0 %v6601_v32 }
 0xad1   : > { %v14265_v24 = vpop.f32.mrb[40].mxu0 }
 0xad2   : > { %7028 = vmatmul.mubr.f32.gmra.mrb[146].mxu0 %v6600_v50  ;;  %v6766_v23 = vpop.f32.mrb[41].mxu0  ;;  %v6631_v50 = vld [vmem:[%s15092_s10 + $0x488] sm:$0xff] }
 0xad3   : > { %7032 = vmatprep.mubr.f32.mxu0 %v6603_v36  ;;  %v6630_v36 = vld [vmem:[%s15092_s10 + $0x480] sm:$0xff] }
 0xad5   : > { %v14273_v31 = vpop.f32.mrb[42].mxu0 }
 0xad6   : > { %7033 = vmatmul.mubr.f32.gmra.mrb[148].mxu0 %v6602_v20  ;;  %v6771_v4 = vpop.f32.mrb[43].mxu0 }
 0xad7   : > { %7037 = vmatprep.mubr.f32.mxu0 %v6605_v10  ;;  %v6633_v10 = vld [vmem:[%s15092_s10 + $0x498] sm:$0xff]  ;;  %v6632_v4 = vld [vmem:[%s15092_s10 + $0x490] sm:$0xff] }
 0xad9   : > { %v14281_v61 = vpop.f32.mrb[44].mxu0 }
 0xada   : > { %7038 = vmatmul.mubr.f32.gmra.mrb[150].mxu0 %v6604_v18  ;;  %v6776_v44 = vpop.f32.mrb[45].mxu0 }
 0xadb   : > { %7042 = vmatprep.mubr.f32.mxu0 %v6607_v26  ;;  %v6635_v44 = vld [vmem:[%s15092_s10 + $0x4a8] sm:$0xff] }
 0xadd   : > { %v14289_v52 = vpop.f32.mrb[46].mxu0 }
 0xade   : > { %7043 = vmatmul.mubr.f32.gmra.mrb[152].mxu0 %v6606_v46  ;;  %v6781_v34 = vpop.f32.mrb[47].mxu0  ;;  %v6634_v46 = vld [vmem:[%s15092_s10 + $0x4a0] sm:$0xff] }
 0xadf   : > { %7047 = vmatprep.mubr.f32.mxu0 %v6609_v8 }
 0xae1   : > { %v14297_v37 = vpop.f32.mrb[48].mxu0 }
 0xae2   : > { %7048 = vmatmul.mubr.f32.gmra.mrb[154].mxu0 %v6608_v14  ;;  %v6786_v41 = vpop.f32.mrb[49].mxu0  ;;  %v6637_v14 = vld [vmem:[%s15092_s10 + $0x4b8] sm:$0xff] }
 0xae3   : > { %7052 = vmatprep.mubr.f32.mxu0 %v6611_v55  ;;  %v6636_v55 = vld [vmem:[%s15092_s10 + $0x4b0] sm:$0xff] }
 0xae5   : > { %v14305_v43 = vpop.f32.mrb[50].mxu0 }
 0xae6   : > { %7053 = vmatmul.mubr.f32.gmra.mrb[156].mxu0 %v6610_v1  ;;  %v6791_v62 = vpop.f32.mrb[51].mxu0 }
 0xae7   : > { %7057 = vmatprep.mubr.f32.mxu0 %v6613_v15  ;;  %v6639_v15 = vld [vmem:[%s15092_s10 + $0x4c8] sm:$0xff]  ;;  %v6638_v62 = vld [vmem:[%s15092_s10 + $0x4c0] sm:$0xff] }
 0xae9   : > { %v14310_v38 = vpop.f32.mrb[52].mxu0 }
 0xaea   : > { %7058 = vmatmul.mubr.f32.gmra.mrb[158].mxu0 %v6612_v60  ;;  %v6796_v30 = vpop.f32.mrb[53].mxu0 }
 0xaeb   : > { %7062 = vmatprep.mubr.f32.mxu0 %v6615_v19  ;;  %v6641_v19 = vld [vmem:[%s15092_s10 + $0x4d8] sm:$0xff] }
 0xaed   : > { %v14318_v9 = vpop.f32.mrb[54].mxu0 }
 0xaee   : > { %v6801_v6 = vpop.f32.mrb[55].mxu0  ;;  %7063 = vmatmul.mubr.f32.gmra.mrb[160].mxu0 %v6614_v5  ;;  %v7224_v5 = vld [vmem:[%s15093_s11 + $0x8] sm:$0xff] }
 0xaef   : > { %7067 = vmatprep.mubr.f32.mxu0 %v6617_v53  ;;  %v7226_v6 = vld [vmem:[%s15093_s11 + $0x18] sm:$0xff]  ;;  %v6640_v53 = vld [vmem:[%s15092_s10 + $0x4d0] sm:$0xff] }
 0xaf1   : > { %v14326_v21 = vpop.f32.mrb[56].mxu0 }
 0xaf2   : > { %v6806_v63 = vpop.f32.mrb[57].mxu0  ;;  %7068 = vmatmul.mubr.f32.gmra.mrb[162].mxu0 %v6616_v33  ;;  %v10164_v33 = vpack.c.bf16 %v7226_v6, %v7224_v5  ;;  %v6656_v6 = vld [vmem:[%s15092_s10 + $0x550] sm:$0xff] }
 0xaf3   : > { %7072 = vmatprep.mubr.f32.mxu0 %v6619_v0 }
 0xaf4   : > { %10165 = vmatprep.subr.bf16.mxu1 %v10164_v33  ;;  %v7227_v33 = vld [vmem:[%s15093_s11 + $0x20] sm:$0xff] }
 0xaf5   : > { %v14334_v59 = vpop.f32.mrb[58].mxu0 }
 0xaf6   : > { %v6811_v49 = vpop.f32.mrb[59].mxu0  ;;  %7073 = vmatmul.mubr.f32.gmra.mrb[164].mxu0 %v6618_v3  ;;  %v6643_v3 = vld [vmem:[%s15092_s10 + $0x4e8] sm:$0xff] }
 0xaf7   : > { %7077 = vmatprep.mubr.f32.mxu0 %v6621_v29  ;;  %v6642_v49 = vld [vmem:[%s15092_s10 + $0x4e0] sm:$0xff] }
 0xaf9   : > { %v14342_v13 = vpop.f32.mrb[60].mxu0 }
 0xafa   : > { %v6816_v28 = vpop.f32.mrb[61].mxu0  ;;  %7078 = vmatmul.mubr.f32.gmra.mrb[166].mxu0 %v6620_v39 }
 0xafb   : > { %7082 = vmatprep.mubr.f32.mxu0 %v6623_v42  ;;  %v6645_v28 = vld [vmem:[%s15092_s10 + $0x4f8] sm:$0xff]  ;;  %v6644_v42 = vld [vmem:[%s15092_s10 + $0x4f0] sm:$0xff] }
 0xafd   : > { %v14350_v47 = vpop.f32.mrb[62].mxu0 }
 0xafe   : > { %v6821_v54 = vpop.f32.mrb[63].mxu0  ;;  %7083 = vmatmul.mubr.f32.gmra.mrb[168].mxu0 %v6622_v25 }
 0xaff   : > { %7087 = vmatprep.mubr.f32.mxu0 %v6625_v40  ;;  %v6647_v40 = vld [vmem:[%s15092_s10 + $0x508] sm:$0xff] }
 0xb01   : > { %v14358_v57 = vpop.f32.mrb[64].mxu0 }
 0xb02   : > { %v6826_v11 = vpop.f32.mrb[65].mxu0  ;;  %7088 = vmatmul.mubr.f32.gmra.mrb[170].mxu0 %v6624_v45  ;;  %v6646_v45 = vld [vmem:[%s15092_s10 + $0x500] sm:$0xff] }
 0xb03   : > { %7092 = vmatprep.mubr.f32.mxu0 %v6627_v17 }
 0xb05   : > { %v14366_v48 = vpop.f32.mrb[66].mxu0 }
 0xb06   : > { %v6831_v2 = vpop.f32.mrb[67].mxu0  ;;  %7093 = vmatmul.mubr.f32.gmra.mrb[172].mxu0 %v6626_v51  ;;  %v6649_v51 = vld [vmem:[%s15092_s10 + $0x518] sm:$0xff] }
 0xb07   : > { %7097 = vmatprep.mubr.f32.mxu0 %v6629_v58  ;;  %v6648_v2 = vld [vmem:[%s15092_s10 + $0x510] sm:$0xff] }
 0xb09   : > { %v14374_v32 = vpop.f32.mrb[68].mxu0 }
 0xb0a   : > { %v6836_v27 = vpop.f32.mrb[69].mxu0  ;;  %7098 = vmatmul.mubr.f32.gmra.mrb[174].mxu0 %v6628_v22 }
 0xb0b   : > { %7102 = vmatprep.mubr.f32.mxu0 %v6631_v50  ;;  %v6651_v27 = vld [vmem:[%s15092_s10 + $0x528] sm:$0xff]  ;;  %v6650_v50 = vld [vmem:[%s15092_s10 + $0x520] sm:$0xff] }
 0xb0d   : > { %v14382_v23 = vpop.f32.mrb[70].mxu0 }
 0xb0e   : > { %v6841_v20 = vpop.f32.mrb[71].mxu0  ;;  %7103 = vmatmul.mubr.f32.gmra.mrb[176].mxu0 %v6630_v36 }
 0xb0f   : > { %7107 = vmatprep.mubr.f32.mxu0 %v6633_v10  ;;  %v6653_v10 = vld [vmem:[%s15092_s10 + $0x538] sm:$0xff] }
 0xb11   : > { %v14390_v18 = vpop.f32.mrb[72].mxu0 }
 0xb12   : > { %v6846_v26 = vpop.f32.mrb[73].mxu0  ;;  %7108 = vmatmul.mubr.f32.gmra.mrb[178].mxu0 %v6632_v4  ;;  %v6652_v4 = vld [vmem:[%s15092_s10 + $0x530] sm:$0xff] }
 0xb13   : > { %7112 = vmatprep.mubr.f32.mxu0 %v6635_v44 }
 0xb15   : > { %v14398_v8 = vpop.f32.mrb[74].mxu0 }
 0xb16   : > { %v6851_v34 = vpop.f32.mrb[75].mxu0  ;;  %7113 = vmatmul.mubr.f32.gmra.mrb[180].mxu0 %v6634_v46  ;;  %v6655_v46 = vld [vmem:[%s15092_s10 + $0x548] sm:$0xff] }
 0xb17   : > { %7117 = vmatprep.mubr.f32.mxu0 %v6637_v14  ;;  %v7223_v34 = vld [vmem:[%s15093_s11] sm:$0xff]  ;;  %v7225_v14 = vld [vmem:[%s15093_s11 + $0x10] sm:$0xff] }
 0xb18   : > { %v10166_v5 = vpack.c.bf16 %v7225_v14, %v7223_v34  ;;  %v7237_v34 = vld [vmem:[%s15093_s11 + $0x70] sm:$0xff] }
 0xb19   : > { %v14406_v41 = vpop.f32.mrb[76].mxu0 }
 0xb1a   : > { %v6856_v1 = vpop.f32.mrb[77].mxu0  ;;  %7118 = vmatmul.mubr.f32.gmra.mrb[182].mxu0 %v6636_v55  ;;  %v6654_v55 = vld [vmem:[%s15092_s10 + $0x540] sm:$0xff] }
 0xb1b   : > { %7122 = vmatprep.mubr.f32.mxu0 %v6639_v15  ;;  %v7228_v15 = vld [vmem:[%s15093_s11 + $0x28] sm:$0xff] }
 0xb1d   : > { %v14414_v60 = vpop.f32.mrb[78].mxu0 }
 0xb1e   : > { %v6861_v30 = vpop.f32.mrb[79].mxu0  ;;  %7123 = vmatmul.mubr.f32.gmra.mrb[184].mxu0 %v6638_v62  ;;  %v7230_v62 = vld [vmem:[%s15093_s11 + $0x38] sm:$0xff] }
 0xb1f   : > { %7127 = vmatprep.mubr.f32.mxu0 %v6641_v19  ;;  %v6657_v19 = vld [vmem:[%s15092_s10 + $0x558] sm:$0xff] }
 0xb21   : > { %v14428_v63 = vpop.f32.mrb[80].mxu0 }
 0xb22   : > { %v6866_v0 = vpop.f32.mrb[81].mxu0  ;;  %7128 = vmatmul.mubr.f32.gmra.mrb[186].mxu0 %v6640_v53  ;;  %v10168_v53 = vpack.c.bf16 %v7230_v62, %v7228_v15  ;;  %v7242_v15 = vld [vmem:[%s15093_s11 + $0x98] sm:$0xff] }
 0xb23   : > { %7132 = vmatprep.mubr.f32.mxu0 %v6643_v3  ;;  %v7229_v0 = vld [vmem:[%s15093_s11 + $0x30] sm:$0xff] }
 0xb25   : > { %v14436_v29 = vpop.f32.mrb[82].mxu0 }
 0xb26   : > { %v6871_v39 = vpop.f32.mrb[83].mxu0  ;;  %7133 = vmatmul.mubr.f32.gmra.mrb[188].mxu0 %v6642_v49  ;;  %v7232_v49 = vld [vmem:[%s15093_s11 + $0x48] sm:$0xff] }
 0xb27   : > { %7137 = vmatprep.mubr.f32.mxu0 %v6645_v28  ;;  %v7234_v39 = vld [vmem:[%s15093_s11 + $0x58] sm:$0xff] }
 0xb29   : > { %v14444_v25 = vpop.f32.mrb[84].mxu0 }
 0xb2a   : > { %v6876_v54 = vpop.f32.mrb[85].mxu0  ;;  %7138 = vmatmul.mubr.f32.gmra.mrb[190].mxu0 %v6644_v42  ;;  %v6659_v42 = vld [vmem:[%s15092_s10 + $0x568] sm:$0xff] }
 0xb2b   : > { %7142 = vmatprep.mubr.f32.mxu0 %v6647_v40  ;;  %v10170_v54 = vpack.c.bf16 %v7229_v0, %v7227_v33  ;;  %v6658_v40 = vld [vmem:[%s15092_s10 + $0x560] sm:$0xff]  ;;  %v7241_v33 = vld [vmem:[%s15093_s11 + $0x90] sm:$0xff] }
 0xb2d   : > { %v14452_v11 = vpop.f32.mrb[86].mxu0 }
 0xb2e   : > { %v6881_v17 = vpop.f32.mrb[87].mxu0  ;;  %7143 = vmatmul.mubr.f32.gmra.mrb[192].mxu0 %v6646_v45  ;;  %v10172_v45 = vpack.c.bf16 %v7234_v39, %v7232_v49  ;;  %v7246_v49 = vld [vmem:[%s15093_s11 + $0xb8] sm:$0xff] }
 0xb2f   : > { %7147 = vmatprep.mubr.f32.mxu0 %v6649_v51  ;;  %v7231_v17 = vld [vmem:[%s15093_s11 + $0x40] sm:$0xff]  ;;  %v7233_v51 = vld [vmem:[%s15093_s11 + $0x50] sm:$0xff] }
 0xb31   : > { %v14460_v58 = vpop.f32.mrb[88].mxu0 }
 0xb32   : > { %v6886_v22 = vpop.f32.mrb[89].mxu0  ;;  %7148 = vmatmul.mubr.f32.gmra.mrb[194].mxu0 %v6648_v2 }
 0xb33   : > { %7152 = vmatprep.mubr.f32.mxu0 %v6651_v27  ;;  %v7236_v22 = vld [vmem:[%s15093_s11 + $0x68] sm:$0xff]  ;;  %v7238_v27 = vld [vmem:[%s15093_s11 + $0x78] sm:$0xff] }
 0xb35   : > { %v14468_v36 = vpop.f32.mrb[90].mxu0 }
 0xb36   : > { %v6891_v20 = vpop.f32.mrb[91].mxu0  ;;  %7153 = vmatmul.mubr.f32.gmra.mrb[196].mxu0 %v6650_v50 }
 0xb37   : > { %7157 = vmatprep.mubr.f32.mxu0 %v6653_v10  ;;  %v6661_v20 = vld [vmem:[%s15092_s10 + $0x578] sm:$0xff]  ;;  %v10174_v10 = vpack.c.bf16 %v7233_v51, %v7231_v17  ;;  %v7245_v17 = vld [vmem:[%s15093_s11 + $0xb0] sm:$0xff] }
 0xb39   : > { %v14476_v26 = vpop.f32.mrb[92].mxu0 }
 0xb3a   : > { %v6896_v44 = vpop.f32.mrb[93].mxu0  ;;  %7158 = vmatmul.mubr.f32.gmra.mrb[198].mxu0 %v6652_v4  ;;  %v6660_v4 = vld [vmem:[%s15092_s10 + $0x570] sm:$0xff] }
 0xb3b   : > { %7162 = vmatprep.mubr.f32.mxu0 %v6655_v46  ;;  %v10176_v44 = vpack.c.bf16 %v7238_v27, %v7236_v22  ;;  %v7235_v46 = vld [vmem:[%s15093_s11 + $0x60] sm:$0xff]  ;;  %v7250_v22 = vld [vmem:[%s15093_s11 + $0xd8] sm:$0xff] }
 0xb3d   : > { %v14490_v1 = vpop.f32.mrb[94].mxu0 }
 0xb3e   : > { %v6901_v30 = vpop.f32.mrb[95].mxu0  ;;  %7163 = vmatmul.mubr.f32.gmra.mrb[200].mxu0 %v6654_v55  ;;  %v7240_v55 = vld [vmem:[%s15093_s11 + $0x88] sm:$0xff] }
 0xb3f   : > { %7167 = vmatprep.mubr.f32.mxu0 %v6657_v19  ;;  %v6663_v30 = vld [vmem:[%s15092_s10 + $0x588] sm:$0xff]  ;;  %v10178_v19 = vpack.c.bf16 %v7237_v34, %v7235_v46  ;;  %v7249_v46 = vld [vmem:[%s15093_s11 + $0xd0] sm:$0xff] }
 0xb41   : > { %v6904_v3 = vpop.f32.mrb[96].mxu0 }
 0xb42   : > { %7353 = vmatmul.mubr.f32.vlgmr.msra.gmra.mrb[160].mxu1 %v6904_v3  ;;  %v6906_v28 = vpop.f32.mrb[97].mxu0  ;;  %7168 = vmatmul.mubr.f32.gmra.mrb[202].mxu0 %v6656_v6  ;;  %v10180_v6 = vpack.c.bf16 %v7242_v15, %v7240_v55  ;;  %v7244_v3 = vld [vmem:[%s15093_s11 + $0xa8] sm:$0xff]  ;;  %v7254_v55 = vld [vmem:[%s15093_s11 + $0xf8] sm:$0xff] }
 0xb43   : > { %7358 = vmatprep.mubr.f32.mxu1 %v10660_v7  ;;  %10167 = vmatpush1.bf16.msra.mxu1 %v10166_v5  ;;  %v6662_v5 = vld [vmem:[%s15092_s10 + $0x580] sm:$0xff]  ;;  %v6665_v28 = vld [vmem:[%s15092_s10 + $0x598] sm:$0xff] }
 0xb44   : > { %10169 = vmatprep.subr.bf16.mxu1 %v10168_v53  ;;  %7172 = vmatprep.mubr.f32.mxu0 %v6659_v42  ;;  %v7239_v53 = vld [vmem:[%s15093_s11 + $0x80] sm:$0xff] }
 0xb45   : > { %v6909_v2 = vpop.f32.mrb[98].mxu0  ;;  %v10182_v42 = vpack.c.bf16 %v7241_v33, %v7239_v53  ;;  %v7253_v53 = vld [vmem:[%s15093_s11 + $0xf0] sm:$0xff] }
 0xb46   : > { %7359 = vmatmul.mubr.f32.gmra.mrb[162].mxu1 %v6909_v2  ;;  %v6911_v50 = vpop.f32.mrb[99].mxu0  ;;  %7173 = vmatmul.mubr.f32.gmra.mrb[204].mxu0 %v6658_v40  ;;  %v10184_v40 = vpack.c.bf16 %v7246_v49, %v7244_v3  ;;  %v7248_v2 = vld [vmem:[%s15093_s11 + $0xc8] sm:$0xff] }
 0xb47   : > { %7364 = vmatprep.mubr.f32.mxu1 %v10660_v7  ;;  %10171 = vmatpush1.bf16.msra.mxu1 %v10170_v54  ;;  %v6664_v54 = vld [vmem:[%s15092_s10 + $0x590] sm:$0xff]  ;;  %v6667_v50 = vld [vmem:[%s15092_s10 + $0x5a8] sm:$0xff] }
 0xb48   : > { %10173 = vmatprep.subr.bf16.mxu1 %v10172_v45  ;;  %7177 = vmatprep.mubr.f32.mxu0 %v6661_v20  ;;  %v7243_v45 = vld [vmem:[%s15093_s11 + $0xa0] sm:$0xff]  ;;  %v6671_v3 = vld [vmem:[%s15092_s10 + $0x5c8] sm:$0xff] }
 0xb49   : > { %v6914_v14 = vpop.f32.mrb[100].mxu0  ;;  %v10186_v20 = vpack.c.bf16 %v7245_v17, %v7243_v45 }
 0xb4a   : > { %7365 = vmatmul.mubr.f32.gmra.mrb[164].mxu1 %v6914_v14  ;;  %v6916_v62 = vpop.f32.mrb[101].mxu0  ;;  %7178 = vmatmul.mubr.f32.gmra.mrb[206].mxu0 %v6660_v4  ;;  %v10188_v4 = vpack.c.bf16 %v7250_v22, %v7248_v2  ;;  %v7252_v14 = vld [vmem:[%s15093_s11 + $0xe8] sm:$0xff]  ;;  %v6674_v2 = vld [vmem:[%s15092_s10 + $0x5e0] sm:$0xff] }
 0xb4b   : > { %7370 = vmatprep.mubr.f32.mxu1 %v10660_v7  ;;  %10175 = vmatpush1.bf16.msra.mxu1 %v10174_v10  ;;  %v6666_v10 = vld [vmem:[%s15092_s10 + $0x5a0] sm:$0xff]  ;;  %v6669_v62 = vld [vmem:[%s15092_s10 + $0x5b8] sm:$0xff] }
 0xb4c   : > { %10177 = vmatprep.subr.bf16.mxu1 %v10176_v44  ;;  %7182 = vmatprep.mubr.f32.mxu0 %v6663_v30  ;;  %v7247_v44 = vld [vmem:[%s15093_s11 + $0xc0] sm:$0xff] }
 0xb4d   : > { %v6919_v0 = vpop.f32.mrb[102].mxu0  ;;  %v10190_v30 = vpack.c.bf16 %v7249_v46, %v7247_v44 }
 0xb4e   : > { %7371 = vmatmul.mubr.f32.gmra.mrb[166].mxu1 %v6919_v0  ;;  %v6921_v39 = vpop.f32.mrb[103].mxu0  ;;  %7183 = vmatmul.mubr.f32.gmra.mrb[208].mxu0 %v6662_v5  ;;  %v10192_v5 = vpack.c.bf16 %v7254_v55, %v7252_v14 }
 0xb4f   : > { %7376 = vmatprep.mubr.f32.mxu1 %v10660_v7  ;;  %10179 = vmatpush1.bf16.msra.mxu1 %v10178_v19  ;;  %v6668_v19 = vld [vmem:[%s15092_s10 + $0x5b0] sm:$0xff]  ;;  %v6670_v39 = vld [vmem:[%s15092_s10 + $0x5c0] sm:$0xff] }
 0xb50   : > { %10181 = vmatprep.subr.bf16.mxu1 %v10180_v6  ;;  %7187 = vmatprep.mubr.f32.mxu0 %v6665_v28  ;;  %v7251_v6 = vld [vmem:[%s15093_s11 + $0xe0] sm:$0xff] }
 0xb51   : > { %v6924_v51 = vpop.f32.mrb[104].mxu0  ;;  %v10194_v49 = vpack.c.bf16 %v7253_v53, %v7251_v6 }
 0xb52   : > { %7377 = vmatmul.mubr.f32.gmra.mrb[168].mxu1 %v6924_v51  ;;  %v6926_v27 = vpop.f32.mrb[105].mxu0  ;;  %7188 = vmatmul.mubr.f32.gmra.mrb[210].mxu0 %v6664_v54  ;;  %v6673_v54 = vld [vmem:[%s15092_s10 + $0x5d8] sm:$0xff]  ;;  %v6675_v51 = vld [vmem:[%s15092_s10 + $0x5e8] sm:$0xff] }
 0xb53   : > { %7382 = vmatprep.mubr.f32.mxu1 %v10660_v7  ;;  %10183 = vmatpush1.bf16.msra.mxu1 %v10182_v42 }
 0xb54   : > { %10185 = vmatprep.subr.bf16.mxu1 %v10184_v40  ;;  %7192 = vmatprep.mubr.f32.mxu0 %v6667_v50  ;;  %v6672_v40 = vld [vmem:[%s15092_s10 + $0x5d0] sm:$0xff]  ;;  %v6677_v50 = vld [vmem:[%s15092_s10 + $0x5f8] sm:$0xff] }
 0xb55   : > { %v6929_v34 = vpop.f32.mrb[106].mxu0 }
 0xb56   : > { %7383 = vmatmul.mubr.f32.gmra.mrb[170].mxu1 %v6929_v34  ;;  %v6931_v15 = vpop.f32.mrb[107].mxu0  ;;  %7193 = vmatmul.mubr.f32.gmra.mrb[212].mxu0 %v6666_v10 }
 0xb57   : > { %7388 = vmatprep.mubr.f32.mxu1 %v10660_v7  ;;  %10187 = vmatpush1.bf16.msra.mxu1 %v10186_v20  ;;  %v6676_v20 = vld [vmem:[%s15092_s10 + $0x5f0] sm:$0xff] }
 0xb58   : > { %10189 = vmatprep.subr.bf16.mxu1 %v10188_v4  ;;  %7197 = vmatprep.mubr.f32.mxu0 %v6669_v62 }
 0xb59   : > { %v6934_v33 = vpop.f32.mrb[108].mxu0 }
 0xb5a   : > { %7389 = vmatmul.mubr.f32.gmra.mrb[172].mxu1 %v6934_v33  ;;  %v6936_v0 = vpop.f32.mrb[109].mxu0  ;;  %7198 = vmatmul.mubr.f32.gmra.mrb[214].mxu0 %v6668_v19 }
 0xb5b   : > { %7394 = vmatprep.mubr.f32.mxu1 %v10660_v7  ;;  %10191 = vmatpush1.bf16.msra.mxu1 %v10190_v30 }
 0xb5c   : > { %10193 = vmatprep.subr.bf16.mxu1 %v10192_v5  ;;  %7202 = vmatprep.mubr.f32.mxu0 %v6671_v3 }
 0xb5d   : > { %v6939_v28 = vpop.f32.mrb[110].mxu0 }
 0xb5e   : > { %7395 = vmatmul.mubr.f32.gmra.mrb[174].mxu1 %v6939_v28  ;;  %v6941_v42 = vpop.f32.mrb[111].mxu0  ;;  %7203 = vmatmul.mubr.f32.gmra.mrb[216].mxu0 %v6670_v39 }
 0xb5f   : > { %7400 = vmatprep.mubr.f32.mxu1 %v10660_v7  ;;  %10195 = vmatpush1.bf16.msra.mxu1 %v10194_v49 }
 0xb60   : > { %7207 = vmatprep.mubr.f32.mxu0 %v6673_v54 }
 0xb61   : > { %v6944_v45 = vpop.f32.mrb[112].mxu0 }
 0xb62   : > { %7401 = vmatmul.mubr.f32.gmra.mrb[176].mxu1 %v6944_v45  ;;  %v6946_v17 = vpop.f32.mrb[113].mxu0  ;;  %7208 = vmatmul.mubr.f32.gmra.mrb[218].mxu0 %v6672_v40 }
 0xb63   : > { %7406 = vmatprep.mubr.f32.mxu1 %v10660_v7  ;;  %7212 = vmatprep.mubr.f32.mxu0 %v6675_v51 }
 0xb65   : > { %v6949_v22 = vpop.f32.mrb[114].mxu0 }
 0xb66   : > { %7407 = vmatmul.mubr.f32.gmra.mrb[178].mxu1 %v6949_v22  ;;  %v6951_v27 = vpop.f32.mrb[115].mxu0  ;;  %7213 = vmatmul.mubr.f32.gmra.mrb[220].mxu0 %v6674_v2 }
 0xb67   : > { %7412 = vmatprep.mubr.f32.mxu1 %v10660_v7  ;;  %7217 = vmatprep.mubr.f32.mxu0 %v6677_v50  ;;  %v8972_v27 = vld [vmem:[%s15093_s11 + $0x208] sm:$0xff]  ;;  %v8974_v50 = vld [vmem:[%s15093_s11 + $0x218] sm:$0xff] }
 0xb69   : > { %v6954_v10 = vpop.f32.mrb[116].mxu0 }
 0xb6a   : > { %7413 = vmatmul.mubr.f32.gmra.mrb[180].mxu1 %v6954_v10  ;;  %v6956_v4 = vpop.f32.mrb[117].mxu0  ;;  %7218 = vmatmul.mubr.f32.gmra.mrb[222].mxu0 %v6676_v20  ;;  %v10196_v20 = vpack.c.bf16 %v8974_v50, %v8972_v27 }
 0xb6b   : > { %7418 = vmatprep.mubr.f32.mxu1 %v10660_v7 }
 0xb6c   : > { %10197 = vmatprep.subr.bf16.mxu1 %v10196_v20  ;;  %v8979_v20 = vld [vmem:[%s15093_s11 + $0x240] sm:$0xff] }
 0xb6d   : > { %v6959_v44 = vpop.f32.mrb[118].mxu0 }
 0xb6e   : > { %7419 = vmatmul.mubr.f32.gmra.mrb[182].mxu1 %v6959_v44  ;;  %v6961_v46 = vpop.f32.mrb[119].mxu0 }
 0xb6f   : > { %7424 = vmatprep.mubr.f32.mxu1 %v10660_v7 }
 0xb71   : > { %v6964_v34 = vpop.f32.mrb[120].mxu0 }
 0xb72   : > { %7425 = vmatmul.mubr.f32.gmra.mrb[184].mxu1 %v6964_v34  ;;  %v6966_v14 = vpop.f32.mrb[121].mxu0 }
 0xb73   : > { %7430 = vmatprep.mubr.f32.mxu1 %v10660_v7 }
 0xb75   : > { %v6969_v55 = vpop.f32.mrb[122].mxu0 }
 0xb76   : > { %7431 = vmatmul.mubr.f32.gmra.mrb[186].mxu1 %v6969_v55  ;;  %v6971_v15 = vpop.f32.mrb[123].mxu0 }
 0xb77   : > { %7436 = vmatprep.mubr.f32.mxu1 %v10660_v7 }
 0xb79   : > { %v6974_v62 = vpop.f32.mrb[124].mxu0 }
 0xb7a   : > { %7437 = vmatmul.mubr.f32.gmra.mrb[188].mxu1 %v6974_v62  ;;  %v6976_v30 = vpop.f32.mrb[125].mxu0 }
 0xb7b   : > { %7442 = vmatprep.mubr.f32.mxu1 %v10660_v7 }
 0xb7d   : > { %v6979_v19 = vpop.f32.mrb[126].mxu0 }
 0xb7e   : > { %7443 = vmatmul.mubr.f32.gmra.mrb[190].mxu1 %v6979_v19  ;;  %v6981_v5 = vpop.f32.mrb[127].mxu0 }
 0xb7f   : > { %7448 = vmatprep.mubr.f32.mxu1 %v10660_v7 }
 0xb81   : > { %v6984_v6 = vpop.f32.mrb[128].mxu0 }
 0xb82   : > { %7449 = vmatmul.mubr.f32.gmra.mrb[192].mxu1 %v6984_v6  ;;  %v6986_v53 = vpop.f32.mrb[129].mxu0 }
 0xb83   : > { %7454 = vmatprep.mubr.f32.mxu1 %v10660_v7 }
 0xb85   : > { %v6989_v33 = vpop.f32.mrb[130].mxu0 }
 0xb86   : > { %7455 = vmatmul.mubr.f32.gmra.mrb[194].mxu1 %v6989_v33  ;;  %v6991_v0 = vpop.f32.mrb[131].mxu0  ;;  %v8971_v33 = vld [vmem:[%s15093_s11 + $0x200] sm:$0xff] }
 0xb87   : > { %7460 = vmatprep.mubr.f32.mxu1 %v10660_v7  ;;  %v8973_v0 = vld [vmem:[%s15093_s11 + $0x210] sm:$0xff] }
 0xb89   : > { %v6994_v3 = vpop.f32.mrb[132].mxu0 }
 0xb8a   : > { %7461 = vmatmul.mubr.f32.gmra.mrb[196].mxu1 %v6994_v3  ;;  %v6996_v49 = vpop.f32.mrb[133].mxu0 }
 0xb8b   : > { %7466 = vmatprep.mubr.f32.mxu1 %v10660_v7  ;;  %v8976_v49 = vld [vmem:[%s15093_s11 + $0x228] sm:$0xff] }
 0xb8d   : > { %v6999_v39 = vpop.f32.mrb[134].mxu0 }
 0xb8e   : > { %7467 = vmatmul.mubr.f32.gmra.mrb[198].mxu1 %v6999_v39  ;;  %v7001_v28 = vpop.f32.mrb[135].mxu0  ;;  %v8978_v39 = vld [vmem:[%s15093_s11 + $0x238] sm:$0xff] }
 0xb8f   : > { %7472 = vmatprep.mubr.f32.mxu1 %v10660_v7 }
 0xb91   : > { %v7004_v42 = vpop.f32.mrb[136].mxu0 }
 0xb92   : > { %7473 = vmatmul.mubr.f32.gmra.mrb[200].mxu1 %v7004_v42  ;;  %v7006_v54 = vpop.f32.mrb[137].mxu0  ;;  %v10198_v42 = vpack.c.bf16 %v8973_v0, %v8971_v33  ;;  %v8989_v33 = vld [vmem:[%s15093_s11 + $0x290] sm:$0xff]  ;;  %v8992_v0 = vld [vmem:[%s15093_s11 + $0x2a8] sm:$0xff] }
 0xb93   : > { %7478 = vmatprep.mubr.f32.mxu1 %v10660_v7  ;;  %v10200_v54 = vpack.c.bf16 %v8978_v39, %v8976_v49 }
 0xb95   : > { %v7009_v40 = vpop.f32.mrb[138].mxu0 }
 0xb96   : > { %7479 = vmatmul.mubr.f32.gmra.mrb[202].mxu1 %v7009_v40  ;;  %v7011_v45 = vpop.f32.mrb[139].mxu0  ;;  %v8975_v40 = vld [vmem:[%s15093_s11 + $0x220] sm:$0xff] }
 0xb97   : > { %7484 = vmatprep.mubr.f32.mxu1 %v10660_v7  ;;  %v8977_v45 = vld [vmem:[%s15093_s11 + $0x230] sm:$0xff] }
 0xb98   : > { %v10202_v27 = vpack.c.bf16 %v8977_v45, %v8975_v40  ;;  %v8996_v40 = vld [vmem:[%s15093_s11 + $0x2c8] sm:$0xff] }
 0xb99   : > { %v7014_v17 = vpop.f32.mrb[140].mxu0 }
 0xb9a   : > { %7485 = vmatmul.mubr.f32.gmra.mrb[204].mxu1 %v7014_v17  ;;  %v7016_v51 = vpop.f32.mrb[141].mxu0  ;;  %v8980_v17 = vld [vmem:[%s15093_s11 + $0x248] sm:$0xff] }
 0xb9b   : > { %7490 = vmatprep.mubr.f32.mxu1 %v10660_v7  ;;  %v8982_v51 = vld [vmem:[%s15093_s11 + $0x258] sm:$0xff] }
 0xb9c   : > { %v10204_v50 = vpack.c.bf16 %v8982_v51, %v8980_v17 }
 0xb9d   : > { %v7019_v2 = vpop.f32.mrb[142].mxu0 }
 0xb9e   : > { %7491 = vmatmul.mubr.f32.gmra.mrb[206].mxu1 %v7019_v2  ;;  %v7021_v22 = vpop.f32.mrb[143].mxu0 }
 0xb9f   : > { %7496 = vmatprep.mubr.f32.mxu1 %v10660_v7 }
 0xba1   : > { %v7024_v10 = vpop.f32.mrb[144].mxu0 }
 0xba2   : > { %7497 = vmatmul.mubr.f32.gmra.mrb[208].mxu1 %v7024_v10  ;;  %v7026_v4 = vpop.f32.mrb[145].mxu0  ;;  %v8981_v10 = vld [vmem:[%s15093_s11 + $0x250] sm:$0xff] }
 0xba3   : > { %7502 = vmatprep.mubr.f32.mxu1 %v10660_v7  ;;  %v8984_v4 = vld [vmem:[%s15093_s11 + $0x268] sm:$0xff] }
 0xba5   : > { %v7029_v44 = vpop.f32.mrb[146].mxu0 }
 0xba6   : > { %7503 = vmatmul.mubr.f32.gmra.mrb[210].mxu1 %v7029_v44  ;;  %v7031_v46 = vpop.f32.mrb[147].mxu0 }
 0xba7   : > { %7508 = vmatprep.mubr.f32.mxu1 %v10660_v7 }
 0xba9   : > { %v7034_v34 = vpop.f32.mrb[148].mxu0 }
 0xbaa   : > { %7509 = vmatmul.mubr.f32.gmra.mrb[212].mxu1 %v7034_v34  ;;  %v7036_v14 = vpop.f32.mrb[149].mxu0  ;;  %v10206_v34 = vpack.c.bf16 %v8981_v10, %v8979_v20  ;;  %v9000_v20 = vld [vmem:[%s15093_s11 + $0x2e8] sm:$0xff] }
 0xbab   : > { %7514 = vmatprep.mubr.f32.mxu1 %v10660_v7 }
 0xbad   : > { %v7039_v55 = vpop.f32.mrb[150].mxu0 }
 0xbae   : > { %7515 = vmatmul.mubr.f32.gmra.mrb[214].mxu1 %v7039_v55  ;;  %v7041_v15 = vpop.f32.mrb[151].mxu0  ;;  %v8983_v55 = vld [vmem:[%s15093_s11 + $0x260] sm:$0xff] }
 0xbaf   : > { %7520 = vmatprep.mubr.f32.mxu1 %v10660_v7  ;;  %v8985_v15 = vld [vmem:[%s15093_s11 + $0x270] sm:$0xff] }
 0xbb1   : > { %v7044_v62 = vpop.f32.mrb[152].mxu0 }
 0xbb2   : > { %7521 = vmatmul.mubr.f32.gmra.mrb[216].mxu1 %v7044_v62  ;;  %v7046_v30 = vpop.f32.mrb[153].mxu0  ;;  %v8988_v62 = vld [vmem:[%s15093_s11 + $0x288] sm:$0xff] }
 0xbb3   : > { %7526 = vmatprep.mubr.f32.mxu1 %v10660_v7 }
 0xbb5   : > { %v7049_v19 = vpop.f32.mrb[154].mxu0 }
 0xbb6   : > { %7527 = vmatmul.mubr.f32.gmra.mrb[218].mxu1 %v7049_v19  ;;  %v7051_v5 = vpop.f32.mrb[155].mxu0 }
 0xbb7   : > { %7532 = vmatprep.mubr.f32.mxu1 %v10660_v7  ;;  %v10210_v5 = vpack.c.bf16 %v8985_v15, %v8983_v55 }
 0xbb9   : > { %v7054_v6 = vpop.f32.mrb[156].mxu0 }
 0xbba   : > { %7533 = vmatmul.mubr.f32.gmra.mrb[220].mxu1 %v7054_v6  ;;  %v7056_v53 = vpop.f32.mrb[157].mxu0 }
 0xbbb   : > { %7538 = vmatprep.mubr.f32.mxu1 %v10660_v7  ;;  %v8987_v53 = vld [vmem:[%s15093_s11 + $0x280] sm:$0xff] }
 0xbbc   : > { %v10214_v39 = vpack.c.bf16 %v8989_v33, %v8987_v53 }
 0xbbd   : > { %v7059_v3 = vpop.f32.mrb[158].mxu0 }
 0xbbe   : > { %7539 = vmatmul.mubr.f32.gmra.mrb[222].mxu1 %v7059_v3  ;;  %v7061_v28 = vpop.f32.mrb[159].mxu0 }
 0xbbf   : > { %7609 = vmatprep.mubr.f32.mxu1 %v10660_v7 }
 0xbc1   : > { %v14704_v2 = vpop.f32.mrb[160].mxu0 }
 0xbc2   : > { %7610 = vmatmul.mubr.f32.vlgmr.msra.gmra.mrb[160].mxu1 %v14232_v12  ;;  %v7066_v22 = vpop.f32.mrb[161].mxu0  ;;  %v8986_v12 = vld [vmem:[%s15093_s11 + $0x278] sm:$0xff] }
 0xbc3   : > { %7615 = vmatprep.mubr.f32.mxu1 %v10660_v7  ;;  %10199 = vmatpush1.bf16.msra.mxu1 %v10198_v42  ;;  %v10208_v14 = vpack.c.bf16 %v8986_v12, %v8984_v4  ;;  %v8991_v42 = vld [vmem:[%s15093_s11 + $0x2a0] sm:$0xff] }
 0xbc4   : > { %10201 = vmatprep.subr.bf16.mxu1 %v10200_v54  ;;  %v8993_v54 = vld [vmem:[%s15093_s11 + $0x2b0] sm:$0xff] }
 0xbc5   : > { %v14720_v44 = vpop.f32.mrb[162].mxu0  ;;  %v10218_v51 = vpack.c.bf16 %v8993_v54, %v8991_v42 }
 0xbc6   : > { %7616 = vmatmul.mubr.f32.gmra.mrb[162].mxu1 %v14241_v16  ;;  %v7071_v46 = vpop.f32.mrb[163].mxu0  ;;  %v8990_v16 = vld [vmem:[%s15093_s11 + $0x298] sm:$0xff] }
 0xbc7   : > { %7621 = vmatprep.mubr.f32.mxu1 %v10660_v7  ;;  %10203 = vmatpush1.bf16.msra.mxu1 %v10202_v27  ;;  %v10212_v6 = vpack.c.bf16 %v8990_v16, %v8988_v62  ;;  %v8995_v27 = vld [vmem:[%s15093_s11 + $0x2c0] sm:$0xff] }
 0xbc8   : > { %10205 = vmatprep.subr.bf16.mxu1 %v10204_v50  ;;  %v8997_v50 = vld [vmem:[%s15093_s11 + $0x2d0] sm:$0xff] }
 0xbc9   : > { %v14736_v30 = vpop.f32.mrb[164].mxu0  ;;  %v10222_v12 = vpack.c.bf16 %v8997_v50, %v8995_v27 }
 0xbca   : > { %7622 = vmatmul.mubr.f32.gmra.mrb[164].mxu1 %v14249_v56  ;;  %v7076_v19 = vpop.f32.mrb[165].mxu0  ;;  %v8994_v56 = vld [vmem:[%s15093_s11 + $0x2b8] sm:$0xff] }
 0xbcb   : > { %7627 = vmatprep.mubr.f32.mxu1 %v10660_v7  ;;  %10207 = vmatpush1.bf16.msra.mxu1 %v10206_v34  ;;  %v10216_v28 = vpack.c.bf16 %v8994_v56, %v8992_v0  ;;  %v8999_v34 = vld [vmem:[%s15093_s11 + $0x2e0] sm:$0xff] }
 0xbcc   : > { %10209 = vmatprep.subr.bf16.mxu1 %v10208_v14  ;;  %v9001_v14 = vld [vmem:[%s15093_s11 + $0x2f0] sm:$0xff] }
 0xbcd   : > { %v14752_v3 = vpop.f32.mrb[166].mxu0  ;;  %v10226_v15 = vpack.c.bf16 %v9001_v14, %v8999_v34 }
 0xbce   : > { %7628 = vmatmul.mubr.f32.gmra.mrb[166].mxu1 %v14257_v35  ;;  %v7081_v49 = vpop.f32.mrb[167].mxu0  ;;  %v8998_v35 = vld [vmem:[%s15093_s11 + $0x2d8] sm:$0xff] }
 0xbcf   : > { %7633 = vmatprep.mubr.f32.mxu1 %v10660_v7  ;;  %10211 = vmatpush1.bf16.msra.mxu1 %v10210_v5  ;;  %v10220_v22 = vpack.c.bf16 %v8998_v35, %v8996_v40 }
 0xbd0   : > { %10213 = vmatprep.subr.bf16.mxu1 %v10212_v6 }
 0xbd1   : > { %v14768_v45 = vpop.f32.mrb[168].mxu0 }
 0xbd2   : > { %7634 = vmatmul.mubr.f32.gmra.mrb[168].mxu1 %v14265_v24  ;;  %v7086_v17 = vpop.f32.mrb[169].mxu0  ;;  %v9002_v24 = vld [vmem:[%s15093_s11 + $0x2f8] sm:$0xff] }
 0xbd3   : > { %7639 = vmatprep.mubr.f32.mxu1 %v10660_v7  ;;  %10215 = vmatpush1.bf16.msra.mxu1 %v10214_v39  ;;  %v10224_v46 = vpack.c.bf16 %v9002_v24, %v9000_v20 }
 0xbd4   : > { %10217 = vmatprep.subr.bf16.mxu1 %v10216_v28 }
 0xbd5   : > { %v14784_v10 = vpop.f32.mrb[170].mxu0 }
 0xbd6   : > { %7640 = vmatmul.mubr.f32.gmra.mrb[170].mxu1 %v14273_v31  ;;  %v7091_v4 = vpop.f32.mrb[171].mxu0 }
 0xbd7   : > { %7645 = vmatprep.mubr.f32.mxu1 %v10660_v7  ;;  %10219 = vmatpush1.bf16.msra.mxu1 %v10218_v51 }
 0xbd8   : > { %10221 = vmatprep.subr.bf16.mxu1 %v10220_v22 }
 0xbd9   : > { %v14794_v55 = vpop.f32.mrb[172].mxu0 }
 0xbda   : > { %7646 = vmatmul.mubr.f32.gmra.mrb[172].mxu1 %v14281_v61  ;;  %v7096_v31 = vpop.f32.mrb[173].mxu0 }
 0xbdb   : > { %7651 = vmatprep.mubr.f32.mxu1 %v10660_v7  ;;  %10223 = vmatpush1.bf16.msra.mxu1 %v10222_v12 }
 0xbdc   : > { %10225 = vmatprep.subr.bf16.mxu1 %v10224_v46 }
 0xbdd   : > { %v14798_v62 = vpop.f32.mrb[174].mxu0 }
 0xbde   : > { %7652 = vmatmul.mubr.f32.gmra.mrb[174].mxu1 %v14289_v52  ;;  %v7101_v16 = vpop.f32.mrb[175].mxu0 }
 0xbdf   : > { %7657 = vmatprep.mubr.f32.mxu1 %v10660_v7  ;;  %10227 = vmatpush1.bf16.msra.mxu1 %v10226_v15 }
 0xbe1   : > { %v14802_v19 = vpop.f32.mrb[176].mxu0 }
 0xbe2   : > { %7658 = vmatmul.mubr.f32.gmra.mrb[176].mxu1 %v14297_v37  ;;  %v7106_v5 = vpop.f32.mrb[177].mxu0 }
 0xbe3   : > { %7663 = vmatprep.mubr.f32.mxu1 %v10660_v7 }
 0xbe5   : > { %v14806_v61 = vpop.f32.mrb[178].mxu0 }
 0xbe6   : > { %7664 = vmatmul.mubr.f32.gmra.mrb[178].mxu1 %v14305_v43  ;;  %v7111_v6 = vpop.f32.mrb[179].mxu0 }
 0xbe7   : > { %7669 = vmatprep.mubr.f32.mxu1 %v10660_v7 }
 0xbe9   : > { %v14810_v53 = vpop.f32.mrb[180].mxu0 }
 0xbea   : > { %7670 = vmatmul.mubr.f32.gmra.mrb[180].mxu1 %v14310_v38  ;;  %v7116_v52 = vpop.f32.mrb[181].mxu0 }
 0xbeb   : > { %7675 = vmatprep.mubr.f32.mxu1 %v10660_v7 }
 0xbed   : > { %v14814_v33 = vpop.f32.mrb[182].mxu0 }
 0xbee   : > { %7676 = vmatmul.mubr.f32.gmra.mrb[182].mxu1 %v14318_v9  ;;  %v7121_v37 = vpop.f32.mrb[183].mxu0 }
 0xbef   : > { %7681 = vmatprep.mubr.f32.mxu1 %v10660_v7 }
 0xbf1   : > { %v14818_v0 = vpop.f32.mrb[184].mxu0 }
 0xbf2   : > { %7682 = vmatmul.mubr.f32.gmra.mrb[184].mxu1 %v14326_v21  ;;  %v7126_v43 = vpop.f32.mrb[185].mxu0 }
 0xbf3   : > { %7687 = vmatprep.mubr.f32.mxu1 %v10660_v7 }
 0xbf5   : > { %v14822_v56 = vpop.f32.mrb[186].mxu0 }
 0xbf6   : > { %7688 = vmatmul.mubr.f32.gmra.mrb[186].mxu1 %v14334_v59  ;;  %v7131_v38 = vpop.f32.mrb[187].mxu0 }
 0xbf7   : > { %7693 = vmatprep.mubr.f32.mxu1 %v10660_v7 }
 0xbf9   : > { %v14826_v49 = vpop.f32.mrb[188].mxu0 }
 0xbfa   : > { %7694 = vmatmul.mubr.f32.gmra.mrb[188].mxu1 %v14342_v13  ;;  %v7136_v9 = vpop.f32.mrb[189].mxu0 }
 0xbfb   : > { %7699 = vmatprep.mubr.f32.mxu1 %v10660_v7 }
 0xbfd   : > { %v14830_v39 = vpop.f32.mrb[190].mxu0 }
 0xbfe   : > { %7700 = vmatmul.mubr.f32.gmra.mrb[190].mxu1 %v14350_v47  ;;  %v7141_v21 = vpop.f32.mrb[191].mxu0 }
 0xbff   : > { %7705 = vmatprep.mubr.f32.mxu1 %v10660_v7 }
 0xc01   : > { %v14834_v28 = vpop.f32.mrb[192].mxu0 }
 0xc02   : > { %7706 = vmatmul.mubr.f32.gmra.mrb[192].mxu1 %v14358_v57  ;;  %v7146_v59 = vpop.f32.mrb[193].mxu0 }
 0xc03   : > { %7711 = vmatprep.mubr.f32.mxu1 %v10660_v7 }
 0xc05   : > { %v14838_v42 = vpop.f32.mrb[194].mxu0 }
 0xc06   : > { %7712 = vmatmul.mubr.f32.gmra.mrb[194].mxu1 %v14366_v48  ;;  %v7151_v13 = vpop.f32.mrb[195].mxu0 }
 0xc07   : > { %7717 = vmatprep.mubr.f32.mxu1 %v10660_v7 }
 0xc09   : > { %v14842_v54 = vpop.f32.mrb[196].mxu0 }
 0xc0a   : > { %7718 = vmatmul.mubr.f32.gmra.mrb[196].mxu1 %v14374_v32  ;;  %v7156_v47 = vpop.f32.mrb[197].mxu0 }
 0xc0b   : > { %7723 = vmatprep.mubr.f32.mxu1 %v10660_v7 }
 0xc0d   : > { %v14846_v40 = vpop.f32.mrb[198].mxu0 }
 0xc0e   : > { %7724 = vmatmul.mubr.f32.gmra.mrb[198].mxu1 %v14382_v23  ;;  %v7161_v57 = vpop.f32.mrb[199].mxu0 }
 0xc0f   : > { %7729 = vmatprep.mubr.f32.mxu1 %v10660_v7 }
 0xc11   : > { %v14850_v35 = vpop.f32.mrb[200].mxu0 }
 0xc12   : > { %7730 = vmatmul.mubr.f32.gmra.mrb[200].mxu1 %v14390_v18  ;;  %v7166_v48 = vpop.f32.mrb[201].mxu0 }
 0xc13   : > { %7735 = vmatprep.mubr.f32.mxu1 %v10660_v7 }
 0xc15   : > { %v14854_v17 = vpop.f32.mrb[202].mxu0 }
 0xc16   : > { %7736 = vmatmul.mubr.f32.gmra.mrb[202].mxu1 %v14398_v8  ;;  %v7171_v32 = vpop.f32.mrb[203].mxu0 }
 0xc17   : > { %7741 = vmatprep.mubr.f32.mxu1 %v10660_v7 }
 0xc19   : > { %v14858_v51 = vpop.f32.mrb[204].mxu0 }
 0xc1a   : > { %7742 = vmatmul.mubr.f32.gmra.mrb[204].mxu1 %v14406_v41  ;;  %v7176_v23 = vpop.f32.mrb[205].mxu0 }
 0xc1b   : > { %7747 = vmatprep.mubr.f32.mxu1 %v10660_v7 }
 0xc1d   : > { %v14862_v22 = vpop.f32.mrb[206].mxu0 }
 0xc1e   : > { %7748 = vmatmul.mubr.f32.gmra.mrb[206].mxu1 %v14414_v60  ;;  %v7181_v18 = vpop.f32.mrb[207].mxu0 }
 0xc1f   : > { %7753 = vmatprep.mubr.f32.mxu1 %v10660_v7 }
 0xc21   : > { %v14866_v27 = vpop.f32.mrb[208].mxu0 }
 0xc22   : > { %7754 = vmatmul.mubr.f32.gmra.mrb[208].mxu1 %v14428_v63  ;;  %v7186_v8 = vpop.f32.mrb[209].mxu0 }
 0xc23   : > { %7759 = vmatprep.mubr.f32.mxu1 %v10660_v7 }
 0xc25   : > { %v14870_v50 = vpop.f32.mrb[210].mxu0 }
 0xc26   : > { %7760 = vmatmul.mubr.f32.gmra.mrb[210].mxu1 %v14436_v29  ;;  %v7191_v41 = vpop.f32.mrb[211].mxu0 }
 0xc27   : > { %7765 = vmatprep.mubr.f32.mxu1 %v10660_v7 }
 0xc29   : > { %v14874_v20 = vpop.f32.mrb[212].mxu0 }
 0xc2a   : > { %7766 = vmatmul.mubr.f32.gmra.mrb[212].mxu1 %v14444_v25  ;;  %v7196_v60 = vpop.f32.mrb[213].mxu0 }
 0xc2b   : > { %7771 = vmatprep.mubr.f32.mxu1 %v10660_v7 }
 0xc2d   : > { %v14878_v24 = vpop.f32.mrb[214].mxu0 }
 0xc2e   : > { %7772 = vmatmul.mubr.f32.gmra.mrb[214].mxu1 %v14452_v11  ;;  %v7201_v63 = vpop.f32.mrb[215].mxu0 }
 0xc2f   : > { %7777 = vmatprep.mubr.f32.mxu1 %v10660_v7 }
 0xc31   : > { %v14882_v4 = vpop.f32.mrb[216].mxu0 }
 0xc32   : > { %7778 = vmatmul.mubr.f32.gmra.mrb[216].mxu1 %v14460_v58  ;;  %v7206_v29 = vpop.f32.mrb[217].mxu0 }
 0xc33   : > { %7783 = vmatprep.mubr.f32.mxu1 %v10660_v7 }
 0xc35   : > { %v14886_v12 = vpop.f32.mrb[218].mxu0 }
 0xc36   : > { %7784 = vmatmul.mubr.f32.gmra.mrb[218].mxu1 %v14468_v36  ;;  %v7211_v25 = vpop.f32.mrb[219].mxu0  ;;  %v8191_v36 = vpop.permute.xlu0 %8190 }
 0xc37   : > { %7789 = vmatprep.mubr.f32.mxu1 %v10660_v7 }
 0xc39   : > { %v14890_v46 = vpop.f32.mrb[220].mxu0 }
 0xc3a   : > { %7790 = vmatmul.mubr.f32.gmra.mrb[220].mxu1 %v14476_v26  ;;  %v7216_v11 = vpop.f32.mrb[221].mxu0  ;;  %v8201_v15 = vpop.permute.xlu0 %8200 }
 0xc3b   : > { %7795 = vmatprep.mubr.f32.mxu1 %v10660_v7 }
 0xc3d   : > { %v14894_v34 = vpop.f32.mrb[222].mxu0 }
 0xc3e   : > { %7796 = vmatmul.mubr.f32.gmra.mrb[222].mxu1 %v14490_v1  ;;  %v7221_v58 = vpop.f32.mrb[223].mxu0  ;;  %v8211_v38 = vpop.permute.xlu0 %8210 }
 0xc3f   : > { %7899 = vmatprep.mubr.f32.mxu1 %v10660_v7 }
 0xc42   : > { %7900 = vmatmul.mubr.f32.vlgmr.msra.gmra.mrb[160].mxu1 %v14704_v2  ;;  %v8221_v48 = vpop.permute.xlu0 %8220 }
 0xc43   : > { %7905 = vmatprep.mubr.f32.mxu1 %v10660_v7 }
 0xc46   : > { %7906 = vmatmul.mubr.f32.gmra.mrb[162].mxu1 %v14720_v44  ;;  %v8231_v63 = vpop.permute.xlu0 %8230 }
 0xc47   : > { %7911 = vmatprep.mubr.f32.mxu1 %v10660_v7 }
 0xc4a   : > { %7912 = vmatmul.mubr.f32.gmra.mrb[164].mxu1 %v14736_v30 }
 0xc4b   : > { %7917 = vmatprep.mubr.f32.mxu1 %v10660_v7 }
 0xc4e   : > { %7918 = vmatmul.mubr.f32.gmra.mrb[166].mxu1 %v14752_v3  ;;  %v8196_v3 = vpop.permute.xlu1 %8195 }
 0xc4f   : > { %7923 = vmatprep.mubr.f32.mxu1 %v10660_v7 }
 0xc52   : > { %7924 = vmatmul.mubr.f32.gmra.mrb[168].mxu1 %v14768_v45 }
 0xc53   : > { %7929 = vmatprep.mubr.f32.mxu1 %v10660_v7 }
 0xc56   : > { %7930 = vmatmul.mubr.f32.gmra.mrb[170].mxu1 %v14784_v10 }
 0xc57   : > { %7935 = vmatprep.mubr.f32.mxu1 %v10660_v7 }
 0xc5a   : > { %7936 = vmatmul.mubr.f32.gmra.mrb[172].mxu1 %v14794_v55 }
 0xc5b   : > { %7941 = vmatprep.mubr.f32.mxu1 %v10660_v7 }
 0xc5e   : > { %7942 = vmatmul.mubr.f32.gmra.mrb[174].mxu1 %v14798_v62 }
 0xc5f   : > { %7947 = vmatprep.mubr.f32.mxu1 %v10660_v7 }
 0xc62   : > { %7948 = vmatmul.mubr.f32.gmra.mrb[176].mxu1 %v14802_v19 }
 0xc63   : > { %7953 = vmatprep.mubr.f32.mxu1 %v10660_v7 }
 0xc66   : > { %7954 = vmatmul.mubr.f32.gmra.mrb[178].mxu1 %v14806_v61 }
 0xc67   : > { %7959 = vmatprep.mubr.f32.mxu1 %v10660_v7 }
 0xc6a   : > { %7960 = vmatmul.mubr.f32.gmra.mrb[180].mxu1 %v14810_v53  ;;  %v8206_v53 = vpop.permute.xlu1 %8205 }
 0xc6b   : > { %7965 = vmatprep.mubr.f32.mxu1 %v10660_v7 }
 0xc6e   : > { %7966 = vmatmul.mubr.f32.gmra.mrb[182].mxu1 %v14814_v33 }
 0xc6f   : > { %7971 = vmatprep.mubr.f32.mxu1 %v10660_v7 }
 0xc72   : > { %7972 = vmatmul.mubr.f32.gmra.mrb[184].mxu1 %v14818_v0 }
 0xc73   : > { %7977 = vmatprep.mubr.f32.mxu1 %v10660_v7 }
 0xc76   : > { %7978 = vmatmul.mubr.f32.gmra.mrb[186].mxu1 %v14822_v56 }
 0xc77   : > { %7983 = vmatprep.mubr.f32.mxu1 %v10660_v7 }
 0xc7a   : > { %7984 = vmatmul.mubr.f32.gmra.mrb[188].mxu1 %v14826_v49 }
 0xc7b   : > { %7989 = vmatprep.mubr.f32.mxu1 %v10660_v7 }
 0xc7e   : > { %7990 = vmatmul.mubr.f32.gmra.mrb[190].mxu1 %v14830_v39 }
 0xc7f   : > { %7995 = vmatprep.mubr.f32.mxu1 %v10660_v7 }
 0xc82   : > { %7996 = vmatmul.mubr.f32.gmra.mrb[192].mxu1 %v14834_v28 }
 0xc83   : > { %8001 = vmatprep.mubr.f32.mxu1 %v10660_v7 }
 0xc86   : > { %8002 = vmatmul.mubr.f32.gmra.mrb[194].mxu1 %v14838_v42  ;;  %v8216_v42 = vpop.permute.xlu1 %8215 }
 0xc87   : > { %8007 = vmatprep.mubr.f32.mxu1 %v10660_v7 }
 0xc8a   : > { %8008 = vmatmul.mubr.f32.gmra.mrb[196].mxu1 %v14842_v54 }
 0xc8b   : > { %8013 = vmatprep.mubr.f32.mxu1 %v10660_v7 }
 0xc8e   : > { %8014 = vmatmul.mubr.f32.gmra.mrb[198].mxu1 %v14846_v40 }
 0xc8f   : > { %8019 = vmatprep.mubr.f32.mxu1 %v10660_v7 }
 0xc92   : > { %8020 = vmatmul.mubr.f32.gmra.mrb[200].mxu1 %v14850_v35 }
 0xc93   : > { %8025 = vmatprep.mubr.f32.mxu1 %v10660_v7 }
 0xc96   : > { %8026 = vmatmul.mubr.f32.gmra.mrb[202].mxu1 %v14854_v17 }
 0xc97   : > { %8031 = vmatprep.mubr.f32.mxu1 %v10660_v7 }
 0xc9a   : > { %8032 = vmatmul.mubr.f32.gmra.mrb[204].mxu1 %v14858_v51 }
 0xc9b   : > { %8037 = vmatprep.mubr.f32.mxu1 %v10660_v7 }
 0xc9e   : > { %8038 = vmatmul.mubr.f32.gmra.mrb[206].mxu1 %v14862_v22 }
 0xc9f   : > { %8043 = vmatprep.mubr.f32.mxu1 %v10660_v7 }
 0xca2   : > { %8044 = vmatmul.mubr.f32.gmra.mrb[208].mxu1 %v14866_v27  ;;  %v8226_v27 = vpop.permute.xlu1 %8225 }
 0xca3   : > { %8049 = vmatprep.mubr.f32.mxu1 %v10660_v7 }
 0xca6   : > { %8050 = vmatmul.mubr.f32.gmra.mrb[210].mxu1 %v14870_v50 }
 0xca7   : > { %8055 = vmatprep.mubr.f32.mxu1 %v10660_v7 }
 0xcaa   : > { %8056 = vmatmul.mubr.f32.gmra.mrb[212].mxu1 %v14874_v20 }
 0xcab   : > { %8061 = vmatprep.mubr.f32.mxu1 %v10660_v7 }
 0xcae   : > { %8062 = vmatmul.mubr.f32.gmra.mrb[214].mxu1 %v14878_v24 }
 0xcaf   : > { %8067 = vmatprep.mubr.f32.mxu1 %v10660_v7 }
 0xcb2   : > { %8068 = vmatmul.mubr.f32.gmra.mrb[216].mxu1 %v14882_v4 }
 0xcb3   : > { %8073 = vmatprep.mubr.f32.mxu1 %v10660_v7 }
 0xcb6   : > { %8074 = vmatmul.mubr.f32.gmra.mrb[218].mxu1 %v14886_v12 }
 0xcb7   : > { %8079 = vmatprep.mubr.f32.mxu1 %v10660_v7 }
 0xcba   : > { %8080 = vmatmul.mubr.f32.gmra.mrb[220].mxu1 %v14890_v46 }
 0xcbb   : > { %8085 = vmatprep.mubr.f32.mxu1 %v10660_v7 }
 0xcbe   : > { %8086 = vmatmul.mubr.f32.gmra.mrb[222].mxu1 %v14894_v34  ;;  %v8236_v34 = vpop.permute.xlu1 %8235 }
 0xd15   : > { %v7901_v26 = vpop.f32.mrb[160].mxu1 }
 0xd16   : > { %v8348_v1 = vadd.f32 %v8191_v36, %v7901_v26  ;;  %v7903_v2 = vpop.f32.mrb[161].mxu1 }
 0xd17   : > { %v8349_v44 = vadd.f32 %v8191_v36, %v7903_v2 }
 0xd18   : > { %v8412_v30 = vmax.f32 %v8348_v1, 0.0 }
 0xd19   : > { %v8413_v45 = vmax.f32 %v8349_v44, 0.0  ;;  %v7907_v10 = vpop.f32.mrb[162].mxu1 }
 0xd1a   : > { %8476 = vst [vmem:[%s14964_s20] sm:$0xff] %v8412_v30  ;;  %v8350_v7 = vadd.f32 %v8196_v3, %v7907_v10  ;;  %v7909_v14 = vpop.f32.mrb[163].mxu1  ;;  %v8241_v30 = vpop.permute.xlu0 %8240 }
 0xd1b   : > { %8477 = vst [vmem:[%s14964_s20 + $0x8] sm:$0xff] %v8413_v45  ;;  %v8351_v55 = vadd.f32 %v8196_v3, %v7909_v14 }
 0xd1c   : > { %v8414_v31 = vmax.f32 %v8350_v7, 0.0 }
 0xd1d   : > { %v8415_v62 = vmax.f32 %v8351_v55, 0.0  ;;  %v7913_v16 = vpop.f32.mrb[164].mxu1 }
 0xd1e   : > { %8478 = vst [vmem:[%s14964_s20 + $0x10] sm:$0xff] %v8414_v31  ;;  %v8352_v19 = vadd.f32 %v8201_v15, %v7913_v16  ;;  %v7915_v5 = vpop.f32.mrb[165].mxu1  ;;  %v8246_v31 = vpop.permute.xlu1 %8245 }
 0xd1f   : > { %8479 = vst [vmem:[%s14964_s20 + $0x18] sm:$0xff] %v8415_v62  ;;  %v8353_v61 = vadd.f32 %v8201_v15, %v7915_v5 }
 0xd20   : > { %v8416_v6 = vmax.f32 %v8352_v19, 0.0 }
 0xd21   : > { %v8417_v52 = vmax.f32 %v8353_v61, 0.0  ;;  %v7919_v33 = vpop.f32.mrb[166].mxu1 }
 0xd22   : > { %8480 = vst [vmem:[%s14964_s20 + $0x20] sm:$0xff] %v8416_v6  ;;  %v8354_v37 = vadd.f32 %v8206_v53, %v7919_v33  ;;  %v7921_v0 = vpop.f32.mrb[167].mxu1  ;;  %v8251_v6 = vpop.permute.xlu0 %8250 }
 0xd23   : > { %8481 = vst [vmem:[%s14964_s20 + $0x28] sm:$0xff] %v8417_v52  ;;  %v8355_v43 = vadd.f32 %v8206_v53, %v7921_v0 }
 0xd24   : > { %v8418_v56 = vmax.f32 %v8354_v37, 0.0 }
 0xd25   : > { %v8419_v49 = vmax.f32 %v8355_v43, 0.0  ;;  %v7925_v9 = vpop.f32.mrb[168].mxu1 }
 0xd26   : > { %8482 = vst [vmem:[%s14964_s20 + $0x30] sm:$0xff] %v8418_v56  ;;  %v8356_v39 = vadd.f32 %v8211_v38, %v7925_v9  ;;  %v7927_v21 = vpop.f32.mrb[169].mxu1  ;;  %v8256_v56 = vpop.permute.xlu1 %8255 }
 0xd27   : > { %8483 = vst [vmem:[%s14964_s20 + $0x38] sm:$0xff] %v8419_v49  ;;  %v8357_v28 = vadd.f32 %v8211_v38, %v7927_v21 }
 0xd28   : > { %v8420_v59 = vmax.f32 %v8356_v39, 0.0 }
 0xd29   : > { %v8421_v13 = vmax.f32 %v8357_v28, 0.0  ;;  %v7931_v54 = vpop.f32.mrb[170].mxu1 }
 0xd2a   : > { %8484 = vst [vmem:[%s14964_s20 + $0x40] sm:$0xff] %v8420_v59  ;;  %v8358_v47 = vadd.f32 %v8216_v42, %v7931_v54  ;;  %v7933_v40 = vpop.f32.mrb[171].mxu1  ;;  %v8261_v59 = vpop.permute.xlu0 %8260 }
 0xd2b   : > { %8485 = vst [vmem:[%s14964_s20 + $0x48] sm:$0xff] %v8421_v13  ;;  %v8359_v57 = vadd.f32 %v8216_v42, %v7933_v40 }
 0xd2c   : > { %v8422_v35 = vmax.f32 %v8358_v47, 0.0 }
 0xd2d   : > { %v8423_v17 = vmax.f32 %v8359_v57, 0.0  ;;  %v7937_v32 = vpop.f32.mrb[172].mxu1 }
 0xd2e   : > { %8486 = vst [vmem:[%s14964_s20 + $0x50] sm:$0xff] %v8422_v35  ;;  %v8360_v51 = vadd.f32 %v8221_v48, %v7937_v32  ;;  %v7939_v23 = vpop.f32.mrb[173].mxu1  ;;  %v8266_v35 = vpop.permute.xlu1 %8265 }
 0xd2f   : > { %8487 = vst [vmem:[%s14964_s20 + $0x58] sm:$0xff] %v8423_v17  ;;  %v8361_v22 = vadd.f32 %v8221_v48, %v7939_v23 }
 0xd30   : > { %v8424_v18 = vmax.f32 %v8360_v51, 0.0 }
 0xd31   : > { %v8425_v8 = vmax.f32 %v8361_v22, 0.0  ;;  %v7943_v50 = vpop.f32.mrb[174].mxu1 }
 0xd32   : > { %8488 = vst [vmem:[%s14964_s20 + $0x60] sm:$0xff] %v8424_v18  ;;  %v8362_v41 = vadd.f32 %v8226_v27, %v7943_v50  ;;  %v7945_v20 = vpop.f32.mrb[175].mxu1  ;;  %v8271_v18 = vpop.permute.xlu0 %8270 }
 0xd33   : > { %8489 = vst [vmem:[%s14964_s20 + $0x68] sm:$0xff] %v8425_v8  ;;  %v8363_v60 = vadd.f32 %v8226_v27, %v7945_v20 }
 0xd34   : > { %v8426_v24 = vmax.f32 %v8362_v41, 0.0 }
 0xd35   : > { %v8427_v4 = vmax.f32 %v8363_v60, 0.0  ;;  %v7949_v29 = vpop.f32.mrb[176].mxu1 }
 0xd36   : > { %8490 = vst [vmem:[%s14964_s20 + $0x70] sm:$0xff] %v8426_v24  ;;  %v8364_v12 = vadd.f32 %v8231_v63, %v7949_v29  ;;  %v7951_v25 = vpop.f32.mrb[177].mxu1  ;;  %v8276_v24 = vpop.permute.xlu1 %8275 }
 0xd37   : > { %8491 = vst [vmem:[%s14964_s20 + $0x78] sm:$0xff] %v8427_v4  ;;  %v8365_v46 = vadd.f32 %v8231_v63, %v7951_v25 }
 0xd38   : > { %v8428_v11 = vmax.f32 %v8364_v12, 0.0 }
 0xd39   : > { %v8429_v58 = vmax.f32 %v8365_v46, 0.0  ;;  %v7955_v36 = vpop.f32.mrb[178].mxu1 }
 0xd3a   : > { %8492 = vst [vmem:[%s14964_s20 + $0x80] sm:$0xff] %v8428_v11  ;;  %v8366_v26 = vadd.f32 %v8236_v34, %v7955_v36  ;;  %v7957_v1 = vpop.f32.mrb[179].mxu1  ;;  %v8281_v11 = vpop.permute.xlu0 %8280 }
 0xd3b   : > { %8493 = vst [vmem:[%s14964_s20 + $0x88] sm:$0xff] %v8429_v58  ;;  %v8367_v2 = vadd.f32 %v8236_v34, %v7957_v1 }
 0xd3c   : > { %v8430_v44 = vmax.f32 %v8366_v26, 0.0 }
 0xd3d   : > { %v8431_v3 = vmax.f32 %v8367_v2, 0.0  ;;  %v7961_v45 = vpop.f32.mrb[180].mxu1 }
 0xd3e   : > { %8494 = vst [vmem:[%s14964_s20 + $0x90] sm:$0xff] %v8430_v44  ;;  %v8368_v10 = vadd.f32 %v8241_v30, %v7961_v45  ;;  %v7963_v7 = vpop.f32.mrb[181].mxu1  ;;  %v8286_v44 = vpop.permute.xlu1 %8285 }
 0xd3f   : > { %8495 = vst [vmem:[%s14964_s20 + $0x98] sm:$0xff] %v8431_v3  ;;  %v8369_v14 = vadd.f32 %v8241_v30, %v7963_v7 }
 0xd40   : > { %v8432_v55 = vmax.f32 %v8368_v10, 0.0 }
 0xd41   : > { %v8433_v15 = vmax.f32 %v8369_v14, 0.0  ;;  %v7967_v62 = vpop.f32.mrb[182].mxu1 }
 0xd42   : > { %8496 = vst [vmem:[%s14964_s20 + $0xa0] sm:$0xff] %v8432_v55  ;;  %v8370_v16 = vadd.f32 %v8246_v31, %v7967_v62  ;;  %v7969_v19 = vpop.f32.mrb[183].mxu1  ;;  %v8291_v55 = vpop.permute.xlu0 %8290 }
 0xd43   : > { %8497 = vst [vmem:[%s14964_s20 + $0xa8] sm:$0xff] %v8433_v15  ;;  %v8371_v5 = vadd.f32 %v8246_v31, %v7969_v19 }
 0xd44   : > { %v8434_v61 = vmax.f32 %v8370_v16, 0.0 }
 0xd45   : > { %v8435_v53 = vmax.f32 %v8371_v5, 0.0  ;;  %v7973_v52 = vpop.f32.mrb[184].mxu1 }
 0xd46   : > { %8498 = vst [vmem:[%s14964_s20 + $0xb0] sm:$0xff] %v8434_v61  ;;  %v8372_v33 = vadd.f32 %v8251_v6, %v7973_v52  ;;  %v7975_v37 = vpop.f32.mrb[185].mxu1  ;;  %v8296_v61 = vpop.permute.xlu1 %8295 }
 0xd47   : > { %8499 = vst [vmem:[%s14964_s20 + $0xb8] sm:$0xff] %v8435_v53  ;;  %v8373_v0 = vadd.f32 %v8251_v6, %v7975_v37 }
 0xd48   : > { %v8436_v43 = vmax.f32 %v8372_v33, 0.0 }
 0xd49   : > { %v8437_v38 = vmax.f32 %v8373_v0, 0.0  ;;  %v7979_v49 = vpop.f32.mrb[186].mxu1 }
 0xd4a   : > { %8500 = vst [vmem:[%s14964_s20 + $0xc0] sm:$0xff] %v8436_v43  ;;  %v8374_v9 = vadd.f32 %v8256_v56, %v7979_v49  ;;  %v7981_v39 = vpop.f32.mrb[187].mxu1  ;;  %v8301_v43 = vpop.permute.xlu0 %8300 }
 0xd4b   : > { %8501 = vst [vmem:[%s14964_s20 + $0xc8] sm:$0xff] %v8437_v38  ;;  %v8375_v21 = vadd.f32 %v8256_v56, %v7981_v39 }
 0xd4c   : > { %v8438_v28 = vmax.f32 %v8374_v9, 0.0 }
 0xd4d   : > { %v8439_v42 = vmax.f32 %v8375_v21, 0.0  ;;  %v7985_v13 = vpop.f32.mrb[188].mxu1 }
 0xd4e   : > { %8502 = vst [vmem:[%s14964_s20 + $0xd0] sm:$0xff] %v8438_v28  ;;  %v8376_v54 = vadd.f32 %v8261_v59, %v7985_v13  ;;  %v7987_v47 = vpop.f32.mrb[189].mxu1  ;;  %v8306_v28 = vpop.permute.xlu1 %8305 }
 0xd4f   : > { %8503 = vst [vmem:[%s14964_s20 + $0xd8] sm:$0xff] %v8439_v42  ;;  %v8377_v40 = vadd.f32 %v8261_v59, %v7987_v47 }
 0xd50   : > { %v8440_v57 = vmax.f32 %v8376_v54, 0.0 }
 0xd51   : > { %v8441_v48 = vmax.f32 %v8377_v40, 0.0  ;;  %v7991_v17 = vpop.f32.mrb[190].mxu1 }
 0xd52   : > { %8504 = vst [vmem:[%s14964_s20 + $0xe0] sm:$0xff] %v8440_v57  ;;  %v8378_v32 = vadd.f32 %v8266_v35, %v7991_v17  ;;  %v7993_v51 = vpop.f32.mrb[191].mxu1  ;;  %v8311_v57 = vpop.permute.xlu0 %8310 }
 0xd53   : > { %8505 = vst [vmem:[%s14964_s20 + $0xe8] sm:$0xff] %v8441_v48  ;;  %v8379_v23 = vadd.f32 %v8266_v35, %v7993_v51 }
 0xd54   : > { %v8442_v22 = vmax.f32 %v8378_v32, 0.0 }
 0xd55   : > { %v8443_v27 = vmax.f32 %v8379_v23, 0.0  ;;  %v7997_v8 = vpop.f32.mrb[192].mxu1 }
 0xd56   : > { %8506 = vst [vmem:[%s14964_s20 + $0xf0] sm:$0xff] %v8442_v22  ;;  %v8380_v50 = vadd.f32 %v8271_v18, %v7997_v8  ;;  %v7999_v41 = vpop.f32.mrb[193].mxu1  ;;  %v8316_v22 = vpop.permute.xlu1 %8315 }
 0xd57   : > { %8507 = vst [vmem:[%s14964_s20 + $0xf8] sm:$0xff] %v8443_v27  ;;  %v8381_v20 = vadd.f32 %v8271_v18, %v7999_v41 }
 0xd58   : > { %v8444_v60 = vmax.f32 %v8380_v50, 0.0 }
 0xd59   : > { %v8445_v63 = vmax.f32 %v8381_v20, 0.0  ;;  %v8003_v4 = vpop.f32.mrb[194].mxu1 }
 0xd5a   : > { %8508 = vst [vmem:[%s14964_s20 + $0x100] sm:$0xff] %v8444_v60  ;;  %v8382_v29 = vadd.f32 %v8276_v24, %v8003_v4  ;;  %v8005_v12 = vpop.f32.mrb[195].mxu1  ;;  %v8321_v60 = vpop.permute.xlu0 %8320 }
 0xd5b   : > { %8509 = vst [vmem:[%s14964_s20 + $0x108] sm:$0xff] %v8445_v63  ;;  %v8383_v25 = vadd.f32 %v8276_v24, %v8005_v12 }
 0xd5c   : > { %v8446_v46 = vmax.f32 %v8382_v29, 0.0 }
 0xd5d   : > { %v8447_v34 = vmax.f32 %v8383_v25, 0.0  ;;  %v8009_v58 = vpop.f32.mrb[196].mxu1 }
 0xd5e   : > { %8510 = vst [vmem:[%s14964_s20 + $0x110] sm:$0xff] %v8446_v46  ;;  %v8384_v36 = vadd.f32 %v8281_v11, %v8009_v58  ;;  %v8011_v26 = vpop.f32.mrb[197].mxu1  ;;  %v8326_v46 = vpop.permute.xlu1 %8325 }
 0xd5f   : > { %8511 = vst [vmem:[%s14964_s20 + $0x118] sm:$0xff] %v8447_v34  ;;  %v8385_v1 = vadd.f32 %v8281_v11, %v8011_v26 }
 0xd60   : > { %v8448_v2 = vmax.f32 %v8384_v36, 0.0 }
 0xd61   : > { %v8449_v30 = vmax.f32 %v8385_v1, 0.0  ;;  %v8015_v3 = vpop.f32.mrb[198].mxu1 }
 0xd62   : > { %8512 = vst [vmem:[%s14964_s20 + $0x120] sm:$0xff] %v8448_v2  ;;  %v8386_v45 = vadd.f32 %v8286_v44, %v8015_v3  ;;  %v8017_v10 = vpop.f32.mrb[199].mxu1  ;;  %v8331_v2 = vpop.permute.xlu0 %8330 }
 0xd63   : > { %8513 = vst [vmem:[%s14964_s20 + $0x128] sm:$0xff] %v8449_v30  ;;  %v8387_v7 = vadd.f32 %v8286_v44, %v8017_v10 }
 0xd64   : > { %v8450_v14 = vmax.f32 %v8386_v45, 0.0 }
 0xd65   : > { %v8451_v31 = vmax.f32 %v8387_v7, 0.0  ;;  %v8021_v15 = vpop.f32.mrb[200].mxu1 }
 0xd66   : > { %8514 = vst [vmem:[%s14964_s20 + $0x130] sm:$0xff] %v8450_v14  ;;  %v8388_v62 = vadd.f32 %v8291_v55, %v8021_v15  ;;  %v8023_v16 = vpop.f32.mrb[201].mxu1  ;;  %v8336_v14 = vpop.permute.xlu1 %8335 }
 0xd67   : > { %8515 = vst [vmem:[%s14964_s20 + $0x138] sm:$0xff] %v8451_v31  ;;  %v8389_v19 = vadd.f32 %v8291_v55, %v8023_v16 }
 0xd68   : > { %v8452_v5 = vmax.f32 %v8388_v62, 0.0 }
 0xd69   : > { %v8453_v6 = vmax.f32 %v8389_v19, 0.0  ;;  %v8027_v53 = vpop.f32.mrb[202].mxu1 }
 0xd6a   : > { %8516 = vst [vmem:[%s14964_s20 + $0x140] sm:$0xff] %v8452_v5  ;;  %v8390_v52 = vadd.f32 %v8296_v61, %v8027_v53  ;;  %v8029_v33 = vpop.f32.mrb[203].mxu1  ;;  %v8341_v5 = vpop.permute.xlu0 %8340 }
 0xd6b   : > { %8517 = vst [vmem:[%s14964_s20 + $0x148] sm:$0xff] %v8453_v6  ;;  %v8391_v37 = vadd.f32 %v8296_v61, %v8029_v33 }
 0xd6c   : > { %v8454_v0 = vmax.f32 %v8390_v52, 0.0 }
 0xd6d   : > { %v8455_v56 = vmax.f32 %v8391_v37, 0.0  ;;  %v8033_v38 = vpop.f32.mrb[204].mxu1 }
 0xd6e   : > { %8518 = vst [vmem:[%s14964_s20 + $0x150] sm:$0xff] %v8454_v0  ;;  %v8392_v49 = vadd.f32 %v8301_v43, %v8033_v38  ;;  %v8035_v9 = vpop.f32.mrb[205].mxu1  ;;  %v8346_v0 = vpop.permute.xlu1 %8345 }
 0xd6f   : > { %8519 = vst [vmem:[%s14964_s20 + $0x158] sm:$0xff] %v8455_v56  ;;  %v8393_v39 = vadd.f32 %v8301_v43, %v8035_v9 }
 0xd70   : > { %v8456_v21 = vmax.f32 %v8392_v49, 0.0 }
 0xd71   : > { %v8457_v59 = vmax.f32 %v8393_v39, 0.0  ;;  %v8039_v42 = vpop.f32.mrb[206].mxu1 }
 0xd72   : > { %8520 = vst [vmem:[%s14964_s20 + $0x160] sm:$0xff] %v8456_v21  ;;  %v8394_v13 = vadd.f32 %v8306_v28, %v8039_v42  ;;  %v8041_v54 = vpop.f32.mrb[207].mxu1 }
 0xd73   : > { %8521 = vst [vmem:[%s14964_s20 + $0x168] sm:$0xff] %v8457_v59  ;;  %v8395_v47 = vadd.f32 %v8306_v28, %v8041_v54 }
 0xd74   : > { %v8458_v40 = vmax.f32 %v8394_v13, 0.0 }
 0xd75   : > { %v8459_v35 = vmax.f32 %v8395_v47, 0.0  ;;  %v8045_v48 = vpop.f32.mrb[208].mxu1 }
 0xd76   : > { %8522 = vst [vmem:[%s14964_s20 + $0x170] sm:$0xff] %v8458_v40  ;;  %v8396_v17 = vadd.f32 %v8311_v57, %v8045_v48  ;;  %v8047_v32 = vpop.f32.mrb[209].mxu1 }
 0xd77   : > { %8523 = vst [vmem:[%s14964_s20 + $0x178] sm:$0xff] %v8459_v35  ;;  %v8397_v51 = vadd.f32 %v8311_v57, %v8047_v32 }
 0xd78   : > { %v8460_v23 = vmax.f32 %v8396_v17, 0.0 }
 0xd79   : > { %v8461_v18 = vmax.f32 %v8397_v51, 0.0  ;;  %v8051_v27 = vpop.f32.mrb[210].mxu1 }
 0xd7a   : > { %8524 = vst [vmem:[%s14964_s20 + $0x180] sm:$0xff] %v8460_v23  ;;  %v8398_v8 = vadd.f32 %v8316_v22, %v8051_v27  ;;  %v8053_v50 = vpop.f32.mrb[211].mxu1 }
 0xd7b   : > { %8525 = vst [vmem:[%s14964_s20 + $0x188] sm:$0xff] %v8461_v18  ;;  %v8399_v41 = vadd.f32 %v8316_v22, %v8053_v50 }
 0xd7c   : > { %v8462_v20 = vmax.f32 %v8398_v8, 0.0 }
 0xd7d   : > { %v8463_v24 = vmax.f32 %v8399_v41, 0.0  ;;  %v8057_v63 = vpop.f32.mrb[212].mxu1 }
 0xd7e   : > { %8526 = vst [vmem:[%s14964_s20 + $0x190] sm:$0xff] %v8462_v20  ;;  %v8400_v4 = vadd.f32 %v8321_v60, %v8057_v63  ;;  %v8059_v29 = vpop.f32.mrb[213].mxu1 }
 0xd7f   : > { %8527 = vst [vmem:[%s14964_s20 + $0x198] sm:$0xff] %v8463_v24  ;;  %v8401_v12 = vadd.f32 %v8321_v60, %v8059_v29 }
 0xd80   : > { %v8464_v25 = vmax.f32 %v8400_v4, 0.0 }
 0xd81   : > { %v8465_v11 = vmax.f32 %v8401_v12, 0.0  ;;  %v8063_v34 = vpop.f32.mrb[214].mxu1 }
 0xd82   : > { %8528 = vst [vmem:[%s14964_s20 + $0x1a0] sm:$0xff] %v8464_v25  ;;  %v8402_v58 = vadd.f32 %v8326_v46, %v8063_v34  ;;  %v8065_v36 = vpop.f32.mrb[215].mxu1 }
 0xd83   : > { %8529 = vst [vmem:[%s14964_s20 + $0x1a8] sm:$0xff] %v8465_v11  ;;  %v8403_v26 = vadd.f32 %v8326_v46, %v8065_v36 }
 0xd84   : > { %v8466_v1 = vmax.f32 %v8402_v58, 0.0 }
 0xd85   : > { %v8467_v44 = vmax.f32 %v8403_v26, 0.0  ;;  %v8069_v30 = vpop.f32.mrb[216].mxu1 }
 0xd86   : > { %8530 = vst [vmem:[%s14964_s20 + $0x1b0] sm:$0xff] %v8466_v1  ;;  %v8404_v3 = vadd.f32 %v8331_v2, %v8069_v30  ;;  %v8071_v45 = vpop.f32.mrb[217].mxu1 }
 0xd87   : > { %8531 = vst [vmem:[%s14964_s20 + $0x1b8] sm:$0xff] %v8467_v44  ;;  %v8405_v10 = vadd.f32 %v8331_v2, %v8071_v45 }
 0xd88   : > { %v8468_v7 = vmax.f32 %v8404_v3, 0.0 }
 0xd89   : > { %v8469_v55 = vmax.f32 %v8405_v10, 0.0  ;;  %v8075_v31 = vpop.f32.mrb[218].mxu1 }
 0xd8a   : > { %8532 = vst [vmem:[%s14964_s20 + $0x1c0] sm:$0xff] %v8468_v7  ;;  %v8406_v15 = vadd.f32 %v8336_v14, %v8075_v31  ;;  %v8077_v62 = vpop.f32.mrb[219].mxu1 }
 0xd8b   : > { %8533 = vst [vmem:[%s14964_s20 + $0x1c8] sm:$0xff] %v8469_v55  ;;  %v8407_v16 = vadd.f32 %v8336_v14, %v8077_v62 }
 0xd8c   : > { %v8470_v19 = vmax.f32 %v8406_v15, 0.0 }
 0xd8d   : > { %v8471_v61 = vmax.f32 %v8407_v16, 0.0  ;;  %v8081_v6 = vpop.f32.mrb[220].mxu1 }
 0xd8e   : > { %8534 = vst [vmem:[%s14964_s20 + $0x1d0] sm:$0xff] %v8470_v19  ;;  %v8408_v53 = vadd.f32 %v8341_v5, %v8081_v6  ;;  %v8083_v52 = vpop.f32.mrb[221].mxu1 }
 0xd8f   : > { %8535 = vst [vmem:[%s14964_s20 + $0x1d8] sm:$0xff] %v8471_v61  ;;  %v8409_v33 = vadd.f32 %v8341_v5, %v8083_v52 }
 0xd90   : > { %v8472_v37 = vmax.f32 %v8408_v53, 0.0 }
 0xd91   : > { %v8473_v43 = vmax.f32 %v8409_v33, 0.0  ;;  %v8087_v56 = vpop.f32.mrb[222].mxu1 }
 0xd92   : > { %8536 = vst [vmem:[%s14964_s20 + $0x1e0] sm:$0xff] %v8472_v37  ;;  %v8410_v38 = vadd.f32 %v8346_v0, %v8087_v56  ;;  %v8089_v49 = vpop.f32.mrb[223].mxu1 }
 0xd93   : > { %8537 = vst [vmem:[%s14964_s20 + $0x1e8] sm:$0xff] %v8473_v43  ;;  %v8411_v9 = vadd.f32 %v8346_v0, %v8089_v49 }
 0xd94   : > { %v8474_v39 = vmax.f32 %v8410_v38, 0.0 }
 0xd95   : > { %v8475_v21 = vmax.f32 %v8411_v9, 0.0 }
 0xd96   : > { %8538 = vst [vmem:[%s14964_s20 + $0x1f0] sm:$0xff] %v8474_v39 }
 0xd97   : > { %8539 = vst [vmem:[%s14964_s20 + $0x1f8] sm:$0xff] %v8475_v21 }
 0xd98   : > { %10607 = shalt.err (!%p10604_p3)
}
 0xd99   : > { %s10608_s17 = scalar_lea.hbm %s15033_s3, 8192  ;;  %s10612_s23 = scalar_lea.hbm %s15095_s13, 16384 }
 0xd9a   : > { %p10609_p4 = scmp.ne.s32.totalorder %s15033_s3, %s10608_s17  ;;  %p10613_p9 = scmp.lt.u32.totalorder %s15033_s3, %s15095_s13 }
 0xd9b   : > { %p10614_p10 = scmp.lt.u32.totalorder %s10612_s23, %s10608_s17  ;;  %p10616_p12 = scmp.lt.u32.totalorder %s10608_s17, %s15033_s3 }
 0xd9c   : > { %p10610_p7 = pnand %p10609_p4, %p10772_p5 }
 0xd9d   : > { %p10615_p11 = por %p10614_p10, %p10613_p9 }
 0xd9e   : > { %p10611_p8 = pneg %p10610_p7 }
 0xd9f   : > { %p10617_p13 = por %p10616_p12, %p10615_p11 }
 0xda1   : > { %p10618_p0 = pnand %p10617_p13, %p10611_p8 }
 0xda3   : > { %10621 = shalt.err (!%p10618_p0)
}
 0xda4   : > { %s10662_s30 = smov 256   ;;  %s10663_s0 = smov 16  }
 0xda5   : > { %10548 = dma.vmem_to_hbm [thread:$0]  (%p10772_p5), %s15035_s22, 8192, %s15033_s3, %s15041_s29, %s10662_s30, %s10662_s30, %s10663_s0  }
 0xda6 PF: > { %p10554_p1 = scmp.ge.s32.totalorder %s10656_s28, 2  ;;  %s8569_s16 = sand.u32 1, %s10644_s25  }
 0xda7   : > { %s8570_s17 = scalar_lea.sflag [#allocation3], %s8569_s16 }
 0xda8   : > { %p10551_p2 = pnand %p10554_p1, %p10776_p6 }
 0xdaa   : > { %10639 = dma.done.wait (!%p10551_p2), %s8570_s17, 8192  }
 0xdab   : > { %10641 = vsyncadd (!%p10551_p2), %s8570_s17, 4294959104  ;;  %s15132_s20 = sld [smem:[#allocation5_spill]]  ;;  %p23_p3 = scmp.ge.s32.totalorder %s10759_s14, 4  }
 0xdac   : > { %s15133_s25 = smov %s10648_s26  ;;  %s15134_s26 = smov %s10652_s27 }
 0xdad   : > { %s15136_s28 = smov %s10759_s14  ;;  %25 = sbr.rel (!%p23_p3) target bundleno = 6 (0x6), region = 115 }
 0xdb1   : > { %s15135_s27 = smov %s15132_s20 }
 0xdb4   :  { %8575 = vsyncpa [#allocation3], 1 }
 0xdb5   :  { %8577 = vsyncpa [#allocation3 + $0x1], 1 }

</bundles_post_ra>
